<compile_context>
chip_gen: v7x
topology: tpu7x:2x2x1
jax: 0.10.0
libtpu: 0.0.40
codegen_flags: <defaults>
</compile_context>

<pallas_src>
import numpy as np
import jax
import jax.numpy as jnp
from jax.experimental import pallas as pl
from jax.experimental.pallas import tpu as pltpu


# --------------------- host-side geometry / constants -----------------------

def _reflect(i, n):
    if i < 0:
        return -i
    if i >= n:
        return 2 * (n - 1) - i
    return i


def _out_size(h, stride):
    # ReflectionPad2d(2) -> h+4, then k=4 / stride conv: floor(h/stride)+1
    return h // stride + 1


def _round8(x):
    return (x + 7) // 8 * 8


def _make_selection(h, w, stride):
    """0/1 matrix T of shape (16*P_out_pad, h*w).

    (T @ a)[k*P_out_pad + p, c] == a[q(p, k), c] where q(p, k) is the
    reflection-padded input position used by output position p and kernel
    offset k = dy*4+dx.  Rows with p >= P_out are zero (alignment padding)."""
    ho, wo = _out_size(h, stride), _out_size(w, stride)
    p_out = ho * wo
    p_pad = _round8(p_out)
    t = np.zeros((16 * p_pad, h * w), np.float32)
    for dy in range(4):
        for dx in range(4):
            k = dy * 4 + dx
            for i in range(ho):
                for j in range(wo):
                    r = _reflect(stride * i + dy - 2, h)
                    c = _reflect(stride * j + dx - 2, w)
                    t[k * p_pad + i * wo + j, r * w + c] = 1.0
    return t, p_out, p_pad


def _make_m5(h, w):
    """Final-layer selection: maps the flattened (q, dydx) products to the
    5x5 output row.  Shape (16*h*w, (h+1)*(w+1))."""
    ho, wo = h + 1, w + 1
    m = np.zeros((16 * h * w, ho * wo), np.float32)
    for i in range(ho):
        for j in range(wo):
            for dy in range(4):
                for dx in range(4):
                    r = _reflect(i + dy - 2, h)
                    c = _reflect(j + dx - 2, w)
                    m[(r * w + c) * 16 + dy * 4 + dx, i * wo + j] = 1.0
    return m


def _build_geometry(h0, w0):
    h1, w1 = _out_size(h0, 2), _out_size(w0, 2)   # conv1 (s2)
    h2, w2 = _out_size(h1, 2), _out_size(w1, 2)   # conv2 (s2)
    h3, w3 = _out_size(h2, 2), _out_size(w2, 2)   # conv3 (s2)
    h4, w4 = _out_size(h3, 1), _out_size(w3, 1)   # conv4 (s1)
    h5, w5 = _out_size(h4, 1), _out_size(w4, 1)   # conv5 (s1)
    for hh, ww in ((h0, w0), (h1, w1), (h2, w2), (h3, w3), (h4, w4)):
        if hh < 3 or ww < 3:
            raise ValueError(
                "ReflectionPad2d(2) needs every (intermediate) spatial size "
                ">= 3; input %dx%d is too small." % (h0, w0))
    t2, po2, pp2 = _make_selection(h1, w1, 2)
    t3, po3, pp3 = _make_selection(h2, w2, 2)
    t4, po4, pp4 = _make_selection(h3, w3, 1)
    m5 = _make_m5(h4, w4)
    return dict(h1=h1, w1=w1, h5=h5, w5=w5,
                t2=t2, t3=t3, t4=t4, m5=m5,
                l2=(po2, pp2), l3=(po3, pp3), l4=(po4, pp4))


def _layer1_patches(x_nhwc):
    """ReflectionPad2d(2) + im2col (k=4, s=2) for the tiny 3-channel input."""
    xp = jnp.pad(x_nhwc, ((0, 0), (2, 2), (2, 2), (0, 0)), mode="reflect")
    n, hp, wp, c = xp.shape
    ho = (hp - 4) // 2 + 1
    wo = (wp - 4) // 2 + 1
    cols = [xp[:, dy:dy + 2 * ho:2, dx:dx + 2 * wo:2, :]
            for dy in range(4) for dx in range(4)]
    pt = jnp.stack(cols, axis=3)                       # (N, Ho, Wo, 16, C)
    return pt.reshape(n, ho * wo, 16 * c)              # (N, Ho*Wo, 16*C)


def _prep_constants(params, geom):
    bf16, f32 = jnp.bfloat16, jnp.float32

    def conv_flat(w):                                  # (Co, Ci, 4, 4) -> (16*Ci, Co)
        co, ci = w.shape[0], w.shape[1]
        return jnp.transpose(w, (2, 3, 1, 0)).reshape(16 * ci, co).astype(bf16)

    def row(v):                                        # (C,) -> (1, C) f32
        return jnp.reshape(v, (1, -1)).astype(f32)

    w5 = params["w5"]
    w5w = w5[0].reshape(w5.shape[1], 16).astype(bf16)  # (512, 16), col = dy*4+dx

    return (conv_flat(params["w1"]), row(params["b1"]),
            jnp.asarray(geom["t2"], bf16), conv_flat(params["w2"]),
            row(params["b2"]), row(params["g2"]), row(params["bt2"]),
            jnp.asarray(geom["t3"], bf16), conv_flat(params["w3"]),
            row(params["b3"]), row(params["g3"]), row(params["bt3"]),
            jnp.asarray(geom["t4"], bf16), conv_flat(params["w4"]),
            row(params["b4"]), row(params["g4"]), row(params["bt4"]),
            w5w, jnp.asarray(geom["m5"], f32), row(params["b5"]))


# --------------------------------- kernel -----------------------------------

def _make_kernel(nb, geom):
    bf16, f32 = jnp.bfloat16, jnp.float32
    (po2, pp2), (po3, pp3), (po4, pp4) = geom["l2"], geom["l3"], geom["l4"]

    def _lrelu(y):
        return jnp.maximum(y, 0.2 * y)                 # LeakyReLU(0.2)

    def _inorm(y, g_ref, b_ref, eps=1e-5):
        # per-(sample, channel) stats over spatial rows, biased var, affine
        mean = jnp.mean(y, axis=0, keepdims=True)
        var = jnp.mean(jnp.square(y - mean), axis=0, keepdims=True)
        return (y - mean) * jax.lax.rsqrt(var + eps) * g_ref[...] + b_ref[...]

    def _sel_conv(a, t_ref, w_ref, b_ref, p_pad, p_out):
        # (1) selection matmul: exact 0/1 gather of bf16 activations (MXU)
        sel = jnp.dot(t_ref[...], a.astype(bf16),
                      preferred_element_type=f32).astype(bf16)
        # (2) aligned rearrange of the 16 row blocks into the K (lane) axis
        lhs = jnp.concatenate(
            [sel[k * p_pad:(k + 1) * p_pad, :] for k in range(16)], axis=1)
        # (3) one conv matmul with K = 16*Cin, f32 accumulation, + bias
        y = jnp.dot(lhs, w_ref[...], preferred_element_type=f32) + b_ref[...]
        return y[:p_out, :]

    def kernel(p1_ref, w1_ref, b1_ref,
               t2_ref, w2_ref, b2_ref, g2_ref, bt2_ref,
               t3_ref, w3_ref, b3_ref, g3_ref, bt3_ref,
               t4_ref, w4_ref, b4_ref, g4_ref, bt4_ref,
               w5_ref, m5_ref, b5_ref, o_ref):
        for s in range(nb):
            # layer 1: 3->64, k4 s2 (host-built im2col patches) + LeakyReLU
            a1 = _lrelu(jnp.dot(p1_ref[s].astype(bf16), w1_ref[...],
                                preferred_element_type=f32) + b1_ref[...])
            # layer 2: 64->128, s2 + InstanceNorm + LeakyReLU
            a2 = _lrelu(_inorm(_sel_conv(a1, t2_ref, w2_ref, b2_ref, pp2, po2),
                               g2_ref, bt2_ref))
            # layer 3: 128->256, s2 + InstanceNorm + LeakyReLU
            a3 = _lrelu(_inorm(_sel_conv(a2, t3_ref, w3_ref, b3_ref, pp3, po3),
                               g3_ref, bt3_ref))
            # layer 4: 256->512, s1 + InstanceNorm + LeakyReLU
            a4 = _lrelu(_inorm(_sel_conv(a3, t4_ref, w4_ref, b4_ref, pp4, po4),
                               g4_ref, bt4_ref))
            # layer 5: 512->1, s1 + sigmoid, emitted as a lane-dense (1, P5) row
            z5 = jnp.dot(a4.astype(bf16), w5_ref[...],
                         preferred_element_type=f32)            # (P4, 16)
            z5row = jnp.concatenate(
                [z5[q:q + 1, :] for q in range(po4)], axis=1)   # (1, 16*P4)
            logits = jnp.dot(z5row, m5_ref[...],
                             preferred_element_type=f32) + b5_ref[...]  # (1, P5)
            o_ref[s] = (1.0 / (1.0 + jnp.exp(-logits))).astype(o_ref.dtype)

    return kernel


# ------------------------------ host wrapper --------------------------------

def discriminator_forward(x_nchw, params):
    n, _, h0, w0 = x_nchw.shape
    geom = _build_geometry(h0, w0)
    p1n = geom["h1"] * geom["w1"]
    p5n = geom["h5"] * geom["w5"]

    x = jnp.transpose(x_nchw, (0, 2, 3, 1)).astype(jnp.float32)   # NHWC
    patches = _layer1_patches(x)                                  # (N, P1, 48)
    consts = _prep_constants(params, geom)

    # 2 "parallel" blocks (one per v7x TensorCore); samples inside a block are
    # unrolled so v5e/v6e pay at most two grid steps for any batch size.
    num_blocks = 2 if (n >= 2 and n % 2 == 0) else max(n, 1)
    nb = n // num_blocks

    kernel = _make_kernel(nb, geom)

    in_specs = [pl.BlockSpec((nb, p1n, patches.shape[-1]), lambda i: (i, 0, 0))]
    in_specs += [pl.BlockSpec(c.shape, lambda i: (0, 0)) for c in consts]

    # rough cost hint for XLA's scheduler
    (po2, pp2), (po3, pp3), (po4, pp4) = geom["l2"], geom["l3"], geom["l4"]
    flops = 2 * p1n * patches.shape[-1] * 64
    for pin_, pp, ci, co in ((p1n, pp2, 64, 128),
                             (po2, pp3, 128, 256),
                             (po3, pp4, 256, 512)):
        flops += 2 * 16 * pp * pin_ * ci + 2 * pp * 16 * ci * co
    flops += 2 * po4 * 512 * 16 + 2 * 16 * po4 * p5n
    bytes_consts = sum(int(c.size) * c.dtype.itemsize for c in consts)
    cost = pl.CostEstimate(
        flops=int(n * flops),
        transcendentals=int(n * (128 + 256 + 512 + p5n)),
        bytes_accessed=int(bytes_consts + patches.size * 4 + n * p5n * 4))

    out = pl.pallas_call(
        kernel,
        out_shape=jax.ShapeDtypeStruct((n, 1, p5n), jnp.float32),
        grid_spec=pltpu.PrefetchScalarGridSpec(
            num_scalar_prefetch=0,
            grid=(num_blocks,),
            in_specs=in_specs,
            out_specs=pl.BlockSpec((nb, 1, p5n), lambda i: (i, 0, 0)),
        ),
        compiler_params=pltpu.CompilerParams(
            dimension_semantics=("parallel",),
            vmem_limit_bytes=32 * 1024 * 1024),
        cost_estimate=cost,
    )(patches, *consts)

    # lane-dense (N, 1, P5) -> NCHW (N, 1, H5, W5)
    return out.reshape(n, 1, geom["h5"], geom["w5"])


def init_params(key):
    """Deterministic synthetic parameters matching the module's shapes."""
    ks = jax.random.split(key, 5)

    def conv_w(k, co, ci, ksz):
        return 0.02 * jax.random.normal(k, (co, ci, ksz, ksz), jnp.float32)

    return {
        "w1": conv_w(ks[0], 64, 3, 4),    "b1": jnp.zeros((64,), jnp.float32),
        "w2": conv_w(ks[1], 128, 64, 4),  "b2": jnp.zeros((128,), jnp.float32),
        "g2": jnp.ones((128,), jnp.float32), "bt2": jnp.zeros((128,), jnp.float32),
        "w3": conv_w(ks[2], 256, 128, 4), "b3": jnp.zeros((256,), jnp.float32),
        "g3": jnp.ones((256,), jnp.float32), "bt3": jnp.zeros((256,), jnp.float32),
        "w4": conv_w(ks[3], 512, 256, 4), "b4": jnp.zeros((512,), jnp.float32),
        "g4": jnp.ones((512,), jnp.float32), "bt4": jnp.zeros((512,), jnp.float32),
        "w5": conv_w(ks[4], 1, 512, 4),   "b5": jnp.zeros((1,), jnp.float32),
    }


if __name__ == "__main__":
    key = jax.random.PRNGKey(0)
    k_x, k_p = jax.random.split(key)
    # Small shapes consistent with the module: batch=2, 3 input channels, 16x16.
    x = jax.random.normal(k_x, (2, 3, 16, 16), jnp.float32)
    params = init_params(k_p)

    fwd = jax.jit(discriminator_forward)
    out = fwd(x, params)
    jax.block_until_ready(out)
    assert out.shape == (2, 1, 5, 5), out.shape
    assert bool(jnp.all(jnp.isfinite(out)))
    print("KERNEL_OK")
</pallas_src>

<mosaic_0001>
module attributes {stable_mosaic.version = 11 : i64} {
  func.func @kernel(%arg0: i32, %arg1: memref<1x81x48xf32, #tpu.memory_space<vmem>>, %arg2: memref<48x64xbf16, #tpu.memory_space<vmem>>, %arg3: memref<1x64xf32, #tpu.memory_space<vmem>>, %arg4: memref<512x81xbf16, #tpu.memory_space<vmem>>, %arg5: memref<1024x128xbf16, #tpu.memory_space<vmem>>, %arg6: memref<1x128xf32, #tpu.memory_space<vmem>>, %arg7: memref<1x128xf32, #tpu.memory_space<vmem>>, %arg8: memref<1x128xf32, #tpu.memory_space<vmem>>, %arg9: memref<256x25xbf16, #tpu.memory_space<vmem>>, %arg10: memref<2048x256xbf16, #tpu.memory_space<vmem>>, %arg11: memref<1x256xf32, #tpu.memory_space<vmem>>, %arg12: memref<1x256xf32, #tpu.memory_space<vmem>>, %arg13: memref<1x256xf32, #tpu.memory_space<vmem>>, %arg14: memref<256x9xbf16, #tpu.memory_space<vmem>>, %arg15: memref<4096x512xbf16, #tpu.memory_space<vmem>>, %arg16: memref<1x512xf32, #tpu.memory_space<vmem>>, %arg17: memref<1x512xf32, #tpu.memory_space<vmem>>, %arg18: memref<1x512xf32, #tpu.memory_space<vmem>>, %arg19: memref<512x16xbf16, #tpu.memory_space<vmem>>, %arg20: memref<256x25xf32, #tpu.memory_space<vmem>>, %arg21: memref<1x1xf32, #tpu.memory_space<vmem>>, %arg22: memref<1x1x25xf32, #tpu.memory_space<vmem>>) attributes {dimension_semantics = [#tpu.dimension_semantics<parallel>], iteration_bounds = array<i64: 2>, scalar_prefetch = 0 : i64, scratch_operands = 0 : i64, tpu.core_type = #tpu.core_type<tc>, window_params = [{transform_indices = @transform_0, window_bounds = array<i64: 1, 81, 48>}, {pipeline_mode = #tpu.pipeline_mode<synchronous>, transform_indices = @transform_1, window_bounds = array<i64: 48, 64>}, {pipeline_mode = #tpu.pipeline_mode<synchronous>, transform_indices = @transform_2, window_bounds = array<i64: 1, 64>}, {pipeline_mode = #tpu.pipeline_mode<synchronous>, transform_indices = @transform_3, window_bounds = array<i64: 512, 81>}, {pipeline_mode = #tpu.pipeline_mode<synchronous>, transform_indices = @transform_4, window_bounds = array<i64: 1024, 128>}, {pipeline_mode = #tpu.pipeline_mode<synchronous>, transform_indices = @transform_5, window_bounds = array<i64: 1, 128>}, {pipeline_mode = #tpu.pipeline_mode<synchronous>, transform_indices = @transform_6, window_bounds = array<i64: 1, 128>}, {pipeline_mode = #tpu.pipeline_mode<synchronous>, transform_indices = @transform_7, window_bounds = array<i64: 1, 128>}, {pipeline_mode = #tpu.pipeline_mode<synchronous>, transform_indices = @transform_8, window_bounds = array<i64: 256, 25>}, {pipeline_mode = #tpu.pipeline_mode<synchronous>, transform_indices = @transform_9, window_bounds = array<i64: 2048, 256>}, {pipeline_mode = #tpu.pipeline_mode<synchronous>, transform_indices = @transform_10, window_bounds = array<i64: 1, 256>}, {pipeline_mode = #tpu.pipeline_mode<synchronous>, transform_indices = @transform_11, window_bounds = array<i64: 1, 256>}, {pipeline_mode = #tpu.pipeline_mode<synchronous>, transform_indices = @transform_12, window_bounds = array<i64: 1, 256>}, {pipeline_mode = #tpu.pipeline_mode<synchronous>, transform_indices = @transform_13, window_bounds = array<i64: 256, 9>}, {pipeline_mode = #tpu.pipeline_mode<synchronous>, transform_indices = @transform_14, window_bounds = array<i64: 4096, 512>}, {pipeline_mode = #tpu.pipeline_mode<synchronous>, transform_indices = @transform_15, window_bounds = array<i64: 1, 512>}, {pipeline_mode = #tpu.pipeline_mode<synchronous>, transform_indices = @transform_16, window_bounds = array<i64: 1, 512>}, {pipeline_mode = #tpu.pipeline_mode<synchronous>, transform_indices = @transform_17, window_bounds = array<i64: 1, 512>}, {pipeline_mode = #tpu.pipeline_mode<synchronous>, transform_indices = @transform_18, window_bounds = array<i64: 512, 16>}, {pipeline_mode = #tpu.pipeline_mode<synchronous>, transform_indices = @transform_19, window_bounds = array<i64: 256, 25>}, {pipeline_mode = #tpu.pipeline_mode<synchronous>, transform_indices = @transform_20, window_bounds = array<i64: 1, 1>}, {transform_indices = @transform_21, window_bounds = array<i64: 1, 1, 25>}]} {
    %c0 = arith.constant 0 : index
    %c0_0 = arith.constant 0 : index
    %c0_1 = arith.constant 0 : index
    %0 = vector.load %arg1[%c0, %c0_0, %c0_1] : memref<1x81x48xf32, #tpu.memory_space<vmem>>, vector<1x81x48xf32>
    %1 = vector.shape_cast %0 : vector<1x81x48xf32> to vector<81x48xf32>
    %2 = arith.truncf %1 : vector<81x48xf32> to vector<81x48xbf16>
    %c0_2 = arith.constant 0 : index
    %c0_3 = arith.constant 0 : index
    %3 = vector.load %arg2[%c0_2, %c0_3] : memref<48x64xbf16, #tpu.memory_space<vmem>>, vector<48x64xbf16>
    %cst = arith.constant dense<0.000000e+00> : vector<81x64xf32>
    %4 = tpu.matmul %2, %3, %cst {dimension_numbers = #tpu.dot_dimension_numbers<[1], [0], [0], [1], [0, 0, 1, 1], [], []>} : vector<81x48xbf16>, vector<48x64xbf16>, vector<81x64xf32> -> vector<81x64xf32>
    %c0_4 = arith.constant 0 : index
    %c0_5 = arith.constant 0 : index
    %5 = vector.load %arg3[%c0_4, %c0_5] : memref<1x64xf32, #tpu.memory_space<vmem>>, vector<1x64xf32>
    %6 = vector.broadcast %5 : vector<1x64xf32> to vector<81x64xf32>
    %7 = arith.addf %4, %6 : vector<81x64xf32>
    %cst_6 = arith.constant 2.000000e-01 : f32
    %8 = vector.broadcast %cst_6 : f32 to vector<81x64xf32>
    %9 = arith.mulf %8, %7 : vector<81x64xf32>
    %10 = arith.maximumf %7, %9 : vector<81x64xf32>
    %c0_7 = arith.constant 0 : index
    %c0_8 = arith.constant 0 : index
    %11 = vector.load %arg4[%c0_7, %c0_8] : memref<512x81xbf16, #tpu.memory_space<vmem>>, vector<512x81xbf16>
    %12 = arith.truncf %10 : vector<81x64xf32> to vector<81x64xbf16>
    %cst_9 = arith.constant dense<0.000000e+00> : vector<512x64xf32>
    %13 = tpu.matmul %11, %12, %cst_9 {dimension_numbers = #tpu.dot_dimension_numbers<[1], [0], [0], [1], [0, 0, 1, 1], [], []>} : vector<512x81xbf16>, vector<81x64xbf16>, vector<512x64xf32> -> vector<512x64xf32>
    %14 = arith.truncf %13 : vector<512x64xf32> to vector<512x64xbf16>
    %15 = vector.extract_strided_slice %14 {offsets = [0, 0], sizes = [32, 64], strides = [1, 1]} : vector<512x64xbf16> to vector<32x64xbf16>
    %16 = vector.extract_strided_slice %14 {offsets = [32, 0], sizes = [32, 64], strides = [1, 1]} : vector<512x64xbf16> to vector<32x64xbf16>
    %17 = vector.extract_strided_slice %14 {offsets = [64, 0], sizes = [32, 64], strides = [1, 1]} : vector<512x64xbf16> to vector<32x64xbf16>
    %18 = vector.extract_strided_slice %14 {offsets = [96, 0], sizes = [32, 64], strides = [1, 1]} : vector<512x64xbf16> to vector<32x64xbf16>
    %19 = vector.extract_strided_slice %14 {offsets = [128, 0], sizes = [32, 64], strides = [1, 1]} : vector<512x64xbf16> to vector<32x64xbf16>
    %20 = vector.extract_strided_slice %14 {offsets = [160, 0], sizes = [32, 64], strides = [1, 1]} : vector<512x64xbf16> to vector<32x64xbf16>
    %21 = vector.extract_strided_slice %14 {offsets = [192, 0], sizes = [32, 64], strides = [1, 1]} : vector<512x64xbf16> to vector<32x64xbf16>
    %22 = vector.extract_strided_slice %14 {offsets = [224, 0], sizes = [32, 64], strides = [1, 1]} : vector<512x64xbf16> to vector<32x64xbf16>
    %23 = vector.extract_strided_slice %14 {offsets = [256, 0], sizes = [32, 64], strides = [1, 1]} : vector<512x64xbf16> to vector<32x64xbf16>
    %24 = vector.extract_strided_slice %14 {offsets = [288, 0], sizes = [32, 64], strides = [1, 1]} : vector<512x64xbf16> to vector<32x64xbf16>
    %25 = vector.extract_strided_slice %14 {offsets = [320, 0], sizes = [32, 64], strides = [1, 1]} : vector<512x64xbf16> to vector<32x64xbf16>
    %26 = vector.extract_strided_slice %14 {offsets = [352, 0], sizes = [32, 64], strides = [1, 1]} : vector<512x64xbf16> to vector<32x64xbf16>
    %27 = vector.extract_strided_slice %14 {offsets = [384, 0], sizes = [32, 64], strides = [1, 1]} : vector<512x64xbf16> to vector<32x64xbf16>
    %28 = vector.extract_strided_slice %14 {offsets = [416, 0], sizes = [32, 64], strides = [1, 1]} : vector<512x64xbf16> to vector<32x64xbf16>
    %29 = vector.extract_strided_slice %14 {offsets = [448, 0], sizes = [32, 64], strides = [1, 1]} : vector<512x64xbf16> to vector<32x64xbf16>
    %30 = vector.extract_strided_slice %14 {offsets = [480, 0], sizes = [32, 64], strides = [1, 1]} : vector<512x64xbf16> to vector<32x64xbf16>
    %31 = tpu.concatenate %15, %16, %17, %18, %19, %20, %21, %22, %23, %24, %25, %26, %27, %28, %29, %30 in 1 : vector<32x64xbf16>, vector<32x64xbf16>, vector<32x64xbf16>, vector<32x64xbf16>, vector<32x64xbf16>, vector<32x64xbf16>, vector<32x64xbf16>, vector<32x64xbf16>, vector<32x64xbf16>, vector<32x64xbf16>, vector<32x64xbf16>, vector<32x64xbf16>, vector<32x64xbf16>, vector<32x64xbf16>, vector<32x64xbf16>, vector<32x64xbf16> -> vector<32x1024xbf16>
    %c0_10 = arith.constant 0 : index
    %c0_11 = arith.constant 0 : index
    %32 = vector.load %arg5[%c0_10, %c0_11] : memref<1024x128xbf16, #tpu.memory_space<vmem>>, vector<1024x128xbf16>
    %cst_12 = arith.constant dense<0.000000e+00> : vector<32x128xf32>
    %33 = tpu.matmul %31, %32, %cst_12 {dimension_numbers = #tpu.dot_dimension_numbers<[1], [0], [0], [1], [0, 0, 1, 1], [], []>} : vector<32x1024xbf16>, vector<1024x128xbf16>, vector<32x128xf32> -> vector<32x128xf32>
    %c0_13 = arith.constant 0 : index
    %c0_14 = arith.constant 0 : index
    %34 = vector.load %arg6[%c0_13, %c0_14] : memref<1x128xf32, #tpu.memory_space<vmem>>, vector<1x128xf32>
    %35 = vector.broadcast %34 : vector<1x128xf32> to vector<32x128xf32>
    %36 = arith.addf %33, %35 : vector<32x128xf32>
    %37 = vector.extract_strided_slice %36 {offsets = [0, 0], sizes = [25, 128], strides = [1, 1]} : vector<32x128xf32> to vector<25x128xf32>
    %cst_15 = arith.constant dense<0.000000e+00> : vector<128xf32>
    %38 = vector.multi_reduction <add>, %37, %cst_15 [0] : vector<25x128xf32> to vector<128xf32>
    %39 = vector.shape_cast %38 : vector<128xf32> to vector<1x128xf32>
    %cst_16 = arith.constant 2.500000e+01 : f32
    %40 = vector.broadcast %cst_16 : f32 to vector<1x128xf32>
    %41 = arith.divf %39, %40 : vector<1x128xf32>
    %42 = vector.broadcast %41 : vector<1x128xf32> to vector<25x128xf32>
    %43 = arith.subf %37, %42 : vector<25x128xf32>
    %44 = arith.mulf %43, %43 : vector<25x128xf32>
    %cst_17 = arith.constant dense<0.000000e+00> : vector<128xf32>
    %45 = vector.multi_reduction <add>, %44, %cst_17 [0] : vector<25x128xf32> to vector<128xf32>
    %46 = vector.shape_cast %45 : vector<128xf32> to vector<1x128xf32>
    %cst_18 = arith.constant 2.500000e+01 : f32
    %47 = vector.broadcast %cst_18 : f32 to vector<1x128xf32>
    %48 = arith.divf %46, %47 : vector<1x128xf32>
    %49 = vector.broadcast %41 : vector<1x128xf32> to vector<25x128xf32>
    %50 = arith.subf %37, %49 : vector<25x128xf32>
    %cst_19 = arith.constant 9.99999974E-6 : f32
    %51 = vector.broadcast %cst_19 : f32 to vector<1x128xf32>
    %52 = arith.addf %48, %51 : vector<1x128xf32>
    %53 = math.rsqrt %52 : vector<1x128xf32>
    %54 = vector.broadcast %53 : vector<1x128xf32> to vector<25x128xf32>
    %55 = arith.mulf %50, %54 : vector<25x128xf32>
    %c0_20 = arith.constant 0 : index
    %c0_21 = arith.constant 0 : index
    %56 = vector.load %arg7[%c0_20, %c0_21] : memref<1x128xf32, #tpu.memory_space<vmem>>, vector<1x128xf32>
    %57 = vector.broadcast %56 : vector<1x128xf32> to vector<25x128xf32>
    %58 = arith.mulf %55, %57 : vector<25x128xf32>
    %c0_22 = arith.constant 0 : index
    %c0_23 = arith.constant 0 : index
    %59 = vector.load %arg8[%c0_22, %c0_23] : memref<1x128xf32, #tpu.memory_space<vmem>>, vector<1x128xf32>
    %60 = vector.broadcast %59 : vector<1x128xf32> to vector<25x128xf32>
    %61 = arith.addf %58, %60 : vector<25x128xf32>
    %cst_24 = arith.constant 2.000000e-01 : f32
    %62 = vector.broadcast %cst_24 : f32 to vector<25x128xf32>
    %63 = arith.mulf %62, %61 : vector<25x128xf32>
    %64 = arith.maximumf %61, %63 : vector<25x128xf32>
    %c0_25 = arith.constant 0 : index
    %c0_26 = arith.constant 0 : index
    %65 = vector.load %arg9[%c0_25, %c0_26] : memref<256x25xbf16, #tpu.memory_space<vmem>>, vector<256x25xbf16>
    %66 = arith.truncf %64 : vector<25x128xf32> to vector<25x128xbf16>
    %cst_27 = arith.constant dense<0.000000e+00> : vector<256x128xf32>
    %67 = tpu.matmul %65, %66, %cst_27 {dimension_numbers = #tpu.dot_dimension_numbers<[1], [0], [0], [1], [0, 0, 1, 1], [], []>} : vector<256x25xbf16>, vector<25x128xbf16>, vector<256x128xf32> -> vector<256x128xf32>
    %68 = arith.truncf %67 : vector<256x128xf32> to vector<256x128xbf16>
    %69 = vector.extract_strided_slice %68 {offsets = [0, 0], sizes = [16, 128], strides = [1, 1]} : vector<256x128xbf16> to vector<16x128xbf16>
    %70 = vector.extract_strided_slice %68 {offsets = [16, 0], sizes = [16, 128], strides = [1, 1]} : vector<256x128xbf16> to vector<16x128xbf16>
    %71 = vector.extract_strided_slice %68 {offsets = [32, 0], sizes = [16, 128], strides = [1, 1]} : vector<256x128xbf16> to vector<16x128xbf16>
    %72 = vector.extract_strided_slice %68 {offsets = [48, 0], sizes = [16, 128], strides = [1, 1]} : vector<256x128xbf16> to vector<16x128xbf16>
    %73 = vector.extract_strided_slice %68 {offsets = [64, 0], sizes = [16, 128], strides = [1, 1]} : vector<256x128xbf16> to vector<16x128xbf16>
    %74 = vector.extract_strided_slice %68 {offsets = [80, 0], sizes = [16, 128], strides = [1, 1]} : vector<256x128xbf16> to vector<16x128xbf16>
    %75 = vector.extract_strided_slice %68 {offsets = [96, 0], sizes = [16, 128], strides = [1, 1]} : vector<256x128xbf16> to vector<16x128xbf16>
    %76 = vector.extract_strided_slice %68 {offsets = [112, 0], sizes = [16, 128], strides = [1, 1]} : vector<256x128xbf16> to vector<16x128xbf16>
    %77 = vector.extract_strided_slice %68 {offsets = [128, 0], sizes = [16, 128], strides = [1, 1]} : vector<256x128xbf16> to vector<16x128xbf16>
    %78 = vector.extract_strided_slice %68 {offsets = [144, 0], sizes = [16, 128], strides = [1, 1]} : vector<256x128xbf16> to vector<16x128xbf16>
    %79 = vector.extract_strided_slice %68 {offsets = [160, 0], sizes = [16, 128], strides = [1, 1]} : vector<256x128xbf16> to vector<16x128xbf16>
    %80 = vector.extract_strided_slice %68 {offsets = [176, 0], sizes = [16, 128], strides = [1, 1]} : vector<256x128xbf16> to vector<16x128xbf16>
    %81 = vector.extract_strided_slice %68 {offsets = [192, 0], sizes = [16, 128], strides = [1, 1]} : vector<256x128xbf16> to vector<16x128xbf16>
    %82 = vector.extract_strided_slice %68 {offsets = [208, 0], sizes = [16, 128], strides = [1, 1]} : vector<256x128xbf16> to vector<16x128xbf16>
    %83 = vector.extract_strided_slice %68 {offsets = [224, 0], sizes = [16, 128], strides = [1, 1]} : vector<256x128xbf16> to vector<16x128xbf16>
    %84 = vector.extract_strided_slice %68 {offsets = [240, 0], sizes = [16, 128], strides = [1, 1]} : vector<256x128xbf16> to vector<16x128xbf16>
    %85 = tpu.concatenate %69, %70, %71, %72, %73, %74, %75, %76, %77, %78, %79, %80, %81, %82, %83, %84 in 1 : vector<16x128xbf16>, vector<16x128xbf16>, vector<16x128xbf16>, vector<16x128xbf16>, vector<16x128xbf16>, vector<16x128xbf16>, vector<16x128xbf16>, vector<16x128xbf16>, vector<16x128xbf16>, vector<16x128xbf16>, vector<16x128xbf16>, vector<16x128xbf16>, vector<16x128xbf16>, vector<16x128xbf16>, vector<16x128xbf16>, vector<16x128xbf16> -> vector<16x2048xbf16>
    %c0_28 = arith.constant 0 : index
    %c0_29 = arith.constant 0 : index
    %86 = vector.load %arg10[%c0_28, %c0_29] : memref<2048x256xbf16, #tpu.memory_space<vmem>>, vector<2048x256xbf16>
    %cst_30 = arith.constant dense<0.000000e+00> : vector<16x256xf32>
    %87 = tpu.matmul %85, %86, %cst_30 {dimension_numbers = #tpu.dot_dimension_numbers<[1], [0], [0], [1], [0, 0, 1, 1], [], []>} : vector<16x2048xbf16>, vector<2048x256xbf16>, vector<16x256xf32> -> vector<16x256xf32>
    %c0_31 = arith.constant 0 : index
    %c0_32 = arith.constant 0 : index
    %88 = vector.load %arg11[%c0_31, %c0_32] : memref<1x256xf32, #tpu.memory_space<vmem>>, vector<1x256xf32>
    %89 = vector.broadcast %88 : vector<1x256xf32> to vector<16x256xf32>
    %90 = arith.addf %87, %89 : vector<16x256xf32>
    %91 = vector.extract_strided_slice %90 {offsets = [0, 0], sizes = [9, 256], strides = [1, 1]} : vector<16x256xf32> to vector<9x256xf32>
    %cst_33 = arith.constant dense<0.000000e+00> : vector<256xf32>
    %92 = vector.multi_reduction <add>, %91, %cst_33 [0] : vector<9x256xf32> to vector<256xf32>
    %93 = vector.shape_cast %92 : vector<256xf32> to vector<1x256xf32>
    %cst_34 = arith.constant 9.000000e+00 : f32
    %94 = vector.broadcast %cst_34 : f32 to vector<1x256xf32>
    %95 = arith.divf %93, %94 : vector<1x256xf32>
    %96 = vector.broadcast %95 : vector<1x256xf32> to vector<9x256xf32>
    %97 = arith.subf %91, %96 : vector<9x256xf32>
    %98 = arith.mulf %97, %97 : vector<9x256xf32>
    %cst_35 = arith.constant dense<0.000000e+00> : vector<256xf32>
    %99 = vector.multi_reduction <add>, %98, %cst_35 [0] : vector<9x256xf32> to vector<256xf32>
    %100 = vector.shape_cast %99 : vector<256xf32> to vector<1x256xf32>
    %cst_36 = arith.constant 9.000000e+00 : f32
    %101 = vector.broadcast %cst_36 : f32 to vector<1x256xf32>
    %102 = arith.divf %100, %101 : vector<1x256xf32>
    %103 = vector.broadcast %95 : vector<1x256xf32> to vector<9x256xf32>
    %104 = arith.subf %91, %103 : vector<9x256xf32>
    %cst_37 = arith.constant 9.99999974E-6 : f32
    %105 = vector.broadcast %cst_37 : f32 to vector<1x256xf32>
    %106 = arith.addf %102, %105 : vector<1x256xf32>
    %107 = math.rsqrt %106 : vector<1x256xf32>
    %108 = vector.broadcast %107 : vector<1x256xf32> to vector<9x256xf32>
    %109 = arith.mulf %104, %108 : vector<9x256xf32>
    %c0_38 = arith.constant 0 : index
    %c0_39 = arith.constant 0 : index
    %110 = vector.load %arg12[%c0_38, %c0_39] : memref<1x256xf32, #tpu.memory_space<vmem>>, vector<1x256xf32>
    %111 = vector.broadcast %110 : vector<1x256xf32> to vector<9x256xf32>
    %112 = arith.mulf %109, %111 : vector<9x256xf32>
    %c0_40 = arith.constant 0 : index
    %c0_41 = arith.constant 0 : index
    %113 = vector.load %arg13[%c0_40, %c0_41] : memref<1x256xf32, #tpu.memory_space<vmem>>, vector<1x256xf32>
    %114 = vector.broadcast %113 : vector<1x256xf32> to vector<9x256xf32>
    %115 = arith.addf %112, %114 : vector<9x256xf32>
    %cst_42 = arith.constant 2.000000e-01 : f32
    %116 = vector.broadcast %cst_42 : f32 to vector<9x256xf32>
    %117 = arith.mulf %116, %115 : vector<9x256xf32>
    %118 = arith.maximumf %115, %117 : vector<9x256xf32>
    %c0_43 = arith.constant 0 : index
    %c0_44 = arith.constant 0 : index
    %119 = vector.load %arg14[%c0_43, %c0_44] : memref<256x9xbf16, #tpu.memory_space<vmem>>, vector<256x9xbf16>
    %120 = arith.truncf %118 : vector<9x256xf32> to vector<9x256xbf16>
    %cst_45 = arith.constant dense<0.000000e+00> : vector<256x256xf32>
    %121 = tpu.matmul %119, %120, %cst_45 {dimension_numbers = #tpu.dot_dimension_numbers<[1], [0], [0], [1], [0, 0, 1, 1], [], []>} : vector<256x9xbf16>, vector<9x256xbf16>, vector<256x256xf32> -> vector<256x256xf32>
    %122 = arith.truncf %121 : vector<256x256xf32> to vector<256x256xbf16>
    %123 = vector.extract_strided_slice %122 {offsets = [0, 0], sizes = [16, 256], strides = [1, 1]} : vector<256x256xbf16> to vector<16x256xbf16>
    %124 = vector.extract_strided_slice %122 {offsets = [16, 0], sizes = [16, 256], strides = [1, 1]} : vector<256x256xbf16> to vector<16x256xbf16>
    %125 = vector.extract_strided_slice %122 {offsets = [32, 0], sizes = [16, 256], strides = [1, 1]} : vector<256x256xbf16> to vector<16x256xbf16>
    %126 = vector.extract_strided_slice %122 {offsets = [48, 0], sizes = [16, 256], strides = [1, 1]} : vector<256x256xbf16> to vector<16x256xbf16>
    %127 = vector.extract_strided_slice %122 {offsets = [64, 0], sizes = [16, 256], strides = [1, 1]} : vector<256x256xbf16> to vector<16x256xbf16>
    %128 = vector.extract_strided_slice %122 {offsets = [80, 0], sizes = [16, 256], strides = [1, 1]} : vector<256x256xbf16> to vector<16x256xbf16>
    %129 = vector.extract_strided_slice %122 {offsets = [96, 0], sizes = [16, 256], strides = [1, 1]} : vector<256x256xbf16> to vector<16x256xbf16>
    %130 = vector.extract_strided_slice %122 {offsets = [112, 0], sizes = [16, 256], strides = [1, 1]} : vector<256x256xbf16> to vector<16x256xbf16>
    %131 = vector.extract_strided_slice %122 {offsets = [128, 0], sizes = [16, 256], strides = [1, 1]} : vector<256x256xbf16> to vector<16x256xbf16>
    %132 = vector.extract_strided_slice %122 {offsets = [144, 0], sizes = [16, 256], strides = [1, 1]} : vector<256x256xbf16> to vector<16x256xbf16>
    %133 = vector.extract_strided_slice %122 {offsets = [160, 0], sizes = [16, 256], strides = [1, 1]} : vector<256x256xbf16> to vector<16x256xbf16>
    %134 = vector.extract_strided_slice %122 {offsets = [176, 0], sizes = [16, 256], strides = [1, 1]} : vector<256x256xbf16> to vector<16x256xbf16>
    %135 = vector.extract_strided_slice %122 {offsets = [192, 0], sizes = [16, 256], strides = [1, 1]} : vector<256x256xbf16> to vector<16x256xbf16>
    %136 = vector.extract_strided_slice %122 {offsets = [208, 0], sizes = [16, 256], strides = [1, 1]} : vector<256x256xbf16> to vector<16x256xbf16>
    %137 = vector.extract_strided_slice %122 {offsets = [224, 0], sizes = [16, 256], strides = [1, 1]} : vector<256x256xbf16> to vector<16x256xbf16>
    %138 = vector.extract_strided_slice %122 {offsets = [240, 0], sizes = [16, 256], strides = [1, 1]} : vector<256x256xbf16> to vector<16x256xbf16>
    %139 = tpu.concatenate %123, %124, %125, %126, %127, %128, %129, %130, %131, %132, %133, %134, %135, %136, %137, %138 in 1 : vector<16x256xbf16>, vector<16x256xbf16>, vector<16x256xbf16>, vector<16x256xbf16>, vector<16x256xbf16>, vector<16x256xbf16>, vector<16x256xbf16>, vector<16x256xbf16>, vector<16x256xbf16>, vector<16x256xbf16>, vector<16x256xbf16>, vector<16x256xbf16>, vector<16x256xbf16>, vector<16x256xbf16>, vector<16x256xbf16>, vector<16x256xbf16> -> vector<16x4096xbf16>
    %c0_46 = arith.constant 0 : index
    %c0_47 = arith.constant 0 : index
    %140 = vector.load %arg15[%c0_46, %c0_47] : memref<4096x512xbf16, #tpu.memory_space<vmem>>, vector<4096x512xbf16>
    %cst_48 = arith.constant dense<0.000000e+00> : vector<16x512xf32>
    %141 = tpu.matmul %139, %140, %cst_48 {dimension_numbers = #tpu.dot_dimension_numbers<[1], [0], [0], [1], [0, 0, 1, 1], [], []>} : vector<16x4096xbf16>, vector<4096x512xbf16>, vector<16x512xf32> -> vector<16x512xf32>
    %c0_49 = arith.constant 0 : index
    %c0_50 = arith.constant 0 : index
    %142 = vector.load %arg16[%c0_49, %c0_50] : memref<1x512xf32, #tpu.memory_space<vmem>>, vector<1x512xf32>
    %143 = vector.broadcast %142 : vector<1x512xf32> to vector<16x512xf32>
    %144 = arith.addf %141, %143 : vector<16x512xf32>
    %cst_51 = arith.constant dense<0.000000e+00> : vector<512xf32>
    %145 = vector.multi_reduction <add>, %144, %cst_51 [0] : vector<16x512xf32> to vector<512xf32>
    %146 = vector.shape_cast %145 : vector<512xf32> to vector<1x512xf32>
    %cst_52 = arith.constant 1.600000e+01 : f32
    %147 = vector.broadcast %cst_52 : f32 to vector<1x512xf32>
    %148 = arith.divf %146, %147 : vector<1x512xf32>
    %149 = vector.broadcast %148 : vector<1x512xf32> to vector<16x512xf32>
    %150 = arith.subf %144, %149 : vector<16x512xf32>
    %151 = arith.mulf %150, %150 : vector<16x512xf32>
    %cst_53 = arith.constant dense<0.000000e+00> : vector<512xf32>
    %152 = vector.multi_reduction <add>, %151, %cst_53 [0] : vector<16x512xf32> to vector<512xf32>
    %153 = vector.shape_cast %152 : vector<512xf32> to vector<1x512xf32>
    %cst_54 = arith.constant 1.600000e+01 : f32
    %154 = vector.broadcast %cst_54 : f32 to vector<1x512xf32>
    %155 = arith.divf %153, %154 : vector<1x512xf32>
    %156 = vector.broadcast %148 : vector<1x512xf32> to vector<16x512xf32>
    %157 = arith.subf %144, %156 : vector<16x512xf32>
    %cst_55 = arith.constant 9.99999974E-6 : f32
    %158 = vector.broadcast %cst_55 : f32 to vector<1x512xf32>
    %159 = arith.addf %155, %158 : vector<1x512xf32>
    %160 = math.rsqrt %159 : vector<1x512xf32>
    %161 = vector.broadcast %160 : vector<1x512xf32> to vector<16x512xf32>
    %162 = arith.mulf %157, %161 : vector<16x512xf32>
    %c0_56 = arith.constant 0 : index
    %c0_57 = arith.constant 0 : index
    %163 = vector.load %arg17[%c0_56, %c0_57] : memref<1x512xf32, #tpu.memory_space<vmem>>, vector<1x512xf32>
    %164 = vector.broadcast %163 : vector<1x512xf32> to vector<16x512xf32>
    %165 = arith.mulf %162, %164 : vector<16x512xf32>
    %c0_58 = arith.constant 0 : index
    %c0_59 = arith.constant 0 : index
    %166 = vector.load %arg18[%c0_58, %c0_59] : memref<1x512xf32, #tpu.memory_space<vmem>>, vector<1x512xf32>
    %167 = vector.broadcast %166 : vector<1x512xf32> to vector<16x512xf32>
    %168 = arith.addf %165, %167 : vector<16x512xf32>
    %cst_60 = arith.constant 2.000000e-01 : f32
    %169 = vector.broadcast %cst_60 : f32 to vector<16x512xf32>
    %170 = arith.mulf %169, %168 : vector<16x512xf32>
    %171 = arith.maximumf %168, %170 : vector<16x512xf32>
    %172 = arith.truncf %171 : vector<16x512xf32> to vector<16x512xbf16>
    %c0_61 = arith.constant 0 : index
    %c0_62 = arith.constant 0 : index
    %173 = vector.load %arg19[%c0_61, %c0_62] : memref<512x16xbf16, #tpu.memory_space<vmem>>, vector<512x16xbf16>
    %cst_63 = arith.constant dense<0.000000e+00> : vector<16x16xf32>
    %174 = tpu.matmul %172, %173, %cst_63 {dimension_numbers = #tpu.dot_dimension_numbers<[1], [0], [0], [1], [0, 0, 1, 1], [], []>} : vector<16x512xbf16>, vector<512x16xbf16>, vector<16x16xf32> -> vector<16x16xf32>
    %175 = vector.extract_strided_slice %174 {offsets = [0, 0], sizes = [1, 16], strides = [1, 1]} : vector<16x16xf32> to vector<1x16xf32>
    %176 = vector.extract_strided_slice %174 {offsets = [1, 0], sizes = [1, 16], strides = [1, 1]} : vector<16x16xf32> to vector<1x16xf32>
    %177 = vector.extract_strided_slice %174 {offsets = [2, 0], sizes = [1, 16], strides = [1, 1]} : vector<16x16xf32> to vector<1x16xf32>
    %178 = vector.extract_strided_slice %174 {offsets = [3, 0], sizes = [1, 16], strides = [1, 1]} : vector<16x16xf32> to vector<1x16xf32>
    %179 = vector.extract_strided_slice %174 {offsets = [4, 0], sizes = [1, 16], strides = [1, 1]} : vector<16x16xf32> to vector<1x16xf32>
    %180 = vector.extract_strided_slice %174 {offsets = [5, 0], sizes = [1, 16], strides = [1, 1]} : vector<16x16xf32> to vector<1x16xf32>
    %181 = vector.extract_strided_slice %174 {offsets = [6, 0], sizes = [1, 16], strides = [1, 1]} : vector<16x16xf32> to vector<1x16xf32>
    %182 = vector.extract_strided_slice %174 {offsets = [7, 0], sizes = [1, 16], strides = [1, 1]} : vector<16x16xf32> to vector<1x16xf32>
    %183 = vector.extract_strided_slice %174 {offsets = [8, 0], sizes = [1, 16], strides = [1, 1]} : vector<16x16xf32> to vector<1x16xf32>
    %184 = vector.extract_strided_slice %174 {offsets = [9, 0], sizes = [1, 16], strides = [1, 1]} : vector<16x16xf32> to vector<1x16xf32>
    %185 = vector.extract_strided_slice %174 {offsets = [10, 0], sizes = [1, 16], strides = [1, 1]} : vector<16x16xf32> to vector<1x16xf32>
    %186 = vector.extract_strided_slice %174 {offsets = [11, 0], sizes = [1, 16], strides = [1, 1]} : vector<16x16xf32> to vector<1x16xf32>
    %187 = vector.extract_strided_slice %174 {offsets = [12, 0], sizes = [1, 16], strides = [1, 1]} : vector<16x16xf32> to vector<1x16xf32>
    %188 = vector.extract_strided_slice %174 {offsets = [13, 0], sizes = [1, 16], strides = [1, 1]} : vector<16x16xf32> to vector<1x16xf32>
    %189 = vector.extract_strided_slice %174 {offsets = [14, 0], sizes = [1, 16], strides = [1, 1]} : vector<16x16xf32> to vector<1x16xf32>
    %190 = vector.extract_strided_slice %174 {offsets = [15, 0], sizes = [1, 16], strides = [1, 1]} : vector<16x16xf32> to vector<1x16xf32>
    %191 = tpu.concatenate %175, %176, %177, %178, %179, %180, %181, %182, %183, %184, %185, %186, %187, %188, %189, %190 in 1 : vector<1x16xf32>, vector<1x16xf32>, vector<1x16xf32>, vector<1x16xf32>, vector<1x16xf32>, vector<1x16xf32>, vector<1x16xf32>, vector<1x16xf32>, vector<1x16xf32>, vector<1x16xf32>, vector<1x16xf32>, vector<1x16xf32>, vector<1x16xf32>, vector<1x16xf32>, vector<1x16xf32>, vector<1x16xf32> -> vector<1x256xf32>
    %c0_64 = arith.constant 0 : index
    %c0_65 = arith.constant 0 : index
    %192 = vector.load %arg20[%c0_64, %c0_65] : memref<256x25xf32, #tpu.memory_space<vmem>>, vector<256x25xf32>
    %cst_66 = arith.constant dense<0.000000e+00> : vector<1x25xf32>
    %193 = tpu.matmul %191, %192, %cst_66 {dimension_numbers = #tpu.dot_dimension_numbers<[1], [0], [0], [1], [0, 0, 1, 1], [], []>} : vector<1x256xf32>, vector<256x25xf32>, vector<1x25xf32> -> vector<1x25xf32>
    %c0_67 = arith.constant 0 : index
    %c0_68 = arith.constant 0 : index
    %194 = vector.load %arg21[%c0_67, %c0_68] : memref<1x1xf32, #tpu.memory_space<vmem>>, vector<1x1xf32>
    %195 = vector.broadcast %194 : vector<1x1xf32> to vector<1x25xf32>
    %196 = arith.addf %193, %195 : vector<1x25xf32>
    %cst_69 = arith.constant 0.000000e+00 : f32
    %197 = vector.broadcast %cst_69 : f32 to vector<1x25xf32>
    %198 = arith.subf %197, %196 : vector<1x25xf32>
    %199 = math.exp %198 : vector<1x25xf32>
    %cst_70 = arith.constant 1.000000e+00 : f32
    %200 = vector.broadcast %cst_70 : f32 to vector<1x25xf32>
    %201 = arith.addf %200, %199 : vector<1x25xf32>
    %cst_71 = arith.constant 1.000000e+00 : f32
    %202 = vector.broadcast %cst_71 : f32 to vector<1x25xf32>
    %203 = arith.divf %202, %201 : vector<1x25xf32>
    %c0_72 = arith.constant 0 : index
    %c0_73 = arith.constant 0 : index
    %c0_74 = arith.constant 0 : index
    %204 = vector.load %arg22[%c0_72, %c0_73, %c0_74] : memref<1x1x25xf32, #tpu.memory_space<vmem>>, vector<1x1x25xf32>
    %205 = vector.shape_cast %204 : vector<1x1x25xf32> to vector<1x25xf32>
    %206 = vector.shape_cast %203 : vector<1x25xf32> to vector<1x1x25xf32>
    tpu.vector_store %arg22[%c0_72, %c0_73, %c0_74], %206 {strides = array<i32>} : memref<1x1x25xf32, #tpu.memory_space<vmem>>, vector<1x1x25xf32>,
    return
  }
  func.func @transform_0(%arg0: i32) -> (i32, i32, i32) {
    %c0_i32 = arith.constant 0 : i32
    %c0_i32_0 = arith.constant 0 : i32
    %c0_i32_1 = arith.constant 0 : i32
    return %arg0, %c0_i32, %c0_i32_0 : i32, i32, i32
  }
  func.func @transform_1(%arg0: i32) -> (i32, i32) {
    %c0_i32 = arith.constant 0 : i32
    %c0_i32_0 = arith.constant 0 : i32
    %c0_i32_1 = arith.constant 0 : i32
    return %c0_i32, %c0_i32_0 : i32, i32
  }
  func.func @transform_2(%arg0: i32) -> (i32, i32) {
    %c0_i32 = arith.constant 0 : i32
    %c0_i32_0 = arith.constant 0 : i32
    %c0_i32_1 = arith.constant 0 : i32
    return %c0_i32, %c0_i32_0 : i32, i32
  }
  func.func @transform_3(%arg0: i32) -> (i32, i32) {
    %c0_i32 = arith.constant 0 : i32
    %c0_i32_0 = arith.constant 0 : i32
    %c0_i32_1 = arith.constant 0 : i32
    return %c0_i32, %c0_i32_0 : i32, i32
  }
  func.func @transform_4(%arg0: i32) -> (i32, i32) {
    %c0_i32 = arith.constant 0 : i32
    %c0_i32_0 = arith.constant 0 : i32
    %c0_i32_1 = arith.constant 0 : i32
    return %c0_i32, %c0_i32_0 : i32, i32
  }
  func.func @transform_5(%arg0: i32) -> (i32, i32) {
    %c0_i32 = arith.constant 0 : i32
    %c0_i32_0 = arith.constant 0 : i32
    %c0_i32_1 = arith.constant 0 : i32
    return %c0_i32, %c0_i32_0 : i32, i32
  }
  func.func @transform_6(%arg0: i32) -> (i32, i32) {
    %c0_i32 = arith.constant 0 : i32
    %c0_i32_0 = arith.constant 0 : i32
    %c0_i32_1 = arith.constant 0 : i32
    return %c0_i32, %c0_i32_0 : i32, i32
  }
  func.func @transform_7(%arg0: i32) -> (i32, i32) {
    %c0_i32 = arith.constant 0 : i32
    %c0_i32_0 = arith.constant 0 : i32
    %c0_i32_1 = arith.constant 0 : i32
    return %c0_i32, %c0_i32_0 : i32, i32
  }
  func.func @transform_8(%arg0: i32) -> (i32, i32) {
    %c0_i32 = arith.constant 0 : i32
    %c0_i32_0 = arith.constant 0 : i32
    %c0_i32_1 = arith.constant 0 : i32
    return %c0_i32, %c0_i32_0 : i32, i32
  }
  func.func @transform_9(%arg0: i32) -> (i32, i32) {
    %c0_i32 = arith.constant 0 : i32
    %c0_i32_0 = arith.constant 0 : i32
    %c0_i32_1 = arith.constant 0 : i32
    return %c0_i32, %c0_i32_0 : i32, i32
  }
  func.func @transform_10(%arg0: i32) -> (i32, i32) {
    %c0_i32 = arith.constant 0 : i32
    %c0_i32_0 = arith.constant 0 : i32
    %c0_i32_1 = arith.constant 0 : i32
    return %c0_i32, %c0_i32_0 : i32, i32
  }
  func.func @transform_11(%arg0: i32) -> (i32, i32) {
    %c0_i32 = arith.constant 0 : i32
    %c0_i32_0 = arith.constant 0 : i32
    %c0_i32_1 = arith.constant 0 : i32
    return %c0_i32, %c0_i32_0 : i32, i32
  }
  func.func @transform_12(%arg0: i32) -> (i32, i32) {
    %c0_i32 = arith.constant 0 : i32
    %c0_i32_0 = arith.constant 0 : i32
    %c0_i32_1 = arith.constant 0 : i32
    return %c0_i32, %c0_i32_0 : i32, i32
  }
  func.func @transform_13(%arg0: i32) -> (i32, i32) {
    %c0_i32 = arith.constant 0 : i32
    %c0_i32_0 = arith.constant 0 : i32
    %c0_i32_1 = arith.constant 0 : i32
    return %c0_i32, %c0_i32_0 : i32, i32
  }
  func.func @transform_14(%arg0: i32) -> (i32, i32) {
    %c0_i32 = arith.constant 0 : i32
    %c0_i32_0 = arith.constant 0 : i32
    %c0_i32_1 = arith.constant 0 : i32
    return %c0_i32, %c0_i32_0 : i32, i32
  }
  func.func @transform_15(%arg0: i32) -> (i32, i32) {
    %c0_i32 = arith.constant 0 : i32
    %c0_i32_0 = arith.constant 0 : i32
    %c0_i32_1 = arith.constant 0 : i32
    return %c0_i32, %c0_i32_0 : i32, i32
  }
  func.func @transform_16(%arg0: i32) -> (i32, i32) {
    %c0_i32 = arith.constant 0 : i32
    %c0_i32_0 = arith.constant 0 : i32
    %c0_i32_1 = arith.constant 0 : i32
    return %c0_i32, %c0_i32_0 : i32, i32
  }
  func.func @transform_17(%arg0: i32) -> (i32, i32) {
    %c0_i32 = arith.constant 0 : i32
    %c0_i32_0 = arith.constant 0 : i32
    %c0_i32_1 = arith.constant 0 : i32
    return %c0_i32, %c0_i32_0 : i32, i32
  }
  func.func @transform_18(%arg0: i32) -> (i32, i32) {
    %c0_i32 = arith.constant 0 : i32
    %c0_i32_0 = arith.constant 0 : i32
    %c0_i32_1 = arith.constant 0 : i32
    return %c0_i32, %c0_i32_0 : i32, i32
  }
  func.func @transform_19(%arg0: i32) -> (i32, i32) {
    %c0_i32 = arith.constant 0 : i32
    %c0_i32_0 = arith.constant 0 : i32
    %c0_i32_1 = arith.constant 0 : i32
    return %c0_i32, %c0_i32_0 : i32, i32
  }
  func.func @transform_20(%arg0: i32) -> (i32, i32) {
    %c0_i32 = arith.constant 0 : i32
    %c0_i32_0 = arith.constant 0 : i32
    %c0_i32_1 = arith.constant 0 : i32
    return %c0_i32, %c0_i32_0 : i32, i32
  }
  func.func @transform_21(%arg0: i32) -> (i32, i32, i32) {
    %c0_i32 = arith.constant 0 : i32
    %c0_i32_0 = arith.constant 0 : i32
    %c0_i32_1 = arith.constant 0 : i32
    return %arg0, %c0_i32, %c0_i32_0 : i32, i32, i32
  }
}

</mosaic_0001>

<bundles_post_ra>
// kernel: discriminator_forward.1
= control target key start
LH: loop header
LB: loop body
LE: loop exit
PB: predicated region body
PF: predicated region fallthrough
CT: control target
= control target key end

     0   :  { %s17790_s26 = smov 0   ;;  %s22905_s0 = inlined_call_operand.vmem [shape: f32[2,81,48], index: 0, kind: input, shape index: {}]   ;;  %s22906_s1 = inlined_call_operand.vmem [shape: bf16[48,64], index: 1, kind: input, shape index: {}]   ;;  %s22907_s2 = inlined_call_operand.vmem [shape: f32[1,64], index: 2, kind: input, shape index: {}]   ;;  %s22908_s3 = inlined_call_operand.vmem [shape: bf16[512,81], index: 3, kind: input, shape index: {}]   ;;  %s22909_s4 = inlined_call_operand.vmem [shape: bf16[1024,128], index: 4, kind: input, shape index: {}]   ;;  %s22910_s5 = inlined_call_operand.vmem [shape: f32[1,128], index: 5, kind: input, shape index: {}]   ;;  %s22911_s6 = inlined_call_operand.vmem [shape: f32[1,128], index: 6, kind: input, shape index: {}]   ;;  %s22912_s7 = inlined_call_operand.vmem [shape: f32[1,128], index: 7, kind: input, shape index: {}]   ;;  %s22913_s8 = inlined_call_operand.vmem [shape: bf16[256,25], index: 8, kind: input, shape index: {}]   ;;  %s22914_s9 = inlined_call_operand.vmem [shape: bf16[2048,256], index: 9, kind: input, shape index: {}]   ;;  %s22915_s10 = inlined_call_operand.vmem [shape: f32[1,256], index: 10, kind: input, shape index: {}]   ;;  %s22916_s11 = inlined_call_operand.vmem [shape: f32[1,256], index: 11, kind: input, shape index: {}]   ;;  %s22917_s12 = inlined_call_operand.vmem [shape: f32[1,256], index: 12, kind: input, shape index: {}]   ;;  %s22918_s13 = inlined_call_operand.vmem [shape: bf16[256,9], index: 13, kind: input, shape index: {}]   ;;  %s22919_s14 = inlined_call_operand.vmem [shape: bf16[4096,512], index: 14, kind: input, shape index: {}]   ;;  %s22920_s15 = inlined_call_operand.vmem [shape: f32[1,512], index: 15, kind: input, shape index: {}]   ;;  %s22921_s16 = inlined_call_operand.vmem [shape: f32[1,512], index: 16, kind: input, shape index: {}]   ;;  %s22922_s17 = inlined_call_operand.vmem [shape: f32[1,512], index: 17, kind: input, shape index: {}]   ;;  %s22923_s18 = inlined_call_operand.vmem [shape: bf16[512,16], index: 18, kind: input, shape index: {}]   ;;  %s22924_s19 = inlined_call_operand.vmem [shape: f32[256,25], index: 19, kind: input, shape index: {}]   ;;  %s22925_s20 = inlined_call_operand.<no memory space> [shape: f32[1,1], index: 20, kind: input, shape index: {}]   ;;  %s22926_s21 = inlined_call_operand.vmem [shape: f32[2,1,25], index: 21, kind: output, shape index: {}]  }
   0x1   :  { %22931 = sst [smem:[#allocation3_spill]] %s22905_s0  ;;  %v26_v0 = vstv %s22925_s20 }
   0x2   :  { %22932 = sst [smem:[#allocation4_spill]] %s22906_s1  ;;  %27 = vst [vmem:[#allocation2] sm:$0x1] %v26_v0 }
   0x3   :  { %22933 = sst [smem:[#allocation5_spill]] %s22907_s2 }
   0x4   :  { %22934 = sst [smem:[#allocation6_spill]] %s22908_s3 }
   0x5   :  { %22935 = sst [smem:[#allocation7_spill]] %s22909_s4 }
   0x6   :  { %22936 = sst [smem:[#allocation8_spill]] %s22910_s5 }
   0x7 LB: > { %s13401_s27 = sadd.s32 4294967295, %s17666_s26   ;;  %p13405_p0 = scmp.ge.s32.totalorder %s17666_s26, 1  ;;  %s17666_s26 = sphi %s17790_s26, %s33_s26  }
   0x8   : > { %p589_p1 = scmp.lt.s32.totalorder %s17666_s26, 3 }
   0xa   : > { %p590_p2 = pnand %p13405_p0, %p589_p1 }
   0xb   : > { %s22937_s29 = sld [smem:[#allocation4_spill]] (!%p590_p2)  ;;  %p647_p3 = scmp.lt.s32.totalorder (!%p590_p2), %s13401_s27, 1  ;;  %vm704_vm0 = vcmask (!%p590_p2), 392192   ;;  %v17668_v21 = vmov (!%p590_p2), 0   ;;  %vm1055_vm1 = vcmask (!%p590_p2), 662528   ;;  %vm1152_vm2 = vcmask (!%p590_p2), 1040384  }
   0xc   : > { %593 = sbr.rel (%p590_p2) target bundleno = 3964 (0xf7c), region = 104  ;;  %s22938_s1 = sld [smem:[#allocation3_spill]] (!%p590_p2)  ;;  %15557 = vset.pattern.permute.xlu1 (!%p590_p2), %v17668_v21  ;;  %15558 = vset.pattern.permute.xlu0 (!%p590_p2), %v17668_v21  ;;  %vm1527_vm3 = vcmask (!%p590_p2), 523264   ;;  %vm2488_vm4 = vcmask (!%p590_p2), 203776   ;;  %vm2537_vm5 = vcmask (!%p590_p2), 1043456   ;;  %vm2538_vm6 = vcmask (!%p590_p2), 1044480  }
   0xd   : > { %s22939_s3 = sld [smem:[#allocation6_spill]] (!%p590_p2)  ;;  %s22940_s0 = sld [smem:[#allocation5_spill]] (!%p590_p2)  ;;  %vm4820_vm7 = vcmask (!%p590_p2), 72704   ;;  %vm13215_vm8 = vcmask (!%p590_p2), 130048   ;;  %vm13217_vm9 = vcmask (!%p590_p2), 261120   ;;  %vm13221_vm10 = vcmask (!%p590_p2), 654336  }
   0xe   : > { %s22941_s23 = sld [smem:[#allocation7_spill]] (!%p590_p2)  ;;  %s22930_s30 = smov (!%p590_p2), 64   ;;  %vm13223_vm11 = vcmask (!%p590_p2), 785408   ;;  %vm13225_vm12 = vcmask (!%p590_p2), 916480   ;;  %vm13352_vm13 = vcmask (!%p590_p2), 196608  }
   0xf   : > { %s22943_s22 = smov (!%p590_p2), 64   ;;  %s17675_s2 = smov (!%p590_p2), 80  }
  0x10   : > { %s17676_s25 = smov (!%p590_p2), 112  }
  0x11   : > { %v15559_v1 = vld [vmem:[%s22937_s29] sm:$0xff] (!%p590_p2)   ;;  %v15560_v2 = vld [vmem:[%s22937_s29 + $0x8] sm:$0xff] (!%p590_p2)   ;;  %v15561_v3 = vld [vmem:[%s22937_s29 + $0x10] sm:$0xff] (!%p590_p2)  }
  0x12   : > { %15182 = vmatprep.subr.bf16.mxu1 (!%p590_p2), %v15559_v1 }
  0x13   : > { %s22945_s27 = smov (!%p647_p3, %s13401_s27), 1  ;;  %15183 = vmatpush3.bf16.msra.mxu1 %v15559_v1  ;;  %v15562_v22 = vld [vmem:[%s22939_s3] sm:$0xff]  }
  0x14   : > { %15184 = vmatprep.subr.bf16.mxu1 %v15560_v2  ;;  %s15504_s5 = smul.u32 88, %s22945_s27  ;;  %v13407_v23 = vld [vmem:[%s22940_s0] ss:$0 sm:$0xff]  ;;  %s22942_s0 = sld [smem:[#allocation8_spill]] }
  0x16   : > { %s651_s24 = scalar_lea.vmem %s22938_s1, %s15504_s5  ;;  %s17672_s5 = smov 16  }
  0x17   : > { %15185 = vmatpush3.bf16.msra.mxu1 %v15560_v2  ;;  %v656_v4 = vld [vmem:[%s651_s24] sm:$0xff]  ;;  %v657_v5 = vld [vmem:[%s651_s24 + $0x8] sm:$0xff]  ;;  %v658_v6 = vld [vmem:[%s651_s24 + $0x10] sm:$0xff]  ;;  %s17673_s1 = smov 48  }
  0x18   : > { %15186 = vmatprep.subr.bf16.mxu1 %v15561_v3  ;;  %v667_v7 = vpack.c.bf16 %v657_v5, %v656_v4  ;;  %v659_v8 = vld [vmem:[%s651_s24 + $0x18] sm:$0xff]  ;;  %v660_v9 = vld [vmem:[%s651_s24 + $0x20] sm:$0xff]  ;;  %v661_v10 = vld [vmem:[%s651_s24 + $0x28] sm:$0xff] }
  0x19   : > { %v668_v11 = vpack.c.bf16 %v659_v8, %v658_v6  ;;  %v669_v12 = vpack.c.bf16 %v661_v10, %v660_v9  ;;  %v662_v13 = vld [vmem:[%s651_s24 + $0x30] sm:$0xff]  ;;  %v663_v14 = vld [vmem:[%s651_s24 + $0x38] sm:$0xff]  ;;  %v664_v15 = vld [vmem:[%s651_s24 + $0x40] sm:$0xff]  ;;  %v1154_v10 = vsel %vm1152_vm2, 65535, %v17668_v21 }
  0x1a   : > { %15188 = vmatprep.mubr.msk.bf16.mxu1 %vm704_vm0, %v667_v7  ;;  %v665_v16 = vld [vmem:[%s651_s24 + $0x48] sm:$0xff]  ;;  %v670_v17 = vpack.c.bf16 %v663_v14, %v662_v13  ;;  %v666_v19 = vld [vmem:[%s651_s24 + $0x50] sm:$0x1]  ;;  %s17674_s24 = smov 96  }
  0x1b   : > { %15187 = vmatpush3.bf16.msra.mxu1 %v15561_v3  ;;  %v671_v18 = vpack.c.bf16 %v665_v16, %v664_v15  ;;  %v672_v20 = vpack.c.bf16 %v666_v19, %v666_v19  ;;  %v15563_v13 = vld [vmem:[%s22939_s3 + $0x8] sm:$0xff]   ;;  %v15564_v14 = vld [vmem:[%s22939_s3 + $0x10] sm:$0xff]   ;;  %v15565_v15 = vld [vmem:[%s22939_s3 + $0x18] sm:$0xff]  }
  0x1c   : > { %v15566_v16 = vld [vmem:[%s22939_s3 + $0x20] sm:$0xff]   ;;  %v15569_v19 = vld [vmem:[%s22939_s3 + $0x38] sm:$0xff]  }
  0x1e   : > { %15189 = vmatmul.mubr.msk.bf16.vlgmr.msra.gmra.mrb[0].mxu1 %vm704_vm0, %v668_v11 }
  0x1f   : > { %15192 = vmatprep.mubr.msk.bf16.mxu1 %vm704_vm0, %v669_v12 }
  0x26   : > { %15193 = vmatmul.mubr.msk.bf16.gmra.mrb[4].mxu1 %vm704_vm0, %v670_v17  ;;  %v15567_v17 = vld [vmem:[%s22939_s3 + $0x28] sm:$0xff]  }
  0x27   : > { %15196 = vmatprep.mubr.msk.bf16.mxu1 %vm704_vm0, %v671_v18  ;;  %v15568_v18 = vld [vmem:[%s22939_s3 + $0x30] sm:$0xff]  }
  0x2e   : > { %15197 = vmatmul.mubr.msk.bf16.gmra.mrb[8].mxu1 %vm704_vm0, %v672_v20  ;;  %v15570_v20 = vld [vmem:[%s22939_s3 + $0x40] sm:$0xff]  }
  0x2f   : > { %15212 = vmatprep.mubr.msk.bf16.mxu1 %vm1055_vm1, %v15562_v22  ;;  %v15571_v22 = vld [vmem:[%s22939_s3 + $0x48] sm:$0xff]  }
  0xf1   : > { %v15190_v24 = vpop.f32.mrb[0].mxu1 }
  0xf2   : > { %v766_v25 = vadd.f32 %v15190_v24, %v13407_v23  ;;  %v757_v26 = vpop.f32.mrb[1].mxu1  ;;  %v15573_v24 = vld [vmem:[%s22939_s3 + $0x58] sm:$0xff]  }
  0xf3   : > { %v758_v27 = vadd.f32 %v13407_v23, %v757_v26  ;;  %v15191_v28 = vpop.f32.mrb[2].mxu1  ;;  %v15575_v26 = vld [vmem:[%s22939_s3 + $0x68] sm:$0xff]  }
  0xf4   : > { %v805_v29 = vmul.f32 0.2, %v766_v25  ;;  %v769_v30 = vadd.f32 %v15191_v28, %v13407_v23  ;;  %v760_v31 = vpop.f32.mrb[3].mxu1  ;;  %v15577_v28 = vld [vmem:[%s22939_s3 + $0x78] sm:$0xff]  }
  0xf5   : > { %v803_v32 = vmul.f32 0.2, %v758_v27  ;;  %v761_v33 = vadd.f32 %v13407_v23, %v760_v31  ;;  %v15580_v31 = vld [vmem:[%s22939_s3 + $0x90] sm:$0xff]  }
  0xf6   : > { %v806_v34 = vmul.f32 0.2, %v769_v30  ;;  %v816_v36 = vmax.f32 %v766_v25, %v805_v29  ;;  %v15574_v25 = vld [vmem:[%s22939_s3 + $0x60] sm:$0xff]  }
  0xf7   : > { %v804_v35 = vmul.f32 0.2, %v761_v33  ;;  %v814_v38 = vmax.f32 %v758_v27, %v803_v32  ;;  %v15576_v27 = vld [vmem:[%s22939_s3 + $0x70] sm:$0xff]   ;;  %v15578_v29 = vld [vmem:[%s22939_s3 + $0x80] sm:$0xff]   ;;  %v15581_v32 = vld [vmem:[%s22939_s3 + $0x98] sm:$0xff]  }
  0xf8   : > { %v817_v37 = vmax.f32 %v769_v30, %v806_v34  ;;  %v15579_v30 = vld [vmem:[%s22939_s3 + $0x88] sm:$0xff]  }
  0xf9   : > { %v815_v39 = vmax.f32 %v761_v33, %v804_v35  ;;  %v15194_v40 = vpop.f32.mrb[4].mxu1  ;;  %v15582_v33 = vld [vmem:[%s22939_s3 + $0xa0] sm:$0xff]   ;;  %v15583_v34 = vld [vmem:[%s22939_s3 + $0xa8] sm:$0xff]   ;;  %v15584_v35 = vld [vmem:[%s22939_s3 + $0xb0] sm:$0xff]  }
  0xfa   : > { %v782_v41 = vadd.f32 %v15194_v40, %v13407_v23  ;;  %v773_v42 = vpop.f32.mrb[5].mxu1  ;;  %v890_v43 = vpack.c.bf16 %v817_v37, %v816_v36  ;;  %v15585_v36 = vld [vmem:[%s22939_s3 + $0xb8] sm:$0xff]   ;;  %v15586_v37 = vld [vmem:[%s22939_s3 + $0xc0] sm:$0xff]  }
  0xfb   : > { %v774_v44 = vadd.f32 %v13407_v23, %v773_v42  ;;  %v15195_v45 = vpop.f32.mrb[6].mxu1  ;;  %v889_v46 = vpack.c.bf16 %v815_v39, %v814_v38  ;;  %v15587_v38 = vld [vmem:[%s22939_s3 + $0xc8] sm:$0xff]   ;;  %v15588_v39 = vld [vmem:[%s22939_s3 + $0xd0] sm:$0xff]   ;;  %v15589_v40 = vld [vmem:[%s22939_s3 + $0xd8] sm:$0xff]  }
  0xfc   : > { %v809_v47 = vmul.f32 0.2, %v782_v41  ;;  %v785_v48 = vadd.f32 %v15195_v45, %v13407_v23  ;;  %v776_v49 = vpop.f32.mrb[7].mxu1  ;;  %v15591_v42 = vld [vmem:[%s22939_s3 + $0xe8] sm:$0xff]   ;;  %v15594_v45 = vld [vmem:[%s22941_s23 + $0x40] sm:$0xff]  }
  0xfd   : > { %v807_v50 = vmul.f32 0.2, %v774_v44  ;;  %v777_v51 = vadd.f32 %v13407_v23, %v776_v49  ;;  %15200 = vmatprep.subr.bf16.mxu1 %v889_v46 }
  0xfe   : > { %v810_v52 = vmul.f32 0.2, %v785_v48  ;;  %15201 = vmatpush3.bf16.msra.mxu1 %v889_v46  ;;  %v820_v54 = vmax.f32 %v782_v41, %v809_v47  ;;  %v15590_v41 = vld [vmem:[%s22939_s3 + $0xe0] sm:$0xff]  }
  0xff   : > { %v808_v53 = vmul.f32 0.2, %v777_v51  ;;  %15202 = vmatprep.subr.bf16.mxu1 %v890_v43  ;;  %v818_v56 = vmax.f32 %v774_v44, %v807_v50  ;;  %v15593_v44 = vld [vmem:[%s22939_s3 + $0xf8] sm:$0xff]   ;;  %v15595_v46 = vld [vmem:[%s22941_s23] sm:$0xff]  }
 0x100   : > { %v821_v55 = vmax.f32 %v785_v48, %v810_v52 }
 0x101   : > { %v819_v57 = vmax.f32 %v777_v51, %v808_v53  ;;  %v15198_v58 = vpop.f32.mrb[8].mxu1  ;;  %v15596_v53 = vld [vmem:[%s22941_s23 + $0x48] sm:$0xff]  }
 0x102   : > { %v798_v59 = vadd.f32 %v15198_v58, %v13407_v23  ;;  %v789_v60 = vpop.f32.mrb[9].mxu1  ;;  %15203 = vmatpush3.bf16.msra.mxu1 %v890_v43  ;;  %v892_v61 = vpack.c.bf16 %v821_v55, %v820_v54  ;;  %v15592_v43 = vld [vmem:[%s22939_s3 + $0xf0] sm:$0xff]   ;;  %v15597_v54 = vld [vmem:[%s22941_s23 + $0x8] sm:$0xff]   ;;  %v15598_v55 = vld [vmem:[%s22941_s23 + $0xc0] sm:$0xff]  }
 0x103   : > { %v790_v62 = vadd.f32 %v13407_v23, %v789_v60  ;;  %v15199_v63 = vpop.f32.mrb[10].mxu1  ;;  %v891_v0 = vpack.c.bf16 %v819_v57, %v818_v56  ;;  %v15599_v56 = vld [vmem:[%s22941_s23 + $0x80] sm:$0xff]   ;;  %v15600_v57 = vld [vmem:[%s22941_s23 + $0x50] sm:$0xff]   ;;  %15001 = vmatprep.subr.bf16.mxu0 %v15598_v55 }
 0x104   : > { %v813_v1 = vmul.f32 0.2, %v798_v59  ;;  %v792_v2 = vpop.f32.mrb[11].mxu1  ;;  %15002 = vmatpush3.bf16.msra.mxu0 %v15599_v56  ;;  %v15620_v55 = vld [vmem:[%s22941_s23 + $0x60] sm:$0xff]  }
 0x105   : > { %v811_v3 = vmul.f32 0.2, %v790_v62  ;;  %v793_v4 = vadd.f32 %v13407_v23, %v792_v2  ;;  %15204 = vmatprep.subr.bf16.mxu1 %v891_v0  ;;  %v15572_v23 = vld [vmem:[%s22939_s3 + $0x50] sm:$0xff]   ;;  %v15621_v56 = vld [vmem:[%s22941_s23 + $0x20] sm:$0xff]  }
 0x106   : > { %v824_v5 = vmax.f32 %v798_v59, %v813_v1  ;;  %15205 = vmatpush3.bf16.msra.mxu1 %v891_v0  ;;  %v15602_v59 = vld [vmem:[%s22941_s23 + $0xc8] sm:$0xff]   ;;  %v15604_v0 = vld [vmem:[%s22941_s23 + $0xd0] sm:$0xff]   ;;  %v15610_v1 = vld [vmem:[%s22941_s23 + $0x58] sm:$0xff]  }
 0x107   : > { %v812_v6 = vmul.f32 0.2, %v793_v4  ;;  %15206 = vmatprep.subr.bf16.mxu1 %v892_v61  ;;  %v822_v8 = vmax.f32 %v790_v62, %v811_v3  ;;  %v15603_v62 = vld [vmem:[%s22941_s23 + $0x88] sm:$0xff]   ;;  %15003 = vmatprep.subr.bf16.mxu0 %v15602_v59 }
 0x108   : > { %v894_v7 = vpack.c.bf16 %v824_v5, %v824_v5  ;;  %15004 = vmatpush3.bf16.msra.mxu0 %v15603_v62 }
 0x109   : > { %v823_v9 = vmax.f32 %v793_v4, %v812_v6  ;;  %v15605_v4 = vld [vmem:[%s22941_s23 + $0x90] sm:$0xff]   ;;  %v15606_v6 = vld [vmem:[%s22941_s23 + $0xd8] sm:$0xff]   ;;  %15005 = vmatprep.subr.bf16.mxu0 %v15604_v0 }
 0x10a   : > { %15207 = vmatpush3.bf16.msra.mxu1 %v892_v61  ;;  %v1156_v12 = vand.u32 %v1154_v10, %v894_v7  ;;  %v15601_v61 = vld [vmem:[%s22941_s23 + $0x10] sm:$0xff]   ;;  %v15611_v7 = vld [vmem:[%s22941_s23 + $0x18] sm:$0xff]   ;;  %v15608_v10 = vld [vmem:[%s22941_s23 + $0xe0] sm:$0xff]  }
 0x10b   : > { %v893_v11 = vpack.c.bf16 %v823_v9, %v822_v8  ;;  %v15607_v8 = vld [vmem:[%s22941_s23 + $0x98] sm:$0xff]  }
 0x10c   : > { %15006 = vmatpush3.bf16.msra.mxu0 %v15605_v4 }
 0x10d   : > { %15208 = vmatprep.subr.bf16.mxu1 %v893_v11  ;;  %15007 = vmatprep.subr.bf16.mxu0 %v15606_v6 }
 0x10e   : > { %15209 = vmatpush3.bf16.msra.mxu1 %v893_v11 }
 0x10f   : > { %15210 = vmatprep.subr.bf16.mxu1 %v1156_v12 }
 0x110   : > { %15008 = vmatpush3.bf16.msra.mxu0 %v15607_v8 }
 0x111   : > { %15009 = vmatprep.subr.bf16.mxu0 %v15608_v10 }
 0x112   : > { %15211 = vmatpush3.bf16.msra.mxu1 %v1156_v12 }
 0x113   : > { %14973 = vmatprep.subr.bf16.mxu1 %v15594_v45 }
 0x115   : > { %15213 = vmatmul.mubr.msk.bf16.vlgmr.msra.gmra.mrb[12].mxu1 %vm1055_vm1, %v15563_v13 }
 0x116   : > { %15216 = vmatprep.mubr.msk.bf16.mxu1 %vm1055_vm1, %v15564_v14  ;;  %14974 = vmatpush3.bf16.msra.mxu1 %v15595_v46 }
 0x117   : > { %14975 = vmatprep.subr.bf16.mxu1 %v15596_v53  ;;  %v15618_v53 = vld [vmem:[%s22941_s23 + $0x140] sm:$0xff]  }
 0x11a   : > { %14976 = vmatpush3.bf16.msra.mxu1 %v15597_v54 }
 0x11b   : > { %14977 = vmatprep.subr.bf16.mxu1 %v15600_v57 }
 0x11d   : > { %15217 = vmatmul.mubr.msk.bf16.gmra.mrb[16].mxu1 %vm1055_vm1, %v15565_v15  ;;  %v15609_v15 = vld [vmem:[%s22941_s23 + $0xa0] sm:$0xff]  }
 0x11e   : > { %15220 = vmatprep.mubr.msk.bf16.mxu1 %vm1055_vm1, %v15566_v16  ;;  %14978 = vmatpush3.bf16.msra.mxu1 %v15601_v61 }
 0x11f   : > { %14979 = vmatprep.subr.bf16.mxu1 %v15610_v1  ;;  %15010 = vmatpush3.bf16.msra.mxu0 %v15609_v15 }
 0x122   : > { %14980 = vmatpush3.bf16.msra.mxu1 %v15611_v7 }
 0x123   : > { %14981 = vmatprep.subr.bf16.mxu1 %v15620_v55 }
 0x125   : > { %15221 = vmatmul.mubr.msk.bf16.gmra.mrb[20].mxu1 %vm1055_vm1, %v15567_v17  ;;  %v15612_v17 = vld [vmem:[%s22941_s23 + $0xe8] sm:$0xff]  }
 0x126   : > { %15224 = vmatprep.mubr.msk.bf16.mxu1 %vm1055_vm1, %v15568_v18  ;;  %v15613_v18 = vld [vmem:[%s22941_s23 + $0xa8] sm:$0xff]   ;;  %15011 = vmatprep.subr.bf16.mxu0 %v15612_v17 }
 0x127   : > { %15012 = vmatpush3.bf16.msra.mxu0 %v15613_v18  ;;  %14982 = vmatpush3.bf16.msra.mxu1 %v15621_v56  ;;  %v15630_v17 = vld [vmem:[%s22941_s23 + $0x68] sm:$0xff]   ;;  %v15639_v56 = vld [vmem:[%s22941_s23 + $0x30] sm:$0xff]  }
 0x128   : > { %v15631_v18 = vld [vmem:[%s22941_s23 + $0x28] sm:$0xff]   ;;  %14983 = vmatprep.subr.bf16.mxu1 %v15630_v17 }
 0x12b   : > { %14984 = vmatpush3.bf16.msra.mxu1 %v15631_v18 }
 0x12d   : > { %15225 = vmatmul.mubr.msk.bf16.gmra.mrb[24].mxu1 %vm1055_vm1, %v15569_v19 }
 0x12e   : > { %15228 = vmatprep.mubr.msk.bf16.mxu1 %vm1055_vm1, %v15570_v20  ;;  %v15614_v20 = vld [vmem:[%s22941_s23 + $0xf0] sm:$0xff]  }
 0x12f   : > { %15013 = vmatprep.subr.bf16.mxu0 %v15614_v20 }
 0x135   : > { %15229 = vmatmul.mubr.msk.bf16.gmra.mrb[28].mxu1 %vm1055_vm1, %v15571_v22 }
 0x136   : > { %15232 = vmatprep.mubr.msk.bf16.mxu1 %vm1055_vm1, %v15572_v23 }
 0x13d   : > { %15233 = vmatmul.mubr.msk.bf16.gmra.mrb[32].mxu1 %vm1055_vm1, %v15573_v24 }
 0x13e   : > { %15236 = vmatprep.mubr.msk.bf16.mxu1 %vm1055_vm1, %v15574_v25 }
 0x145   : > { %15237 = vmatmul.mubr.msk.bf16.gmra.mrb[36].mxu1 %vm1055_vm1, %v15575_v26  ;;  %v15615_v26 = vld [vmem:[%s22941_s23 + $0xb0] sm:$0xff]  }
 0x146   : > { %15240 = vmatprep.mubr.msk.bf16.mxu1 %vm1055_vm1, %v15576_v27  ;;  %15014 = vmatpush3.bf16.msra.mxu0 %v15615_v26 }
 0x14d   : > { %15241 = vmatmul.mubr.msk.bf16.gmra.mrb[40].mxu1 %vm1055_vm1, %v15577_v28 }
 0x14e   : > { %15244 = vmatprep.mubr.msk.bf16.mxu1 %vm1055_vm1, %v15578_v29 }
 0x155   : > { %15245 = vmatmul.mubr.msk.bf16.gmra.mrb[44].mxu1 %vm1055_vm1, %v15579_v30 }
 0x156   : > { %15248 = vmatprep.mubr.msk.bf16.mxu1 %vm1055_vm1, %v15580_v31 }
 0x15d   : > { %15249 = vmatmul.mubr.msk.bf16.gmra.mrb[48].mxu1 %vm1055_vm1, %v15581_v32 }
 0x15e   : > { %15252 = vmatprep.mubr.msk.bf16.mxu1 %vm1055_vm1, %v15582_v33 }
 0x165   : > { %15253 = vmatmul.mubr.msk.bf16.gmra.mrb[52].mxu1 %vm1055_vm1, %v15583_v34 }
 0x166   : > { %15256 = vmatprep.mubr.msk.bf16.mxu1 %vm1055_vm1, %v15584_v35 }
 0x16d   : > { %15257 = vmatmul.mubr.msk.bf16.gmra.mrb[56].mxu1 %vm1055_vm1, %v15585_v36 }
 0x16e   : > { %15260 = vmatprep.mubr.msk.bf16.mxu1 %vm1055_vm1, %v15586_v37 }
 0x175   : > { %15261 = vmatmul.mubr.msk.bf16.gmra.mrb[60].mxu1 %vm1055_vm1, %v15587_v38 }
 0x176   : > { %15264 = vmatprep.mubr.msk.bf16.mxu1 %vm1055_vm1, %v15588_v39 }
 0x17d   : > { %15265 = vmatmul.mubr.msk.bf16.gmra.mrb[64].mxu1 %vm1055_vm1, %v15589_v40  ;;  %v15616_v40 = vld [vmem:[%s22941_s23 + $0xf8] sm:$0xff]  }
 0x17e   : > { %15268 = vmatprep.mubr.msk.bf16.mxu1 %vm1055_vm1, %v15590_v41  ;;  %15015 = vmatprep.subr.bf16.mxu0 %v15616_v40 }
 0x185   : > { %15269 = vmatmul.mubr.msk.bf16.gmra.mrb[68].mxu1 %vm1055_vm1, %v15591_v42  ;;  %v15617_v42 = vld [vmem:[%s22941_s23 + $0xb8] sm:$0xff]  }
 0x186   : > { %15272 = vmatprep.mubr.msk.bf16.mxu1 %vm1055_vm1, %v15592_v43  ;;  %15016 = vmatpush3.bf16.msra.mxu0 %v15617_v42  ;;  %v15638_v42 = vld [vmem:[%s22941_s23 + $0x70] sm:$0xff]  }
 0x187   : > { %15029 = vmatprep.subr.bf16.mxu0 %v15618_v53  ;;  %14985 = vmatprep.subr.bf16.mxu1 %v15638_v42 }
 0x188   : > { %14986 = vmatpush3.bf16.msra.mxu1 %v15639_v56 }
 0x18d   : > { %15273 = vmatmul.mubr.msk.bf16.gmra.mrb[72].mxu1 %vm1055_vm1, %v15593_v44 }
 0x1e8   : > { %v17960_v47 = vpop.f32.mrb[12].mxu1 }
 0x1e9   : > { %v17962_v48 = vpop.f32.mrb[13].mxu1 }
 0x1ea   : > { %v17964_v49 = vpop.f32.mrb[14].mxu1 }
 0x1eb   : > { %v1448_v50 = vpack.c.bf16 %v17964_v49, %v17960_v47  ;;  %v17968_v51 = vpop.f32.mrb[15].mxu1 }
 0x1ec   : > { %v1447_v52 = vpack.c.bf16 %v17968_v51, %v17962_v48  ;;  %v15649_v48 = vld [vmem:[%s22941_s23 + $0x198] sm:$0xff]   ;;  %v15650_v51 = vld [vmem:[%s22941_s23 + $0x1e0] sm:$0xff]  }
 0x1f0   : > { %v17987_v58 = vpop.f32.mrb[16].mxu1 }
 0x1f1   : > { %v17992_v60 = vpop.f32.mrb[17].mxu1 }
 0x1f2   : > { %v18000_v63 = vpop.f32.mrb[18].mxu1 }
 0x1f3   : > { %v1450_v2 = vpack.c.bf16 %v18000_v63, %v17987_v58  ;;  %v18010_v3 = vpop.f32.mrb[19].mxu1 }
 0x1f4   : > { %v1449_v5 = vpack.c.bf16 %v18010_v3, %v17992_v60 }
 0x1f8   : > { %v18026_v9 = vpop.f32.mrb[20].mxu1 }
 0x1f9   : > { %v18031_v11 = vpop.f32.mrb[21].mxu1 }
 0x1fa   : > { %v18033_v12 = vpop.f32.mrb[22].mxu1 }
 0x1fb   : > { %v1452_v13 = vpack.c.bf16 %v18033_v12, %v18026_v9  ;;  %v18037_v14 = vpop.f32.mrb[23].mxu1 }
 0x1fc   : > { %v1451_v16 = vpack.c.bf16 %v18037_v14, %v18031_v11  ;;  %v15652_v14 = vld [vmem:[%s22941_s23 + $0x1e8] sm:$0xff]  }
 0x200   : > { %v18050_v19 = vpop.f32.mrb[24].mxu1 }
 0x201   : > { %v18055_v22 = vpop.f32.mrb[25].mxu1 }
 0x202   : > { %v18057_v23 = vpop.f32.mrb[26].mxu1 }
 0x203   : > { %v1454_v24 = vpack.c.bf16 %v18057_v23, %v18050_v19  ;;  %v18061_v25 = vpop.f32.mrb[27].mxu1  ;;  %v15622_v19 = vld [vmem:[%s22941_s23 + $0x148] sm:$0xff]  }
 0x204   : > { %v1453_v27 = vpack.c.bf16 %v18061_v25, %v18055_v22 }
 0x208   : > { %v18068_v28 = vpop.f32.mrb[28].mxu1 }
 0x209   : > { %v18070_v29 = vpop.f32.mrb[29].mxu1 }
 0x20a   : > { %v18072_v30 = vpop.f32.mrb[30].mxu1 }
 0x20b   : > { %v1456_v31 = vpack.c.bf16 %v18072_v30, %v18068_v28  ;;  %v18076_v32 = vpop.f32.mrb[31].mxu1  ;;  %v15632_v28 = vld [vmem:[%s22941_s23 + $0x168] sm:$0xff]  }
 0x20c   : > { %v1455_v33 = vpack.c.bf16 %v18076_v32, %v18070_v29  ;;  %v15625_v32 = vld [vmem:[%s22941_s23 + $0x110] sm:$0xff]   ;;  %v15633_v30 = vld [vmem:[%s22941_s23 + $0x128] sm:$0xff]  }
 0x210   : > { %v15234_v34 = vpop.f32.mrb[32].mxu1 }
 0x211   : > { %v1272_v35 = vpop.f32.mrb[33].mxu1 }
 0x212   : > { %v15235_v36 = vpop.f32.mrb[34].mxu1 }
 0x213   : > { %v1458_v37 = vpack.c.bf16 %v15235_v36, %v15234_v34  ;;  %v1275_v38 = vpop.f32.mrb[35].mxu1 }
 0x214   : > { %v1457_v39 = vpack.c.bf16 %v1275_v38, %v1272_v35 }
 0x218   : > { %v18083_v41 = vpop.f32.mrb[36].mxu1 }
 0x219   : > { %v18088_v43 = vpop.f32.mrb[37].mxu1 }
 0x21a   : > { %v18090_v44 = vpop.f32.mrb[38].mxu1 }
 0x21b   : > { %v1460_v45 = vpack.c.bf16 %v18090_v44, %v18083_v41  ;;  %v18094_v46 = vpop.f32.mrb[39].mxu1  ;;  %v15627_v44 = vld [vmem:[%s22941_s23 + $0x118] sm:$0xff]  }
 0x21c   : > { %v1459_v54 = vpack.c.bf16 %v18094_v46, %v18088_v43  ;;  %v15623_v43 = vld [vmem:[%s22941_s23 + $0x108] sm:$0xff]   ;;  %v15624_v46 = vld [vmem:[%s22941_s23 + $0x150] sm:$0xff]  }
 0x220   : > { %v15242_v57 = vpop.f32.mrb[40].mxu1 }
 0x221   : > { %v1304_v59 = vpop.f32.mrb[41].mxu1 }
 0x222   : > { %v15243_v61 = vpop.f32.mrb[42].mxu1 }
 0x223   : > { %v1462_v62 = vpack.c.bf16 %v15243_v61, %v15242_v57  ;;  %v1307_v0 = vpop.f32.mrb[43].mxu1  ;;  %v15643_v61 = vld [vmem:[%s22941_s23 + $0x38] sm:$0xff]  }
 0x224   : > { %v1461_v1 = vpack.c.bf16 %v1307_v0, %v1304_v59  ;;  %v15642_v59 = vld [vmem:[%s22941_s23 + $0x78] sm:$0xff]  }
 0x225   : > { %1501 = vrot.lane.b32.xlu1 %v1462_v62, %s22930_s30  ;;  %14987 = vmatprep.subr.bf16.mxu1 %v15642_v59 }
 0x226   : > { %1499 = vrot.lane.b32.xlu0 %v1461_v1, %s22930_s30  ;;  %14988 = vmatpush3.bf16.msra.mxu1 %v15643_v61 }
 0x228   : > { %v18109_v4 = vpop.f32.mrb[44].mxu1 }
 0x229   : > { %1495 = vrot.lane.b32.xlu1 %v1458_v37, %s22930_s30  ;;  %v18112_v6 = vpop.f32.mrb[45].mxu1 }
 0x22a   : > { %1493 = vrot.lane.b32.xlu0 %v1457_v39, %s22930_s30  ;;  %v18115_v7 = vpop.f32.mrb[46].mxu1 }
 0x22b   : > { %v1464_v8 = vpack.c.bf16 %v18115_v7, %v18109_v4  ;;  %v18119_v10 = vpop.f32.mrb[47].mxu1  ;;  %v15654_v4 = vld [vmem:[%s22941_s23 + $0x1f0] sm:$0xff]  }
 0x22c   : > { %v1463_v15 = vpack.c.bf16 %v18119_v10, %v18112_v6  ;;  %v15646_v6 = vld [vmem:[%s22941_s23 + $0x1d0] sm:$0xff]  }
 0x22d   : > { %v15655_v7 = vld [vmem:[%s22941_s23 + $0x1b0] sm:$0xff]  }
 0x230   : > { %v15250_v20 = vpop.f32.mrb[48].mxu1 }
 0x231   : > { %v1336_v26 = vpop.f32.mrb[49].mxu1 }
 0x232   : > { %v15251_v34 = vpop.f32.mrb[50].mxu1 }
 0x233   : > { %v1466_v35 = vpack.c.bf16 %v15251_v34, %v15250_v20  ;;  %v1339_v36 = vpop.f32.mrb[51].mxu1 }
 0x234   : > { %v1465_v37 = vpack.c.bf16 %v1339_v36, %v1336_v26 }
 0x236   : > { %1505 = vrot.lane.b32.xlu1 %v1465_v37, %s22930_s30 }
 0x238   : > { %v18130_v38 = vpop.f32.mrb[52].mxu1 }
 0x239   : > { %v18132_v39 = vpop.f32.mrb[53].mxu1 }
 0x23a   : > { %1507 = vrot.lane.b32.xlu1 %v1466_v35, %s22930_s30  ;;  %v18135_v40 = vpop.f32.mrb[54].mxu1 }
 0x23b   : > { %v1468_v53 = vpack.c.bf16 %v18135_v40, %v18130_v38  ;;  %v18142_v55 = vpop.f32.mrb[55].mxu1  ;;  %v15647_v38 = vld [vmem:[%s22941_s23 + $0x190] sm:$0xff]   ;;  %v15648_v40 = vld [vmem:[%s22941_s23 + $0x1d8] sm:$0xff]  }
 0x23c   : > { %v1467_v57 = vpack.c.bf16 %v18142_v55, %v18132_v39 }
 0x23e   : > { %1481 = vrot.lane.b32.xlu1 %v1449_v5, %s22930_s30 }
 0x240   : > { %v15258_v62 = vpop.f32.mrb[56].mxu1 }
 0x241   : > { %v1368_v0 = vpop.f32.mrb[57].mxu1 }
 0x242   : > { %v15259_v1 = vpop.f32.mrb[58].mxu1 }
 0x243   : > { %v1470_v17 = vpack.c.bf16 %v15259_v1, %v15258_v62  ;;  %v1371_v18 = vpop.f32.mrb[59].mxu1 }
 0x244   : > { %v1469_v20 = vpack.c.bf16 %v1371_v18, %v1368_v0 }
 0x246   : > { %1511 = vrot.lane.b32.xlu0 %v1469_v20, %s22930_s30 }
 0x248   : > { %v18160_v60 = vpop.f32.mrb[60].mxu1 }
 0x249   : > { %v18162_v3 = vpop.f32.mrb[61].mxu1 }
 0x24a   : > { %1513 = vrot.lane.b32.xlu0 %v1470_v17, %s22930_s30  ;;  %v18165_v5 = vpop.f32.mrb[62].mxu1 }
 0x24b   : > { %v1472_v26 = vpack.c.bf16 %v18165_v5, %v18160_v60  ;;  %v18169_v34 = vpop.f32.mrb[63].mxu1 }
 0x24c   : > { %v1471_v35 = vpack.c.bf16 %v18169_v34, %v18162_v3 }
 0x24e   : > { %1487 = vrot.lane.b32.xlu0 %v1453_v27, %s22930_s30 }
 0x250   : > { %v15266_v36 = vpop.f32.mrb[64].mxu1 }
 0x251   : > { %v1400_v37 = vpop.f32.mrb[65].mxu1 }
 0x252   : > { %v15267_v42 = vpop.f32.mrb[66].mxu1 }
 0x253   : > { %v1474_v56 = vpack.c.bf16 %v15267_v42, %v15266_v36  ;;  %v1403_v59 = vpop.f32.mrb[67].mxu1 }
 0x254   : > { %v1473_v61 = vpack.c.bf16 %v1403_v59, %v1400_v37 }
 0x256   : > { %1517 = vrot.lane.b32.xlu1 %v1473_v61, %s22930_s30 }
 0x258   : > { %v18178_v62 = vpop.f32.mrb[68].mxu1 }
 0x259   : > { %v18180_v0 = vpop.f32.mrb[69].mxu1 }
 0x25a   : > { %1483 = vrot.lane.b32.xlu1 %v1450_v2, %s22930_s30  ;;  %v18186_v1 = vpop.f32.mrb[70].mxu1 }
 0x25b   : > { %v1476_v22 = vpack.c.bf16 %v18186_v1, %v18178_v62  ;;  %v18190_v25 = vpop.f32.mrb[71].mxu1 }
 0x25c   : > { %v1475_v27 = vpack.c.bf16 %v18190_v25, %v18180_v0 }
 0x25e   : > { %1519 = vrot.lane.b32.xlu1 %v1474_v56, %s22930_s30  ;;  %v15619_v56 = vld [vmem:[%s22941_s23 + $0x100] sm:$0xff]  }
 0x260   : > { %v15274_v17 = vpop.f32.mrb[72].mxu1 }
 0x261   : > { %v1432_v18 = vpop.f32.mrb[73].mxu1 }
 0x262   : > { %v15275_v20 = vpop.f32.mrb[74].mxu1 }
 0x263   : > { %v1478_v36 = vpack.c.bf16 %v15275_v20, %v15274_v17  ;;  %v1435_v37 = vpop.f32.mrb[75].mxu1  ;;  %v15635_v17 = vld [vmem:[%s22941_s23 + $0x130] sm:$0xff]   ;;  %v15637_v20 = vld [vmem:[%s22941_s23 + $0x138] sm:$0xff]  }
 0x264   : > { %v1477_v42 = vpack.c.bf16 %v1435_v37, %v1432_v18  ;;  %v15636_v18 = vld [vmem:[%s22941_s23 + $0x178] sm:$0xff]   ;;  %v15640_v37 = vld [vmem:[%s22941_s23 + $0x1c0] sm:$0xff]  }
 0x266   : > { %1523 = vrot.lane.b32.xlu0 %v1477_v42, %s22930_s30 }
 0x26a   : > { %1489 = vrot.lane.b32.xlu0 %v1454_v24, %s22930_s30 }
 0x26e   : > { %1525 = vrot.lane.b32.xlu0 %v1478_v36, %s22930_s30  ;;  %s17671_s30 = smov 32  }
 0x297   : > { %v1502_v2 = vpop.permute.xlu1 %1501 }
 0x298   : > { %v1500_v58 = vpop.permute.xlu0 %1499  ;;  %v1558_v24 = vsel %vm1527_vm3, %v1460_v45, %v1502_v2  ;;  %v15628_v45 = vld [vmem:[%s22941_s23 + $0x160] sm:$0xff]  }
 0x299   : > { %v1554_v63 = vsel %vm1527_vm3, %v1459_v54, %v1500_v58  ;;  %v15629_v54 = vld [vmem:[%s22941_s23 + $0x120] sm:$0xff]  }
 0x29a   : > { %2192 = vmatprep.mubr.bf16.mxu0 %v1554_v63  ;;  %v15641_v63 = vld [vmem:[%s22941_s23 + $0x180] sm:$0xff]  }
 0x29b   : > { %v1496_v29 = vpop.permute.xlu1 %1495 }
 0x29c   : > { %v1494_v59 = vpop.permute.xlu0 %1493  ;;  %v1550_v41 = vsel %vm1527_vm3, %v1456_v31, %v1496_v29  ;;  %v15634_v31 = vld [vmem:[%s22941_s23 + $0x170] sm:$0xff]  }
 0x29d   : > { %v1546_v23 = vsel %vm1527_vm3, %v1455_v33, %v1494_v59  ;;  %v15626_v33 = vld [vmem:[%s22941_s23 + $0x158] sm:$0xff]  }
 0x29e   : > { %2193 = vmatmul.mubr.bf16.vlgmr.msra.gmra.mrb[0].mxu0 %v1546_v23  ;;  %v15657_v23 = vld [vmem:[%s22941_s23 + $0x1b8] sm:$0xff]  }
 0x29f   : > { %15030 = vmatpush3.bf16.msra.mxu0 %v15619_v56  ;;  %2200 = vmatprep.mubr.bf16.mxu0 %v1558_v24  ;;  %v15644_v56 = vld [vmem:[%s22941_s23 + $0x1c8] sm:$0xff]  }
 0x2a0   : > { %15031 = vmatprep.subr.bf16.mxu0 %v15622_v19 }
 0x2a3   : > { %15032 = vmatpush3.bf16.msra.mxu0 %v15623_v43 }
 0x2a4   : > { %15033 = vmatprep.subr.bf16.mxu0 %v15624_v46 }
 0x2a6   : > { %2201 = vmatmul.mubr.bf16.gmra.mrb[4].mxu0 %v1550_v41 }
 0x2a7   : > { %15034 = vmatpush3.bf16.msra.mxu0 %v15625_v32 }
 0x2a8   : > { %15035 = vmatprep.subr.bf16.mxu0 %v15626_v33  ;;  %v1506_v61 = vpop.permute.xlu1 %1505 }
 0x2a9   : > { %v1562_v59 = vsel %vm1527_vm3, %v1463_v15, %v1506_v61  ;;  %v13481_v61 = vld [vmem:[%s22942_s0] ss:$0 sm:$0xff]  ;;  %s654_s0 = scalar_lea.vmem %s22926_s21, %s22945_s27 }
 0x2ab   : > { %15036 = vmatpush3.bf16.msra.mxu0 %v15627_v44 }
 0x2ac   : > { %15037 = vmatprep.subr.bf16.mxu0 %v15628_v45  ;;  %v1508_v42 = vpop.permute.xlu1 %1507  ;;  %v15658_v45 = vld [vmem:[%s22913_s8] sm:$0xff]  }
 0x2ad   : > { %v1566_v11 = vsel %vm1527_vm3, %v1464_v8, %v1508_v42  ;;  %v15656_v8 = vld [vmem:[%s22941_s23 + $0x1f8] sm:$0xff]  }
 0x2af   : > { %15038 = vmatpush3.bf16.msra.mxu0 %v15629_v54 }
 0x2b0   : > { %15039 = vmatprep.subr.bf16.mxu0 %v15632_v28  ;;  %v1482_v55 = vpop.permute.xlu1 %1481 }
 0x2b1   : > { %v1530_v15 = vsel %vm1527_vm3, %v1447_v52, %v1482_v55  ;;  %v15651_v52 = vld [vmem:[%s22941_s23 + $0x1a0] sm:$0xff]  }
 0x2b3   : > { %15040 = vmatpush3.bf16.msra.mxu0 %v15633_v30 }
 0x2b4   : > { %15041 = vmatprep.subr.bf16.mxu0 %v15634_v31 }
 0x2b7   : > { %15042 = vmatpush3.bf16.msra.mxu0 %v15635_v17 }
 0x2b8   : > { %v1512_v36 = vpop.permute.xlu0 %1511  ;;  %15043 = vmatprep.subr.bf16.mxu0 %v15636_v18 }
 0x2b9   : > { %v1570_v58 = vsel %vm1527_vm3, %v1467_v57, %v1512_v36  ;;  %v15645_v57 = vld [vmem:[%s22941_s23 + $0x188] sm:$0xff]  }
 0x2ba   : > { %2241 = vmatprep.mubr.bf16.mxu0 %v1570_v58 }
 0x2bb   : > { %15044 = vmatpush3.bf16.msra.mxu0 %v15637_v20 }
 0x2bc   : > { %v1514_v2 = vpop.permute.xlu0 %1513  ;;  %15057 = vmatprep.subr.bf16.mxu0 %v15640_v37 }
 0x2bd   : > { %v1574_v39 = vsel %vm1527_vm3, %v1468_v53, %v1514_v2 }
 0x2be   : > { %2242 = vmatmul.mubr.bf16.vlgmr.msra.gmra.mrb[8].mxu0 %v1562_v59 }
 0x2bf   : > { %2249 = vmatprep.mubr.bf16.mxu0 %v1574_v39  ;;  %15058 = vmatpush3.bf16.msra.mxu0 %v15641_v63 }
 0x2c0   : > { %v1488_v19 = vpop.permute.xlu0 %1487  ;;  %15059 = vmatprep.subr.bf16.mxu0 %v15644_v56 }
 0x2c1   : > { %v1538_v10 = vsel %vm1527_vm3, %v1451_v16, %v1488_v19  ;;  %v15653_v16 = vld [vmem:[%s22941_s23 + $0x1a8] sm:$0xff]  }
 0x2c2   : > { %2143 = vmatprep.mubr.bf16.mxu1 %v1538_v10 }
 0x2c3   : > { %15060 = vmatpush3.bf16.msra.mxu0 %v15645_v57  ;;  %2144 = vmatmul.mubr.bf16.vlgmr.msra.gmra.mrb[76].mxu1 %v1530_v15  ;;  %v15683_v15 = vld [vmem:[%s22914_s9 + $0x200] ss:$8 sps:$4 sm:$0xff]  }
 0x2c4   : > { %15061 = vmatprep.subr.bf16.mxu0 %v15646_v6 }
 0x2c6   : > { %2250 = vmatmul.mubr.bf16.gmra.mrb[12].mxu0 %v1566_v11 }
 0x2c7   : > { %15062 = vmatpush3.bf16.msra.mxu0 %v15647_v38  ;;  %v15685_v38 = vld [vmem:[%s22914_s9 + $0x204] ss:$8 sps:$4 sm:$0xff]  }
 0x2c8   : > { %15063 = vmatprep.subr.bf16.mxu0 %v15648_v40  ;;  %v1518_v53 = vpop.permute.xlu1 %1517  ;;  %v15691_v40 = vld [vmem:[%s22914_s9 + $0x214] ss:$8 sps:$4 sm:$0xff]  }
 0x2c9   : > { %v1578_v32 = vsel %vm1527_vm3, %v1471_v35, %v1518_v53 }
 0x2cb   : > { %15064 = vmatpush3.bf16.msra.mxu0 %v15649_v48  ;;  %v15689_v48 = vld [vmem:[%s22914_s9 + $0x210] ss:$8 sps:$4 sm:$0xff]  }
 0x2cc   : > { %15065 = vmatprep.subr.bf16.mxu0 %v15650_v51  ;;  %v1484_v46 = vpop.permute.xlu1 %1483 }
 0x2cd   : > { %v1534_v0 = vsel %vm1527_vm3, %v1448_v50, %v1484_v46 }
 0x2cf   : > { %15066 = vmatpush3.bf16.msra.mxu0 %v15651_v52 }
 0x2d0   : > { %15067 = vmatprep.subr.bf16.mxu0 %v15652_v14  ;;  %v1520_v34 = vpop.permute.xlu1 %1519  ;;  %v15697_v14 = vld [vmem:[%s22914_s9 + $0x224] ss:$8 sps:$4 sm:$0xff]  }
 0x2d1   : > { %v1582_v9 = vsel %vm1527_vm3, %v1472_v26, %v1520_v34 }
 0x2d3   : > { %15068 = vmatpush3.bf16.msra.mxu0 %v15653_v16 }
 0x2d4   : > { %15069 = vmatprep.subr.bf16.mxu0 %v15654_v4 }
 0x2d7   : > { %15070 = vmatpush3.bf16.msra.mxu0 %v15655_v7 }
 0x2d8   : > { %v1524_v24 = vpop.permute.xlu0 %1523  ;;  %15071 = vmatprep.subr.bf16.mxu0 %v15656_v8 }
 0x2d9   : > { %v1586_v43 = vsel %vm1527_vm3, %v1475_v27, %v1524_v24 }
 0x2da   : > { %2290 = vmatprep.mubr.bf16.mxu0 %v1586_v43 }
 0x2db   : > { %15072 = vmatpush3.bf16.msra.mxu0 %v15657_v23 }
 0x2dc   : > { %v1490_v29 = vpop.permute.xlu0 %1489  ;;  %4355 = vmatprep.subr.bf16.mxu0 %v15685_v38 }
 0x2dd   : > { %v1542_v33 = vsel %vm1527_vm3, %v1452_v13, %v1490_v29  ;;  %v15695_v29 = vld [vmem:[%s22914_s9 + $0x220] ss:$8 sps:$4 sm:$0xff]  }
 0x2de   : > { %2291 = vmatmul.mubr.bf16.vlgmr.msra.gmra.mrb[16].mxu0 %v1578_v32  ;;  %2151 = vmatprep.mubr.bf16.mxu1 %v1542_v33 }
 0x2df   : > { %2152 = vmatmul.mubr.bf16.gmra.mrb[80].mxu1 %v1534_v0  ;;  %4356 = vmatpush1.bf16.msra.mxu0 %v15683_v15  ;;  %v15703_v0 = vld [vmem:[%s22914_s9 + $0x234] ss:$8 sps:$4 sm:$0xff]   ;;  %v15750_v15 = vld [vmem:[%s22914_s9 + $0x2a4] ss:$8 sps:$4 sm:$0xff]  }
 0x2e0   : > { %v1526_v25 = vpop.permute.xlu0 %1525  ;;  %15280 = vmatprep.mubr.msk.bf16.mxu1 %vm2488_vm4, %v15658_v45  ;;  %4357 = vmatprep.subr.bf16.mxu0 %v15691_v40 }
 0x2e1   : > { %v1590_v3 = vsel %vm1527_vm3, %v1476_v22, %v1526_v25 }
 0x2e2   : > { %2298 = vmatprep.mubr.bf16.mxu0 %v1590_v3 }
 0x2e3   : > { %4358 = vmatpush1.bf16.msra.mxu0 %v15689_v48  ;;  %v15748_v48 = vld [vmem:[%s22914_s9 + $0x2a0] ss:$8 sps:$4 sm:$0xff]  }
 0x2e4   : > { %4359 = vmatprep.subr.bf16.mxu0 %v15697_v14 }
 0x2e6   : > { %2299 = vmatmul.mubr.bf16.gmra.mrb[20].mxu0 %v1582_v9 }
 0x2e7   : > { %4360 = vmatpush1.bf16.msra.mxu0 %v15695_v29 }
 0x2e8   : > { %4361 = vmatprep.subr.bf16.mxu0 %v15703_v0 }
 0x371   : > { %v15017_v12 = vpop.f32.mrb[0].mxu0 }
 0x372   : > { %v15018_v13 = vpop.f32.mrb[1].mxu0 }
 0x373   : > { %v15019_v47 = vadd.f32 %v15018_v13, %v15017_v12  ;;  %v15020_v49 = vpop.f32.mrb[2].mxu0  ;;  %v15701_v13 = vld [vmem:[%s22914_s9 + $0x230] ss:$8 sps:$4 sm:$0xff]  }
 0x374   : > { %v15021_v50 = vpop.f32.mrb[3].mxu0  ;;  %4362 = vmatpush1.bf16.msra.mxu0 %v15701_v13 }
 0x375   : > { %v15022_v35 = vadd.f32 %v15021_v50, %v15020_v49 }
 0x379   : > { %v15023_v27 = vpop.f32.mrb[4].mxu0 }
 0x37a   : > { %v15024_v41 = vpop.f32.mrb[5].mxu0 }
 0x37b   : > { %v15025_v44 = vadd.f32 %v15024_v41, %v15023_v27  ;;  %v15026_v62 = vpop.f32.mrb[6].mxu0 }
 0x37c   : > { %v15027_v1 = vpop.f32.mrb[7].mxu0 }
 0x37d   : > { %v15028_v22 = vadd.f32 %v15027_v1, %v15026_v62 }
 0x391   : > { %v15045_v60 = vpop.f32.mrb[8].mxu0 }
 0x392   : > { %v15046_v5 = vpop.f32.mrb[9].mxu0 }
 0x393   : > { %v15047_v26 = vadd.f32 %v15046_v5, %v15045_v60  ;;  %v15048_v54 = vpop.f32.mrb[10].mxu0  ;;  %v15707_v60 = vld [vmem:[%s22914_s9 + $0x240] ss:$8 sps:$4 sm:$0xff]  }
 0x394   : > { %v15049_v28 = vpop.f32.mrb[11].mxu0 }
 0x395   : > { %v15050_v30 = vadd.f32 %v15049_v28, %v15048_v54  ;;  %v15713_v28 = vld [vmem:[%s22914_s9 + $0x250] ss:$8 sps:$4 sm:$0xff]  }
 0x396   : > { %v14989_v31 = vpop.f32.mrb[76].mxu1 }
 0x397   : > { %v14990_v17 = vpop.f32.mrb[77].mxu1 }
 0x398   : > { %v14991_v18 = vadd.f32 %v14990_v17, %v14989_v31  ;;  %v14992_v20 = vpop.f32.mrb[78].mxu1  ;;  %v15722_v31 = vld [vmem:[%s22914_s9 + $0x264] ss:$8 sps:$4 sm:$0xff]   ;;  %v15720_v17 = vld [vmem:[%s22914_s9 + $0x260] ss:$8 sps:$4 sm:$0xff]  }
 0x399   : > { %v15051_v36 = vpop.f32.mrb[12].mxu0  ;;  %v14993_v37 = vpop.f32.mrb[79].mxu1 }
 0x39a   : > { %v2146_v42 = vadd.f32 %v14991_v18, %v13481_v61  ;;  %v14994_v58 = vadd.f32 %v14993_v37, %v14992_v20  ;;  %v15052_v63 = vpop.f32.mrb[13].mxu0  ;;  %v15729_v20 = vld [vmem:[%s22914_s9 + $0x274] ss:$8 sps:$4 sm:$0xff]   ;;  %v15727_v37 = vld [vmem:[%s22914_s9 + $0x270] ss:$8 sps:$4 sm:$0xff]  }
 0x39b   : > { %v15053_v2 = vadd.f32 %v15052_v63, %v15051_v36  ;;  %v15054_v56 = vpop.f32.mrb[14].mxu0 }
 0x39c   : > { %v2195_v59 = vadd.f32 %v15019_v47, %v2146_v42  ;;  %v2149_v39 = vadd.f32 %v14994_v58, %v13481_v61  ;;  %v15055_v55 = vpop.f32.mrb[15].mxu0  ;;  %v15736_v58 = vld [vmem:[%s22914_s9 + $0x284] ss:$8 sps:$4 sm:$0xff]  }
 0x39d   : > { %v15056_v57 = vadd.f32 %v15055_v55, %v15054_v56  ;;  %v15741_v55 = vld [vmem:[%s22914_s9 + $0x290] ss:$8 sps:$4 sm:$0xff]  }
 0x39e   : > { %v2198_v19 = vadd.f32 %v15022_v35, %v2149_v39  ;;  %v2244_v6 = vadd.f32 %v15047_v26, %v2195_v59  ;;  %v15709_v35 = vld [vmem:[%s22914_s9 + $0x244] ss:$8 sps:$4 sm:$0xff]   ;;  %v15743_v59 = vld [vmem:[%s22914_s9 + $0x294] ss:$8 sps:$4 sm:$0xff]  }
 0x39f   : > { %4363 = vmatprep.subr.bf16.mxu0 %v15709_v35 }
 0x3a0   : > { %v2247_v10 = vadd.f32 %v15050_v30, %v2198_v19  ;;  %4364 = vmatpush1.bf16.msra.mxu0 %v15707_v60  ;;  %v17670_v60 = vmov 65535  }
 0x3b1   : > { %v15073_v11 = vpop.f32.mrb[16].mxu0 }
 0x3b2   : > { %v15074_v51 = vpop.f32.mrb[17].mxu0  ;;  %v14995_v52 = vpop.f32.mrb[80].mxu1 }
 0x3b3   : > { %v15075_v16 = vadd.f32 %v15074_v51, %v15073_v11  ;;  %v15076_v4 = vpop.f32.mrb[18].mxu0  ;;  %v14996_v7 = vpop.f32.mrb[81].mxu1 }
 0x3b4   : > { %v14997_v8 = vadd.f32 %v14996_v7, %v14995_v52  ;;  %v15077_v53 = vpop.f32.mrb[19].mxu0  ;;  %v14998_v23 = vpop.f32.mrb[82].mxu1 }
 0x3b5   : > { %v2293_v24 = vadd.f32 %v15075_v16, %v2244_v6  ;;  %v15078_v43 = vadd.f32 %v15077_v53, %v15076_v4  ;;  %v14999_v46 = vpop.f32.mrb[83].mxu1 }
 0x3b6   : > { %v2154_v32 = vadd.f32 %v14997_v8, %v13481_v61  ;;  %v15000_v33 = vadd.f32 %v14999_v46, %v14998_v23 }
 0x3b7   : > { %v2296_v25 = vadd.f32 %v15078_v43, %v2247_v10 }
 0x3b8   : > { %v2203_v3 = vadd.f32 %v15025_v44, %v2154_v32  ;;  %v2157_v34 = vadd.f32 %v15000_v33, %v13481_v61  ;;  %v13546_v33 = vld [vmem:[%s22911_s6] ss:$0 sm:$0xff] }
 0x3b9   : > { %v2307_v9 = vadd.f32 %v2296_v25, %v2293_v24  ;;  %v15079_v12 = vpop.f32.mrb[20].mxu0 }
 0x3ba   : > { %v2206_v47 = vadd.f32 %v15028_v22, %v2157_v34  ;;  %v2252_v49 = vadd.f32 %v15053_v2, %v2203_v3  ;;  %v15080_v50 = vpop.f32.mrb[21].mxu0  ;;  %v15715_v22 = vld [vmem:[%s22914_s9 + $0x254] ss:$8 sps:$4 sm:$0xff]   ;;  %v15734_v2 = vld [vmem:[%s22914_s9 + $0x280] ss:$8 sps:$4 sm:$0xff]  }
 0x3bb   : > { %v15081_v27 = vadd.f32 %v15080_v50, %v15079_v12  ;;  %v15082_v41 = vpop.f32.mrb[22].mxu0  ;;  %4365 = vmatprep.subr.bf16.mxu0 %v15715_v22  ;;  %v2539_v22 = vsel %vm2537_vm5, 4294967295, %v17670_v60  ;;  %v15769_v60 = vld [vmem:[%s22914_s9 + $0x2d4] ss:$8 sps:$4 sm:$0xff]  }
 0x3bc   : > { %v2255_v62 = vadd.f32 %v15056_v57, %v2206_v47  ;;  %v15083_v44 = vpop.f32.mrb[23].mxu0  ;;  %4366 = vmatpush1.bf16.msra.mxu0 %v15713_v28 }
 0x3bd   : > { %v2301_v1 = vadd.f32 %v15081_v27, %v2252_v49  ;;  %v15084_v45 = vadd.f32 %v15083_v44, %v15082_v41  ;;  %4367 = vmatprep.subr.bf16.mxu0 %v15722_v31  ;;  %v18439_v31 = vsel %vm2538_vm6, %v2539_v22, 0  ;;  %v15773_v22 = vld [vmem:[%s22914_s9 + $0x2e0] ss:$8 sps:$4 sm:$0xff]  }
 0x3bf   : > { %v2308_v5 = vadd.f32 %v2307_v9, %v2301_v1  ;;  %v2304_v26 = vadd.f32 %v15084_v45, %v2255_v62  ;;  %v13547_v9 = vld [vmem:[%s22912_s7] ss:$0 sm:$0xff] }
 0x3c0   : > { %4368 = vmatpush1.bf16.msra.mxu0 %v15720_v17 }
 0x3c1   : > { %v2309_v54 = vsel %vm1152_vm2, %v2304_v26, 0.0  ;;  %4369 = vmatprep.subr.bf16.mxu0 %v15729_v20  ;;  %v15659_v20 = vld [vmem:[%s22913_s8 + $0x8] sm:$0xff]  }
 0x3c2   : > { %v2310_v30 = vadd.f32 %v2309_v54, %v2308_v5 }
 0x3c4   : > { %v2311_v61 = vrot.slane %v2310_v30, 4  ;;  %4370 = vmatpush1.bf16.msra.mxu0 %v15727_v37  ;;  %v15668_v37 = vld [vmem:[%s22914_s9] ss:$8 sps:$4 sm:$0xff]  }
 0x3c5   : > { %4371 = vmatprep.subr.bf16.mxu0 %v15736_v58  ;;  %v15671_v58 = vld [vmem:[%s22914_s9 + $0x10] ss:$8 sps:$4 sm:$0xff]  }
 0x3c6   : > { %v2312_v18 = vadd.f32 %v2311_v61, %v2310_v30 }
 0x3c8   : > { %v2313_v36 = vrot.slane %v2312_v18, 2  ;;  %4372 = vmatpush1.bf16.msra.mxu0 %v15734_v2  ;;  %v15661_v2 = vld [vmem:[%s22913_s8 + $0x18] sm:$0xff]  }
 0x3c9   : > { %4373 = vmatprep.subr.bf16.mxu0 %v15743_v59  ;;  %v15674_v59 = vld [vmem:[%s22914_s9 + $0x20] ss:$8 sps:$4 sm:$0xff]  }
 0x3ca   : > { %v2314_v42 = vadd.f32 %v2313_v36, %v2312_v18  ;;  %v15670_v18 = vld [vmem:[%s22914_s9 + $0x4] ss:$8 sps:$4 sm:$0xff]   ;;  %v15660_v36 = vld [vmem:[%s22913_s8 + $0x10] sm:$0xff]  }
 0x3cc   : > { %v2315_v63 = vrot.slane %v2314_v42, 1  ;;  %4374 = vmatpush1.bf16.msra.mxu0 %v15741_v55  ;;  %v15677_v55 = vld [vmem:[%s22914_s9 + $0x30] ss:$8 sps:$4 sm:$0xff]  }
 0x3cd   : > { %4375 = vmatprep.subr.bf16.mxu0 %v15750_v15  ;;  %v15688_v15 = vld [vmem:[%s22914_s9 + $0x54] ss:$8 sps:$4 sm:$0xff]  }
 0x3ce   : > { %v2316_v56 = vadd.f32 %v2315_v63, %v2314_v42  ;;  %v15673_v42 = vld [vmem:[%s22914_s9 + $0x14] ss:$8 sps:$4 sm:$0xff]   ;;  %v15676_v63 = vld [vmem:[%s22914_s9 + $0x24] ss:$8 sps:$4 sm:$0xff]  }
 0x3d0   : > { %v2318_v39 = vmul.f32 0.04, %v2316_v56  ;;  %4376 = vmatpush1.bf16.msra.mxu0 %v15748_v48  ;;  %v15662_v56 = vld [vmem:[%s22913_s8 + $0x20] sm:$0xff]  }
 0x3d1   : > { %v15666_v48 = vld [vmem:[%s22913_s8 + $0x40] sm:$0xff]  }
 0x3d2   : > { %v2319_v57 = vsub.f32 %v2293_v24, %v2318_v39  ;;  %v2320_v19 = vsub.f32 %v2296_v25, %v2318_v39  ;;  %v2321_v6 = vsub.f32 %v2301_v1, %v2318_v39  ;;  %v2322_v10 = vsub.f32 %v2304_v26, %v2318_v39  ;;  %v15679_v39 = vld [vmem:[%s22914_s9 + $0x34] ss:$8 sps:$4 sm:$0xff]  }
 0x3d4   : > { %v2323_v38 = vmul.f32 %v2319_v57, %v2319_v57  ;;  %v2324_v40 = vmul.f32 %v2320_v19, %v2320_v19  ;;  %v2326_v11 = vmul.f32 %v2322_v10, %v2322_v10  ;;  %v2325_v51 = vmul.f32 %v2321_v6, %v2321_v6 }
 0x3d6   : > { %v2327_v52 = vadd.f32 %v2324_v40, %v2323_v38  ;;  %v2329_v16 = vsel %vm1152_vm2, %v2326_v11, 0.0  ;;  %v15686_v38 = vld [vmem:[%s22914_s9 + $0x50] ss:$8 sps:$4 sm:$0xff]   ;;  %v15694_v40 = vld [vmem:[%s22914_s9 + $0x64] ss:$8 sps:$4 sm:$0xff]  }
 0x3d7   : > { %v15665_v11 = vld [vmem:[%s22913_s8 + $0x38] sm:$0xff]  }
 0x3d8   : > { %v2328_v14 = vadd.f32 %v2327_v52, %v2325_v51  ;;  %v15692_v51 = vld [vmem:[%s22914_s9 + $0x60] ss:$8 sps:$4 sm:$0xff]   ;;  %v15700_v52 = vld [vmem:[%s22914_s9 + $0x74] ss:$8 sps:$4 sm:$0xff]  }
 0x3da   : > { %v2330_v4 = vadd.f32 %v2329_v16, %v2328_v14  ;;  %v15698_v14 = vld [vmem:[%s22914_s9 + $0x70] ss:$8 sps:$4 sm:$0xff]   ;;  %v15706_v16 = vld [vmem:[%s22914_s9 + $0x84] ss:$8 sps:$4 sm:$0xff]  }
 0x3dc   : > { %v2331_v7 = vrot.slane %v2330_v4, 4 }
 0x3de   : > { %v2332_v8 = vadd.f32 %v2331_v7, %v2330_v4  ;;  %v15667_v4 = vld [vmem:[%s22913_s8 + $0x48] sm:$0xff]  }
 0x3df   : > { %v15704_v7 = vld [vmem:[%s22914_s9 + $0x80] ss:$8 sps:$4 sm:$0xff]  }
 0x3e0   : > { %v2333_v53 = vrot.slane %v2332_v8, 2 }
 0x3e2   : > { %v2334_v23 = vadd.f32 %v2333_v53, %v2332_v8  ;;  %v15716_v8 = vld [vmem:[%s22913_s8 + $0x50] sm:$0xff]  }
 0x3e3   : > { %v15712_v53 = vld [vmem:[%s22914_s9 + $0x94] ss:$8 sps:$4 sm:$0xff]  }
 0x3e4   : > { %v2335_v24 = vrot.slane %v2334_v23, 1 }
 0x3e6   : > { %v2336_v43 = vadd.f32 %v2335_v24, %v2334_v23  ;;  %v15710_v23 = vld [vmem:[%s22914_s9 + $0x90] ss:$8 sps:$4 sm:$0xff]   ;;  %v15719_v24 = vld [vmem:[%s22914_s9 + $0xa4] ss:$8 sps:$4 sm:$0xff]  }
 0x3e8   : > { %v2337_v46 = vmul.f32 0.04, %v2336_v43  ;;  %v15723_v43 = vld [vmem:[%s22913_s8 + $0x58] sm:$0xff]  }
 0x3ea   : > { %v2338_v29 = vadd.f32 1e-05, %v2337_v46  ;;  %v15717_v46 = vld [vmem:[%s22914_s9 + $0xa0] ss:$8 sps:$4 sm:$0xff]  }
 0x3ec   : > { %17642 = vrsqrt.f32 %v2338_v29  ;;  %v15730_v29 = vld [vmem:[%s22913_s8 + $0x60] sm:$0xff]  }
 0x3f6   : > { %v17643_v32 = vpop.eup %17642 }
 0x3f7   : > { %v2343_v0 = vmul.f32 %v17643_v32, %v2322_v10  ;;  %v2340_v25 = vmul.f32 %v17643_v32, %v2319_v57  ;;  %v2341_v3 = vmul.f32 %v17643_v32, %v2320_v19  ;;  %v2342_v34 = vmul.f32 %v17643_v32, %v2321_v6  ;;  %v15682_v57 = vld [vmem:[%s22914_s9 + $0x44] ss:$8 sps:$4 sm:$0xff]   ;;  %v15664_v6 = vld [vmem:[%s22913_s8 + $0x30] sm:$0xff]   ;;  %v15680_v10 = vld [vmem:[%s22914_s9 + $0x40] ss:$8 sps:$4 sm:$0xff]  }
 0x3f8   : > { %v15663_v19 = vld [vmem:[%s22913_s8 + $0x28] sm:$0xff]   ;;  %v15726_v32 = vld [vmem:[%s22914_s9 + $0xb4] ss:$8 sps:$4 sm:$0xff]  }
 0x3f9   : > { %v2354_v12 = vmul.f32 %v13546_v33, %v2343_v0  ;;  %v2351_v13 = vmul.f32 %v13546_v33, %v2340_v25  ;;  %v2352_v47 = vmul.f32 %v13546_v33, %v2341_v3  ;;  %v2353_v49 = vmul.f32 %v13546_v33, %v2342_v34  ;;  %v15724_v33 = vld [vmem:[%s22914_s9 + $0xb0] ss:$8 sps:$4 sm:$0xff]   ;;  %v15733_v0 = vld [vmem:[%s22914_s9 + $0xc4] ss:$8 sps:$4 sm:$0xff]   ;;  %v15731_v3 = vld [vmem:[%s22914_s9 + $0xc0] ss:$8 sps:$4 sm:$0xff]  }
 0x3fa   : > { %v15737_v25 = vld [vmem:[%s22913_s8 + $0x68] sm:$0xff]   ;;  %v15744_v34 = vld [vmem:[%s22913_s8 + $0x70] sm:$0xff]  }
 0x3fb   : > { %v2362_v50 = vadd.f32 %v13547_v9, %v2351_v13  ;;  %v2363_v35 = vadd.f32 %v13547_v9, %v2352_v47  ;;  %v2364_v27 = vadd.f32 %v13547_v9, %v2353_v49  ;;  %v2365_v41 = vadd.f32 %v13547_v9, %v2354_v12  ;;  %v15740_v9 = vld [vmem:[%s22914_s9 + $0xd4] ss:$8 sps:$4 sm:$0xff]   ;;  %v15738_v12 = vld [vmem:[%s22914_s9 + $0xd0] ss:$8 sps:$4 sm:$0xff]   ;;  %v15747_v13 = vld [vmem:[%s22914_s9 + $0xe4] ss:$8 sps:$4 sm:$0xff]  }
 0x3fc   : > { %v15751_v47 = vld [vmem:[%s22913_s8 + $0x78] sm:$0xff]   ;;  %v15745_v49 = vld [vmem:[%s22914_s9 + $0xe0] ss:$8 sps:$4 sm:$0xff]  }
 0x3fd   : > { %v2366_v62 = vmul.f32 0.2, %v2362_v50  ;;  %v2367_v44 = vmul.f32 0.2, %v2363_v35  ;;  %v2368_v1 = vmul.f32 0.2, %v2364_v27 }
 0x3fe   : > { %v2369_v45 = vmul.f32 0.2, %v2365_v41 }
 0x3ff   : > { %v2370_v5 = vmax.f32 %v2362_v50, %v2366_v62  ;;  %v2371_v26 = vmax.f32 %v2363_v35, %v2367_v44  ;;  %v2372_v54 = vmax.f32 %v2364_v27, %v2368_v1  ;;  %v15754_v50 = vld [vmem:[%s22914_s9 + $0xf4] ss:$8 sps:$4 sm:$0xff]   ;;  %v15752_v27 = vld [vmem:[%s22914_s9 + $0xf0] ss:$8 sps:$4 sm:$0xff]   ;;  %v15760_v62 = vld [vmem:[%s22914_s9 + $0x104] ss:$8 sps:$4 sm:$0xff]  }
 0x400   : > { %v2373_v28 = vmax.f32 %v2365_v41, %v2369_v45  ;;  %v15757_v35 = vld [vmem:[%s22914_s9 + $0x2b4] ss:$8 sps:$4 sm:$0xff]   ;;  %v15755_v41 = vld [vmem:[%s22914_s9 + $0x2b0] ss:$8 sps:$4 sm:$0xff]   ;;  %v15763_v44 = vld [vmem:[%s22914_s9 + $0x2c4] ss:$8 sps:$4 sm:$0xff]  }
 0x401   : > { %v2406_v30 = vpack.c.bf16 %v2371_v26, %v2370_v5  ;;  %4377 = vmatprep.subr.bf16.mxu0 %v15757_v35  ;;  %v15761_v1 = vld [vmem:[%s22914_s9 + $0x2c0] ss:$8 sps:$4 sm:$0xff]   ;;  %v15767_v45 = vld [vmem:[%s22914_s9 + $0x2d0] ss:$8 sps:$4 sm:$0xff]   ;;  %v15775_v5 = vld [vmem:[%s22914_s9 + $0x2e4] ss:$8 sps:$4 sm:$0xff]  }
 0x402   : > { %v2407_v61 = vpack.c.bf16 %v2373_v28, %v2372_v54  ;;  %4378 = vmatpush1.bf16.msra.mxu0 %v15755_v41  ;;  %v15781_v26 = vld [vmem:[%s22914_s9 + $0x2f4] ss:$8 sps:$4 sm:$0xff]   ;;  %v15779_v54 = vld [vmem:[%s22914_s9 + $0x2f0] ss:$8 sps:$4 sm:$0xff]   ;;  %v15787_v28 = vld [vmem:[%s22914_s9 + $0x304] ss:$8 sps:$4 sm:$0xff]  }
 0x403   : > { %15276 = vmatprep.subr.bf16.mxu1 %v2406_v30  ;;  %4379 = vmatprep.subr.bf16.mxu0 %v15763_v44  ;;  %v15806_v41 = vld [vmem:[%s22914_s9 + $0x180] ss:$8 sps:$4 sm:$0xff]  }
 0x404   : > { %15277 = vmatpush3.bf16.msra.mxu1 %v2406_v30  ;;  %v2542_v17 = vand.u32 %v18439_v31, %v2407_v61 }
 0x406   : > { %15278 = vmatprep.subr.bf16.mxu1 %v2542_v17  ;;  %4380 = vmatpush1.bf16.msra.mxu0 %v15761_v1 }
 0x407   : > { %4381 = vmatprep.subr.bf16.mxu0 %v15769_v60  ;;  %v15817_v60 = vld [vmem:[%s22914_s9 + $0x354] ss:$8 sps:$4 sm:$0xff]  }
 0x408   : > { %15279 = vmatpush3.bf16.msra.mxu1 %v2542_v17 }
 0x409   : > { %4269 = vmatprep.subr.bf16.mxu1 %v15670_v18 }
 0x40a   : > { %4382 = vmatpush1.bf16.msra.mxu0 %v15767_v45  ;;  %v15814_v45 = vld [vmem:[%s22914_s9 + $0x194] ss:$8 sps:$4 sm:$0xff]  }
 0x40b   : > { %15281 = vmatmul.mubr.msk.bf16.vlgmr.msra.gmra.mrb[84].mxu1 %vm2488_vm4, %v15659_v20  ;;  %4383 = vmatprep.subr.bf16.mxu0 %v15775_v5  ;;  %v15812_v5 = vld [vmem:[%s22914_s9 + $0x190] ss:$8 sps:$4 sm:$0xff]  }
 0x40c   : > { %15284 = vmatprep.mubr.msk.bf16.mxu1 %vm2488_vm4, %v15660_v36  ;;  %4270 = vmatpush1.bf16.msra.mxu1 %v15668_v37  ;;  %v15758_v36 = vld [vmem:[%s22914_s9 + $0x100] ss:$8 sps:$4 sm:$0xff]  }
 0x40d   : > { %4271 = vmatprep.subr.bf16.mxu1 %v15673_v42  ;;  %v15766_v42 = vld [vmem:[%s22914_s9 + $0x114] ss:$8 sps:$4 sm:$0xff]  }
 0x40e   : > { %4384 = vmatpush1.bf16.msra.mxu0 %v15773_v22 }
 0x40f   : > { %4385 = vmatprep.subr.bf16.mxu0 %v15781_v26  ;;  %v15815_v26 = vld [vmem:[%s22914_s9 + $0x350] ss:$8 sps:$4 sm:$0xff]  }
 0x410   : > { %4272 = vmatpush1.bf16.msra.mxu1 %v15671_v58  ;;  %v15764_v58 = vld [vmem:[%s22914_s9 + $0x110] ss:$8 sps:$4 sm:$0xff]  }
 0x411   : > { %4273 = vmatprep.subr.bf16.mxu1 %v15676_v63 }
 0x412   : > { %4386 = vmatpush1.bf16.msra.mxu0 %v15779_v54  ;;  %v15820_v54 = vld [vmem:[%s22914_s9 + $0x1a4] ss:$8 sps:$4 sm:$0xff]  }
 0x413   : > { %15285 = vmatmul.mubr.msk.bf16.gmra.mrb[88].mxu1 %vm2488_vm4, %v15661_v2  ;;  %4398 = vmatprep.subr.bf16.mxu0 %v15787_v28  ;;  %v15772_v2 = vld [vmem:[%s22914_s9 + $0x124] ss:$8 sps:$4 sm:$0xff]  }
 0x414   : > { %15288 = vmatprep.mubr.msk.bf16.mxu1 %vm2488_vm4, %v15662_v56  ;;  %4274 = vmatpush1.bf16.msra.mxu1 %v15674_v59  ;;  %v15823_v28 = vld [vmem:[%s22914_s9 + $0x364] ss:$8 sps:$4 sm:$0xff]  }
 0x415   : > { %4275 = vmatprep.subr.bf16.mxu1 %v15679_v39 }
 0x418   : > { %4276 = vmatpush1.bf16.msra.mxu1 %v15677_v55 }
 0x419   : > { %4277 = vmatprep.subr.bf16.mxu1 %v15682_v57  ;;  %v15770_v57 = vld [vmem:[%s22914_s9 + $0x120] ss:$8 sps:$4 sm:$0xff]  }
 0x41b   : > { %15289 = vmatmul.mubr.msk.bf16.gmra.mrb[92].mxu1 %vm2488_vm4, %v15663_v19 }
 0x41c   : > { %15292 = vmatprep.mubr.msk.bf16.mxu1 %vm2488_vm4, %v15664_v6  ;;  %4278 = vmatpush1.bf16.msra.mxu1 %v15680_v10  ;;  %v15778_v6 = vld [vmem:[%s22914_s9 + $0x134] ss:$8 sps:$4 sm:$0xff]   ;;  %v15776_v10 = vld [vmem:[%s22914_s9 + $0x130] ss:$8 sps:$4 sm:$0xff]  }
 0x41d   : > { %4279 = vmatprep.subr.bf16.mxu1 %v15688_v15 }
 0x420   : > { %4280 = vmatpush1.bf16.msra.mxu1 %v15686_v38  ;;  %v15784_v38 = vld [vmem:[%s22914_s9 + $0x144] ss:$8 sps:$4 sm:$0xff]  }
 0x421   : > { %4281 = vmatprep.subr.bf16.mxu1 %v15694_v40 }
 0x423   : > { %15293 = vmatmul.mubr.msk.bf16.gmra.mrb[96].mxu1 %vm2488_vm4, %v15665_v11 }
 0x424   : > { %15296 = vmatprep.mubr.msk.bf16.mxu1 %vm2488_vm4, %v15666_v48  ;;  %4282 = vmatpush1.bf16.msra.mxu1 %v15692_v51 }
 0x425   : > { %4283 = vmatprep.subr.bf16.mxu1 %v15700_v52  ;;  %v15782_v52 = vld [vmem:[%s22914_s9 + $0x140] ss:$8 sps:$4 sm:$0xff]  }
 0x428   : > { %4284 = vmatpush1.bf16.msra.mxu1 %v15698_v14  ;;  %v15785_v14 = vld [vmem:[%s22914_s9 + $0x300] ss:$8 sps:$4 sm:$0xff]  }
 0x429   : > { %4285 = vmatprep.subr.bf16.mxu1 %v15706_v16 }
 0x42b   : > { %15297 = vmatmul.mubr.msk.bf16.gmra.mrb[100].mxu1 %vm2488_vm4, %v15667_v4  ;;  %v15790_v4 = vld [vmem:[%s22914_s9 + $0x154] ss:$8 sps:$4 sm:$0xff]  }
 0x42c   : > { %4286 = vmatpush1.bf16.msra.mxu1 %v15704_v7  ;;  %15300 = vmatprep.mubr.msk.bf16.mxu1 %vm2488_vm4, %v15716_v8  ;;  %v15793_v7 = vld [vmem:[%s22914_s9 + $0x314] ss:$8 sps:$4 sm:$0xff]   ;;  %v15788_v8 = vld [vmem:[%s22914_s9 + $0x150] ss:$8 sps:$4 sm:$0xff]  }
 0x42d   : > { %4287 = vmatprep.subr.bf16.mxu1 %v15712_v53  ;;  %v15791_v53 = vld [vmem:[%s22914_s9 + $0x310] ss:$8 sps:$4 sm:$0xff]  }
 0x430   : > { %4288 = vmatpush1.bf16.msra.mxu1 %v15710_v23  ;;  %v15796_v23 = vld [vmem:[%s22914_s9 + $0x164] ss:$8 sps:$4 sm:$0xff]  }
 0x431   : > { %4289 = vmatprep.subr.bf16.mxu1 %v15719_v24  ;;  %v15799_v24 = vld [vmem:[%s22914_s9 + $0x324] ss:$8 sps:$4 sm:$0xff]  }
 0x433   : > { %15301 = vmatmul.mubr.msk.bf16.gmra.mrb[104].mxu1 %vm2488_vm4, %v15723_v43 }
 0x434   : > { %4290 = vmatpush1.bf16.msra.mxu1 %v15717_v46  ;;  %15304 = vmatprep.mubr.msk.bf16.mxu1 %vm2488_vm4, %v15730_v29 }
 0x435   : > { %4291 = vmatprep.subr.bf16.mxu1 %v15726_v32  ;;  %v15794_v32 = vld [vmem:[%s22914_s9 + $0x160] ss:$8 sps:$4 sm:$0xff]  }
 0x438   : > { %4292 = vmatpush1.bf16.msra.mxu1 %v15724_v33  ;;  %v15797_v33 = vld [vmem:[%s22914_s9 + $0x320] ss:$8 sps:$4 sm:$0xff]  }
 0x439   : > { %4293 = vmatprep.subr.bf16.mxu1 %v15733_v0 }
 0x43b   : > { %15305 = vmatmul.mubr.msk.bf16.gmra.mrb[108].mxu1 %vm2488_vm4, %v15737_v25 }
 0x43c   : > { %4294 = vmatpush1.bf16.msra.mxu1 %v15731_v3  ;;  %15308 = vmatprep.mubr.msk.bf16.mxu1 %vm2488_vm4, %v15744_v34  ;;  %v15802_v3 = vld [vmem:[%s22914_s9 + $0x174] ss:$8 sps:$4 sm:$0xff]  }
 0x43d   : > { %4295 = vmatprep.subr.bf16.mxu1 %v15740_v9  ;;  %v15805_v34 = vld [vmem:[%s22914_s9 + $0x334] ss:$8 sps:$4 sm:$0xff]  }
 0x440   : > { %4296 = vmatpush1.bf16.msra.mxu1 %v15738_v12  ;;  %v15800_v12 = vld [vmem:[%s22914_s9 + $0x170] ss:$8 sps:$4 sm:$0xff]  }
 0x441   : > { %4297 = vmatprep.subr.bf16.mxu1 %v15747_v13  ;;  %v15803_v13 = vld [vmem:[%s22914_s9 + $0x330] ss:$8 sps:$4 sm:$0xff]  }
 0x443   : > { %15309 = vmatmul.mubr.msk.bf16.gmra.mrb[112].mxu1 %vm2488_vm4, %v15751_v47  ;;  %v15808_v47 = vld [vmem:[%s22914_s9 + $0x184] ss:$8 sps:$4 sm:$0xff]  }
 0x444   : > { %4298 = vmatpush1.bf16.msra.mxu1 %v15745_v49  ;;  %v15811_v49 = vld [vmem:[%s22914_s9 + $0x344] ss:$8 sps:$4 sm:$0xff]  }
 0x445   : > { %4299 = vmatprep.subr.bf16.mxu1 %v15754_v50 }
 0x448   : > { %4300 = vmatpush1.bf16.msra.mxu1 %v15752_v27 }
 0x449   : > { %4312 = vmatprep.subr.bf16.mxu1 %v15760_v62  ;;  %v15809_v62 = vld [vmem:[%s22914_s9 + $0x340] ss:$8 sps:$4 sm:$0xff]  }
 0x4de   : > { %v15282_v30 = vpop.f32.mrb[84].mxu1 }
 0x4df   : > { %v2578_v61 = vpop.f32.mrb[85].mxu1 }
 0x4e0   : > { %v15283_v17 = vpop.f32.mrb[86].mxu1 }
 0x4e1   : > { %v2706_v18 = vpack.c.bf16 %v15283_v17, %v15282_v30  ;;  %v2581_v20 = vpop.f32.mrb[87].mxu1  ;;  %v15818_v30 = vld [vmem:[%s22914_s9 + $0x1a0] ss:$8 sps:$4 sm:$0xff]   ;;  %v15826_v17 = vld [vmem:[%s22914_s9 + $0x1b4] ss:$8 sps:$4 sm:$0xff]  }
 0x4e2   : > { %v2705_v37 = vpack.c.bf16 %v2581_v20, %v2578_v61  ;;  %v15821_v61 = vld [vmem:[%s22914_s9 + $0x360] ss:$8 sps:$4 sm:$0xff]   ;;  %v15824_v20 = vld [vmem:[%s22914_s9 + $0x1b0] ss:$8 sps:$4 sm:$0xff]  }
 0x4e3   : > { %4301 = vmatprep.mubr.bf16.mxu1 %v2706_v18  ;;  %v15829_v18 = vld [vmem:[%s22914_s9 + $0x374] ss:$8 sps:$4 sm:$0xff]  }
 0x4e4   : > { %4302 = vmatmul.mubr.bf16.vlgmr.msra.gmra.mrb[116].mxu1 %v2705_v37  ;;  %v15832_v37 = vld [vmem:[%s22914_s9 + $0x1c4] ss:$8 sps:$4 sm:$0xff]  }
 0x4e5   : > { %4313 = vmatpush1.bf16.msra.mxu1 %v15758_v36  ;;  %v15827_v36 = vld [vmem:[%s22914_s9 + $0x370] ss:$8 sps:$4 sm:$0xff]  }
 0x4e6   : > { %v15286_v63 = vpop.f32.mrb[88].mxu1  ;;  %4314 = vmatprep.subr.bf16.mxu1 %v15766_v42  ;;  %v15835_v42 = vld [vmem:[%s22914_s9 + $0x384] ss:$8 sps:$4 sm:$0xff]  }
 0x4e7   : > { %v18646_v56 = vpop.f32.mrb[89].mxu1 }
 0x4e8   : > { %v15287_v59 = vpop.f32.mrb[90].mxu1 }
 0x4e9   : > { %4315 = vmatpush1.bf16.msra.mxu1 %v15764_v58  ;;  %v2708_v39 = vpack.c.bf16 %v15287_v59, %v15286_v63  ;;  %v18648_v55 = vpop.f32.mrb[91].mxu1  ;;  %v15830_v58 = vld [vmem:[%s22914_s9 + $0x1c0] ss:$8 sps:$4 sm:$0xff]   ;;  %v15841_v59 = vld [vmem:[%s22914_s9 + $0x394] ss:$8 sps:$4 sm:$0xff]  }
 0x4ea   : > { %v2707_v19 = vpack.c.bf16 %v18648_v55, %v18646_v56  ;;  %4316 = vmatprep.subr.bf16.mxu1 %v15772_v2  ;;  %v15833_v63 = vld [vmem:[%s22914_s9 + $0x380] ss:$8 sps:$4 sm:$0xff]   ;;  %v15838_v2 = vld [vmem:[%s22914_s9 + $0x1d4] ss:$8 sps:$4 sm:$0xff]  }
 0x4eb   : > { %4344 = vmatprep.mubr.bf16.mxu1 %v2708_v39  ;;  %v15836_v39 = vld [vmem:[%s22914_s9 + $0x1d0] ss:$8 sps:$4 sm:$0xff]   ;;  %v15865_v56 = vld [vmem:[%s22914_s9 + $0x3f4] ss:$8 sps:$4 sm:$0xff]  }
 0x4ed   : > { %4317 = vmatpush1.bf16.msra.mxu1 %v15770_v57  ;;  %v15839_v57 = vld [vmem:[%s22914_s9 + $0x390] ss:$8 sps:$4 sm:$0xff]  }
 0x4ee   : > { %v15290_v15 = vpop.f32.mrb[92].mxu1  ;;  %4318 = vmatprep.subr.bf16.mxu1 %v15778_v6  ;;  %v15844_v6 = vld [vmem:[%s22914_s9 + $0x1e4] ss:$8 sps:$4 sm:$0xff]  }
 0x4ef   : > { %v2610_v40 = vpop.f32.mrb[93].mxu1 }
 0x4f0   : > { %v15291_v11 = vpop.f32.mrb[94].mxu1 }
 0x4f1   : > { %v2710_v48 = vpack.c.bf16 %v15291_v11, %v15290_v15  ;;  %4319 = vmatpush1.bf16.msra.mxu1 %v15776_v10  ;;  %v2613_v51 = vpop.f32.mrb[95].mxu1  ;;  %v15847_v10 = vld [vmem:[%s22914_s9 + $0x3a4] ss:$8 sps:$4 sm:$0xff]   ;;  %v15842_v15 = vld [vmem:[%s22914_s9 + $0x1e0] ss:$8 sps:$4 sm:$0xff]  }
 0x4f2   : > { %v2709_v16 = vpack.c.bf16 %v2613_v51, %v2610_v40  ;;  %4320 = vmatprep.subr.bf16.mxu1 %v15784_v38  ;;  %v15845_v38 = vld [vmem:[%s22914_s9 + $0x3a0] ss:$8 sps:$4 sm:$0xff]   ;;  %v15850_v40 = vld [vmem:[%s22914_s9 + $0x1f4] ss:$8 sps:$4 sm:$0xff]   ;;  %v15851_v51 = vld [vmem:[%s22914_s9 + $0x3b0] ss:$8 sps:$4 sm:$0xff]  }
 0x4f3   : > { %4387 = vmatprep.mubr.bf16.mxu0 %v2710_v48  ;;  %v15853_v11 = vld [vmem:[%s22914_s9 + $0x3b4] ss:$8 sps:$4 sm:$0xff]   ;;  %v15848_v48 = vld [vmem:[%s22914_s9 + $0x1f0] ss:$8 sps:$4 sm:$0xff]  }
 0x4f4   : > { %4388 = vmatmul.mubr.bf16.vlgmr.msra.gmra.mrb[24].mxu0 %v2709_v16  ;;  %v15859_v16 = vld [vmem:[%s22914_s9 + $0x3d4] ss:$8 sps:$4 sm:$0xff]  }
 0x4f5   : > { %4321 = vmatpush1.bf16.msra.mxu1 %v15782_v52  ;;  %4399 = vmatpush1.bf16.msra.mxu0 %v15785_v14  ;;  %v15856_v52 = vld [vmem:[%s22914_s9 + $0x3c4] ss:$8 sps:$4 sm:$0xff]   ;;  %v15854_v14 = vld [vmem:[%s22914_s9 + $0x3c0] ss:$8 sps:$4 sm:$0xff]  }
 0x4f6   : > { %4322 = vmatprep.subr.bf16.mxu1 %v15790_v4  ;;  %4400 = vmatprep.subr.bf16.mxu0 %v15793_v7  ;;  %v15294_v43 = vpop.f32.mrb[96].mxu1  ;;  %v15857_v4 = vld [vmem:[%s22914_s9 + $0x3d0] ss:$8 sps:$4 sm:$0xff]   ;;  %v15862_v7 = vld [vmem:[%s22914_s9 + $0x3e4] ss:$8 sps:$4 sm:$0xff]  }
 0x4f7   : > { %v18688_v46 = vpop.f32.mrb[97].mxu1 }
 0x4f8   : > { %v15295_v29 = vpop.f32.mrb[98].mxu1 }
 0x4f9   : > { %4323 = vmatpush1.bf16.msra.mxu1 %v15788_v8  ;;  %4401 = vmatpush1.bf16.msra.mxu0 %v15791_v53  ;;  %v2712_v0 = vpack.c.bf16 %v15295_v29, %v15294_v43  ;;  %v18696_v25 = vpop.f32.mrb[99].mxu1  ;;  %v15860_v8 = vld [vmem:[%s22914_s9 + $0x3e0] ss:$8 sps:$4 sm:$0xff]  }
 0x4fa   : > { %4324 = vmatprep.subr.bf16.mxu1 %v15796_v23  ;;  %4402 = vmatprep.subr.bf16.mxu0 %v15799_v24  ;;  %v2711_v9 = vpack.c.bf16 %v18696_v25, %v18688_v46  ;;  %v15868_v23 = vld [vmem:[%s22914_s9 + $0x404] ss:$8 sps:$4 sm:$0xff]   ;;  %v15872_v46 = vld [vmem:[%s22914_s9 + $0x420] ss:$8 sps:$4 sm:$0xff]   ;;  %v15877_v25 = vld [vmem:[%s22914_s9 + $0x434] ss:$8 sps:$4 sm:$0xff]  }
 0x4fb   : > { %4430 = vmatprep.mubr.bf16.mxu0 %v2712_v0  ;;  %v15871_v0 = vld [vmem:[%s22914_s9 + $0x414] ss:$8 sps:$4 sm:$0xff]  }
 0x4fd   : > { %4325 = vmatpush1.bf16.msra.mxu1 %v15794_v32  ;;  %4403 = vmatpush1.bf16.msra.mxu0 %v15797_v33  ;;  %v15866_v33 = vld [vmem:[%s22914_s9 + $0x400] ss:$8 sps:$4 sm:$0xff]  }
 0x4fe   : > { %4326 = vmatprep.subr.bf16.mxu1 %v15802_v3  ;;  %4404 = vmatprep.subr.bf16.mxu0 %v15805_v34  ;;  %v18718_v50 = vpop.f32.mrb[100].mxu1  ;;  %v15869_v3 = vld [vmem:[%s22914_s9 + $0x410] ss:$8 sps:$4 sm:$0xff]   ;;  %v15874_v34 = vld [vmem:[%s22914_s9 + $0x424] ss:$8 sps:$4 sm:$0xff]  }
 0x4ff   : > { %v18720_v35 = vpop.f32.mrb[101].mxu1 }
 0x500   : > { %v18722_v27 = vpop.f32.mrb[102].mxu1 }
 0x501   : > { %4327 = vmatpush1.bf16.msra.mxu1 %v15800_v12  ;;  %4405 = vmatpush1.bf16.msra.mxu0 %v15803_v13  ;;  %v2714_v44 = vpack.c.bf16 %v18722_v27, %v18718_v50  ;;  %v18732_v1 = vpop.f32.mrb[103].mxu1  ;;  %v15880_v12 = vld [vmem:[%s22914_s9 + $0x444] ss:$8 sps:$4 sm:$0xff]   ;;  %v15878_v13 = vld [vmem:[%s22914_s9 + $0x440] ss:$8 sps:$4 sm:$0xff]  }
 0x502   : > { %4328 = vmatprep.subr.bf16.mxu1 %v15808_v47  ;;  %4406 = vmatprep.subr.bf16.mxu0 %v15811_v49  ;;  %v2713_v22 = vpack.c.bf16 %v18732_v1, %v18720_v35  ;;  %v15883_v47 = vld [vmem:[%s22914_s9 + $0x454] ss:$8 sps:$4 sm:$0xff]   ;;  %v15881_v49 = vld [vmem:[%s22914_s9 + $0x450] ss:$8 sps:$4 sm:$0xff]   ;;  %v15886_v50 = vld [vmem:[%s22914_s9 + $0x464] ss:$8 sps:$4 sm:$0xff]  }
 0x503   : > { %v15884_v27 = vld [vmem:[%s22914_s9 + $0x460] ss:$8 sps:$4 sm:$0xff]   ;;  %v15922_v35 = vld [vmem:[%s22914_s9 + $0x524] ss:$8 sps:$4 sm:$0xff]  }
 0x505   : > { %4329 = vmatpush1.bf16.msra.mxu1 %v15806_v41  ;;  %4407 = vmatpush1.bf16.msra.mxu0 %v15809_v62  ;;  %v15889_v41 = vld [vmem:[%s22914_s9 + $0x474] ss:$8 sps:$4 sm:$0xff]   ;;  %v15887_v62 = vld [vmem:[%s22914_s9 + $0x470] ss:$8 sps:$4 sm:$0xff]  }
 0x506   : > { %4330 = vmatprep.subr.bf16.mxu1 %v15814_v45  ;;  %4408 = vmatprep.subr.bf16.mxu0 %v15817_v60  ;;  %v18845_v55 = vpop.f32.mrb[104].mxu1  ;;  %v15890_v45 = vld [vmem:[%s22914_s9 + $0x480] ss:$8 sps:$4 sm:$0xff]   ;;  %v15895_v60 = vld [vmem:[%s22914_s9 + $0x494] ss:$8 sps:$4 sm:$0xff]  }
 0x507   : > { %v18850_v53 = vpop.f32.mrb[105].mxu1 }
 0x508   : > { %v18855_v24 = vpop.f32.mrb[106].mxu1 }
 0x509   : > { %4331 = vmatpush1.bf16.msra.mxu1 %v15812_v5  ;;  %4409 = vmatpush1.bf16.msra.mxu0 %v15815_v26  ;;  %v2716_v43 = vpack.c.bf16 %v18855_v24, %v18845_v55  ;;  %v18859_v29 = vpop.f32.mrb[107].mxu1  ;;  %v15893_v5 = vld [vmem:[%s22914_s9 + $0x490] ss:$8 sps:$4 sm:$0xff]   ;;  %v15898_v26 = vld [vmem:[%s22914_s9 + $0x4a4] ss:$8 sps:$4 sm:$0xff]  }
 0x50a   : > { %4332 = vmatprep.subr.bf16.mxu1 %v15820_v54  ;;  %4410 = vmatprep.subr.bf16.mxu0 %v15823_v28  ;;  %v2715_v32 = vpack.c.bf16 %v18859_v29, %v18850_v53  ;;  %v15896_v54 = vld [vmem:[%s22914_s9 + $0x4a0] ss:$8 sps:$4 sm:$0xff]   ;;  %v15901_v28 = vld [vmem:[%s22914_s9 + $0x4b4] ss:$8 sps:$4 sm:$0xff]   ;;  %v15929_v55 = vld [vmem:[%s22914_s9 + $0x550] ss:$8 sps:$4 sm:$0xff]  }
 0x50b   : > { %v15937_v24 = vld [vmem:[%s22914_s9 + $0x574] ss:$8 sps:$4 sm:$0xff]   ;;  %v15968_v53 = vld [vmem:[%s22914_s9 + $0x620] ss:$8 sps:$4 sm:$0xff]  }
 0x50c   : > { %v15973_v29 = vld [vmem:[%s22914_s9 + $0x634] ss:$8 sps:$4 sm:$0xff]  }
 0x50d   : > { %4333 = vmatpush1.bf16.msra.mxu1 %v15818_v30  ;;  %4411 = vmatpush1.bf16.msra.mxu0 %v15821_v61  ;;  %v15899_v30 = vld [vmem:[%s22914_s9 + $0x4b0] ss:$8 sps:$4 sm:$0xff]   ;;  %v15904_v61 = vld [vmem:[%s22914_s9 + $0x4c4] ss:$8 sps:$4 sm:$0xff]  }
 0x50e   : > { %4334 = vmatprep.subr.bf16.mxu1 %v15826_v17  ;;  %4412 = vmatprep.subr.bf16.mxu0 %v15829_v18  ;;  %v15902_v17 = vld [vmem:[%s22914_s9 + $0x4c0] ss:$8 sps:$4 sm:$0xff]   ;;  %v15907_v18 = vld [vmem:[%s22914_s9 + $0x4d4] ss:$8 sps:$4 sm:$0xff]  }
 0x511   : > { %4335 = vmatpush1.bf16.msra.mxu1 %v15824_v20  ;;  %4413 = vmatpush1.bf16.msra.mxu0 %v15827_v36  ;;  %v15905_v20 = vld [vmem:[%s22914_s9 + $0x4d0] ss:$8 sps:$4 sm:$0xff]   ;;  %v15910_v36 = vld [vmem:[%s22914_s9 + $0x4e4] ss:$8 sps:$4 sm:$0xff]  }
 0x512   : > { %4336 = vmatprep.subr.bf16.mxu1 %v15832_v37  ;;  %4414 = vmatprep.subr.bf16.mxu0 %v15835_v42  ;;  %v15908_v37 = vld [vmem:[%s22914_s9 + $0x4e0] ss:$8 sps:$4 sm:$0xff]   ;;  %v15913_v42 = vld [vmem:[%s22914_s9 + $0x4f4] ss:$8 sps:$4 sm:$0xff]  }
 0x515   : > { %4337 = vmatpush1.bf16.msra.mxu1 %v15830_v58  ;;  %4415 = vmatpush1.bf16.msra.mxu0 %v15833_v63  ;;  %v18959_v58 = vpop.f32.mrb[108].mxu1  ;;  %v15911_v63 = vld [vmem:[%s22914_s9 + $0x4f0] ss:$8 sps:$4 sm:$0xff]  }
 0x516   : > { %4338 = vmatprep.subr.bf16.mxu1 %v15838_v2  ;;  %4416 = vmatprep.subr.bf16.mxu0 %v15841_v59  ;;  %v18964_v2 = vpop.f32.mrb[109].mxu1  ;;  %v15916_v59 = vld [vmem:[%s22914_s9 + $0x504] ss:$8 sps:$4 sm:$0xff]  }
 0x519   : > { %4339 = vmatpush1.bf16.msra.mxu1 %v15836_v39  ;;  %4417 = vmatpush1.bf16.msra.mxu0 %v15839_v57  ;;  %v18969_v39 = vpop.f32.mrb[110].mxu1 }
 0x51a   : > { %4340 = vmatprep.subr.bf16.mxu1 %v15844_v6  ;;  %4418 = vmatprep.subr.bf16.mxu0 %v15847_v10  ;;  %v2718_v57 = vpack.c.bf16 %v18969_v39, %v18959_v58  ;;  %v18973_v6 = vpop.f32.mrb[111].mxu1  ;;  %v15986_v58 = vld [vmem:[%s22914_s9 + $0x680] ss:$8 sps:$4 sm:$0xff]   ;;  %v15994_v39 = vld [vmem:[%s22914_s9 + $0x6a4] ss:$8 sps:$4 sm:$0xff]  }
 0x51b   : > { %v2717_v10 = vpack.c.bf16 %v18973_v6, %v18964_v2  ;;  %v16016_v6 = vld [vmem:[%s22914_s9 + $0x720] ss:$8 sps:$4 sm:$0xff]  }
 0x51d   : > { %4341 = vmatpush1.bf16.msra.mxu1 %v15842_v15  ;;  %4419 = vmatpush1.bf16.msra.mxu0 %v15845_v38  ;;  %v15914_v15 = vld [vmem:[%s22914_s9 + $0x500] ss:$8 sps:$4 sm:$0xff]   ;;  %v18980_v38 = vpop.f32.mrb[112].mxu1 }
 0x51e   : > { %4342 = vmatprep.subr.bf16.mxu1 %v15850_v40  ;;  %4420 = vmatprep.subr.bf16.mxu0 %v15853_v11  ;;  %v15919_v40 = vld [vmem:[%s22914_s9 + $0x514] ss:$8 sps:$4 sm:$0xff]   ;;  %v18985_v11 = vpop.f32.mrb[113].mxu1 }
 0x521   : > { %4343 = vmatpush1.bf16.msra.mxu1 %v15848_v48  ;;  %4421 = vmatpush1.bf16.msra.mxu0 %v15851_v51  ;;  %v18987_v48 = vpop.f32.mrb[114].mxu1 }
 0x522   : > { %4422 = vmatprep.subr.bf16.mxu0 %v15856_v52  ;;  %v2720_v51 = vpack.c.bf16 %v18987_v48, %v18980_v38  ;;  %v15917_v52 = vld [vmem:[%s22914_s9 + $0x510] ss:$8 sps:$4 sm:$0xff]   ;;  %v16021_v38 = vld [vmem:[%s22914_s9 + $0x734] ss:$8 sps:$4 sm:$0xff]  }
 0x523   : > { %v16019_v48 = vld [vmem:[%s22914_s9 + $0x730] ss:$8 sps:$4 sm:$0xff]  }
 0x524   : > { %4345 = vmatmul.mubr.bf16.vlgmr.msra.gmra.mrb[116].mxu1 %v2707_v19  ;;  %v15863_v19 = vld [vmem:[%s22914_s9 + $0x3f0] ss:$8 sps:$4 sm:$0xff]  }
 0x525   : > { %4423 = vmatpush1.bf16.msra.mxu0 %v15854_v14  ;;  %4907 = vmatprep.mubr.bf16.mxu1 %v17668_v21  ;;  %v19000_v14 = vpop.f32.mrb[115].mxu1 }
 0x526   : > { %4424 = vmatprep.subr.bf16.mxu0 %v15859_v16  ;;  %v2719_v1 = vpack.c.bf16 %v19000_v14, %v18985_v11  ;;  %v15925_v16 = vld [vmem:[%s22914_s9 + $0x534] ss:$8 sps:$4 sm:$0xff]  }
 0x529   : > { %4425 = vmatpush1.bf16.msra.mxu0 %v15857_v4  ;;  %v15923_v4 = vld [vmem:[%s22914_s9 + $0x530] ss:$8 sps:$4 sm:$0xff]  }
 0x52a   : > { %4426 = vmatprep.subr.bf16.mxu0 %v15862_v7  ;;  %v15928_v7 = vld [vmem:[%s22914_s9 + $0x544] ss:$8 sps:$4 sm:$0xff]  }
 0x52d   : > { %4427 = vmatpush1.bf16.msra.mxu0 %v15860_v8  ;;  %v15926_v8 = vld [vmem:[%s22914_s9 + $0x540] ss:$8 sps:$4 sm:$0xff]  }
 0x52e   : > { %4428 = vmatprep.subr.bf16.mxu0 %v15865_v56  ;;  %v15931_v56 = vld [vmem:[%s22914_s9 + $0x554] ss:$8 sps:$4 sm:$0xff]  }
 0x531   : > { %4429 = vmatpush1.bf16.msra.mxu0 %v15863_v19  ;;  %v15934_v19 = vld [vmem:[%s22914_s9 + $0x564] ss:$8 sps:$4 sm:$0xff]  }
 0x532   : > { %4441 = vmatprep.subr.bf16.mxu0 %v15868_v23  ;;  %v15932_v23 = vld [vmem:[%s22914_s9 + $0x560] ss:$8 sps:$4 sm:$0xff]  }
 0x534   : > { %4431 = vmatmul.mubr.bf16.vlgmr.msra.gmra.mrb[24].mxu0 %v2711_v9  ;;  %v15875_v9 = vld [vmem:[%s22914_s9 + $0x430] ss:$8 sps:$4 sm:$0xff]  }
 0x535   : > { %4442 = vmatpush1.bf16.msra.mxu0 %v15866_v33  ;;  %4473 = vmatprep.mubr.bf16.mxu0 %v2714_v44  ;;  %v15892_v44 = vld [vmem:[%s22914_s9 + $0x484] ss:$8 sps:$4 sm:$0xff]  }
 0x536   : > { %4443 = vmatprep.subr.bf16.mxu0 %v15871_v0  ;;  %v15940_v33 = vld [vmem:[%s22914_s9 + $0x584] ss:$8 sps:$4 sm:$0xff]   ;;  %v15938_v0 = vld [vmem:[%s22914_s9 + $0x580] ss:$8 sps:$4 sm:$0xff]  }
 0x539   : > { %4444 = vmatpush1.bf16.msra.mxu0 %v15869_v3  ;;  %v15943_v3 = vld [vmem:[%s22914_s9 + $0x594] ss:$8 sps:$4 sm:$0xff]  }
 0x53a   : > { %4445 = vmatprep.subr.bf16.mxu0 %v15874_v34  ;;  %v15941_v34 = vld [vmem:[%s22914_s9 + $0x590] ss:$8 sps:$4 sm:$0xff]  }
 0x53d   : > { %4446 = vmatpush1.bf16.msra.mxu0 %v15872_v46  ;;  %v15946_v46 = vld [vmem:[%s22914_s9 + $0x5a4] ss:$8 sps:$4 sm:$0xff]  }
 0x53e   : > { %4447 = vmatprep.subr.bf16.mxu0 %v15877_v25  ;;  %v15944_v25 = vld [vmem:[%s22914_s9 + $0x5a0] ss:$8 sps:$4 sm:$0xff]  }
 0x541   : > { %4448 = vmatpush1.bf16.msra.mxu0 %v15875_v9  ;;  %v15949_v9 = vld [vmem:[%s22914_s9 + $0x5b4] ss:$8 sps:$4 sm:$0xff]  }
 0x542   : > { %4449 = vmatprep.subr.bf16.mxu0 %v15880_v12  ;;  %v15947_v12 = vld [vmem:[%s22914_s9 + $0x5b0] ss:$8 sps:$4 sm:$0xff]  }
 0x545   : > { %4450 = vmatpush1.bf16.msra.mxu0 %v15878_v13  ;;  %v15952_v13 = vld [vmem:[%s22914_s9 + $0x5c4] ss:$8 sps:$4 sm:$0xff]  }
 0x546   : > { %4451 = vmatprep.subr.bf16.mxu0 %v15883_v47  ;;  %v15950_v47 = vld [vmem:[%s22914_s9 + $0x5c0] ss:$8 sps:$4 sm:$0xff]  }
 0x549   : > { %4452 = vmatpush1.bf16.msra.mxu0 %v15881_v49  ;;  %v15955_v49 = vld [vmem:[%s22914_s9 + $0x5d4] ss:$8 sps:$4 sm:$0xff]  }
 0x54a   : > { %4453 = vmatprep.subr.bf16.mxu0 %v15886_v50  ;;  %v15953_v50 = vld [vmem:[%s22914_s9 + $0x5d0] ss:$8 sps:$4 sm:$0xff]  }
 0x54d   : > { %4454 = vmatpush1.bf16.msra.mxu0 %v15884_v27  ;;  %v15958_v27 = vld [vmem:[%s22914_s9 + $0x5e4] ss:$8 sps:$4 sm:$0xff]  }
 0x54e   : > { %4455 = vmatprep.subr.bf16.mxu0 %v15889_v41  ;;  %v15956_v41 = vld [vmem:[%s22914_s9 + $0x5e0] ss:$8 sps:$4 sm:$0xff]  }
 0x551   : > { %4456 = vmatpush1.bf16.msra.mxu0 %v15887_v62  ;;  %v15961_v62 = vld [vmem:[%s22914_s9 + $0x5f4] ss:$8 sps:$4 sm:$0xff]  }
 0x552   : > { %4457 = vmatprep.subr.bf16.mxu0 %v15892_v44  ;;  %v15959_v44 = vld [vmem:[%s22914_s9 + $0x5f0] ss:$8 sps:$4 sm:$0xff]  }
 0x555   : > { %4458 = vmatpush1.bf16.msra.mxu0 %v15890_v45  ;;  %v15964_v45 = vld [vmem:[%s22914_s9 + $0x604] ss:$8 sps:$4 sm:$0xff]  }
 0x556   : > { %4459 = vmatprep.subr.bf16.mxu0 %v15895_v60  ;;  %v15962_v60 = vld [vmem:[%s22914_s9 + $0x600] ss:$8 sps:$4 sm:$0xff]  }
 0x559   : > { %4460 = vmatpush1.bf16.msra.mxu0 %v15893_v5  ;;  %v15967_v5 = vld [vmem:[%s22914_s9 + $0x614] ss:$8 sps:$4 sm:$0xff]  }
 0x55a   : > { %4461 = vmatprep.subr.bf16.mxu0 %v15898_v26  ;;  %v15965_v26 = vld [vmem:[%s22914_s9 + $0x610] ss:$8 sps:$4 sm:$0xff]  }
 0x55d   : > { %4462 = vmatpush1.bf16.msra.mxu0 %v15896_v54  ;;  %v15970_v54 = vld [vmem:[%s22914_s9 + $0x624] ss:$8 sps:$4 sm:$0xff]  }
 0x55e   : > { %4463 = vmatprep.subr.bf16.mxu0 %v15901_v28  ;;  %v15976_v28 = vld [vmem:[%s22914_s9 + $0x644] ss:$8 sps:$4 sm:$0xff]  }
 0x561   : > { %4464 = vmatpush1.bf16.msra.mxu0 %v15899_v30  ;;  %v15974_v30 = vld [vmem:[%s22914_s9 + $0x640] ss:$8 sps:$4 sm:$0xff]  }
 0x562   : > { %4465 = vmatprep.subr.bf16.mxu0 %v15904_v61  ;;  %v15979_v61 = vld [vmem:[%s22914_s9 + $0x654] ss:$8 sps:$4 sm:$0xff]  }
 0x565   : > { %4466 = vmatpush1.bf16.msra.mxu0 %v15902_v17  ;;  %v15977_v17 = vld [vmem:[%s22914_s9 + $0x650] ss:$8 sps:$4 sm:$0xff]  }
 0x566   : > { %4467 = vmatprep.subr.bf16.mxu0 %v15907_v18  ;;  %v15982_v18 = vld [vmem:[%s22914_s9 + $0x664] ss:$8 sps:$4 sm:$0xff]  }
 0x569   : > { %4468 = vmatpush1.bf16.msra.mxu0 %v15905_v20  ;;  %v15980_v20 = vld [vmem:[%s22914_s9 + $0x660] ss:$8 sps:$4 sm:$0xff]  }
 0x56a   : > { %4469 = vmatprep.subr.bf16.mxu0 %v15910_v36  ;;  %v15985_v36 = vld [vmem:[%s22914_s9 + $0x674] ss:$8 sps:$4 sm:$0xff]  }
 0x56d   : > { %4470 = vmatpush1.bf16.msra.mxu0 %v15908_v37  ;;  %v15983_v37 = vld [vmem:[%s22914_s9 + $0x670] ss:$8 sps:$4 sm:$0xff]  }
 0x56e   : > { %4471 = vmatprep.subr.bf16.mxu0 %v15913_v42  ;;  %v15988_v42 = vld [vmem:[%s22914_s9 + $0x684] ss:$8 sps:$4 sm:$0xff]  }
 0x571   : > { %4472 = vmatpush1.bf16.msra.mxu0 %v15911_v63  ;;  %v15991_v63 = vld [vmem:[%s22914_s9 + $0x694] ss:$8 sps:$4 sm:$0xff]  }
 0x572   : > { %4484 = vmatprep.subr.bf16.mxu0 %v15916_v59  ;;  %v15989_v59 = vld [vmem:[%s22914_s9 + $0x690] ss:$8 sps:$4 sm:$0xff]  }
 0x574   : > { %4474 = vmatmul.mubr.bf16.vlgmr.msra.gmra.mrb[24].mxu0 %v2713_v22  ;;  %v15920_v22 = vld [vmem:[%s22914_s9 + $0x520] ss:$8 sps:$4 sm:$0xff]  }
 0x575   : > { %4485 = vmatpush1.bf16.msra.mxu0 %v15914_v15  ;;  %4516 = vmatprep.mubr.bf16.mxu0 %v2716_v43  ;;  %v15935_v43 = vld [vmem:[%s22914_s9 + $0x570] ss:$8 sps:$4 sm:$0xff]   ;;  %v15997_v15 = vld [vmem:[%s22914_s9 + $0x6b4] ss:$8 sps:$4 sm:$0xff]  }
 0x576   : > { %4486 = vmatprep.subr.bf16.mxu0 %v15919_v40  ;;  %v15995_v40 = vld [vmem:[%s22914_s9 + $0x6b0] ss:$8 sps:$4 sm:$0xff]  }
 0x579   : > { %4487 = vmatpush1.bf16.msra.mxu0 %v15917_v52  ;;  %v16000_v52 = vld [vmem:[%s22914_s9 + $0x6c4] ss:$8 sps:$4 sm:$0xff]  }
 0x57a   : > { %4488 = vmatprep.subr.bf16.mxu0 %v15922_v35  ;;  %v15998_v35 = vld [vmem:[%s22914_s9 + $0x6c0] ss:$8 sps:$4 sm:$0xff]  }
 0x57d   : > { %4489 = vmatpush1.bf16.msra.mxu0 %v15920_v22  ;;  %v16003_v22 = vld [vmem:[%s22914_s9 + $0x6d4] ss:$8 sps:$4 sm:$0xff]  }
 0x57e   : > { %4490 = vmatprep.subr.bf16.mxu0 %v15925_v16  ;;  %v16001_v16 = vld [vmem:[%s22914_s9 + $0x6d0] ss:$8 sps:$4 sm:$0xff]  }
 0x581   : > { %4491 = vmatpush1.bf16.msra.mxu0 %v15923_v4  ;;  %v16006_v4 = vld [vmem:[%s22914_s9 + $0x6e4] ss:$8 sps:$4 sm:$0xff]  }
 0x582   : > { %4492 = vmatprep.subr.bf16.mxu0 %v15928_v7  ;;  %v16004_v7 = vld [vmem:[%s22914_s9 + $0x6e0] ss:$8 sps:$4 sm:$0xff]  }
 0x585   : > { %4493 = vmatpush1.bf16.msra.mxu0 %v15926_v8  ;;  %v16009_v8 = vld [vmem:[%s22914_s9 + $0x6f4] ss:$8 sps:$4 sm:$0xff]  }
 0x586   : > { %4494 = vmatprep.subr.bf16.mxu0 %v15931_v56  ;;  %v16007_v56 = vld [vmem:[%s22914_s9 + $0x6f0] ss:$8 sps:$4 sm:$0xff]  }
 0x589   : > { %4495 = vmatpush1.bf16.msra.mxu0 %v15929_v55  ;;  %v16012_v55 = vld [vmem:[%s22914_s9 + $0x704] ss:$8 sps:$4 sm:$0xff]  }
 0x58a   : > { %4496 = vmatprep.subr.bf16.mxu0 %v15934_v19  ;;  %v16010_v19 = vld [vmem:[%s22914_s9 + $0x700] ss:$8 sps:$4 sm:$0xff]  }
 0x58d   : > { %4497 = vmatpush1.bf16.msra.mxu0 %v15932_v23  ;;  %v16015_v23 = vld [vmem:[%s22914_s9 + $0x714] ss:$8 sps:$4 sm:$0xff]  }
 0x58e   : > { %4498 = vmatprep.subr.bf16.mxu0 %v15937_v24  ;;  %v16013_v24 = vld [vmem:[%s22914_s9 + $0x710] ss:$8 sps:$4 sm:$0xff]  }
 0x591   : > { %4499 = vmatpush1.bf16.msra.mxu0 %v15935_v43  ;;  %v16018_v43 = vld [vmem:[%s22914_s9 + $0x724] ss:$8 sps:$4 sm:$0xff]  }
 0x592   : > { %4500 = vmatprep.subr.bf16.mxu0 %v15940_v33 }
 0x595   : > { %4501 = vmatpush1.bf16.msra.mxu0 %v15938_v0 }
 0x596   : > { %4502 = vmatprep.subr.bf16.mxu0 %v15943_v3  ;;  %v16022_v3 = vld [vmem:[%s22914_s9 + $0x740] ss:$8 sps:$4 sm:$0xff]  }
 0x599   : > { %4503 = vmatpush1.bf16.msra.mxu0 %v15941_v34  ;;  %v16027_v34 = vld [vmem:[%s22914_s9 + $0x754] ss:$8 sps:$4 sm:$0xff]  }
 0x59a   : > { %4504 = vmatprep.subr.bf16.mxu0 %v15946_v46  ;;  %v16025_v46 = vld [vmem:[%s22914_s9 + $0x750] ss:$8 sps:$4 sm:$0xff]  }
 0x59d   : > { %4505 = vmatpush1.bf16.msra.mxu0 %v15944_v25  ;;  %v16030_v25 = vld [vmem:[%s22914_s9 + $0x764] ss:$8 sps:$4 sm:$0xff]  }
 0x59e   : > { %4506 = vmatprep.subr.bf16.mxu0 %v15949_v9  ;;  %v16028_v9 = vld [vmem:[%s22914_s9 + $0x760] ss:$8 sps:$4 sm:$0xff]  }
 0x5a1   : > { %4507 = vmatpush1.bf16.msra.mxu0 %v15947_v12  ;;  %v16033_v12 = vld [vmem:[%s22914_s9 + $0x774] ss:$8 sps:$4 sm:$0xff]  }
 0x5a2   : > { %4508 = vmatprep.subr.bf16.mxu0 %v15952_v13  ;;  %v16031_v13 = vld [vmem:[%s22914_s9 + $0x770] ss:$8 sps:$4 sm:$0xff]  }
 0x5a5   : > { %4509 = vmatpush1.bf16.msra.mxu0 %v15950_v47  ;;  %v16036_v47 = vld [vmem:[%s22914_s9 + $0x784] ss:$8 sps:$4 sm:$0xff]  }
 0x5a6   : > { %4510 = vmatprep.subr.bf16.mxu0 %v15955_v49  ;;  %v16034_v49 = vld [vmem:[%s22914_s9 + $0x780] ss:$8 sps:$4 sm:$0xff]  }
 0x5a9   : > { %4511 = vmatpush1.bf16.msra.mxu0 %v15953_v50  ;;  %v16039_v50 = vld [vmem:[%s22914_s9 + $0x794] ss:$8 sps:$4 sm:$0xff]  }
 0x5aa   : > { %4512 = vmatprep.subr.bf16.mxu0 %v15958_v27  ;;  %v16037_v27 = vld [vmem:[%s22914_s9 + $0x790] ss:$8 sps:$4 sm:$0xff]  }
 0x5ad   : > { %4513 = vmatpush1.bf16.msra.mxu0 %v15956_v41  ;;  %v16042_v41 = vld [vmem:[%s22914_s9 + $0x7a4] ss:$8 sps:$4 sm:$0xff]  }
 0x5ae   : > { %4514 = vmatprep.subr.bf16.mxu0 %v15961_v62  ;;  %v16040_v62 = vld [vmem:[%s22914_s9 + $0x7a0] ss:$8 sps:$4 sm:$0xff]  }
 0x5b1   : > { %4515 = vmatpush1.bf16.msra.mxu0 %v15959_v44  ;;  %v16045_v44 = vld [vmem:[%s22914_s9 + $0x7b4] ss:$8 sps:$4 sm:$0xff]  }
 0x5b2   : > { %4527 = vmatprep.subr.bf16.mxu0 %v15964_v45  ;;  %v16043_v45 = vld [vmem:[%s22914_s9 + $0x7b0] ss:$8 sps:$4 sm:$0xff]  }
 0x5b4   : > { %4517 = vmatmul.mubr.bf16.vlgmr.msra.gmra.mrb[24].mxu0 %v2715_v32  ;;  %v15971_v32 = vld [vmem:[%s22914_s9 + $0x630] ss:$8 sps:$4 sm:$0xff]  }
 0x5b5   : > { %4528 = vmatpush1.bf16.msra.mxu0 %v15962_v60  ;;  %4559 = vmatprep.mubr.bf16.mxu0 %v2718_v57  ;;  %v15992_v57 = vld [vmem:[%s22914_s9 + $0x6a0] ss:$8 sps:$4 sm:$0xff]   ;;  %v16048_v60 = vld [vmem:[%s22914_s9 + $0x7c4] ss:$8 sps:$4 sm:$0xff]  }
 0x5b6   : > { %4529 = vmatprep.subr.bf16.mxu0 %v15967_v5  ;;  %v16046_v5 = vld [vmem:[%s22914_s9 + $0x7c0] ss:$8 sps:$4 sm:$0xff]  }
 0x5b9   : > { %4530 = vmatpush1.bf16.msra.mxu0 %v15965_v26  ;;  %v16051_v26 = vld [vmem:[%s22914_s9 + $0x7d4] ss:$8 sps:$4 sm:$0xff]  }
 0x5ba   : > { %4531 = vmatprep.subr.bf16.mxu0 %v15970_v54  ;;  %v16049_v54 = vld [vmem:[%s22914_s9 + $0x7d0] ss:$8 sps:$4 sm:$0xff]  }
 0x5bd   : > { %4532 = vmatpush1.bf16.msra.mxu0 %v15968_v53  ;;  %v16054_v53 = vld [vmem:[%s22914_s9 + $0x7e4] ss:$8 sps:$4 sm:$0xff]  }
 0x5be   : > { %4533 = vmatprep.subr.bf16.mxu0 %v15973_v29  ;;  %v16052_v29 = vld [vmem:[%s22914_s9 + $0x7e0] ss:$8 sps:$4 sm:$0xff]  }
 0x5c1   : > { %4534 = vmatpush1.bf16.msra.mxu0 %v15971_v32  ;;  %v16057_v32 = vld [vmem:[%s22914_s9 + $0x7f4] ss:$8 sps:$4 sm:$0xff]  }
 0x5c2   : > { %4535 = vmatprep.subr.bf16.mxu0 %v15976_v28  ;;  %v16055_v28 = vld [vmem:[%s22914_s9 + $0x7f0] ss:$8 sps:$4 sm:$0xff]  }
 0x5c5   : > { %4536 = vmatpush1.bf16.msra.mxu0 %v15974_v30  ;;  %v2979_v30 = vlaneseq }
 0x5c6   : > { %4537 = vmatprep.subr.bf16.mxu0 %v15979_v61 }
 0x5c7   : > { %v19303_v61 = vshrl.u32 %v2979_v30, 7  ;;  %v16119_v30 = vld [vmem:[%s22919_s14 + $0xcc] ss:$16 sps:$4 sm:$0xff]  }
 0x5c9   : > { %4538 = vmatpush1.bf16.msra.mxu0 %v15977_v17  ;;  %v19306_v17 = vsub.s32 0, %v19303_v61 }
 0x5ca   : > { %4539 = vmatprep.subr.bf16.mxu0 %v15982_v18  ;;  %v2977_v18 = vld [vmem:[%s22915_s10] sm:$0x3] }
 0x5cd   : > { %4540 = vmatpush1.bf16.msra.mxu0 %v15980_v20  ;;  %v19312_v20 = vsub.s32 1, %v19303_v61 }
 0x5ce   : > { %4541 = vmatprep.subr.bf16.mxu0 %v15985_v36  ;;  %v2982_v36 = vrot.slane %v2977_v18, %v19306_v17 }
 0x5d1   : > { %4542 = vmatpush1.bf16.msra.mxu0 %v15983_v37  ;;  %v2986_v37 = vrot.slane %v2977_v18, %v19312_v20 }
 0x5d2   : > { %4543 = vmatprep.subr.bf16.mxu0 %v15988_v42 }
 0x5d5   : > { %4544 = vmatpush1.bf16.msra.mxu0 %v15986_v58 }
 0x5d6   : > { %4545 = vmatprep.subr.bf16.mxu0 %v15991_v63 }
 0x5d9   : > { %4546 = vmatpush1.bf16.msra.mxu0 %v15989_v59 }
 0x5da   : > { %4547 = vmatprep.subr.bf16.mxu0 %v15994_v39 }
 0x5dd   : > { %4548 = vmatpush1.bf16.msra.mxu0 %v15992_v57 }
 0x5de   : > { %4549 = vmatprep.subr.bf16.mxu0 %v15997_v15 }
 0x5e1   : > { %4550 = vmatpush1.bf16.msra.mxu0 %v15995_v40 }
 0x5e2   : > { %4551 = vmatprep.subr.bf16.mxu0 %v16000_v52 }
 0x5e5   : > { %4552 = vmatpush1.bf16.msra.mxu0 %v15998_v35  ;;  %v16087_v35 = vld [vmem:[%s22919_s14 + $0x8] ss:$16 sps:$4 sm:$0xff]  }
 0x5e6   : > { %4553 = vmatprep.subr.bf16.mxu0 %v16003_v22  ;;  %v16089_v22 = vld [vmem:[%s22919_s14 + $0xc] ss:$16 sps:$4 sm:$0xff]  }
 0x5e9   : > { %4554 = vmatpush1.bf16.msra.mxu0 %v16001_v16 }
 0x5ea   : > { %4555 = vmatprep.subr.bf16.mxu0 %v16006_v4 }
 0x5ed   : > { %4556 = vmatpush1.bf16.msra.mxu0 %v16004_v7 }
 0x5ee   : > { %4557 = vmatprep.subr.bf16.mxu0 %v16009_v8 }
 0x5f1   : > { %4558 = vmatpush1.bf16.msra.mxu0 %v16007_v56 }
 0x5f2   : > { %4570 = vmatprep.subr.bf16.mxu0 %v16012_v55 }
 0x5f4   : > { %4560 = vmatmul.mubr.bf16.vlgmr.msra.gmra.mrb[24].mxu0 %v2717_v10 }
 0x5f5   : > { %4571 = vmatpush1.bf16.msra.mxu0 %v16010_v19  ;;  %4602 = vmatprep.mubr.bf16.mxu0 %v2720_v51  ;;  %v16024_v51 = vld [vmem:[%s22914_s9 + $0x744] ss:$8 sps:$4 sm:$0xff]  }
 0x5f6   : > { %4572 = vmatprep.subr.bf16.mxu0 %v16015_v23 }
 0x5f7   : > { %v19211_v33 = vpop.f32.mrb[116].mxu1 }
 0x5f8   : > { %v19213_v0 = vpop.f32.mrb[117].mxu1  ;;  %v15344_v11 = vadd.f32 %v19211_v33, %v2982_v36  ;;  %v16096_v33 = vld [vmem:[%s22919_s14 + $0x2c] ss:$16 sps:$4 sm:$0xff]  }
 0x5f9   : > { %v19215_v2 = vpop.f32.mrb[118].mxu1  ;;  %4573 = vmatpush1.bf16.msra.mxu0 %v16013_v24  ;;  %v15346_v14 = vadd.f32 %v19213_v0, %v2986_v37  ;;  %v16094_v24 = vld [vmem:[%s22919_s14 + $0x28] ss:$16 sps:$4 sm:$0xff]  }
 0x5fa   : > { %v19220_v10 = vpop.f32.mrb[119].mxu1  ;;  %4574 = vmatprep.subr.bf16.mxu0 %v16018_v43  ;;  %v15348_v42 = vadd.f32 %v19215_v2, %v2982_v36  ;;  %v16099_v2 = vld [vmem:[%s22919_s14 + $0x4c] ss:$16 sps:$4 sm:$0xff]  }
 0x5fb   : > { %v15350_v59 = vadd.f32 %v19220_v10, %v2986_v37  ;;  %v16117_v37 = vld [vmem:[%s22919_s14 + $0xc8] ss:$16 sps:$4 sm:$0xff]  }
 0x5fd   : > { %4575 = vmatpush1.bf16.msra.mxu0 %v16016_v6 }
 0x5fe   : > { %4576 = vmatprep.subr.bf16.mxu0 %v16021_v38  ;;  %v16097_v38 = vld [vmem:[%s22919_s14 + $0x48] ss:$16 sps:$4 sm:$0xff]  }
 0x601   : > { %4577 = vmatpush1.bf16.msra.mxu0 %v16019_v48 }
 0x602   : > { %4578 = vmatprep.subr.bf16.mxu0 %v16024_v51 }
 0x605   : > { %4579 = vmatpush1.bf16.msra.mxu0 %v16022_v3 }
 0x606   : > { %4580 = vmatprep.subr.bf16.mxu0 %v16027_v34 }
 0x609   : > { %4581 = vmatpush1.bf16.msra.mxu0 %v16025_v46  ;;  %v16104_v46 = vld [vmem:[%s22919_s14 + $0x68] ss:$16 sps:$4 sm:$0xff]  }
 0x60a   : > { %4582 = vmatprep.subr.bf16.mxu0 %v16030_v25 }
 0x60d   : > { %4583 = vmatpush1.bf16.msra.mxu0 %v16028_v9  ;;  %v16106_v9 = vld [vmem:[%s22919_s14 + $0x6c] ss:$16 sps:$4 sm:$0xff]  }
 0x60e   : > { %4584 = vmatprep.subr.bf16.mxu0 %v16033_v12 }
 0x611   : > { %4585 = vmatpush1.bf16.msra.mxu0 %v16031_v13  ;;  %v16109_v13 = vld [vmem:[%s22919_s14 + $0x8c] ss:$16 sps:$4 sm:$0xff]  }
 0x612   : > { %4586 = vmatprep.subr.bf16.mxu0 %v16036_v47 }
 0x615   : > { %4587 = vmatpush1.bf16.msra.mxu0 %v16034_v49 }
 0x616   : > { %4588 = vmatprep.subr.bf16.mxu0 %v16039_v50 }
 0x619   : > { %4589 = vmatpush1.bf16.msra.mxu0 %v16037_v27 }
 0x61a   : > { %4590 = vmatprep.subr.bf16.mxu0 %v16042_v41  ;;  %v16107_v41 = vld [vmem:[%s22919_s14 + $0x88] ss:$16 sps:$4 sm:$0xff]  }
 0x61d   : > { %4591 = vmatpush1.bf16.msra.mxu0 %v16040_v62 }
 0x61e   : > { %4592 = vmatprep.subr.bf16.mxu0 %v16045_v44 }
 0x621   : > { %4593 = vmatpush1.bf16.msra.mxu0 %v16043_v45 }
 0x622   : > { %4594 = vmatprep.subr.bf16.mxu0 %v16048_v60 }
 0x625   : > { %4595 = vmatpush1.bf16.msra.mxu0 %v16046_v5 }
 0x626   : > { %4596 = vmatprep.subr.bf16.mxu0 %v16051_v26 }
 0x629   : > { %4597 = vmatpush1.bf16.msra.mxu0 %v16049_v54 }
 0x62a   : > { %4598 = vmatprep.subr.bf16.mxu0 %v16054_v53 }
 0x62d   : > { %4599 = vmatpush1.bf16.msra.mxu0 %v16052_v29  ;;  %v16114_v29 = vld [vmem:[%s22919_s14 + $0xa8] ss:$16 sps:$4 sm:$0xff]  }
 0x62e   : > { %4600 = vmatprep.subr.bf16.mxu0 %v16057_v32  ;;  %v16116_v32 = vld [vmem:[%s22919_s14 + $0xac] ss:$16 sps:$4 sm:$0xff]  }
 0x631   : > { %4601 = vmatpush1.bf16.msra.mxu0 %v16055_v28 }
 0x632   : > { %11954 = vmatprep.subr.bf16.mxu0 %v16089_v22 }
 0x634   : > { %4603 = vmatmul.mubr.bf16.vlgmr.msra.gmra.mrb[24].mxu0 %v2719_v1 }
 0x635   : > { %11955 = vmatpush1.bf16.msra.mxu0 %v16087_v35 }
 0x636   : > { %11956 = vmatprep.subr.bf16.mxu0 %v16096_v33  ;;  %v16149_v33 = vld [vmem:[%s22919_s14 + $0x18c] ss:$16 sps:$4 sm:$0xff]  }
 0x639   : > { %11957 = vmatpush1.bf16.msra.mxu0 %v16094_v24  ;;  %v16144_v24 = vld [vmem:[%s22919_s14 + $0x168] ss:$16 sps:$4 sm:$0xff]  }
 0x63a   : > { %11958 = vmatprep.subr.bf16.mxu0 %v16099_v2 }
 0x63d   : > { %11959 = vmatpush1.bf16.msra.mxu0 %v16097_v38  ;;  %v16147_v38 = vld [vmem:[%s22919_s14 + $0x188] ss:$16 sps:$4 sm:$0xff]  }
 0x63e   : > { %11960 = vmatprep.subr.bf16.mxu0 %v16106_v9 }
 0x641   : > { %11961 = vmatpush1.bf16.msra.mxu0 %v16104_v46 }
 0x642   : > { %11962 = vmatprep.subr.bf16.mxu0 %v16109_v13 }
 0x645   : > { %11963 = vmatpush1.bf16.msra.mxu0 %v16107_v41 }
 0x646   : > { %11964 = vmatprep.subr.bf16.mxu0 %v16116_v32 }
 0x649   : > { %11965 = vmatpush1.bf16.msra.mxu0 %v16114_v29  ;;  %v16160_v29 = vld [vmem:[%s22919_s14 + $0x1c8] ss:$16 sps:$4 sm:$0xff]  }
 0x64a   : > { %11966 = vmatprep.subr.bf16.mxu0 %v16119_v30 }
 0x64d   : > { %11967 = vmatpush1.bf16.msra.mxu0 %v16117_v37 }
 0x707   : > { %v4604_v1 = vpop.f32.mrb[24].mxu0 }
 0x708   : > { %v15345_v58 = vadd.f32 %v15344_v11, %v4604_v1  ;;  %v4606_v63 = vpop.f32.mrb[25].mxu0 }
 0x709   : > { %v15347_v39 = vadd.f32 %v15346_v14, %v4606_v63  ;;  %v4608_v57 = vpop.f32.mrb[26].mxu0 }
 0x70a   : > { %v15349_v15 = vadd.f32 %v15348_v42, %v4608_v57  ;;  %v4610_v40 = vpop.f32.mrb[27].mxu0 }
 0x70b   : > { %v15351_v52 = vadd.f32 %v15350_v59, %v4610_v40  ;;  %v16126_v59 = vld [vmem:[%s22919_s14 + $0xec] ss:$16 sps:$4 sm:$0xff]  }
 0x70c   : > { %v4613_v16 = vsel %vm1152_vm2, %v15349_v15, 0.0  ;;  %11968 = vmatprep.subr.bf16.mxu0 %v16126_v59  ;;  %v16070_v59 = vld [vmem:[%s22919_s14 + $0x44] ss:$16 sps:$4 sm:$0xff]  }
 0x70d   : > { %v4614_v4 = vadd.f32 %v15345_v58, %v4613_v16  ;;  %v4621_v7 = vsel %vm1152_vm2, %v15351_v52, 0.0 }
 0x70e   : > { %v4622_v8 = vadd.f32 %v15347_v39, %v4621_v7 }
 0x70f   : > { %v4615_v56 = vrot.slane %v4614_v4, 4 }
 0x710   : > { %v4623_v55 = vrot.slane %v4622_v8, 4 }
 0x711   : > { %v4616_v19 = vadd.f32 %v4615_v56, %v4614_v4  ;;  %v16136_v56 = vld [vmem:[%s22919_s14 + $0x12c] ss:$16 sps:$4 sm:$0xff]  }
 0x712   : > { %v4624_v23 = vadd.f32 %v4623_v55, %v4622_v8  ;;  %v16134_v8 = vld [vmem:[%s22919_s14 + $0x128] ss:$16 sps:$4 sm:$0xff]   ;;  %v16139_v55 = vld [vmem:[%s22919_s14 + $0x14c] ss:$16 sps:$4 sm:$0xff]  }
 0x713   : > { %v4617_v43 = vrot.slane %v4616_v19, 2 }
 0x714   : > { %v4625_v0 = vrot.slane %v4624_v23, 2 }
 0x715   : > { %v4618_v6 = vadd.f32 %v4617_v43, %v4616_v19  ;;  %v16137_v19 = vld [vmem:[%s22919_s14 + $0x148] ss:$16 sps:$4 sm:$0xff]   ;;  %v16146_v43 = vld [vmem:[%s22919_s14 + $0x16c] ss:$16 sps:$4 sm:$0xff]  }
 0x716   : > { %v4626_v10 = vadd.f32 %v4625_v0, %v4624_v23  ;;  %v4666_v23 = vld [vmem:[%s22916_s11] sm:$0x3] }
 0x717   : > { %v4619_v48 = vrot.slane %v4618_v6, 1  ;;  %v4682_v0 = vld [vmem:[%s22917_s12] sm:$0x3]  ;;  %v4671_v2 = vrot.slane %v4666_v23, %v19306_v17 }
 0x718   : > { %v4627_v51 = vrot.slane %v4626_v10, 1  ;;  %v4691_v9 = vrot.slane %v4682_v0, %v19312_v20 }
 0x719   : > { %v4620_v3 = vadd.f32 %v4619_v48, %v4618_v6 }
 0x71a   : > { %v4628_v34 = vadd.f32 %v4627_v51, %v4626_v10  ;;  %v4675_v10 = vrot.slane %v4666_v23, %v19312_v20  ;;  %v16103_v23 = vld [vmem:[%s22919_s14 + $0x104] ss:$16 sps:$4 sm:$0xff]  }
 0x71b   : > { %v4630_v25 = vmul.f32 0.11111111, %v4620_v3 }
 0x71c   : > { %v4631_v12 = vmul.f32 0.11111111, %v4628_v34  ;;  %v4687_v34 = vrot.slane %v4682_v0, %v19306_v17  ;;  %v16111_v0 = vld [vmem:[%s22919_s14 + $0x120] ss:$16 sps:$4 sm:$0xff]  }
 0x71d   : > { %v19349_v47 = vsub.f32 %v15345_v58, %v4630_v25  ;;  %v19351_v49 = vsub.f32 %v15349_v15, %v4630_v25  ;;  %v16124_v58 = vld [vmem:[%s22919_s14 + $0xe8] ss:$16 sps:$4 sm:$0xff]  }
 0x71e   : > { %v19353_v50 = vsub.f32 %v15347_v39, %v4631_v12  ;;  %v19355_v27 = vsub.f32 %v15351_v52, %v4631_v12  ;;  %v16129_v39 = vld [vmem:[%s22919_s14 + $0x10c] ss:$16 sps:$4 sm:$0xff]   ;;  %11969 = vmatpush1.bf16.msra.mxu0 %v16124_v58  ;;  %v16127_v52 = vld [vmem:[%s22919_s14 + $0x108] ss:$16 sps:$4 sm:$0xff]   ;;  %v16060_v58 = vld [vmem:[%s22919_s14] ss:$16 sps:$4 sm:$0xff]  }
 0x71f   : > { %v4636_v62 = vmul.f32 %v19349_v47, %v19349_v47  ;;  %v4638_v44 = vmul.f32 %v19351_v49, %v19351_v49  ;;  %11970 = vmatprep.subr.bf16.mxu0 %v16129_v39  ;;  %v16059_v39 = vld [vmem:[%s22918_s13 + $0x8] sm:$0xff]  }
 0x720   : > { %v4637_v45 = vmul.f32 %v19353_v50, %v19353_v50  ;;  %v4639_v60 = vmul.f32 %v19355_v27, %v19355_v27 }
 0x721   : > { %v4640_v5 = vsel %vm1152_vm2, %v4638_v44, 0.0 }
 0x722   : > { %v4641_v26 = vadd.f32 %v4640_v5, %v4636_v62  ;;  %v4648_v54 = vsel %vm1152_vm2, %v4639_v60, 0.0  ;;  %11971 = vmatpush1.bf16.msra.mxu0 %v16127_v52  ;;  %v16078_v52 = vld [vmem:[%s22919_s14 + $0x84] ss:$16 sps:$4 sm:$0xff]  }
 0x723   : > { %v4649_v53 = vadd.f32 %v4648_v54, %v4637_v45  ;;  %11972 = vmatprep.subr.bf16.mxu0 %v16136_v56  ;;  %v16156_v45 = vld [vmem:[%s22919_s14 + $0x1ac] ss:$16 sps:$4 sm:$0xff]   ;;  %v16084_v56 = vld [vmem:[%s22919_s14 + $0xc0] ss:$16 sps:$4 sm:$0xff]  }
 0x724   : > { %v4642_v28 = vrot.slane %v4641_v26, 4 }
 0x725   : > { %v4650_v18 = vrot.slane %v4649_v53, 4 }
 0x726   : > { %v4643_v36 = vadd.f32 %v4642_v28, %v4641_v26  ;;  %11973 = vmatpush1.bf16.msra.mxu0 %v16134_v8  ;;  %v16067_v8 = vld [vmem:[%s22918_s13 + $0x18] sm:$0xff]  }
 0x727   : > { %v4651_v11 = vadd.f32 %v4650_v18, %v4649_v53  ;;  %11974 = vmatprep.subr.bf16.mxu0 %v16139_v55  ;;  %v16093_v55 = vld [vmem:[%s22919_s14 + $0xe4] ss:$16 sps:$4 sm:$0xff]  }
 0x728   : > { %v4644_v14 = vrot.slane %v4643_v36, 2 }
 0x729   : > { %v4652_v1 = vrot.slane %v4651_v11, 2 }
 0x72a   : > { %v4645_v42 = vadd.f32 %v4644_v14, %v4643_v36  ;;  %11975 = vmatpush1.bf16.msra.mxu0 %v16137_v19  ;;  %v16062_v14 = vld [vmem:[%s22919_s14 + $0x4] ss:$16 sps:$4 sm:$0xff]   ;;  %v16091_v19 = vld [vmem:[%s22919_s14 + $0xe0] ss:$16 sps:$4 sm:$0xff]  }
 0x72b   : > { %v4653_v63 = vadd.f32 %v4652_v1, %v4651_v11  ;;  %11976 = vmatprep.subr.bf16.mxu0 %v16146_v43  ;;  %v16101_v43 = vld [vmem:[%s22919_s14 + $0x100] ss:$16 sps:$4 sm:$0xff]  }
 0x72c   : > { %v4646_v57 = vrot.slane %v4645_v42, 1 }
 0x72d   : > { %v4654_v15 = vrot.slane %v4653_v63, 1 }
 0x72e   : > { %v4647_v40 = vadd.f32 %v4646_v57, %v4645_v42  ;;  %11977 = vmatpush1.bf16.msra.mxu0 %v16144_v24  ;;  %v16058_v42 = vld [vmem:[%s22918_s13] sm:$0xff]  }
 0x72f   : > { %v4655_v35 = vadd.f32 %v4654_v15, %v4653_v63  ;;  %11978 = vmatprep.subr.bf16.mxu0 %v16149_v33  ;;  %v16066_v63 = vld [vmem:[%s22919_s14 + $0x24] ss:$16 sps:$4 sm:$0xff]   ;;  %v16068_v57 = vld [vmem:[%s22919_s14 + $0x40] ss:$16 sps:$4 sm:$0xff]  }
 0x730   : > { %v4656_v22 = vmul.f32 0.11111111, %v4647_v40  ;;  %v16074_v15 = vld [vmem:[%s22919_s14 + $0x64] ss:$16 sps:$4 sm:$0xff]   ;;  %v16072_v40 = vld [vmem:[%s22919_s14 + $0x60] ss:$16 sps:$4 sm:$0xff]  }
 0x731   : > { %v4657_v16 = vmul.f32 0.11111111, %v4655_v35  ;;  %v16063_v35 = vld [vmem:[%s22918_s13 + $0x10] sm:$0xff]   ;;  %v16071_v24 = vld [vmem:[%s22918_s13 + $0x20] sm:$0xff]  }
 0x732   : > { %v4658_v4 = vadd.f32 1e-05, %v4656_v22  ;;  %11979 = vmatpush1.bf16.msra.mxu0 %v16147_v38  ;;  %v16076_v22 = vld [vmem:[%s22919_s14 + $0x80] ss:$16 sps:$4 sm:$0xff]   ;;  %v16113_v33 = vld [vmem:[%s22919_s14 + $0x124] ss:$16 sps:$4 sm:$0xff]  }
 0x733   : > { %v4659_v7 = vadd.f32 1e-05, %v4657_v16  ;;  %11980 = vmatprep.subr.bf16.mxu0 %v16156_v45  ;;  %v16082_v16 = vld [vmem:[%s22919_s14 + $0xa4] ss:$16 sps:$4 sm:$0xff]   ;;  %v16120_v45 = vld [vmem:[%s22918_s13 + $0x58] sm:$0xff]  }
 0x734   : > { %17644 = vrsqrt.f32 %v4658_v4  ;;  %v16080_v4 = vld [vmem:[%s22919_s14 + $0xa0] ss:$16 sps:$4 sm:$0xff]   ;;  %v16133_v38 = vld [vmem:[%s22919_s14 + $0x164] ss:$16 sps:$4 sm:$0xff]  }
 0x735   : > { %17646 = vrsqrt.f32 %v4659_v7  ;;  %v16086_v7 = vld [vmem:[%s22919_s14 + $0xc4] ss:$16 sps:$4 sm:$0xff]  }
 0x73e   : > { %v17645_v6 = vpop.eup %17644 }
 0x73f   : > { %v17647_v48 = vpop.eup %17646  ;;  %v4662_v51 = vmul.f32 %v17645_v6, %v19349_v47  ;;  %v4664_v3 = vmul.f32 %v17645_v6, %v19351_v49  ;;  %v16154_v47 = vld [vmem:[%s22919_s14 + $0x1a8] ss:$16 sps:$4 sm:$0xff]  }
 0x740   : > { %v4663_v46 = vmul.f32 %v17647_v48, %v19353_v50  ;;  %v4665_v25 = vmul.f32 %v17647_v48, %v19355_v27  ;;  %v16162_v27 = vld [vmem:[%s22919_s14 + $0x1cc] ss:$16 sps:$4 sm:$0xff]   ;;  %11981 = vmatpush1.bf16.msra.mxu0 %v16154_v47  ;;  %v16131_v48 = vld [vmem:[%s22919_s14 + $0x160] ss:$16 sps:$4 sm:$0xff]  }
 0x741   : > { %v4678_v12 = vmul.f32 %v4671_v2, %v4662_v51  ;;  %v4680_v13 = vmul.f32 %v4671_v2, %v4664_v3  ;;  %11982 = vmatprep.subr.bf16.mxu0 %v16162_v27  ;;  %v16123_v2 = vld [vmem:[%s22919_s14 + $0x144] ss:$16 sps:$4 sm:$0xff]   ;;  %v16075_v6 = vld [vmem:[%s22918_s13 + $0x28] sm:$0xff]  }
 0x742   : > { %v4679_v41 = vmul.f32 %v4675_v10, %v4663_v46  ;;  %v4681_v62 = vmul.f32 %v4675_v10, %v4665_v25  ;;  %v16121_v10 = vld [vmem:[%s22919_s14 + $0x140] ss:$16 sps:$4 sm:$0xff]   ;;  %v16143_v51 = vld [vmem:[%s22919_s14 + $0x184] ss:$16 sps:$4 sm:$0xff]  }
 0x743   : > { %v4694_v44 = vadd.f32 %v4687_v34, %v4678_v12  ;;  %v4696_v49 = vadd.f32 %v4687_v34, %v4680_v13  ;;  %v16079_v3 = vld [vmem:[%s22918_s13 + $0x30] sm:$0xff]   ;;  %v16083_v12 = vld [vmem:[%s22918_s13 + $0x38] sm:$0xff]  }
 0x744   : > { %v4697_v50 = vadd.f32 %v4691_v9, %v4681_v62  ;;  %v4695_v60 = vadd.f32 %v4691_v9, %v4679_v41  ;;  %11983 = vmatpush1.bf16.msra.mxu0 %v16160_v29  ;;  %v16141_v34 = vld [vmem:[%s22919_s14 + $0x180] ss:$16 sps:$4 sm:$0xff]   ;;  %v16153_v46 = vld [vmem:[%s22919_s14 + $0x1a4] ss:$16 sps:$4 sm:$0xff]   ;;  %v16100_v62 = vld [vmem:[%s22918_s13 + $0x48] sm:$0xff]  }
 0x745   : > { %v4700_v5 = vmul.f32 0.2, %v4696_v49  ;;  %v4698_v26 = vmul.f32 0.2, %v4694_v44  ;;  %v16151_v25 = vld [vmem:[%s22919_s14 + $0x1a0] ss:$16 sps:$4 sm:$0xff]  }
 0x746   : > { %v4699_v54 = vmul.f32 0.2, %v4695_v60  ;;  %v4701_v53 = vmul.f32 0.2, %v4697_v50  ;;  %v16159_v9 = vld [vmem:[%s22919_s14 + $0x1c4] ss:$16 sps:$4 sm:$0xff]  }
 0x747   : > { %v4704_v32 = vmax.f32 %v4696_v49, %v4700_v5  ;;  %v4702_v28 = vmax.f32 %v4694_v44, %v4698_v26  ;;  %v16157_v13 = vld [vmem:[%s22919_s14 + $0x1c0] ss:$16 sps:$4 sm:$0xff]   ;;  %v16166_v44 = vld [vmem:[%s22919_s14 + $0x1e4] ss:$16 sps:$4 sm:$0xff]   ;;  %v16169_v49 = vld [vmem:[%s22919_s14 + $0x1ec] ss:$16 sps:$4 sm:$0xff]  }
 0x748   : > { %v4703_v30 = vmax.f32 %v4695_v60, %v4699_v54  ;;  %v4705_v18 = vmax.f32 %v4697_v50, %v4701_v53  ;;  %v16090_v41 = vld [vmem:[%s22918_s13 + $0x40] sm:$0xff]   ;;  %v16110_v47 = vld [vmem:[%s22918_s13 + $0x50] sm:$0xff]   ;;  %v16167_v60 = vld [vmem:[%s22919_s14 + $0x1e8] ss:$16 sps:$4 sm:$0xff]   ;;  %11984 = vmatprep.subr.bf16.mxu0 %v16169_v49 }
 0x749   : > { %v4738_v36 = vpack.c.bf16 %v4704_v32, %v4702_v28  ;;  %v16164_v50 = vld [vmem:[%s22919_s14 + $0x1e0] ss:$16 sps:$4 sm:$0xff]   ;;  %11985 = vmatpush1.bf16.msra.mxu0 %v16167_v60  ;;  %v16172_v27 = vld [vmem:[%s22919_s14 + $0x204] ss:$16 sps:$4 sm:$0xff]   ;;  %v16175_v5 = vld [vmem:[%s22919_s14 + $0x20c] ss:$16 sps:$4 sm:$0xff]  }
 0x74a   : > { %v4739_v37 = vpack.c.bf16 %v4705_v18, %v4703_v30  ;;  %11997 = vmatprep.subr.bf16.mxu0 %v16175_v5  ;;  %v16130_v26 = vld [vmem:[%s22918_s13 + $0x60] sm:$0xff]   ;;  %v16140_v54 = vld [vmem:[%s22918_s13 + $0x68] sm:$0xff]   ;;  %v16150_v53 = vld [vmem:[%s22918_s13 + $0x70] sm:$0xff]  }
 0x74b   : > { %v4870_v1 = vand.u32 %v4738_v36, %v18439_v31  ;;  %v16163_v29 = vld [vmem:[%s22918_s13 + $0x78] sm:$0xff]  }
 0x74c   : > { %v4873_v11 = vand.u32 %v4739_v37, %v18439_v31  ;;  %v16064_v31 = vld [vmem:[%s22919_s14 + $0x20] ss:$16 sps:$4 sm:$0xff]   ;;  %v16217_v49 = vld [vmem:[%s22919_s14 + $0x2ec] ss:$16 sps:$4 sm:$0xff]  }
 0x74d   : > { %v16223_v5 = vld [vmem:[%s22919_s14 + $0x30c] ss:$16 sps:$4 sm:$0xff]  }
 0x74e   : > { %4875 = vmatprep.subr.bf16.mxu1 %v4873_v11  ;;  %v16170_v11 = vld [vmem:[%s22919_s14 + $0x200] ss:$16 sps:$4 sm:$0xff]  }
 0x74f   : > { %4876 = vmatpush1.bf16.msra.mxu1 %v4870_v1  ;;  %v16181_v1 = vld [vmem:[%s22919_s14 + $0x22c] ss:$16 sps:$4 sm:$0xff]  }
 0x750   : > { %11266 = vmatprep.subr.bf16.mxu1 %v16062_v14  ;;  %v16178_v14 = vld [vmem:[%s22919_s14 + $0x224] ss:$16 sps:$4 sm:$0xff]  }
 0x752   : > { %13852 = vmatmul.mubr.msk.bf16.vlgmr.msra.gmra.mrb[120].mxu1 %vm4820_vm7, %v16058_v42  ;;  %v16176_v42 = vld [vmem:[%s22919_s14 + $0x220] ss:$16 sps:$4 sm:$0xff]  }
 0x753   : > { %4917 = vmatprep.mubr.bf16.mxu1 %v17668_v21  ;;  %11267 = vmatpush1.bf16.msra.mxu1 %v16060_v58  ;;  %v16179_v58 = vld [vmem:[%s22919_s14 + $0x228] ss:$16 sps:$4 sm:$0xff]  }
 0x754   : > { %11268 = vmatprep.subr.bf16.mxu1 %v16066_v63 }
 0x757   : > { %11269 = vmatpush1.bf16.msra.mxu1 %v16064_v31  ;;  %v16184_v31 = vld [vmem:[%s22919_s14 + $0x244] ss:$16 sps:$4 sm:$0xff]  }
 0x758   : > { %11270 = vmatprep.subr.bf16.mxu1 %v16070_v59  ;;  %v16187_v59 = vld [vmem:[%s22919_s14 + $0x24c] ss:$16 sps:$4 sm:$0xff]  }
 0x75a   : > { %13853 = vmatmul.mubr.msk.bf16.gmra.mrb[124].mxu1 %vm4820_vm7, %v16059_v39 }
 0x75b   : > { %4927 = vmatprep.mubr.bf16.mxu1 %v17668_v21  ;;  %11271 = vmatpush1.bf16.msra.mxu1 %v16068_v57 }
 0x75c   : > { %11272 = vmatprep.subr.bf16.mxu1 %v16074_v15 }
 0x75f   : > { %11273 = vmatpush1.bf16.msra.mxu1 %v16072_v40 }
 0x760   : > { %11274 = vmatprep.subr.bf16.mxu1 %v16078_v52  ;;  %v16182_v52 = vld [vmem:[%s22919_s14 + $0x240] ss:$16 sps:$4 sm:$0xff]  }
 0x762   : > { %13854 = vmatmul.mubr.msk.bf16.gmra.mrb[128].mxu1 %vm4820_vm7, %v16063_v35  ;;  %v16185_v35 = vld [vmem:[%s22919_s14 + $0x248] ss:$16 sps:$4 sm:$0xff]  }
 0x763   : > { %4937 = vmatprep.mubr.bf16.mxu1 %v17668_v21  ;;  %11275 = vmatpush1.bf16.msra.mxu1 %v16076_v22 }
 0x764   : > { %11276 = vmatprep.subr.bf16.mxu1 %v16082_v16  ;;  %v16190_v16 = vld [vmem:[%s22919_s14 + $0x264] ss:$16 sps:$4 sm:$0xff]  }
 0x767   : > { %11277 = vmatpush1.bf16.msra.mxu1 %v16080_v4  ;;  %v16193_v4 = vld [vmem:[%s22919_s14 + $0x26c] ss:$16 sps:$4 sm:$0xff]  }
 0x768   : > { %11278 = vmatprep.subr.bf16.mxu1 %v16086_v7  ;;  %v16188_v7 = vld [vmem:[%s22919_s14 + $0x260] ss:$16 sps:$4 sm:$0xff]  }
 0x76a   : > { %13855 = vmatmul.mubr.msk.bf16.gmra.mrb[132].mxu1 %vm4820_vm7, %v16067_v8  ;;  %v16191_v8 = vld [vmem:[%s22919_s14 + $0x268] ss:$16 sps:$4 sm:$0xff]  }
 0x76b   : > { %4947 = vmatprep.mubr.bf16.mxu1 %v17668_v21  ;;  %11279 = vmatpush1.bf16.msra.mxu1 %v16084_v56 }
 0x76c   : > { %11280 = vmatprep.subr.bf16.mxu1 %v16093_v55  ;;  %v16196_v55 = vld [vmem:[%s22919_s14 + $0x284] ss:$16 sps:$4 sm:$0xff]  }
 0x76f   : > { %11281 = vmatpush1.bf16.msra.mxu1 %v16091_v19  ;;  %v16199_v19 = vld [vmem:[%s22919_s14 + $0x28c] ss:$16 sps:$4 sm:$0xff]  }
 0x770   : > { %11282 = vmatprep.subr.bf16.mxu1 %v16103_v23 }
 0x772   : > { %13856 = vmatmul.mubr.msk.bf16.gmra.mrb[136].mxu1 %vm4820_vm7, %v16071_v24 }
 0x773   : > { %4957 = vmatprep.mubr.bf16.mxu1 %v17668_v21  ;;  %11283 = vmatpush1.bf16.msra.mxu1 %v16101_v43 }
 0x774   : > { %11284 = vmatprep.subr.bf16.mxu1 %v16113_v33 }
 0x777   : > { %11285 = vmatpush1.bf16.msra.mxu1 %v16111_v0  ;;  %v16194_v0 = vld [vmem:[%s22919_s14 + $0x280] ss:$16 sps:$4 sm:$0xff]  }
 0x778   : > { %11286 = vmatprep.subr.bf16.mxu1 %v16123_v2  ;;  %v16197_v2 = vld [vmem:[%s22919_s14 + $0x288] ss:$16 sps:$4 sm:$0xff]  }
 0x77a   : > { %13857 = vmatmul.mubr.msk.bf16.gmra.mrb[140].mxu1 %vm4820_vm7, %v16075_v6 }
 0x77b   : > { %4967 = vmatprep.mubr.bf16.mxu1 %v17668_v21  ;;  %11287 = vmatpush1.bf16.msra.mxu1 %v16121_v10  ;;  %v16202_v10 = vld [vmem:[%s22919_s14 + $0x2a4] ss:$16 sps:$4 sm:$0xff]  }
 0x77c   : > { %11288 = vmatprep.subr.bf16.mxu1 %v16133_v38  ;;  %v16205_v38 = vld [vmem:[%s22919_s14 + $0x2ac] ss:$16 sps:$4 sm:$0xff]  }
 0x77f   : > { %11289 = vmatpush1.bf16.msra.mxu1 %v16131_v48  ;;  %v16200_v48 = vld [vmem:[%s22919_s14 + $0x2a0] ss:$16 sps:$4 sm:$0xff]  }
 0x780   : > { %11290 = vmatprep.subr.bf16.mxu1 %v16143_v51  ;;  %v16203_v51 = vld [vmem:[%s22919_s14 + $0x2a8] ss:$16 sps:$4 sm:$0xff]  }
 0x782   : > { %13858 = vmatmul.mubr.msk.bf16.gmra.mrb[144].mxu1 %vm4820_vm7, %v16079_v3 }
 0x783   : > { %4977 = vmatprep.mubr.bf16.mxu1 %v17668_v21  ;;  %11291 = vmatpush1.bf16.msra.mxu1 %v16141_v34  ;;  %v16208_v34 = vld [vmem:[%s22919_s14 + $0x2c4] ss:$16 sps:$4 sm:$0xff]  }
 0x784   : > { %11292 = vmatprep.subr.bf16.mxu1 %v16153_v46  ;;  %v16211_v46 = vld [vmem:[%s22919_s14 + $0x2cc] ss:$16 sps:$4 sm:$0xff]  }
 0x787   : > { %11293 = vmatpush1.bf16.msra.mxu1 %v16151_v25 }
 0x788   : > { %11294 = vmatprep.subr.bf16.mxu1 %v16159_v9 }
 0x78a   : > { %13859 = vmatmul.mubr.msk.bf16.gmra.mrb[148].mxu1 %vm4820_vm7, %v16083_v12 }
 0x78b   : > { %4987 = vmatprep.mubr.bf16.mxu1 %v17668_v21  ;;  %11295 = vmatpush1.bf16.msra.mxu1 %v16157_v13 }
 0x78c   : > { %11296 = vmatprep.subr.bf16.mxu1 %v16166_v44  ;;  %v16214_v44 = vld [vmem:[%s22919_s14 + $0x2e4] ss:$16 sps:$4 sm:$0xff]  }
 0x78f   : > { %11297 = vmatpush1.bf16.msra.mxu1 %v16164_v50  ;;  %v16215_v50 = vld [vmem:[%s22919_s14 + $0x2e8] ss:$16 sps:$4 sm:$0xff]  }
 0x790   : > { %11309 = vmatprep.subr.bf16.mxu1 %v16172_v27  ;;  %v16220_v27 = vld [vmem:[%s22919_s14 + $0x304] ss:$16 sps:$4 sm:$0xff]  }
 0x792   : > { %13860 = vmatmul.mubr.msk.bf16.gmra.mrb[152].mxu1 %vm4820_vm7, %v16090_v41  ;;  %v16206_v41 = vld [vmem:[%s22919_s14 + $0x2c0] ss:$16 sps:$4 sm:$0xff]  }
 0x793   : > { %4997 = vmatprep.mubr.bf16.mxu1 %v17668_v21 }
 0x79a   : > { %13861 = vmatmul.mubr.msk.bf16.gmra.mrb[156].mxu1 %vm4820_vm7, %v16100_v62  ;;  %v16209_v62 = vld [vmem:[%s22919_s14 + $0x2c8] ss:$16 sps:$4 sm:$0xff]  }
 0x79b   : > { %5007 = vmatprep.mubr.bf16.mxu1 %v17668_v21 }
 0x7a2   : > { %13862 = vmatmul.mubr.msk.bf16.gmra.mrb[160].mxu1 %vm4820_vm7, %v16110_v47 }
 0x7a3   : > { %5017 = vmatprep.mubr.bf16.mxu1 %v17668_v21 }
 0x7aa   : > { %13863 = vmatmul.mubr.msk.bf16.gmra.mrb[164].mxu1 %vm4820_vm7, %v16120_v45  ;;  %v16212_v45 = vld [vmem:[%s22919_s14 + $0x2e0] ss:$16 sps:$4 sm:$0xff]  }
 0x7ab   : > { %5027 = vmatprep.mubr.bf16.mxu1 %v17668_v21 }
 0x7b2   : > { %13864 = vmatmul.mubr.msk.bf16.gmra.mrb[168].mxu1 %vm4820_vm7, %v16130_v26 }
 0x7b3   : > { %5037 = vmatprep.mubr.bf16.mxu1 %v17668_v21 }
 0x7ba   : > { %13865 = vmatmul.mubr.msk.bf16.gmra.mrb[172].mxu1 %vm4820_vm7, %v16140_v54 }
 0x7bb   : > { %5047 = vmatprep.mubr.bf16.mxu1 %v17668_v21 }
 0x7c2   : > { %13866 = vmatmul.mubr.msk.bf16.gmra.mrb[176].mxu1 %vm4820_vm7, %v16150_v53 }
 0x7c3   : > { %5057 = vmatprep.mubr.bf16.mxu1 %v17668_v21  ;;  %v16173_v21 = vld [vmem:[%s22919_s14 + $0x208] ss:$16 sps:$4 sm:$0xff]  }
 0x7ca   : > { %13867 = vmatmul.mubr.msk.bf16.gmra.mrb[180].mxu1 %vm4820_vm7, %v16163_v29 }
 0x825   : > { %v4909_v32 = vpop.f32.mrb[120].mxu1 }
 0x826   : > { %v4911_v28 = vpop.f32.mrb[121].mxu1 }
 0x827   : > { %v4913_v30 = vpop.f32.mrb[122].mxu1 }
 0x828   : > { %v5068_v18 = vpack.c.bf16 %v4913_v30, %v4909_v32  ;;  %v4915_v36 = vpop.f32.mrb[123].mxu1  ;;  %v16218_v32 = vld [vmem:[%s22919_s14 + $0x300] ss:$16 sps:$4 sm:$0xff]  }
 0x829   : > { %v5069_v37 = vpack.c.bf16 %v4915_v36, %v4911_v28  ;;  %v16221_v28 = vld [vmem:[%s22919_s14 + $0x308] ss:$16 sps:$4 sm:$0xff]   ;;  %v16229_v36 = vld [vmem:[%s22919_s14 + $0x32c] ss:$16 sps:$4 sm:$0xff]  }
 0x82b   : > { %11298 = vmatprep.mubr.bf16.mxu1 %v5069_v37  ;;  %11986 = vmatprep.mubr.bf16.mxu0 %v5069_v37  ;;  %v16224_v37 = vld [vmem:[%s22919_s14 + $0x320] ss:$16 sps:$4 sm:$0xff]  }
 0x82c   : > { %11299 = vmatmul.mubr.bf16.vlgmr.msra.gmra.mrb[184].mxu1 %v5068_v18  ;;  %11987 = vmatmul.mubr.bf16.vlgmr.msra.gmra.mrb[28].mxu0 %v5068_v18  ;;  %v16226_v18 = vld [vmem:[%s22919_s14 + $0x324] ss:$16 sps:$4 sm:$0xff]  }
 0x82d   : > { %11310 = vmatpush1.bf16.msra.mxu1 %v16170_v11  ;;  %11998 = vmatpush1.bf16.msra.mxu0 %v16173_v21  ;;  %v4919_v63 = vpop.f32.mrb[124].mxu1  ;;  %v16227_v11 = vld [vmem:[%s22919_s14 + $0x328] ss:$16 sps:$4 sm:$0xff]  }
 0x82e   : > { %11311 = vmatprep.subr.bf16.mxu1 %v16178_v14  ;;  %11999 = vmatprep.subr.bf16.mxu0 %v16181_v1  ;;  %v4921_v39 = vpop.f32.mrb[125].mxu1  ;;  %v16232_v14 = vld [vmem:[%s22919_s14 + $0x344] ss:$16 sps:$4 sm:$0xff]   ;;  %v16235_v1 = vld [vmem:[%s22919_s14 + $0x34c] ss:$16 sps:$4 sm:$0xff]  }
 0x82f   : > { %v4923_v57 = vpop.f32.mrb[126].mxu1 }
 0x830   : > { %v19657_v15 = vpack.c.bf16 %v4923_v57, %v4919_v63  ;;  %v4925_v40 = vpop.f32.mrb[127].mxu1 }
 0x831   : > { %11312 = vmatpush1.bf16.msra.mxu1 %v16176_v42  ;;  %12000 = vmatpush1.bf16.msra.mxu0 %v16179_v58  ;;  %v5071_v22 = vpack.c.bf16 %v4925_v40, %v4921_v39  ;;  %v16233_v39 = vld [vmem:[%s22919_s14 + $0x348] ss:$16 sps:$4 sm:$0xff]   ;;  %v16238_v40 = vld [vmem:[%s22919_s14 + $0x364] ss:$16 sps:$4 sm:$0xff]  }
 0x832   : > { %11313 = vmatprep.subr.bf16.mxu1 %v16184_v31  ;;  %12001 = vmatprep.subr.bf16.mxu0 %v16187_v59  ;;  %v16230_v59 = vld [vmem:[%s22919_s14 + $0x340] ss:$16 sps:$4 sm:$0xff]  }
 0x833   : > { %11341 = vmatprep.mubr.bf16.mxu1 %v5071_v22  ;;  %12029 = vmatprep.mubr.bf16.mxu0 %v5071_v22  ;;  %v16239_v22 = vld [vmem:[%s22919_s14 + $0x368] ss:$16 sps:$4 sm:$0xff]  }
 0x835   : > { %11314 = vmatpush1.bf16.msra.mxu1 %v16182_v52  ;;  %12002 = vmatpush1.bf16.msra.mxu0 %v16185_v35  ;;  %v4929_v56 = vpop.f32.mrb[128].mxu1  ;;  %v16241_v52 = vld [vmem:[%s22919_s14 + $0x36c] ss:$16 sps:$4 sm:$0xff]   ;;  %v16236_v35 = vld [vmem:[%s22919_s14 + $0x360] ss:$16 sps:$4 sm:$0xff]  }
 0x836   : > { %11315 = vmatprep.subr.bf16.mxu1 %v16190_v16  ;;  %12003 = vmatprep.subr.bf16.mxu0 %v16193_v4  ;;  %v4931_v23 = vpop.f32.mrb[129].mxu1  ;;  %v16244_v4 = vld [vmem:[%s22919_s14 + $0x384] ss:$16 sps:$4 sm:$0xff]  }
 0x837   : > { %v4933_v24 = vpop.f32.mrb[130].mxu1 }
 0x838   : > { %v19683_v43 = vpack.c.bf16 %v4933_v24, %v4929_v56  ;;  %v4935_v33 = vpop.f32.mrb[131].mxu1  ;;  %v16245_v24 = vld [vmem:[%s22919_s14 + $0x388] ss:$16 sps:$4 sm:$0xff]  }
 0x839   : > { %11316 = vmatpush1.bf16.msra.mxu1 %v16188_v7  ;;  %12004 = vmatpush1.bf16.msra.mxu0 %v16191_v8  ;;  %v19691_v6 = vpack.c.bf16 %v4935_v33, %v4931_v23  ;;  %v16247_v7 = vld [vmem:[%s22919_s14 + $0x38c] ss:$16 sps:$4 sm:$0xff]   ;;  %v16242_v23 = vld [vmem:[%s22919_s14 + $0x380] ss:$16 sps:$4 sm:$0xff]  }
 0x83a   : > { %11317 = vmatprep.subr.bf16.mxu1 %v16196_v55  ;;  %12005 = vmatprep.subr.bf16.mxu0 %v16199_v19 }
 0x83d   : > { %11318 = vmatpush1.bf16.msra.mxu1 %v16194_v0  ;;  %12006 = vmatpush1.bf16.msra.mxu0 %v16197_v2  ;;  %v4939_v3 = vpop.f32.mrb[132].mxu1  ;;  %v16250_v0 = vld [vmem:[%s22919_s14 + $0x3a4] ss:$16 sps:$4 sm:$0xff]   ;;  %v16253_v2 = vld [vmem:[%s22919_s14 + $0x3ac] ss:$16 sps:$4 sm:$0xff]  }
 0x83e   : > { %11319 = vmatprep.subr.bf16.mxu1 %v16202_v10  ;;  %12007 = vmatprep.subr.bf16.mxu0 %v16205_v38  ;;  %v4941_v25 = vpop.f32.mrb[133].mxu1  ;;  %v16248_v10 = vld [vmem:[%s22919_s14 + $0x3a0] ss:$16 sps:$4 sm:$0xff]   ;;  %v16251_v38 = vld [vmem:[%s22919_s14 + $0x3a8] ss:$16 sps:$4 sm:$0xff]  }
 0x83f   : > { %v4943_v9 = vpop.f32.mrb[134].mxu1 }
 0x840   : > { %v19711_v12 = vpack.c.bf16 %v4943_v9, %v4939_v3  ;;  %v4945_v13 = vpop.f32.mrb[135].mxu1  ;;  %v16259_v3 = vld [vmem:[%s22919_s14 + $0x3cc] ss:$16 sps:$4 sm:$0xff]  }
 0x841   : > { %11320 = vmatpush1.bf16.msra.mxu1 %v16200_v48  ;;  %12008 = vmatpush1.bf16.msra.mxu0 %v16203_v51  ;;  %v19719_v47 = vpack.c.bf16 %v4945_v13, %v4941_v25  ;;  %v16256_v51 = vld [vmem:[%s22919_s14 + $0x3c4] ss:$16 sps:$4 sm:$0xff]   ;;  %v16254_v13 = vld [vmem:[%s22919_s14 + $0x3c0] ss:$16 sps:$4 sm:$0xff]  }
 0x842   : > { %11321 = vmatprep.subr.bf16.mxu1 %v16208_v34  ;;  %12009 = vmatprep.subr.bf16.mxu0 %v16211_v46 }
 0x845   : > { %11322 = vmatpush1.bf16.msra.mxu1 %v16206_v41  ;;  %12010 = vmatpush1.bf16.msra.mxu0 %v16209_v62  ;;  %v4949_v60 = vpop.f32.mrb[136].mxu1  ;;  %v16257_v41 = vld [vmem:[%s22919_s14 + $0x3c8] ss:$16 sps:$4 sm:$0xff]  }
 0x846   : > { %11323 = vmatprep.subr.bf16.mxu1 %v16214_v44  ;;  %12011 = vmatprep.subr.bf16.mxu0 %v16217_v49  ;;  %v4951_v26 = vpop.f32.mrb[137].mxu1  ;;  %v16262_v44 = vld [vmem:[%s22919_s14 + $0x3e4] ss:$16 sps:$4 sm:$0xff]   ;;  %v16265_v49 = vld [vmem:[%s22919_s14 + $0x3ec] ss:$16 sps:$4 sm:$0xff]  }
 0x847   : > { %v4953_v54 = vpop.f32.mrb[138].mxu1 }
 0x848   : > { %v19739_v53 = vpack.c.bf16 %v4953_v54, %v4949_v60  ;;  %v4955_v29 = vpop.f32.mrb[139].mxu1 }
 0x849   : > { %11324 = vmatpush1.bf16.msra.mxu1 %v16212_v45  ;;  %12012 = vmatpush1.bf16.msra.mxu0 %v16215_v50  ;;  %v19747_v30 = vpack.c.bf16 %v4955_v29, %v4951_v26  ;;  %v16260_v45 = vld [vmem:[%s22919_s14 + $0x3e0] ss:$16 sps:$4 sm:$0xff]   ;;  %v16263_v50 = vld [vmem:[%s22919_s14 + $0x3e8] ss:$16 sps:$4 sm:$0xff]  }
 0x84a   : > { %11325 = vmatprep.subr.bf16.mxu1 %v16220_v27  ;;  %12013 = vmatprep.subr.bf16.mxu0 %v16223_v5  ;;  %v16268_v27 = vld [vmem:[%s22919_s14 + $0x404] ss:$16 sps:$4 sm:$0xff]   ;;  %v16271_v5 = vld [vmem:[%s22919_s14 + $0x40c] ss:$16 sps:$4 sm:$0xff]  }
 0x84d   : > { %11326 = vmatpush1.bf16.msra.mxu1 %v16218_v32  ;;  %12014 = vmatpush1.bf16.msra.mxu0 %v16221_v28  ;;  %v4959_v21 = vpop.f32.mrb[140].mxu1  ;;  %v16266_v28 = vld [vmem:[%s22919_s14 + $0x400] ss:$16 sps:$4 sm:$0xff]  }
 0x84e   : > { %11327 = vmatprep.subr.bf16.mxu1 %v16226_v18  ;;  %12015 = vmatprep.subr.bf16.mxu0 %v16229_v36  ;;  %v4961_v42 = vpop.f32.mrb[141].mxu1  ;;  %v16269_v18 = vld [vmem:[%s22919_s14 + $0x408] ss:$16 sps:$4 sm:$0xff]  }
 0x84f   : > { %v4963_v58 = vpop.f32.mrb[142].mxu1 }
 0x850   : > { %v19767_v63 = vpack.c.bf16 %v4963_v58, %v4959_v21  ;;  %v4965_v31 = vpop.f32.mrb[143].mxu1  ;;  %v16272_v21 = vld [vmem:[%s22919_s14 + $0x420] ss:$16 sps:$4 sm:$0xff]  }
 0x851   : > { %11328 = vmatpush1.bf16.msra.mxu1 %v16224_v37  ;;  %12016 = vmatpush1.bf16.msra.mxu0 %v16227_v11  ;;  %v19775_v57 = vpack.c.bf16 %v4965_v31, %v4961_v42  ;;  %v16274_v37 = vld [vmem:[%s22919_s14 + $0x424] ss:$16 sps:$4 sm:$0xff]   ;;  %v16277_v11 = vld [vmem:[%s22919_s14 + $0x42c] ss:$16 sps:$4 sm:$0xff]  }
 0x852   : > { %11329 = vmatprep.subr.bf16.mxu1 %v16232_v14  ;;  %12017 = vmatprep.subr.bf16.mxu0 %v16235_v1  ;;  %v16275_v14 = vld [vmem:[%s22919_s14 + $0x428] ss:$16 sps:$4 sm:$0xff]   ;;  %v16280_v42 = vld [vmem:[%s22919_s14 + $0x444] ss:$16 sps:$4 sm:$0xff]  }
 0x855   : > { %11330 = vmatpush1.bf16.msra.mxu1 %v16230_v59  ;;  %12018 = vmatpush1.bf16.msra.mxu0 %v16233_v39  ;;  %v4969_v16 = vpop.f32.mrb[144].mxu1 }
 0x856   : > { %11331 = vmatprep.subr.bf16.mxu1 %v16238_v40  ;;  %12019 = vmatprep.subr.bf16.mxu0 %v16241_v52  ;;  %v4971_v8 = vpop.f32.mrb[145].mxu1  ;;  %v16278_v40 = vld [vmem:[%s22919_s14 + $0x440] ss:$16 sps:$4 sm:$0xff]   ;;  %v16281_v52 = vld [vmem:[%s22919_s14 + $0x448] ss:$16 sps:$4 sm:$0xff]  }
 0x857   : > { %v4973_v56 = vpop.f32.mrb[146].mxu1 }
 0x858   : > { %v19795_v55 = vpack.c.bf16 %v4973_v56, %v4969_v16  ;;  %v4975_v19 = vpop.f32.mrb[147].mxu1  ;;  %v16284_v16 = vld [vmem:[%s22919_s14 + $0x460] ss:$16 sps:$4 sm:$0xff]   ;;  %v16295_v56 = vld [vmem:[%s22919_s14 + $0x48c] ss:$16 sps:$4 sm:$0xff]  }
 0x859   : > { %11332 = vmatpush1.bf16.msra.mxu1 %v16236_v35  ;;  %12020 = vmatpush1.bf16.msra.mxu0 %v16239_v22  ;;  %v19803_v33 = vpack.c.bf16 %v4975_v19, %v4971_v8  ;;  %v16289_v22 = vld [vmem:[%s22919_s14 + $0x46c] ss:$16 sps:$4 sm:$0xff]   ;;  %v16292_v8 = vld [vmem:[%s22919_s14 + $0x484] ss:$16 sps:$4 sm:$0xff]  }
 0x85a   : > { %11333 = vmatprep.subr.bf16.mxu1 %v16244_v4  ;;  %12021 = vmatprep.subr.bf16.mxu0 %v16247_v7  ;;  %v16287_v4 = vld [vmem:[%s22919_s14 + $0x468] ss:$16 sps:$4 sm:$0xff]  }
 0x85d   : > { %11334 = vmatpush1.bf16.msra.mxu1 %v16242_v23  ;;  %12022 = vmatpush1.bf16.msra.mxu0 %v16245_v24  ;;  %v4979_v48 = vpop.f32.mrb[148].mxu1 }
 0x85e   : > { %11335 = vmatprep.subr.bf16.mxu1 %v16250_v0  ;;  %12023 = vmatprep.subr.bf16.mxu0 %v16253_v2  ;;  %v4981_v34 = vpop.f32.mrb[149].mxu1  ;;  %v16290_v2 = vld [vmem:[%s22919_s14 + $0x480] ss:$16 sps:$4 sm:$0xff]  }
 0x85f   : > { %v4983_v46 = vpop.f32.mrb[150].mxu1 }
 0x860   : > { %v19823_v25 = vpack.c.bf16 %v4983_v46, %v4979_v48  ;;  %v4985_v9 = vpop.f32.mrb[151].mxu1  ;;  %v16298_v48 = vld [vmem:[%s22919_s14 + $0x4a4] ss:$16 sps:$4 sm:$0xff]  }
 0x861   : > { %11336 = vmatpush1.bf16.msra.mxu1 %v16248_v10  ;;  %12024 = vmatpush1.bf16.msra.mxu0 %v16251_v38  ;;  %v19831_v62 = vpack.c.bf16 %v4985_v9, %v4981_v34  ;;  %v16293_v10 = vld [vmem:[%s22919_s14 + $0x488] ss:$16 sps:$4 sm:$0xff]   ;;  %v16304_v9 = vld [vmem:[%s22919_s14 + $0x4c4] ss:$16 sps:$4 sm:$0xff]  }
 0x862   : > { %11337 = vmatprep.subr.bf16.mxu1 %v16256_v51  ;;  %12025 = vmatprep.subr.bf16.mxu0 %v16259_v3  ;;  %v16301_v51 = vld [vmem:[%s22919_s14 + $0x4ac] ss:$16 sps:$4 sm:$0xff]   ;;  %v16296_v3 = vld [vmem:[%s22919_s14 + $0x4a0] ss:$16 sps:$4 sm:$0xff]   ;;  %v16299_v34 = vld [vmem:[%s22919_s14 + $0x4a8] ss:$16 sps:$4 sm:$0xff]  }
 0x865   : > { %11338 = vmatpush1.bf16.msra.mxu1 %v16254_v13  ;;  %12026 = vmatpush1.bf16.msra.mxu0 %v16257_v41  ;;  %v4989_v60 = vpop.f32.mrb[152].mxu1  ;;  %v16307_v13 = vld [vmem:[%s22919_s14 + $0x4cc] ss:$16 sps:$4 sm:$0xff]  }
 0x866   : > { %11339 = vmatprep.subr.bf16.mxu1 %v16262_v44  ;;  %12027 = vmatprep.subr.bf16.mxu0 %v16265_v49  ;;  %v4991_v26 = vpop.f32.mrb[153].mxu1 }
 0x867   : > { %v4993_v54 = vpop.f32.mrb[154].mxu1 }
 0x868   : > { %v19851_v29 = vpack.c.bf16 %v4993_v54, %v4989_v60  ;;  %v4995_v32 = vpop.f32.mrb[155].mxu1  ;;  %v16305_v60 = vld [vmem:[%s22919_s14 + $0x4c8] ss:$16 sps:$4 sm:$0xff]   ;;  %v16308_v54 = vld [vmem:[%s22919_s14 + $0x4e0] ss:$16 sps:$4 sm:$0xff]  }
 0x869   : > { %11340 = vmatpush1.bf16.msra.mxu1 %v16260_v45  ;;  %12028 = vmatpush1.bf16.msra.mxu0 %v16263_v50  ;;  %v19859_v36 = vpack.c.bf16 %v4995_v32, %v4991_v26  ;;  %v16302_v50 = vld [vmem:[%s22919_s14 + $0x4c0] ss:$16 sps:$4 sm:$0xff]   ;;  %v16313_v26 = vld [vmem:[%s22919_s14 + $0x4ec] ss:$16 sps:$4 sm:$0xff]   ;;  %v16311_v32 = vld [vmem:[%s22919_s14 + $0x4e8] ss:$16 sps:$4 sm:$0xff]  }
 0x86a   : > { %11352 = vmatprep.subr.bf16.mxu1 %v16268_v27  ;;  %12040 = vmatprep.subr.bf16.mxu0 %v16271_v5  ;;  %v16310_v5 = vld [vmem:[%s22919_s14 + $0x4e4] ss:$16 sps:$4 sm:$0xff]  }
 0x86c   : > { %11342 = vmatmul.mubr.bf16.vlgmr.msra.gmra.mrb[184].mxu1 %v19657_v15  ;;  %12030 = vmatmul.mubr.bf16.vlgmr.msra.gmra.mrb[28].mxu0 %v19657_v15  ;;  %v16283_v15 = vld [vmem:[%s22919_s14 + $0x44c] ss:$16 sps:$4 sm:$0xff]  }
 0x86d   : > { %11353 = vmatpush1.bf16.msra.mxu1 %v16266_v28  ;;  %12041 = vmatpush1.bf16.msra.mxu0 %v16269_v18  ;;  %v4999_v1 = vpop.f32.mrb[156].mxu1  ;;  %v16316_v18 = vld [vmem:[%s22919_s14 + $0x504] ss:$16 sps:$4 sm:$0xff]  }
 0x86e   : > { %11354 = vmatprep.subr.bf16.mxu1 %v16274_v37  ;;  %12042 = vmatprep.subr.bf16.mxu0 %v16277_v11  ;;  %v5001_v58 = vpop.f32.mrb[157].mxu1  ;;  %v16319_v37 = vld [vmem:[%s22919_s14 + $0x50c] ss:$16 sps:$4 sm:$0xff]  }
 0x86f   : > { %11384 = vmatprep.mubr.bf16.mxu1 %v19691_v6  ;;  %12072 = vmatprep.mubr.bf16.mxu0 %v19691_v6  ;;  %v5003_v31 = vpop.f32.mrb[158].mxu1  ;;  %v16286_v6 = vld [vmem:[%s22919_s14 + $0x464] ss:$16 sps:$4 sm:$0xff]  }
 0x870   : > { %v19883_v59 = vpack.c.bf16 %v5003_v31, %v4999_v1  ;;  %v5005_v39 = vpop.f32.mrb[159].mxu1  ;;  %v16322_v31 = vld [vmem:[%s22919_s14 + $0x524] ss:$16 sps:$4 sm:$0xff]  }
 0x871   : > { %11355 = vmatpush1.bf16.msra.mxu1 %v16272_v21  ;;  %12043 = vmatpush1.bf16.msra.mxu0 %v16275_v14  ;;  %v19891_v35 = vpack.c.bf16 %v5005_v39, %v5001_v58  ;;  %v16325_v39 = vld [vmem:[%s22919_s14 + $0x52c] ss:$16 sps:$4 sm:$0xff]  }
 0x872   : > { %11356 = vmatprep.subr.bf16.mxu1 %v16280_v42  ;;  %12044 = vmatprep.subr.bf16.mxu0 %v16283_v15  ;;  %v16314_v42 = vld [vmem:[%s22919_s14 + $0x500] ss:$16 sps:$4 sm:$0xff]   ;;  %v16317_v15 = vld [vmem:[%s22919_s14 + $0x508] ss:$16 sps:$4 sm:$0xff]  }
 0x875   : > { %11357 = vmatpush1.bf16.msra.mxu1 %v16278_v40  ;;  %12045 = vmatpush1.bf16.msra.mxu0 %v16281_v52  ;;  %v5009_v7 = vpop.f32.mrb[160].mxu1  ;;  %v16320_v40 = vld [vmem:[%s22919_s14 + $0x520] ss:$16 sps:$4 sm:$0xff]   ;;  %v16323_v52 = vld [vmem:[%s22919_s14 + $0x528] ss:$16 sps:$4 sm:$0xff]  }
 0x876   : > { %11358 = vmatprep.subr.bf16.mxu1 %v16286_v6  ;;  %12046 = vmatprep.subr.bf16.mxu0 %v16289_v22  ;;  %v5011_v19 = vpop.f32.mrb[161].mxu1  ;;  %v16328_v22 = vld [vmem:[%s22919_s14 + $0x544] ss:$16 sps:$4 sm:$0xff]  }
 0x877   : > { %v5013_v23 = vpop.f32.mrb[162].mxu1 }
 0x878   : > { %v19911_v24 = vpack.c.bf16 %v5013_v23, %v5009_v7  ;;  %v5015_v0 = vpop.f32.mrb[163].mxu1  ;;  %v16329_v23 = vld [vmem:[%s22919_s14 + $0x548] ss:$16 sps:$4 sm:$0xff]  }
 0x879   : > { %11359 = vmatpush1.bf16.msra.mxu1 %v16284_v16  ;;  %12047 = vmatpush1.bf16.msra.mxu0 %v16287_v4  ;;  %v19919_v38 = vpack.c.bf16 %v5015_v0, %v5011_v19  ;;  %v16331_v16 = vld [vmem:[%s22919_s14 + $0x54c] ss:$16 sps:$4 sm:$0xff]   ;;  %v16326_v19 = vld [vmem:[%s22919_s14 + $0x540] ss:$16 sps:$4 sm:$0xff]  }
 0x87a   : > { %11360 = vmatprep.subr.bf16.mxu1 %v16292_v8  ;;  %12048 = vmatprep.subr.bf16.mxu0 %v16295_v56 }
 0x87d   : > { %11361 = vmatpush1.bf16.msra.mxu1 %v16290_v2  ;;  %12049 = vmatpush1.bf16.msra.mxu0 %v16293_v10  ;;  %v5019_v46 = vpop.f32.mrb[164].mxu1  ;;  %v16334_v2 = vld [vmem:[%s22919_s14 + $0x564] ss:$16 sps:$4 sm:$0xff]   ;;  %v16337_v10 = vld [vmem:[%s22919_s14 + $0x56c] ss:$16 sps:$4 sm:$0xff]  }
 0x87e   : > { %11362 = vmatprep.subr.bf16.mxu1 %v16298_v48  ;;  %12050 = vmatprep.subr.bf16.mxu0 %v16301_v51  ;;  %v5021_v41 = vpop.f32.mrb[165].mxu1  ;;  %v16332_v48 = vld [vmem:[%s22919_s14 + $0x560] ss:$16 sps:$4 sm:$0xff]   ;;  %v16335_v51 = vld [vmem:[%s22919_s14 + $0x568] ss:$16 sps:$4 sm:$0xff]  }
 0x87f   : > { %v5023_v44 = vpop.f32.mrb[166].mxu1 }
 0x880   : > { %v19939_v49 = vpack.c.bf16 %v5023_v44, %v5019_v46  ;;  %v5025_v45 = vpop.f32.mrb[167].mxu1  ;;  %v16343_v46 = vld [vmem:[%s22919_s14 + $0x58c] ss:$16 sps:$4 sm:$0xff]  }
 0x881   : > { %11363 = vmatpush1.bf16.msra.mxu1 %v16296_v3  ;;  %12051 = vmatpush1.bf16.msra.mxu0 %v16299_v34  ;;  %v19947_v27 = vpack.c.bf16 %v5025_v45, %v5021_v41  ;;  %v16340_v34 = vld [vmem:[%s22919_s14 + $0x584] ss:$16 sps:$4 sm:$0xff]   ;;  %v16338_v45 = vld [vmem:[%s22919_s14 + $0x580] ss:$16 sps:$4 sm:$0xff]  }
 0x882   : > { %11364 = vmatprep.subr.bf16.mxu1 %v16304_v9  ;;  %12052 = vmatprep.subr.bf16.mxu0 %v16307_v13 }
 0x885   : > { %11365 = vmatpush1.bf16.msra.mxu1 %v16302_v50  ;;  %12053 = vmatpush1.bf16.msra.mxu0 %v16305_v60  ;;  %v5029_v28 = vpop.f32.mrb[168].mxu1  ;;  %v16341_v50 = vld [vmem:[%s22919_s14 + $0x588] ss:$16 sps:$4 sm:$0xff]  }
 0x886   : > { %11366 = vmatprep.subr.bf16.mxu1 %v16310_v5  ;;  %12054 = vmatprep.subr.bf16.mxu0 %v16313_v26  ;;  %v5031_v11 = vpop.f32.mrb[169].mxu1  ;;  %v16346_v5 = vld [vmem:[%s22919_s14 + $0x5a4] ss:$16 sps:$4 sm:$0xff]   ;;  %v16349_v26 = vld [vmem:[%s22919_s14 + $0x5ac] ss:$16 sps:$4 sm:$0xff]  }
 0x887   : > { %v5033_v21 = vpop.f32.mrb[170].mxu1 }
 0x888   : > { %v19967_v14 = vpack.c.bf16 %v5033_v21, %v5029_v28  ;;  %v5035_v1 = vpop.f32.mrb[171].mxu1 }
 0x889   : > { %11367 = vmatpush1.bf16.msra.mxu1 %v16308_v54  ;;  %12055 = vmatpush1.bf16.msra.mxu0 %v16311_v32  ;;  %v19975_v58 = vpack.c.bf16 %v5035_v1, %v5031_v11  ;;  %v16344_v54 = vld [vmem:[%s22919_s14 + $0x5a0] ss:$16 sps:$4 sm:$0xff]   ;;  %v16347_v32 = vld [vmem:[%s22919_s14 + $0x5a8] ss:$16 sps:$4 sm:$0xff]  }
 0x88a   : > { %11368 = vmatprep.subr.bf16.mxu1 %v16316_v18  ;;  %12056 = vmatprep.subr.bf16.mxu0 %v16319_v37  ;;  %v16352_v18 = vld [vmem:[%s22919_s14 + $0x5c4] ss:$16 sps:$4 sm:$0xff]   ;;  %v16355_v37 = vld [vmem:[%s22919_s14 + $0x5cc] ss:$16 sps:$4 sm:$0xff]  }
 0x88d   : > { %11369 = vmatpush1.bf16.msra.mxu1 %v16314_v42  ;;  %12057 = vmatpush1.bf16.msra.mxu0 %v16317_v15  ;;  %v5039_v6 = vpop.f32.mrb[172].mxu1  ;;  %v16350_v15 = vld [vmem:[%s22919_s14 + $0x5c0] ss:$16 sps:$4 sm:$0xff]  }
 0x88e   : > { %11370 = vmatprep.subr.bf16.mxu1 %v16322_v31  ;;  %12058 = vmatprep.subr.bf16.mxu0 %v16325_v39  ;;  %v5041_v4 = vpop.f32.mrb[173].mxu1  ;;  %v16353_v31 = vld [vmem:[%s22919_s14 + $0x5c8] ss:$16 sps:$4 sm:$0xff]  }
 0x88f   : > { %v5043_v7 = vpop.f32.mrb[174].mxu1 }
 0x890   : > { %v19995_v8 = vpack.c.bf16 %v5043_v7, %v5039_v6  ;;  %v5045_v56 = vpop.f32.mrb[175].mxu1  ;;  %v16356_v6 = vld [vmem:[%s22919_s14 + $0x5e0] ss:$16 sps:$4 sm:$0xff]  }
 0x891   : > { %11371 = vmatpush1.bf16.msra.mxu1 %v16320_v40  ;;  %12059 = vmatpush1.bf16.msra.mxu0 %v16323_v52  ;;  %v20003_v0 = vpack.c.bf16 %v5045_v56, %v5041_v4  ;;  %v16358_v40 = vld [vmem:[%s22919_s14 + $0x5e4] ss:$16 sps:$4 sm:$0xff]   ;;  %v16361_v52 = vld [vmem:[%s22919_s14 + $0x5ec] ss:$16 sps:$4 sm:$0xff]   ;;  %v16362_v7 = vld [vmem:[%s22919_s14 + $0x600] ss:$16 sps:$4 sm:$0xff]  }
 0x892   : > { %11372 = vmatprep.subr.bf16.mxu1 %v16328_v22  ;;  %12060 = vmatprep.subr.bf16.mxu0 %v16331_v16  ;;  %v16359_v22 = vld [vmem:[%s22919_s14 + $0x5e8] ss:$16 sps:$4 sm:$0xff]   ;;  %v16364_v16 = vld [vmem:[%s22919_s14 + $0x604] ss:$16 sps:$4 sm:$0xff]   ;;  %v16367_v4 = vld [vmem:[%s22919_s14 + $0x60c] ss:$16 sps:$4 sm:$0xff]  }
 0x893   : > { %v16365_v56 = vld [vmem:[%s22919_s14 + $0x608] ss:$16 sps:$4 sm:$0xff]  }
 0x895   : > { %11373 = vmatpush1.bf16.msra.mxu1 %v16326_v19  ;;  %12061 = vmatpush1.bf16.msra.mxu0 %v16329_v23  ;;  %v5049_v3 = vpop.f32.mrb[176].mxu1  ;;  %v16370_v19 = vld [vmem:[%s22919_s14 + $0x624] ss:$16 sps:$4 sm:$0xff]   ;;  %v16373_v23 = vld [vmem:[%s22919_s14 + $0x62c] ss:$16 sps:$4 sm:$0xff]  }
 0x896   : > { %11374 = vmatprep.subr.bf16.mxu1 %v16334_v2  ;;  %12062 = vmatprep.subr.bf16.mxu0 %v16337_v10  ;;  %v5051_v9 = vpop.f32.mrb[177].mxu1  ;;  %v16368_v2 = vld [vmem:[%s22919_s14 + $0x620] ss:$16 sps:$4 sm:$0xff]   ;;  %v16371_v10 = vld [vmem:[%s22919_s14 + $0x628] ss:$16 sps:$4 sm:$0xff]  }
 0x897   : > { %v5053_v13 = vpop.f32.mrb[178].mxu1 }
 0x898   : > { %v20023_v41 = vpack.c.bf16 %v5053_v13, %v5049_v3  ;;  %v5055_v44 = vpop.f32.mrb[179].mxu1  ;;  %v16382_v3 = vld [vmem:[%s22919_s14 + $0x664] ss:$16 sps:$4 sm:$0xff]  }
 0x899   : > { %11375 = vmatpush1.bf16.msra.mxu1 %v16332_v48  ;;  %12063 = vmatpush1.bf16.msra.mxu0 %v16335_v51  ;;  %v20031_v60 = vpack.c.bf16 %v5055_v44, %v5051_v9  ;;  %v16376_v48 = vld [vmem:[%s22919_s14 + $0x644] ss:$16 sps:$4 sm:$0xff]   ;;  %v16374_v51 = vld [vmem:[%s22919_s14 + $0x640] ss:$16 sps:$4 sm:$0xff]   ;;  %v16383_v9 = vld [vmem:[%s22919_s14 + $0x668] ss:$16 sps:$4 sm:$0xff]  }
 0x89a   : > { %11376 = vmatprep.subr.bf16.mxu1 %v16340_v34  ;;  %12064 = vmatprep.subr.bf16.mxu0 %v16343_v46  ;;  %v16385_v34 = vld [vmem:[%s22919_s14 + $0x66c] ss:$16 sps:$4 sm:$0xff]   ;;  %v16380_v46 = vld [vmem:[%s22919_s14 + $0x660] ss:$16 sps:$4 sm:$0xff]   ;;  %v16388_v13 = vld [vmem:[%s22919_s14 + $0x684] ss:$16 sps:$4 sm:$0xff]  }
 0x89b   : > { %v16391_v44 = vld [vmem:[%s22919_s14 + $0x68c] ss:$16 sps:$4 sm:$0xff]  }
 0x89d   : > { %11377 = vmatpush1.bf16.msra.mxu1 %v16338_v45  ;;  %12065 = vmatpush1.bf16.msra.mxu0 %v16341_v50  ;;  %v5059_v28 = vpop.f32.mrb[180].mxu1  ;;  %v16386_v45 = vld [vmem:[%s22919_s14 + $0x680] ss:$16 sps:$4 sm:$0xff]   ;;  %v16389_v50 = vld [vmem:[%s22919_s14 + $0x688] ss:$16 sps:$4 sm:$0xff]  }
 0x89e   : > { %11378 = vmatprep.subr.bf16.mxu1 %v16346_v5  ;;  %12066 = vmatprep.subr.bf16.mxu0 %v16349_v26  ;;  %v5061_v11 = vpop.f32.mrb[181].mxu1  ;;  %v16394_v5 = vld [vmem:[%s22919_s14 + $0x6a4] ss:$16 sps:$4 sm:$0xff]   ;;  %v16397_v26 = vld [vmem:[%s22919_s14 + $0x6ac] ss:$16 sps:$4 sm:$0xff]  }
 0x89f   : > { %v5063_v21 = vpop.f32.mrb[182].mxu1 }
 0x8a0   : > { %v20051_v1 = vpack.c.bf16 %v5063_v21, %v5059_v28  ;;  %v5065_v42 = vpop.f32.mrb[183].mxu1  ;;  %v16400_v28 = vld [vmem:[%s22919_s14 + $0x6c4] ss:$16 sps:$4 sm:$0xff]  }
 0x8a1   : > { %11379 = vmatpush1.bf16.msra.mxu1 %v16344_v54  ;;  %12067 = vmatpush1.bf16.msra.mxu0 %v16347_v32  ;;  %v20059_v39 = vpack.c.bf16 %v5065_v42, %v5061_v11  ;;  %v16392_v54 = vld [vmem:[%s22919_s14 + $0x6a0] ss:$16 sps:$4 sm:$0xff]   ;;  %v16395_v32 = vld [vmem:[%s22919_s14 + $0x6a8] ss:$16 sps:$4 sm:$0xff]   ;;  %v16406_v21 = vld [vmem:[%s22919_s14 + $0x6e4] ss:$16 sps:$4 sm:$0xff]  }
 0x8a2   : > { %11380 = vmatprep.subr.bf16.mxu1 %v16352_v18  ;;  %12068 = vmatprep.subr.bf16.mxu0 %v16355_v37  ;;  %v16403_v18 = vld [vmem:[%s22919_s14 + $0x6cc] ss:$16 sps:$4 sm:$0xff]   ;;  %v16398_v37 = vld [vmem:[%s22919_s14 + $0x6c0] ss:$16 sps:$4 sm:$0xff]   ;;  %v16401_v11 = vld [vmem:[%s22919_s14 + $0x6c8] ss:$16 sps:$4 sm:$0xff]  }
 0x8a3   : > { %v16409_v42 = vld [vmem:[%s22919_s14 + $0x6ec] ss:$16 sps:$4 sm:$0xff]  }
 0x8a5   : > { %11381 = vmatpush1.bf16.msra.mxu1 %v16350_v15  ;;  %12069 = vmatpush1.bf16.msra.mxu0 %v16353_v31  ;;  %v16404_v15 = vld [vmem:[%s22919_s14 + $0x6e0] ss:$16 sps:$4 sm:$0xff]   ;;  %v16407_v31 = vld [vmem:[%s22919_s14 + $0x6e8] ss:$16 sps:$4 sm:$0xff]  }
 0x8a6   : > { %11382 = vmatprep.subr.bf16.mxu1 %v16358_v40  ;;  %12070 = vmatprep.subr.bf16.mxu0 %v16361_v52  ;;  %v16412_v40 = vld [vmem:[%s22919_s14 + $0x704] ss:$16 sps:$4 sm:$0xff]   ;;  %v16415_v52 = vld [vmem:[%s22919_s14 + $0x70c] ss:$16 sps:$4 sm:$0xff]  }
 0x8a9   : > { %11383 = vmatpush1.bf16.msra.mxu1 %v16356_v6  ;;  %12071 = vmatpush1.bf16.msra.mxu0 %v16359_v22  ;;  %v16410_v6 = vld [vmem:[%s22919_s14 + $0x700] ss:$16 sps:$4 sm:$0xff]   ;;  %v16413_v22 = vld [vmem:[%s22919_s14 + $0x708] ss:$16 sps:$4 sm:$0xff]  }
 0x8aa   : > { %11395 = vmatprep.subr.bf16.mxu1 %v16364_v16  ;;  %12083 = vmatprep.subr.bf16.mxu0 %v16367_v4  ;;  %v16418_v16 = vld [vmem:[%s22919_s14 + $0x724] ss:$16 sps:$4 sm:$0xff]   ;;  %v16421_v4 = vld [vmem:[%s22919_s14 + $0x72c] ss:$16 sps:$4 sm:$0xff]  }
 0x8ac   : > { %11385 = vmatmul.mubr.bf16.vlgmr.msra.gmra.mrb[184].mxu1 %v19683_v43  ;;  %12073 = vmatmul.mubr.bf16.vlgmr.msra.gmra.mrb[28].mxu0 %v19683_v43  ;;  %v16379_v43 = vld [vmem:[%s22919_s14 + $0x64c] ss:$16 sps:$4 sm:$0xff]  }
 0x8ad   : > { %11396 = vmatpush1.bf16.msra.mxu1 %v16362_v7  ;;  %11427 = vmatprep.mubr.bf16.mxu1 %v19719_v47  ;;  %v16416_v7 = vld [vmem:[%s22919_s14 + $0x720] ss:$16 sps:$4 sm:$0xff]  }
 0x8ae   : > { %12084 = vmatpush1.bf16.msra.mxu0 %v16365_v56  ;;  %12115 = vmatprep.mubr.bf16.mxu0 %v19719_v47  ;;  %v16377_v47 = vld [vmem:[%s22919_s14 + $0x648] ss:$16 sps:$4 sm:$0xff]  }
 0x8af   : > { %11397 = vmatprep.subr.bf16.mxu1 %v16370_v19  ;;  %12085 = vmatprep.subr.bf16.mxu0 %v16373_v23  ;;  %v16419_v56 = vld [vmem:[%s22919_s14 + $0x728] ss:$16 sps:$4 sm:$0xff]   ;;  %v16424_v19 = vld [vmem:[%s22919_s14 + $0x744] ss:$16 sps:$4 sm:$0xff]   ;;  %v16427_v23 = vld [vmem:[%s22919_s14 + $0x74c] ss:$16 sps:$4 sm:$0xff]  }
 0x8b1   : > { %11398 = vmatpush1.bf16.msra.mxu1 %v16368_v2  ;;  %v16422_v2 = vld [vmem:[%s22919_s14 + $0x740] ss:$16 sps:$4 sm:$0xff]  }
 0x8b2   : > { %12086 = vmatpush1.bf16.msra.mxu0 %v16371_v10  ;;  %11399 = vmatprep.subr.bf16.mxu1 %v16376_v48  ;;  %v16425_v10 = vld [vmem:[%s22919_s14 + $0x748] ss:$16 sps:$4 sm:$0xff]   ;;  %v16430_v48 = vld [vmem:[%s22919_s14 + $0x764] ss:$16 sps:$4 sm:$0xff]  }
 0x8b3   : > { %12087 = vmatprep.subr.bf16.mxu0 %v16379_v43  ;;  %v16433_v43 = vld [vmem:[%s22919_s14 + $0x76c] ss:$16 sps:$4 sm:$0xff]  }
 0x8b5   : > { %11400 = vmatpush1.bf16.msra.mxu1 %v16374_v51  ;;  %v16428_v51 = vld [vmem:[%s22919_s14 + $0x760] ss:$16 sps:$4 sm:$0xff]  }
 0x8b6   : > { %12088 = vmatpush1.bf16.msra.mxu0 %v16377_v47  ;;  %11401 = vmatprep.subr.bf16.mxu1 %v16382_v3  ;;  %v16431_v47 = vld [vmem:[%s22919_s14 + $0x768] ss:$16 sps:$4 sm:$0xff]   ;;  %v16436_v3 = vld [vmem:[%s22919_s14 + $0x784] ss:$16 sps:$4 sm:$0xff]  }
 0x8b7   : > { %12089 = vmatprep.subr.bf16.mxu0 %v16385_v34  ;;  %v16439_v34 = vld [vmem:[%s22919_s14 + $0x78c] ss:$16 sps:$4 sm:$0xff]  }
 0x8b9   : > { %11402 = vmatpush1.bf16.msra.mxu1 %v16380_v46  ;;  %v16434_v46 = vld [vmem:[%s22919_s14 + $0x780] ss:$16 sps:$4 sm:$0xff]  }
 0x8ba   : > { %12090 = vmatpush1.bf16.msra.mxu0 %v16383_v9  ;;  %11403 = vmatprep.subr.bf16.mxu1 %v16388_v13  ;;  %v16437_v9 = vld [vmem:[%s22919_s14 + $0x788] ss:$16 sps:$4 sm:$0xff]   ;;  %v16442_v13 = vld [vmem:[%s22919_s14 + $0x7a4] ss:$16 sps:$4 sm:$0xff]  }
 0x8bb   : > { %12091 = vmatprep.subr.bf16.mxu0 %v16391_v44  ;;  %v16445_v44 = vld [vmem:[%s22919_s14 + $0x7ac] ss:$16 sps:$4 sm:$0xff]  }
 0x8bd   : > { %11404 = vmatpush1.bf16.msra.mxu1 %v16386_v45  ;;  %v16440_v45 = vld [vmem:[%s22919_s14 + $0x7a0] ss:$16 sps:$4 sm:$0xff]  }
 0x8be   : > { %12092 = vmatpush1.bf16.msra.mxu0 %v16389_v50  ;;  %11405 = vmatprep.subr.bf16.mxu1 %v16394_v5  ;;  %v16443_v50 = vld [vmem:[%s22919_s14 + $0x7a8] ss:$16 sps:$4 sm:$0xff]   ;;  %v16448_v5 = vld [vmem:[%s22919_s14 + $0x7c4] ss:$16 sps:$4 sm:$0xff]  }
 0x8bf   : > { %12093 = vmatprep.subr.bf16.mxu0 %v16397_v26  ;;  %v16451_v26 = vld [vmem:[%s22919_s14 + $0x7cc] ss:$16 sps:$4 sm:$0xff]  }
 0x8c1   : > { %11406 = vmatpush1.bf16.msra.mxu1 %v16392_v54  ;;  %v16446_v54 = vld [vmem:[%s22919_s14 + $0x7c0] ss:$16 sps:$4 sm:$0xff]  }
 0x8c2   : > { %12094 = vmatpush1.bf16.msra.mxu0 %v16395_v32  ;;  %11407 = vmatprep.subr.bf16.mxu1 %v16400_v28  ;;  %v16449_v32 = vld [vmem:[%s22919_s14 + $0x7c8] ss:$16 sps:$4 sm:$0xff]   ;;  %v16454_v28 = vld [vmem:[%s22919_s14 + $0x7e4] ss:$16 sps:$4 sm:$0xff]  }
 0x8c3   : > { %12095 = vmatprep.subr.bf16.mxu0 %v16403_v18  ;;  %v16457_v18 = vld [vmem:[%s22919_s14 + $0x7ec] ss:$16 sps:$4 sm:$0xff]  }
 0x8c5   : > { %11408 = vmatpush1.bf16.msra.mxu1 %v16398_v37  ;;  %v16452_v37 = vld [vmem:[%s22919_s14 + $0x7e0] ss:$16 sps:$4 sm:$0xff]  }
 0x8c6   : > { %12096 = vmatpush1.bf16.msra.mxu0 %v16401_v11  ;;  %11409 = vmatprep.subr.bf16.mxu1 %v16406_v21  ;;  %v16455_v11 = vld [vmem:[%s22919_s14 + $0x7e8] ss:$16 sps:$4 sm:$0xff]   ;;  %v16460_v21 = vld [vmem:[%s22919_s14 + $0x804] ss:$16 sps:$4 sm:$0xff]  }
 0x8c7   : > { %12097 = vmatprep.subr.bf16.mxu0 %v16409_v42  ;;  %v16463_v42 = vld [vmem:[%s22919_s14 + $0x80c] ss:$16 sps:$4 sm:$0xff]  }
 0x8c9   : > { %11410 = vmatpush1.bf16.msra.mxu1 %v16404_v15  ;;  %v16458_v15 = vld [vmem:[%s22919_s14 + $0x800] ss:$16 sps:$4 sm:$0xff]  }
 0x8ca   : > { %12098 = vmatpush1.bf16.msra.mxu0 %v16407_v31  ;;  %11411 = vmatprep.subr.bf16.mxu1 %v16412_v40  ;;  %v16461_v31 = vld [vmem:[%s22919_s14 + $0x808] ss:$16 sps:$4 sm:$0xff]   ;;  %v16466_v40 = vld [vmem:[%s22919_s14 + $0x824] ss:$16 sps:$4 sm:$0xff]  }
 0x8cb   : > { %12099 = vmatprep.subr.bf16.mxu0 %v16415_v52  ;;  %v16469_v52 = vld [vmem:[%s22919_s14 + $0x82c] ss:$16 sps:$4 sm:$0xff]  }
 0x8cd   : > { %11412 = vmatpush1.bf16.msra.mxu1 %v16410_v6  ;;  %v16464_v6 = vld [vmem:[%s22919_s14 + $0x820] ss:$16 sps:$4 sm:$0xff]  }
 0x8ce   : > { %12100 = vmatpush1.bf16.msra.mxu0 %v16413_v22  ;;  %11413 = vmatprep.subr.bf16.mxu1 %v16418_v16  ;;  %v16467_v22 = vld [vmem:[%s22919_s14 + $0x828] ss:$16 sps:$4 sm:$0xff]   ;;  %v16472_v16 = vld [vmem:[%s22919_s14 + $0x844] ss:$16 sps:$4 sm:$0xff]  }
 0x8cf   : > { %12101 = vmatprep.subr.bf16.mxu0 %v16421_v4  ;;  %v16470_v4 = vld [vmem:[%s22919_s14 + $0x840] ss:$16 sps:$4 sm:$0xff]  }
 0x8d1   : > { %11414 = vmatpush1.bf16.msra.mxu1 %v16416_v7  ;;  %v16473_v7 = vld [vmem:[%s22919_s14 + $0x848] ss:$16 sps:$4 sm:$0xff]  }
 0x8d2   : > { %12102 = vmatpush1.bf16.msra.mxu0 %v16419_v56  ;;  %11415 = vmatprep.subr.bf16.mxu1 %v16424_v19  ;;  %v16481_v56 = vld [vmem:[%s22919_s14 + $0x86c] ss:$16 sps:$4 sm:$0xff]   ;;  %v16476_v19 = vld [vmem:[%s22919_s14 + $0x860] ss:$16 sps:$4 sm:$0xff]  }
 0x8d3   : > { %12103 = vmatprep.subr.bf16.mxu0 %v16427_v23  ;;  %v16479_v23 = vld [vmem:[%s22919_s14 + $0x868] ss:$16 sps:$4 sm:$0xff]  }
 0x8d5   : > { %11416 = vmatpush1.bf16.msra.mxu1 %v16422_v2  ;;  %v16484_v2 = vld [vmem:[%s22919_s14 + $0x884] ss:$16 sps:$4 sm:$0xff]  }
 0x8d6   : > { %12104 = vmatpush1.bf16.msra.mxu0 %v16425_v10  ;;  %11417 = vmatprep.subr.bf16.mxu1 %v16430_v48  ;;  %v16487_v10 = vld [vmem:[%s22919_s14 + $0x88c] ss:$16 sps:$4 sm:$0xff]   ;;  %v16482_v48 = vld [vmem:[%s22919_s14 + $0x880] ss:$16 sps:$4 sm:$0xff]  }
 0x8d7   : > { %12105 = vmatprep.subr.bf16.mxu0 %v16433_v43  ;;  %v16485_v43 = vld [vmem:[%s22919_s14 + $0x888] ss:$16 sps:$4 sm:$0xff]  }
 0x8d9   : > { %11418 = vmatpush1.bf16.msra.mxu1 %v16428_v51  ;;  %v16490_v51 = vld [vmem:[%s22919_s14 + $0x8a4] ss:$16 sps:$4 sm:$0xff]  }
 0x8da   : > { %12106 = vmatpush1.bf16.msra.mxu0 %v16431_v47  ;;  %11419 = vmatprep.subr.bf16.mxu1 %v16436_v3  ;;  %v16493_v47 = vld [vmem:[%s22919_s14 + $0x8ac] ss:$16 sps:$4 sm:$0xff]   ;;  %v16488_v3 = vld [vmem:[%s22919_s14 + $0x8a0] ss:$16 sps:$4 sm:$0xff]  }
 0x8db   : > { %12107 = vmatprep.subr.bf16.mxu0 %v16439_v34  ;;  %v16491_v34 = vld [vmem:[%s22919_s14 + $0x8a8] ss:$16 sps:$4 sm:$0xff]  }
 0x8dd   : > { %11420 = vmatpush1.bf16.msra.mxu1 %v16434_v46  ;;  %v16496_v46 = vld [vmem:[%s22919_s14 + $0x8c4] ss:$16 sps:$4 sm:$0xff]  }
 0x8de   : > { %12108 = vmatpush1.bf16.msra.mxu0 %v16437_v9  ;;  %11421 = vmatprep.subr.bf16.mxu1 %v16442_v13  ;;  %v16499_v9 = vld [vmem:[%s22919_s14 + $0x8cc] ss:$16 sps:$4 sm:$0xff]   ;;  %v16494_v13 = vld [vmem:[%s22919_s14 + $0x8c0] ss:$16 sps:$4 sm:$0xff]  }
 0x8df   : > { %12109 = vmatprep.subr.bf16.mxu0 %v16445_v44  ;;  %v16497_v44 = vld [vmem:[%s22919_s14 + $0x8c8] ss:$16 sps:$4 sm:$0xff]  }
 0x8e1   : > { %11422 = vmatpush1.bf16.msra.mxu1 %v16440_v45  ;;  %v16502_v45 = vld [vmem:[%s22919_s14 + $0x8e4] ss:$16 sps:$4 sm:$0xff]  }
 0x8e2   : > { %12110 = vmatpush1.bf16.msra.mxu0 %v16443_v50  ;;  %11423 = vmatprep.subr.bf16.mxu1 %v16448_v5  ;;  %v16505_v50 = vld [vmem:[%s22919_s14 + $0x8ec] ss:$16 sps:$4 sm:$0xff]   ;;  %v16500_v5 = vld [vmem:[%s22919_s14 + $0x8e0] ss:$16 sps:$4 sm:$0xff]  }
 0x8e3   : > { %12111 = vmatprep.subr.bf16.mxu0 %v16451_v26  ;;  %v16503_v26 = vld [vmem:[%s22919_s14 + $0x8e8] ss:$16 sps:$4 sm:$0xff]  }
 0x8e5   : > { %11424 = vmatpush1.bf16.msra.mxu1 %v16446_v54  ;;  %v16508_v54 = vld [vmem:[%s22919_s14 + $0x904] ss:$16 sps:$4 sm:$0xff]  }
 0x8e6   : > { %12112 = vmatpush1.bf16.msra.mxu0 %v16449_v32  ;;  %11425 = vmatprep.subr.bf16.mxu1 %v16454_v28  ;;  %v16511_v32 = vld [vmem:[%s22919_s14 + $0x90c] ss:$16 sps:$4 sm:$0xff]   ;;  %v16506_v28 = vld [vmem:[%s22919_s14 + $0x900] ss:$16 sps:$4 sm:$0xff]  }
 0x8e7   : > { %12113 = vmatprep.subr.bf16.mxu0 %v16457_v18  ;;  %v16509_v18 = vld [vmem:[%s22919_s14 + $0x908] ss:$16 sps:$4 sm:$0xff]  }
 0x8e9   : > { %11426 = vmatpush1.bf16.msra.mxu1 %v16452_v37  ;;  %v16514_v37 = vld [vmem:[%s22919_s14 + $0x924] ss:$16 sps:$4 sm:$0xff]  }
 0x8ea   : > { %12114 = vmatpush1.bf16.msra.mxu0 %v16455_v11  ;;  %11438 = vmatprep.subr.bf16.mxu1 %v16460_v21  ;;  %v16517_v11 = vld [vmem:[%s22919_s14 + $0x92c] ss:$16 sps:$4 sm:$0xff]   ;;  %v16512_v21 = vld [vmem:[%s22919_s14 + $0x920] ss:$16 sps:$4 sm:$0xff]  }
 0x8eb   : > { %12126 = vmatprep.subr.bf16.mxu0 %v16463_v42  ;;  %v16515_v42 = vld [vmem:[%s22919_s14 + $0x928] ss:$16 sps:$4 sm:$0xff]  }
 0x8ec   : > { %11428 = vmatmul.mubr.bf16.vlgmr.msra.gmra.mrb[184].mxu1 %v19711_v12 }
 0x8ed   : > { %12116 = vmatmul.mubr.bf16.vlgmr.msra.gmra.mrb[28].mxu0 %v19711_v12  ;;  %11439 = vmatpush1.bf16.msra.mxu1 %v16458_v15  ;;  %v16475_v12 = vld [vmem:[%s22919_s14 + $0x84c] ss:$16 sps:$4 sm:$0xff]   ;;  %v16520_v15 = vld [vmem:[%s22919_s14 + $0x944] ss:$16 sps:$4 sm:$0xff]  }
 0x8ee   : > { %11470 = vmatprep.mubr.bf16.mxu1 %v19747_v30  ;;  %12127 = vmatpush1.bf16.msra.mxu0 %v16461_v31  ;;  %v16523_v31 = vld [vmem:[%s22919_s14 + $0x94c] ss:$16 sps:$4 sm:$0xff]  }
 0x8ef   : > { %12158 = vmatprep.mubr.bf16.mxu0 %v19747_v30  ;;  %11440 = vmatprep.subr.bf16.mxu1 %v16466_v40  ;;  %v16478_v30 = vld [vmem:[%s22919_s14 + $0x864] ss:$16 sps:$4 sm:$0xff]   ;;  %v16518_v40 = vld [vmem:[%s22919_s14 + $0x940] ss:$16 sps:$4 sm:$0xff]  }
 0x8f0   : > { %12128 = vmatprep.subr.bf16.mxu0 %v16469_v52  ;;  %v16521_v52 = vld [vmem:[%s22919_s14 + $0x948] ss:$16 sps:$4 sm:$0xff]  }
 0x8f1   : > { %11441 = vmatpush1.bf16.msra.mxu1 %v16464_v6  ;;  %v16526_v6 = vld [vmem:[%s22919_s14 + $0x964] ss:$16 sps:$4 sm:$0xff]  }
 0x8f2   : > { %12129 = vmatpush1.bf16.msra.mxu0 %v16467_v22  ;;  %11442 = vmatprep.subr.bf16.mxu1 %v16472_v16  ;;  %v16529_v22 = vld [vmem:[%s22919_s14 + $0x96c] ss:$16 sps:$4 sm:$0xff]   ;;  %v16524_v16 = vld [vmem:[%s22919_s14 + $0x960] ss:$16 sps:$4 sm:$0xff]  }
 0x8f3   : > { %12130 = vmatprep.subr.bf16.mxu0 %v16475_v12  ;;  %v16527_v12 = vld [vmem:[%s22919_s14 + $0x968] ss:$16 sps:$4 sm:$0xff]  }
 0x8f5   : > { %11443 = vmatpush1.bf16.msra.mxu1 %v16470_v4  ;;  %v16532_v4 = vld [vmem:[%s22919_s14 + $0x984] ss:$16 sps:$4 sm:$0xff]  }
 0x8f6   : > { %12131 = vmatpush1.bf16.msra.mxu0 %v16473_v7  ;;  %11444 = vmatprep.subr.bf16.mxu1 %v16478_v30  ;;  %v16535_v7 = vld [vmem:[%s22919_s14 + $0x98c] ss:$16 sps:$4 sm:$0xff]   ;;  %v16530_v30 = vld [vmem:[%s22919_s14 + $0x980] ss:$16 sps:$4 sm:$0xff]  }
 0x8f7   : > { %12132 = vmatprep.subr.bf16.mxu0 %v16481_v56  ;;  %v16533_v56 = vld [vmem:[%s22919_s14 + $0x988] ss:$16 sps:$4 sm:$0xff]  }
 0x8f9   : > { %11445 = vmatpush1.bf16.msra.mxu1 %v16476_v19  ;;  %v16538_v19 = vld [vmem:[%s22919_s14 + $0x9a4] ss:$16 sps:$4 sm:$0xff]  }
 0x8fa   : > { %12133 = vmatpush1.bf16.msra.mxu0 %v16479_v23  ;;  %11446 = vmatprep.subr.bf16.mxu1 %v16484_v2  ;;  %v16541_v23 = vld [vmem:[%s22919_s14 + $0x9ac] ss:$16 sps:$4 sm:$0xff]   ;;  %v16536_v2 = vld [vmem:[%s22919_s14 + $0x9a0] ss:$16 sps:$4 sm:$0xff]  }
 0x8fb   : > { %12134 = vmatprep.subr.bf16.mxu0 %v16487_v10  ;;  %v16539_v10 = vld [vmem:[%s22919_s14 + $0x9a8] ss:$16 sps:$4 sm:$0xff]  }
 0x8fd   : > { %11447 = vmatpush1.bf16.msra.mxu1 %v16482_v48  ;;  %v16544_v48 = vld [vmem:[%s22919_s14 + $0x9c4] ss:$16 sps:$4 sm:$0xff]  }
 0x8fe   : > { %12135 = vmatpush1.bf16.msra.mxu0 %v16485_v43  ;;  %11448 = vmatprep.subr.bf16.mxu1 %v16490_v51  ;;  %v16547_v43 = vld [vmem:[%s22919_s14 + $0x9cc] ss:$16 sps:$4 sm:$0xff]   ;;  %v16542_v51 = vld [vmem:[%s22919_s14 + $0x9c0] ss:$16 sps:$4 sm:$0xff]  }
 0x8ff   : > { %12136 = vmatprep.subr.bf16.mxu0 %v16493_v47  ;;  %v16545_v47 = vld [vmem:[%s22919_s14 + $0x9c8] ss:$16 sps:$4 sm:$0xff]  }
 0x901   : > { %11449 = vmatpush1.bf16.msra.mxu1 %v16488_v3  ;;  %v16550_v3 = vld [vmem:[%s22919_s14 + $0x9e4] ss:$16 sps:$4 sm:$0xff]  }
 0x902   : > { %12137 = vmatpush1.bf16.msra.mxu0 %v16491_v34  ;;  %11450 = vmatprep.subr.bf16.mxu1 %v16496_v46  ;;  %v16553_v34 = vld [vmem:[%s22919_s14 + $0x9ec] ss:$16 sps:$4 sm:$0xff]   ;;  %v16548_v46 = vld [vmem:[%s22919_s14 + $0x9e0] ss:$16 sps:$4 sm:$0xff]  }
 0x903   : > { %12138 = vmatprep.subr.bf16.mxu0 %v16499_v9  ;;  %v16551_v9 = vld [vmem:[%s22919_s14 + $0x9e8] ss:$16 sps:$4 sm:$0xff]  }
 0x905   : > { %11451 = vmatpush1.bf16.msra.mxu1 %v16494_v13  ;;  %v16556_v13 = vld [vmem:[%s22919_s14 + $0xa04] ss:$16 sps:$4 sm:$0xff]  }
 0x906   : > { %12139 = vmatpush1.bf16.msra.mxu0 %v16497_v44  ;;  %11452 = vmatprep.subr.bf16.mxu1 %v16502_v45  ;;  %v16559_v44 = vld [vmem:[%s22919_s14 + $0xa0c] ss:$16 sps:$4 sm:$0xff]   ;;  %v16554_v45 = vld [vmem:[%s22919_s14 + $0xa00] ss:$16 sps:$4 sm:$0xff]  }
 0x907   : > { %12140 = vmatprep.subr.bf16.mxu0 %v16505_v50  ;;  %v16557_v50 = vld [vmem:[%s22919_s14 + $0xa08] ss:$16 sps:$4 sm:$0xff]  }
 0x909   : > { %11453 = vmatpush1.bf16.msra.mxu1 %v16500_v5  ;;  %v16562_v5 = vld [vmem:[%s22919_s14 + $0xa24] ss:$16 sps:$4 sm:$0xff]  }
 0x90a   : > { %12141 = vmatpush1.bf16.msra.mxu0 %v16503_v26  ;;  %11454 = vmatprep.subr.bf16.mxu1 %v16508_v54  ;;  %v16565_v26 = vld [vmem:[%s22919_s14 + $0xa2c] ss:$16 sps:$4 sm:$0xff]   ;;  %v16560_v54 = vld [vmem:[%s22919_s14 + $0xa20] ss:$16 sps:$4 sm:$0xff]  }
 0x90b   : > { %12142 = vmatprep.subr.bf16.mxu0 %v16511_v32  ;;  %v16563_v32 = vld [vmem:[%s22919_s14 + $0xa28] ss:$16 sps:$4 sm:$0xff]  }
 0x90d   : > { %11455 = vmatpush1.bf16.msra.mxu1 %v16506_v28  ;;  %v16568_v28 = vld [vmem:[%s22919_s14 + $0xa44] ss:$16 sps:$4 sm:$0xff]  }
 0x90e   : > { %12143 = vmatpush1.bf16.msra.mxu0 %v16509_v18  ;;  %11456 = vmatprep.subr.bf16.mxu1 %v16514_v37  ;;  %v16566_v18 = vld [vmem:[%s22919_s14 + $0xa40] ss:$16 sps:$4 sm:$0xff]   ;;  %v16569_v37 = vld [vmem:[%s22919_s14 + $0xa48] ss:$16 sps:$4 sm:$0xff]  }
 0x90f   : > { %12144 = vmatprep.subr.bf16.mxu0 %v16517_v11  ;;  %v16577_v11 = vld [vmem:[%s22919_s14 + $0xa6c] ss:$16 sps:$4 sm:$0xff]  }
 0x911   : > { %11457 = vmatpush1.bf16.msra.mxu1 %v16512_v21  ;;  %v16572_v21 = vld [vmem:[%s22919_s14 + $0xa60] ss:$16 sps:$4 sm:$0xff]  }
 0x912   : > { %12145 = vmatpush1.bf16.msra.mxu0 %v16515_v42  ;;  %11458 = vmatprep.subr.bf16.mxu1 %v16520_v15  ;;  %v16575_v42 = vld [vmem:[%s22919_s14 + $0xa68] ss:$16 sps:$4 sm:$0xff]   ;;  %v16580_v15 = vld [vmem:[%s22919_s14 + $0xa84] ss:$16 sps:$4 sm:$0xff]  }
 0x913   : > { %12146 = vmatprep.subr.bf16.mxu0 %v16523_v31  ;;  %v16583_v31 = vld [vmem:[%s22919_s14 + $0xa8c] ss:$16 sps:$4 sm:$0xff]  }
 0x915   : > { %11459 = vmatpush1.bf16.msra.mxu1 %v16518_v40  ;;  %v16578_v40 = vld [vmem:[%s22919_s14 + $0xa80] ss:$16 sps:$4 sm:$0xff]  }
 0x916   : > { %12147 = vmatpush1.bf16.msra.mxu0 %v16521_v52  ;;  %11460 = vmatprep.subr.bf16.mxu1 %v16526_v6  ;;  %v16581_v52 = vld [vmem:[%s22919_s14 + $0xa88] ss:$16 sps:$4 sm:$0xff]   ;;  %v16586_v6 = vld [vmem:[%s22919_s14 + $0xaa4] ss:$16 sps:$4 sm:$0xff]  }
 0x917   : > { %12148 = vmatprep.subr.bf16.mxu0 %v16529_v22  ;;  %v16589_v22 = vld [vmem:[%s22919_s14 + $0xaac] ss:$16 sps:$4 sm:$0xff]  }
 0x919   : > { %11461 = vmatpush1.bf16.msra.mxu1 %v16524_v16  ;;  %v16584_v16 = vld [vmem:[%s22919_s14 + $0xaa0] ss:$16 sps:$4 sm:$0xff]  }
 0x91a   : > { %12149 = vmatpush1.bf16.msra.mxu0 %v16527_v12  ;;  %11462 = vmatprep.subr.bf16.mxu1 %v16532_v4  ;;  %v16587_v12 = vld [vmem:[%s22919_s14 + $0xaa8] ss:$16 sps:$4 sm:$0xff]   ;;  %v16592_v4 = vld [vmem:[%s22919_s14 + $0xac4] ss:$16 sps:$4 sm:$0xff]  }
 0x91b   : > { %12150 = vmatprep.subr.bf16.mxu0 %v16535_v7  ;;  %v16595_v7 = vld [vmem:[%s22919_s14 + $0xacc] ss:$16 sps:$4 sm:$0xff]  }
 0x91d   : > { %11463 = vmatpush1.bf16.msra.mxu1 %v16530_v30  ;;  %v16590_v30 = vld [vmem:[%s22919_s14 + $0xac0] ss:$16 sps:$4 sm:$0xff]  }
 0x91e   : > { %12151 = vmatpush1.bf16.msra.mxu0 %v16533_v56  ;;  %11464 = vmatprep.subr.bf16.mxu1 %v16538_v19  ;;  %v16593_v56 = vld [vmem:[%s22919_s14 + $0xac8] ss:$16 sps:$4 sm:$0xff]   ;;  %v16598_v19 = vld [vmem:[%s22919_s14 + $0xae4] ss:$16 sps:$4 sm:$0xff]  }
 0x91f   : > { %12152 = vmatprep.subr.bf16.mxu0 %v16541_v23  ;;  %v16601_v23 = vld [vmem:[%s22919_s14 + $0xaec] ss:$16 sps:$4 sm:$0xff]  }
 0x921   : > { %11465 = vmatpush1.bf16.msra.mxu1 %v16536_v2  ;;  %v16596_v2 = vld [vmem:[%s22919_s14 + $0xae0] ss:$16 sps:$4 sm:$0xff]  }
 0x922   : > { %12153 = vmatpush1.bf16.msra.mxu0 %v16539_v10  ;;  %11466 = vmatprep.subr.bf16.mxu1 %v16544_v48  ;;  %v16599_v10 = vld [vmem:[%s22919_s14 + $0xae8] ss:$16 sps:$4 sm:$0xff]   ;;  %v16604_v48 = vld [vmem:[%s22919_s14 + $0xb04] ss:$16 sps:$4 sm:$0xff]  }
 0x923   : > { %12154 = vmatprep.subr.bf16.mxu0 %v16547_v43  ;;  %v16607_v43 = vld [vmem:[%s22919_s14 + $0xb0c] ss:$16 sps:$4 sm:$0xff]  }
 0x925   : > { %11467 = vmatpush1.bf16.msra.mxu1 %v16542_v51  ;;  %v16602_v51 = vld [vmem:[%s22919_s14 + $0xb00] ss:$16 sps:$4 sm:$0xff]  }
 0x926   : > { %12155 = vmatpush1.bf16.msra.mxu0 %v16545_v47  ;;  %11468 = vmatprep.subr.bf16.mxu1 %v16550_v3  ;;  %v16605_v47 = vld [vmem:[%s22919_s14 + $0xb08] ss:$16 sps:$4 sm:$0xff]   ;;  %v16610_v3 = vld [vmem:[%s22919_s14 + $0xb24] ss:$16 sps:$4 sm:$0xff]  }
 0x927   : > { %12156 = vmatprep.subr.bf16.mxu0 %v16553_v34  ;;  %v16613_v34 = vld [vmem:[%s22919_s14 + $0xb2c] ss:$16 sps:$4 sm:$0xff]  }
 0x929   : > { %11469 = vmatpush1.bf16.msra.mxu1 %v16548_v46  ;;  %v16608_v46 = vld [vmem:[%s22919_s14 + $0xb20] ss:$16 sps:$4 sm:$0xff]  }
 0x92a   : > { %12157 = vmatpush1.bf16.msra.mxu0 %v16551_v9  ;;  %11481 = vmatprep.subr.bf16.mxu1 %v16556_v13  ;;  %v16611_v9 = vld [vmem:[%s22919_s14 + $0xb28] ss:$16 sps:$4 sm:$0xff]   ;;  %v16616_v13 = vld [vmem:[%s22919_s14 + $0xb44] ss:$16 sps:$4 sm:$0xff]  }
 0x92b   : > { %12169 = vmatprep.subr.bf16.mxu0 %v16559_v44  ;;  %v16619_v44 = vld [vmem:[%s22919_s14 + $0xb4c] ss:$16 sps:$4 sm:$0xff]  }
 0x92c   : > { %11471 = vmatmul.mubr.bf16.vlgmr.msra.gmra.mrb[184].mxu1 %v19739_v53 }
 0x92d   : > { %12159 = vmatmul.mubr.bf16.vlgmr.msra.gmra.mrb[28].mxu0 %v19739_v53  ;;  %11482 = vmatpush1.bf16.msra.mxu1 %v16554_v45  ;;  %v16571_v53 = vld [vmem:[%s22919_s14 + $0xa4c] ss:$16 sps:$4 sm:$0xff]   ;;  %v16614_v45 = vld [vmem:[%s22919_s14 + $0xb40] ss:$16 sps:$4 sm:$0xff]  }
 0x92e   : > { %11513 = vmatprep.mubr.bf16.mxu1 %v19775_v57  ;;  %12170 = vmatpush1.bf16.msra.mxu0 %v16557_v50  ;;  %v16617_v50 = vld [vmem:[%s22919_s14 + $0xb48] ss:$16 sps:$4 sm:$0xff]  }
 0x92f   : > { %12201 = vmatprep.mubr.bf16.mxu0 %v19775_v57  ;;  %11483 = vmatprep.subr.bf16.mxu1 %v16562_v5  ;;  %v16574_v57 = vld [vmem:[%s22919_s14 + $0xa64] ss:$16 sps:$4 sm:$0xff]  }
 0x930   : > { %12171 = vmatprep.subr.bf16.mxu0 %v16565_v26  ;;  %v16622_v5 = vld [vmem:[%s22919_s14 + $0xb64] ss:$16 sps:$4 sm:$0xff]   ;;  %v16625_v26 = vld [vmem:[%s22919_s14 + $0xb6c] ss:$16 sps:$4 sm:$0xff]  }
 0x931   : > { %11484 = vmatpush1.bf16.msra.mxu1 %v16560_v54  ;;  %v16620_v54 = vld [vmem:[%s22919_s14 + $0xb60] ss:$16 sps:$4 sm:$0xff]  }
 0x932   : > { %12172 = vmatpush1.bf16.msra.mxu0 %v16563_v32  ;;  %11485 = vmatprep.subr.bf16.mxu1 %v16568_v28  ;;  %v16623_v32 = vld [vmem:[%s22919_s14 + $0xb68] ss:$16 sps:$4 sm:$0xff]   ;;  %v16628_v28 = vld [vmem:[%s22919_s14 + $0xb84] ss:$16 sps:$4 sm:$0xff]  }
 0x933   : > { %12173 = vmatprep.subr.bf16.mxu0 %v16571_v53  ;;  %v16631_v53 = vld [vmem:[%s22919_s14 + $0xb8c] ss:$16 sps:$4 sm:$0xff]  }
 0x935   : > { %11486 = vmatpush1.bf16.msra.mxu1 %v16566_v18  ;;  %v16626_v18 = vld [vmem:[%s22919_s14 + $0xb80] ss:$16 sps:$4 sm:$0xff]  }
 0x936   : > { %12174 = vmatpush1.bf16.msra.mxu0 %v16569_v37  ;;  %11487 = vmatprep.subr.bf16.mxu1 %v16574_v57  ;;  %v16629_v37 = vld [vmem:[%s22919_s14 + $0xb88] ss:$16 sps:$4 sm:$0xff]   ;;  %v16634_v57 = vld [vmem:[%s22919_s14 + $0xba4] ss:$16 sps:$4 sm:$0xff]  }
 0x937   : > { %12175 = vmatprep.subr.bf16.mxu0 %v16577_v11  ;;  %v16637_v11 = vld [vmem:[%s22919_s14 + $0xbac] ss:$16 sps:$4 sm:$0xff]  }
 0x939   : > { %11488 = vmatpush1.bf16.msra.mxu1 %v16572_v21  ;;  %v16632_v21 = vld [vmem:[%s22919_s14 + $0xba0] ss:$16 sps:$4 sm:$0xff]  }
 0x93a   : > { %12176 = vmatpush1.bf16.msra.mxu0 %v16575_v42  ;;  %11489 = vmatprep.subr.bf16.mxu1 %v16580_v15  ;;  %v16635_v42 = vld [vmem:[%s22919_s14 + $0xba8] ss:$16 sps:$4 sm:$0xff]   ;;  %v16640_v15 = vld [vmem:[%s22919_s14 + $0xbc4] ss:$16 sps:$4 sm:$0xff]  }
 0x93b   : > { %12177 = vmatprep.subr.bf16.mxu0 %v16583_v31  ;;  %v16643_v31 = vld [vmem:[%s22919_s14 + $0xbcc] ss:$16 sps:$4 sm:$0xff]  }
 0x93d   : > { %11490 = vmatpush1.bf16.msra.mxu1 %v16578_v40  ;;  %v16638_v40 = vld [vmem:[%s22919_s14 + $0xbc0] ss:$16 sps:$4 sm:$0xff]  }
 0x93e   : > { %12178 = vmatpush1.bf16.msra.mxu0 %v16581_v52  ;;  %11491 = vmatprep.subr.bf16.mxu1 %v16586_v6  ;;  %v16641_v52 = vld [vmem:[%s22919_s14 + $0xbc8] ss:$16 sps:$4 sm:$0xff]   ;;  %v16646_v6 = vld [vmem:[%s22919_s14 + $0xbe4] ss:$16 sps:$4 sm:$0xff]  }
 0x93f   : > { %12179 = vmatprep.subr.bf16.mxu0 %v16589_v22  ;;  %v16649_v22 = vld [vmem:[%s22919_s14 + $0xbec] ss:$16 sps:$4 sm:$0xff]  }
 0x941   : > { %11492 = vmatpush1.bf16.msra.mxu1 %v16584_v16  ;;  %v16644_v16 = vld [vmem:[%s22919_s14 + $0xbe0] ss:$16 sps:$4 sm:$0xff]  }
 0x942   : > { %12180 = vmatpush1.bf16.msra.mxu0 %v16587_v12  ;;  %11493 = vmatprep.subr.bf16.mxu1 %v16592_v4  ;;  %v16647_v12 = vld [vmem:[%s22919_s14 + $0xbe8] ss:$16 sps:$4 sm:$0xff]   ;;  %v16652_v4 = vld [vmem:[%s22919_s14 + $0xc04] ss:$16 sps:$4 sm:$0xff]  }
 0x943   : > { %12181 = vmatprep.subr.bf16.mxu0 %v16595_v7  ;;  %v16655_v7 = vld [vmem:[%s22919_s14 + $0xc0c] ss:$16 sps:$4 sm:$0xff]  }
 0x945   : > { %11494 = vmatpush1.bf16.msra.mxu1 %v16590_v30  ;;  %v16650_v30 = vld [vmem:[%s22919_s14 + $0xc00] ss:$16 sps:$4 sm:$0xff]  }
 0x946   : > { %12182 = vmatpush1.bf16.msra.mxu0 %v16593_v56  ;;  %11495 = vmatprep.subr.bf16.mxu1 %v16598_v19  ;;  %v16653_v56 = vld [vmem:[%s22919_s14 + $0xc08] ss:$16 sps:$4 sm:$0xff]   ;;  %v16658_v19 = vld [vmem:[%s22919_s14 + $0xc24] ss:$16 sps:$4 sm:$0xff]  }
 0x947   : > { %12183 = vmatprep.subr.bf16.mxu0 %v16601_v23  ;;  %v16661_v23 = vld [vmem:[%s22919_s14 + $0xc2c] ss:$16 sps:$4 sm:$0xff]  }
 0x949   : > { %11496 = vmatpush1.bf16.msra.mxu1 %v16596_v2  ;;  %v16656_v2 = vld [vmem:[%s22919_s14 + $0xc20] ss:$16 sps:$4 sm:$0xff]  }
 0x94a   : > { %12184 = vmatpush1.bf16.msra.mxu0 %v16599_v10  ;;  %11497 = vmatprep.subr.bf16.mxu1 %v16604_v48  ;;  %v16659_v10 = vld [vmem:[%s22919_s14 + $0xc28] ss:$16 sps:$4 sm:$0xff]   ;;  %v16664_v48 = vld [vmem:[%s22919_s14 + $0xc44] ss:$16 sps:$4 sm:$0xff]  }
 0x94b   : > { %12185 = vmatprep.subr.bf16.mxu0 %v16607_v43  ;;  %v16662_v43 = vld [vmem:[%s22919_s14 + $0xc40] ss:$16 sps:$4 sm:$0xff]  }
 0x94d   : > { %11498 = vmatpush1.bf16.msra.mxu1 %v16602_v51  ;;  %v16665_v51 = vld [vmem:[%s22919_s14 + $0xc48] ss:$16 sps:$4 sm:$0xff]  }
 0x94e   : > { %12186 = vmatpush1.bf16.msra.mxu0 %v16605_v47  ;;  %11499 = vmatprep.subr.bf16.mxu1 %v16610_v3  ;;  %v16673_v47 = vld [vmem:[%s22919_s14 + $0xc6c] ss:$16 sps:$4 sm:$0xff]   ;;  %v16668_v3 = vld [vmem:[%s22919_s14 + $0xc60] ss:$16 sps:$4 sm:$0xff]  }
 0x94f   : > { %12187 = vmatprep.subr.bf16.mxu0 %v16613_v34  ;;  %v16671_v34 = vld [vmem:[%s22919_s14 + $0xc68] ss:$16 sps:$4 sm:$0xff]  }
 0x951   : > { %11500 = vmatpush1.bf16.msra.mxu1 %v16608_v46  ;;  %v16676_v46 = vld [vmem:[%s22919_s14 + $0xc84] ss:$16 sps:$4 sm:$0xff]  }
 0x952   : > { %12188 = vmatpush1.bf16.msra.mxu0 %v16611_v9  ;;  %11501 = vmatprep.subr.bf16.mxu1 %v16616_v13  ;;  %v16679_v9 = vld [vmem:[%s22919_s14 + $0xc8c] ss:$16 sps:$4 sm:$0xff]   ;;  %v16674_v13 = vld [vmem:[%s22919_s14 + $0xc80] ss:$16 sps:$4 sm:$0xff]  }
 0x953   : > { %12189 = vmatprep.subr.bf16.mxu0 %v16619_v44  ;;  %v16677_v44 = vld [vmem:[%s22919_s14 + $0xc88] ss:$16 sps:$4 sm:$0xff]  }
 0x955   : > { %11502 = vmatpush1.bf16.msra.mxu1 %v16614_v45  ;;  %v16682_v45 = vld [vmem:[%s22919_s14 + $0xca4] ss:$16 sps:$4 sm:$0xff]  }
 0x956   : > { %12190 = vmatpush1.bf16.msra.mxu0 %v16617_v50  ;;  %11503 = vmatprep.subr.bf16.mxu1 %v16622_v5  ;;  %v16685_v50 = vld [vmem:[%s22919_s14 + $0xcac] ss:$16 sps:$4 sm:$0xff]   ;;  %v16680_v5 = vld [vmem:[%s22919_s14 + $0xca0] ss:$16 sps:$4 sm:$0xff]  }
 0x957   : > { %12191 = vmatprep.subr.bf16.mxu0 %v16625_v26  ;;  %v16683_v26 = vld [vmem:[%s22919_s14 + $0xca8] ss:$16 sps:$4 sm:$0xff]  }
 0x959   : > { %11504 = vmatpush1.bf16.msra.mxu1 %v16620_v54  ;;  %v16688_v54 = vld [vmem:[%s22919_s14 + $0xcc4] ss:$16 sps:$4 sm:$0xff]  }
 0x95a   : > { %12192 = vmatpush1.bf16.msra.mxu0 %v16623_v32  ;;  %11505 = vmatprep.subr.bf16.mxu1 %v16628_v28  ;;  %v16691_v32 = vld [vmem:[%s22919_s14 + $0xccc] ss:$16 sps:$4 sm:$0xff]   ;;  %v16686_v28 = vld [vmem:[%s22919_s14 + $0xcc0] ss:$16 sps:$4 sm:$0xff]  }
 0x95b   : > { %12193 = vmatprep.subr.bf16.mxu0 %v16631_v53  ;;  %v16689_v53 = vld [vmem:[%s22919_s14 + $0xcc8] ss:$16 sps:$4 sm:$0xff]  }
 0x95d   : > { %11506 = vmatpush1.bf16.msra.mxu1 %v16626_v18  ;;  %v16694_v18 = vld [vmem:[%s22919_s14 + $0xce4] ss:$16 sps:$4 sm:$0xff]  }
 0x95e   : > { %12194 = vmatpush1.bf16.msra.mxu0 %v16629_v37  ;;  %11507 = vmatprep.subr.bf16.mxu1 %v16634_v57  ;;  %v16697_v37 = vld [vmem:[%s22919_s14 + $0xcec] ss:$16 sps:$4 sm:$0xff]   ;;  %v16692_v57 = vld [vmem:[%s22919_s14 + $0xce0] ss:$16 sps:$4 sm:$0xff]  }
 0x95f   : > { %12195 = vmatprep.subr.bf16.mxu0 %v16637_v11  ;;  %v16695_v11 = vld [vmem:[%s22919_s14 + $0xce8] ss:$16 sps:$4 sm:$0xff]  }
 0x961   : > { %11508 = vmatpush1.bf16.msra.mxu1 %v16632_v21  ;;  %v16700_v21 = vld [vmem:[%s22919_s14 + $0xd04] ss:$16 sps:$4 sm:$0xff]  }
 0x962   : > { %12196 = vmatpush1.bf16.msra.mxu0 %v16635_v42  ;;  %11509 = vmatprep.subr.bf16.mxu1 %v16640_v15  ;;  %v16703_v42 = vld [vmem:[%s22919_s14 + $0xd0c] ss:$16 sps:$4 sm:$0xff]   ;;  %v16698_v15 = vld [vmem:[%s22919_s14 + $0xd00] ss:$16 sps:$4 sm:$0xff]  }
 0x963   : > { %12197 = vmatprep.subr.bf16.mxu0 %v16643_v31  ;;  %v16701_v31 = vld [vmem:[%s22919_s14 + $0xd08] ss:$16 sps:$4 sm:$0xff]  }
 0x965   : > { %11510 = vmatpush1.bf16.msra.mxu1 %v16638_v40  ;;  %v16706_v40 = vld [vmem:[%s22919_s14 + $0xd24] ss:$16 sps:$4 sm:$0xff]  }
 0x966   : > { %12198 = vmatpush1.bf16.msra.mxu0 %v16641_v52  ;;  %11511 = vmatprep.subr.bf16.mxu1 %v16646_v6  ;;  %v16709_v52 = vld [vmem:[%s22919_s14 + $0xd2c] ss:$16 sps:$4 sm:$0xff]   ;;  %v16704_v6 = vld [vmem:[%s22919_s14 + $0xd20] ss:$16 sps:$4 sm:$0xff]  }
 0x967   : > { %12199 = vmatprep.subr.bf16.mxu0 %v16649_v22  ;;  %v16707_v22 = vld [vmem:[%s22919_s14 + $0xd28] ss:$16 sps:$4 sm:$0xff]  }
 0x969   : > { %11512 = vmatpush1.bf16.msra.mxu1 %v16644_v16  ;;  %v16712_v16 = vld [vmem:[%s22919_s14 + $0xd44] ss:$16 sps:$4 sm:$0xff]  }
 0x96a   : > { %12200 = vmatpush1.bf16.msra.mxu0 %v16647_v12  ;;  %11524 = vmatprep.subr.bf16.mxu1 %v16652_v4  ;;  %v16715_v12 = vld [vmem:[%s22919_s14 + $0xd4c] ss:$16 sps:$4 sm:$0xff]   ;;  %v16710_v4 = vld [vmem:[%s22919_s14 + $0xd40] ss:$16 sps:$4 sm:$0xff]  }
 0x96b   : > { %12212 = vmatprep.subr.bf16.mxu0 %v16655_v7  ;;  %v16713_v7 = vld [vmem:[%s22919_s14 + $0xd48] ss:$16 sps:$4 sm:$0xff]  }
 0x96c   : > { %11514 = vmatmul.mubr.bf16.vlgmr.msra.gmra.mrb[184].mxu1 %v19767_v63 }
 0x96d   : > { %12202 = vmatmul.mubr.bf16.vlgmr.msra.gmra.mrb[28].mxu0 %v19767_v63  ;;  %11525 = vmatpush1.bf16.msra.mxu1 %v16650_v30  ;;  %v16667_v63 = vld [vmem:[%s22919_s14 + $0xc4c] ss:$16 sps:$4 sm:$0xff]   ;;  %v16718_v30 = vld [vmem:[%s22919_s14 + $0xd64] ss:$16 sps:$4 sm:$0xff]  }
 0x96e   : > { %11556 = vmatprep.mubr.bf16.mxu1 %v19803_v33  ;;  %12213 = vmatpush1.bf16.msra.mxu0 %v16653_v56  ;;  %v16721_v56 = vld [vmem:[%s22919_s14 + $0xd6c] ss:$16 sps:$4 sm:$0xff]  }
 0x96f   : > { %12244 = vmatprep.mubr.bf16.mxu0 %v19803_v33  ;;  %11526 = vmatprep.subr.bf16.mxu1 %v16658_v19  ;;  %v16670_v33 = vld [vmem:[%s22919_s14 + $0xc64] ss:$16 sps:$4 sm:$0xff]   ;;  %v16716_v19 = vld [vmem:[%s22919_s14 + $0xd60] ss:$16 sps:$4 sm:$0xff]  }
 0x970   : > { %12214 = vmatprep.subr.bf16.mxu0 %v16661_v23  ;;  %v16719_v23 = vld [vmem:[%s22919_s14 + $0xd68] ss:$16 sps:$4 sm:$0xff]  }
 0x971   : > { %11527 = vmatpush1.bf16.msra.mxu1 %v16656_v2  ;;  %v16724_v2 = vld [vmem:[%s22919_s14 + $0xd84] ss:$16 sps:$4 sm:$0xff]  }
 0x972   : > { %12215 = vmatpush1.bf16.msra.mxu0 %v16659_v10  ;;  %11528 = vmatprep.subr.bf16.mxu1 %v16664_v48  ;;  %v16727_v10 = vld [vmem:[%s22919_s14 + $0xd8c] ss:$16 sps:$4 sm:$0xff]   ;;  %v16722_v48 = vld [vmem:[%s22919_s14 + $0xd80] ss:$16 sps:$4 sm:$0xff]  }
 0x973   : > { %12216 = vmatprep.subr.bf16.mxu0 %v16667_v63  ;;  %v16725_v63 = vld [vmem:[%s22919_s14 + $0xd88] ss:$16 sps:$4 sm:$0xff]  }
 0x975   : > { %11529 = vmatpush1.bf16.msra.mxu1 %v16662_v43  ;;  %v16730_v43 = vld [vmem:[%s22919_s14 + $0xda4] ss:$16 sps:$4 sm:$0xff]  }
 0x976   : > { %12217 = vmatpush1.bf16.msra.mxu0 %v16665_v51  ;;  %11530 = vmatprep.subr.bf16.mxu1 %v16670_v33  ;;  %v16733_v51 = vld [vmem:[%s22919_s14 + $0xdac] ss:$16 sps:$4 sm:$0xff]   ;;  %v16728_v33 = vld [vmem:[%s22919_s14 + $0xda0] ss:$16 sps:$4 sm:$0xff]  }
 0x977   : > { %12218 = vmatprep.subr.bf16.mxu0 %v16673_v47  ;;  %v16731_v47 = vld [vmem:[%s22919_s14 + $0xda8] ss:$16 sps:$4 sm:$0xff]  }
 0x979   : > { %11531 = vmatpush1.bf16.msra.mxu1 %v16668_v3  ;;  %v16736_v3 = vld [vmem:[%s22919_s14 + $0xdc4] ss:$16 sps:$4 sm:$0xff]  }
 0x97a   : > { %12219 = vmatpush1.bf16.msra.mxu0 %v16671_v34  ;;  %11532 = vmatprep.subr.bf16.mxu1 %v16676_v46  ;;  %v16739_v34 = vld [vmem:[%s22919_s14 + $0xdcc] ss:$16 sps:$4 sm:$0xff]   ;;  %v16734_v46 = vld [vmem:[%s22919_s14 + $0xdc0] ss:$16 sps:$4 sm:$0xff]  }
 0x97b   : > { %12220 = vmatprep.subr.bf16.mxu0 %v16679_v9  ;;  %v16737_v9 = vld [vmem:[%s22919_s14 + $0xdc8] ss:$16 sps:$4 sm:$0xff]  }
 0x97d   : > { %11533 = vmatpush1.bf16.msra.mxu1 %v16674_v13  ;;  %v16742_v13 = vld [vmem:[%s22919_s14 + $0xde4] ss:$16 sps:$4 sm:$0xff]  }
 0x97e   : > { %12221 = vmatpush1.bf16.msra.mxu0 %v16677_v44  ;;  %11534 = vmatprep.subr.bf16.mxu1 %v16682_v45  ;;  %v16745_v44 = vld [vmem:[%s22919_s14 + $0xdec] ss:$16 sps:$4 sm:$0xff]   ;;  %v16740_v45 = vld [vmem:[%s22919_s14 + $0xde0] ss:$16 sps:$4 sm:$0xff]  }
 0x97f   : > { %12222 = vmatprep.subr.bf16.mxu0 %v16685_v50  ;;  %v16743_v50 = vld [vmem:[%s22919_s14 + $0xde8] ss:$16 sps:$4 sm:$0xff]  }
 0x981   : > { %11535 = vmatpush1.bf16.msra.mxu1 %v16680_v5  ;;  %v16748_v5 = vld [vmem:[%s22919_s14 + $0xe04] ss:$16 sps:$4 sm:$0xff]  }
 0x982   : > { %12223 = vmatpush1.bf16.msra.mxu0 %v16683_v26  ;;  %11536 = vmatprep.subr.bf16.mxu1 %v16688_v54  ;;  %v16751_v26 = vld [vmem:[%s22919_s14 + $0xe0c] ss:$16 sps:$4 sm:$0xff]   ;;  %v16746_v54 = vld [vmem:[%s22919_s14 + $0xe00] ss:$16 sps:$4 sm:$0xff]  }
 0x983   : > { %12224 = vmatprep.subr.bf16.mxu0 %v16691_v32  ;;  %v16749_v32 = vld [vmem:[%s22919_s14 + $0xe08] ss:$16 sps:$4 sm:$0xff]  }
 0x985   : > { %11537 = vmatpush1.bf16.msra.mxu1 %v16686_v28  ;;  %v16754_v28 = vld [vmem:[%s22919_s14 + $0xe24] ss:$16 sps:$4 sm:$0xff]  }
 0x986   : > { %12225 = vmatpush1.bf16.msra.mxu0 %v16689_v53  ;;  %11538 = vmatprep.subr.bf16.mxu1 %v16694_v18  ;;  %v16757_v53 = vld [vmem:[%s22919_s14 + $0xe2c] ss:$16 sps:$4 sm:$0xff]   ;;  %v16752_v18 = vld [vmem:[%s22919_s14 + $0xe20] ss:$16 sps:$4 sm:$0xff]  }
 0x987   : > { %12226 = vmatprep.subr.bf16.mxu0 %v16697_v37  ;;  %v16755_v37 = vld [vmem:[%s22919_s14 + $0xe28] ss:$16 sps:$4 sm:$0xff]  }
 0x989   : > { %11539 = vmatpush1.bf16.msra.mxu1 %v16692_v57  ;;  %v16760_v57 = vld [vmem:[%s22919_s14 + $0xe44] ss:$16 sps:$4 sm:$0xff]  }
 0x98a   : > { %12227 = vmatpush1.bf16.msra.mxu0 %v16695_v11  ;;  %11540 = vmatprep.subr.bf16.mxu1 %v16700_v21  ;;  %v16758_v11 = vld [vmem:[%s22919_s14 + $0xe40] ss:$16 sps:$4 sm:$0xff]   ;;  %v16761_v21 = vld [vmem:[%s22919_s14 + $0xe48] ss:$16 sps:$4 sm:$0xff]  }
 0x98b   : > { %12228 = vmatprep.subr.bf16.mxu0 %v16703_v42  ;;  %v16769_v42 = vld [vmem:[%s22919_s14 + $0xe6c] ss:$16 sps:$4 sm:$0xff]  }
 0x98d   : > { %11541 = vmatpush1.bf16.msra.mxu1 %v16698_v15  ;;  %v16764_v15 = vld [vmem:[%s22919_s14 + $0xe60] ss:$16 sps:$4 sm:$0xff]  }
 0x98e   : > { %12229 = vmatpush1.bf16.msra.mxu0 %v16701_v31  ;;  %11542 = vmatprep.subr.bf16.mxu1 %v16706_v40  ;;  %v16767_v31 = vld [vmem:[%s22919_s14 + $0xe68] ss:$16 sps:$4 sm:$0xff]   ;;  %v16772_v40 = vld [vmem:[%s22919_s14 + $0xe84] ss:$16 sps:$4 sm:$0xff]  }
 0x98f   : > { %12230 = vmatprep.subr.bf16.mxu0 %v16709_v52  ;;  %v16775_v52 = vld [vmem:[%s22919_s14 + $0xe8c] ss:$16 sps:$4 sm:$0xff]  }
 0x991   : > { %11543 = vmatpush1.bf16.msra.mxu1 %v16704_v6  ;;  %v16770_v6 = vld [vmem:[%s22919_s14 + $0xe80] ss:$16 sps:$4 sm:$0xff]  }
 0x992   : > { %12231 = vmatpush1.bf16.msra.mxu0 %v16707_v22  ;;  %11544 = vmatprep.subr.bf16.mxu1 %v16712_v16  ;;  %v16773_v22 = vld [vmem:[%s22919_s14 + $0xe88] ss:$16 sps:$4 sm:$0xff]   ;;  %v16778_v16 = vld [vmem:[%s22919_s14 + $0xea4] ss:$16 sps:$4 sm:$0xff]  }
 0x993   : > { %12232 = vmatprep.subr.bf16.mxu0 %v16715_v12  ;;  %v16781_v12 = vld [vmem:[%s22919_s14 + $0xeac] ss:$16 sps:$4 sm:$0xff]  }
 0x995   : > { %11545 = vmatpush1.bf16.msra.mxu1 %v16710_v4  ;;  %v16776_v4 = vld [vmem:[%s22919_s14 + $0xea0] ss:$16 sps:$4 sm:$0xff]  }
 0x996   : > { %12233 = vmatpush1.bf16.msra.mxu0 %v16713_v7  ;;  %11546 = vmatprep.subr.bf16.mxu1 %v16718_v30  ;;  %v16779_v7 = vld [vmem:[%s22919_s14 + $0xea8] ss:$16 sps:$4 sm:$0xff]   ;;  %v16784_v30 = vld [vmem:[%s22919_s14 + $0xec4] ss:$16 sps:$4 sm:$0xff]  }
 0x997   : > { %12234 = vmatprep.subr.bf16.mxu0 %v16721_v56  ;;  %v16787_v56 = vld [vmem:[%s22919_s14 + $0xecc] ss:$16 sps:$4 sm:$0xff]  }
 0x999   : > { %11547 = vmatpush1.bf16.msra.mxu1 %v16716_v19  ;;  %v16782_v19 = vld [vmem:[%s22919_s14 + $0xec0] ss:$16 sps:$4 sm:$0xff]  }
 0x99a   : > { %12235 = vmatpush1.bf16.msra.mxu0 %v16719_v23  ;;  %11548 = vmatprep.subr.bf16.mxu1 %v16724_v2  ;;  %v16785_v23 = vld [vmem:[%s22919_s14 + $0xec8] ss:$16 sps:$4 sm:$0xff]   ;;  %v16790_v2 = vld [vmem:[%s22919_s14 + $0xee4] ss:$16 sps:$4 sm:$0xff]  }
 0x99b   : > { %12236 = vmatprep.subr.bf16.mxu0 %v16727_v10  ;;  %v16793_v10 = vld [vmem:[%s22919_s14 + $0xeec] ss:$16 sps:$4 sm:$0xff]  }
 0x99d   : > { %11549 = vmatpush1.bf16.msra.mxu1 %v16722_v48  ;;  %v16788_v48 = vld [vmem:[%s22919_s14 + $0xee0] ss:$16 sps:$4 sm:$0xff]  }
 0x99e   : > { %12237 = vmatpush1.bf16.msra.mxu0 %v16725_v63  ;;  %11550 = vmatprep.subr.bf16.mxu1 %v16730_v43  ;;  %v16791_v63 = vld [vmem:[%s22919_s14 + $0xee8] ss:$16 sps:$4 sm:$0xff]   ;;  %v16796_v43 = vld [vmem:[%s22919_s14 + $0xf04] ss:$16 sps:$4 sm:$0xff]  }
 0x99f   : > { %12238 = vmatprep.subr.bf16.mxu0 %v16733_v51  ;;  %v16799_v51 = vld [vmem:[%s22919_s14 + $0xf0c] ss:$16 sps:$4 sm:$0xff]  }
 0x9a1   : > { %11551 = vmatpush1.bf16.msra.mxu1 %v16728_v33  ;;  %v16794_v33 = vld [vmem:[%s22919_s14 + $0xf00] ss:$16 sps:$4 sm:$0xff]  }
 0x9a2   : > { %12239 = vmatpush1.bf16.msra.mxu0 %v16731_v47  ;;  %11552 = vmatprep.subr.bf16.mxu1 %v16736_v3  ;;  %v16797_v47 = vld [vmem:[%s22919_s14 + $0xf08] ss:$16 sps:$4 sm:$0xff]   ;;  %v16802_v3 = vld [vmem:[%s22919_s14 + $0xf24] ss:$16 sps:$4 sm:$0xff]  }
 0x9a3   : > { %12240 = vmatprep.subr.bf16.mxu0 %v16739_v34  ;;  %v16805_v34 = vld [vmem:[%s22919_s14 + $0xf2c] ss:$16 sps:$4 sm:$0xff]  }
 0x9a5   : > { %11553 = vmatpush1.bf16.msra.mxu1 %v16734_v46  ;;  %v16800_v46 = vld [vmem:[%s22919_s14 + $0xf20] ss:$16 sps:$4 sm:$0xff]  }
 0x9a6   : > { %12241 = vmatpush1.bf16.msra.mxu0 %v16737_v9  ;;  %11554 = vmatprep.subr.bf16.mxu1 %v16742_v13  ;;  %v16803_v9 = vld [vmem:[%s22919_s14 + $0xf28] ss:$16 sps:$4 sm:$0xff]   ;;  %v16808_v13 = vld [vmem:[%s22919_s14 + $0xf44] ss:$16 sps:$4 sm:$0xff]  }
 0x9a7   : > { %12242 = vmatprep.subr.bf16.mxu0 %v16745_v44  ;;  %v16811_v44 = vld [vmem:[%s22919_s14 + $0xf4c] ss:$16 sps:$4 sm:$0xff]  }
 0x9a9   : > { %11555 = vmatpush1.bf16.msra.mxu1 %v16740_v45  ;;  %v16806_v45 = vld [vmem:[%s22919_s14 + $0xf40] ss:$16 sps:$4 sm:$0xff]  }
 0x9aa   : > { %12243 = vmatpush1.bf16.msra.mxu0 %v16743_v50  ;;  %11567 = vmatprep.subr.bf16.mxu1 %v16748_v5  ;;  %v16809_v50 = vld [vmem:[%s22919_s14 + $0xf48] ss:$16 sps:$4 sm:$0xff]   ;;  %v16814_v5 = vld [vmem:[%s22919_s14 + $0xf64] ss:$16 sps:$4 sm:$0xff]  }
 0x9ab   : > { %12255 = vmatprep.subr.bf16.mxu0 %v16751_v26  ;;  %v16817_v26 = vld [vmem:[%s22919_s14 + $0xf6c] ss:$16 sps:$4 sm:$0xff]  }
 0x9ac   : > { %11557 = vmatmul.mubr.bf16.vlgmr.msra.gmra.mrb[184].mxu1 %v19795_v55 }
 0x9ad   : > { %12245 = vmatmul.mubr.bf16.vlgmr.msra.gmra.mrb[28].mxu0 %v19795_v55  ;;  %11568 = vmatpush1.bf16.msra.mxu1 %v16746_v54  ;;  %v16763_v55 = vld [vmem:[%s22919_s14 + $0xe4c] ss:$16 sps:$4 sm:$0xff]   ;;  %v16812_v54 = vld [vmem:[%s22919_s14 + $0xf60] ss:$16 sps:$4 sm:$0xff]  }
 0x9ae   : > { %11599 = vmatprep.mubr.bf16.mxu1 %v19831_v62  ;;  %12256 = vmatpush1.bf16.msra.mxu0 %v16749_v32  ;;  %v16815_v32 = vld [vmem:[%s22919_s14 + $0xf68] ss:$16 sps:$4 sm:$0xff]  }
 0x9af   : > { %12287 = vmatprep.mubr.bf16.mxu0 %v19831_v62  ;;  %11569 = vmatprep.subr.bf16.mxu1 %v16754_v28  ;;  %v16766_v62 = vld [vmem:[%s22919_s14 + $0xe64] ss:$16 sps:$4 sm:$0xff]  }
 0x9b0   : > { %12257 = vmatprep.subr.bf16.mxu0 %v16757_v53  ;;  %v16820_v28 = vld [vmem:[%s22919_s14 + $0xf84] ss:$16 sps:$4 sm:$0xff]   ;;  %v16823_v53 = vld [vmem:[%s22919_s14 + $0xf8c] ss:$16 sps:$4 sm:$0xff]  }
 0x9b1   : > { %11570 = vmatpush1.bf16.msra.mxu1 %v16752_v18  ;;  %v16818_v18 = vld [vmem:[%s22919_s14 + $0xf80] ss:$16 sps:$4 sm:$0xff]  }
 0x9b2   : > { %12258 = vmatpush1.bf16.msra.mxu0 %v16755_v37  ;;  %11571 = vmatprep.subr.bf16.mxu1 %v16760_v57  ;;  %v16821_v37 = vld [vmem:[%s22919_s14 + $0xf88] ss:$16 sps:$4 sm:$0xff]   ;;  %v16826_v57 = vld [vmem:[%s22919_s14 + $0xfa4] ss:$16 sps:$4 sm:$0xff]  }
 0x9b3   : > { %12259 = vmatprep.subr.bf16.mxu0 %v16763_v55  ;;  %v16829_v55 = vld [vmem:[%s22919_s14 + $0xfac] ss:$16 sps:$4 sm:$0xff]  }
 0x9b5   : > { %11572 = vmatpush1.bf16.msra.mxu1 %v16758_v11  ;;  %v16824_v11 = vld [vmem:[%s22919_s14 + $0xfa0] ss:$16 sps:$4 sm:$0xff]  }
 0x9b6   : > { %12260 = vmatpush1.bf16.msra.mxu0 %v16761_v21  ;;  %11573 = vmatprep.subr.bf16.mxu1 %v16766_v62  ;;  %v16827_v21 = vld [vmem:[%s22919_s14 + $0xfa8] ss:$16 sps:$4 sm:$0xff]   ;;  %v16832_v62 = vld [vmem:[%s22919_s14 + $0xfc4] ss:$16 sps:$4 sm:$0xff]  }
 0x9b7   : > { %12261 = vmatprep.subr.bf16.mxu0 %v16769_v42  ;;  %v16835_v42 = vld [vmem:[%s22919_s14 + $0xfcc] ss:$16 sps:$4 sm:$0xff]  }
 0x9b9   : > { %11574 = vmatpush1.bf16.msra.mxu1 %v16764_v15  ;;  %v16830_v15 = vld [vmem:[%s22919_s14 + $0xfc0] ss:$16 sps:$4 sm:$0xff]  }
 0x9ba   : > { %12262 = vmatpush1.bf16.msra.mxu0 %v16767_v31  ;;  %11575 = vmatprep.subr.bf16.mxu1 %v16772_v40  ;;  %v16833_v31 = vld [vmem:[%s22919_s14 + $0xfc8] ss:$16 sps:$4 sm:$0xff]   ;;  %v16838_v40 = vld [vmem:[%s22919_s14 + $0xfe4] ss:$16 sps:$4 sm:$0xff]  }
 0x9bb   : > { %12263 = vmatprep.subr.bf16.mxu0 %v16775_v52  ;;  %v16841_v52 = vld [vmem:[%s22919_s14 + $0xfec] ss:$16 sps:$4 sm:$0xff]  }
 0x9bd   : > { %11576 = vmatpush1.bf16.msra.mxu1 %v16770_v6  ;;  %v16836_v6 = vld [vmem:[%s22919_s14 + $0xfe0] ss:$16 sps:$4 sm:$0xff]  }
 0x9be   : > { %12264 = vmatpush1.bf16.msra.mxu0 %v16773_v22  ;;  %11577 = vmatprep.subr.bf16.mxu1 %v16778_v16  ;;  %v16839_v22 = vld [vmem:[%s22919_s14 + $0xfe8] ss:$16 sps:$4 sm:$0xff]   ;;  %v16844_v16 = vld [vmem:[%s22919_s14 + $0x1004] ss:$16 sps:$4 sm:$0xff]  }
 0x9bf   : > { %12265 = vmatprep.subr.bf16.mxu0 %v16781_v12  ;;  %v16847_v12 = vld [vmem:[%s22919_s14 + $0x100c] ss:$16 sps:$4 sm:$0xff]  }
 0x9c1   : > { %11578 = vmatpush1.bf16.msra.mxu1 %v16776_v4  ;;  %v16842_v4 = vld [vmem:[%s22919_s14 + $0x1000] ss:$16 sps:$4 sm:$0xff]  }
 0x9c2   : > { %12266 = vmatpush1.bf16.msra.mxu0 %v16779_v7  ;;  %11579 = vmatprep.subr.bf16.mxu1 %v16784_v30  ;;  %v16845_v7 = vld [vmem:[%s22919_s14 + $0x1008] ss:$16 sps:$4 sm:$0xff]   ;;  %v16850_v30 = vld [vmem:[%s22919_s14 + $0x1024] ss:$16 sps:$4 sm:$0xff]  }
 0x9c3   : > { %12267 = vmatprep.subr.bf16.mxu0 %v16787_v56  ;;  %v16853_v56 = vld [vmem:[%s22919_s14 + $0x102c] ss:$16 sps:$4 sm:$0xff]  }
 0x9c5   : > { %11580 = vmatpush1.bf16.msra.mxu1 %v16782_v19  ;;  %v16848_v19 = vld [vmem:[%s22919_s14 + $0x1020] ss:$16 sps:$4 sm:$0xff]  }
 0x9c6   : > { %12268 = vmatpush1.bf16.msra.mxu0 %v16785_v23  ;;  %11581 = vmatprep.subr.bf16.mxu1 %v16790_v2  ;;  %v16851_v23 = vld [vmem:[%s22919_s14 + $0x1028] ss:$16 sps:$4 sm:$0xff]   ;;  %v16856_v2 = vld [vmem:[%s22919_s14 + $0x1044] ss:$16 sps:$4 sm:$0xff]  }
 0x9c7   : > { %12269 = vmatprep.subr.bf16.mxu0 %v16793_v10  ;;  %v16854_v10 = vld [vmem:[%s22919_s14 + $0x1040] ss:$16 sps:$4 sm:$0xff]  }
 0x9c9   : > { %11582 = vmatpush1.bf16.msra.mxu1 %v16788_v48  ;;  %v16857_v48 = vld [vmem:[%s22919_s14 + $0x1048] ss:$16 sps:$4 sm:$0xff]  }
 0x9ca   : > { %12270 = vmatpush1.bf16.msra.mxu0 %v16791_v63  ;;  %11583 = vmatprep.subr.bf16.mxu1 %v16796_v43  ;;  %v16865_v63 = vld [vmem:[%s22919_s14 + $0x106c] ss:$16 sps:$4 sm:$0xff]   ;;  %v16860_v43 = vld [vmem:[%s22919_s14 + $0x1060] ss:$16 sps:$4 sm:$0xff]  }
 0x9cb   : > { %12271 = vmatprep.subr.bf16.mxu0 %v16799_v51  ;;  %v16863_v51 = vld [vmem:[%s22919_s14 + $0x1068] ss:$16 sps:$4 sm:$0xff]  }
 0x9cd   : > { %11584 = vmatpush1.bf16.msra.mxu1 %v16794_v33  ;;  %v16868_v33 = vld [vmem:[%s22919_s14 + $0x1084] ss:$16 sps:$4 sm:$0xff]  }
 0x9ce   : > { %12272 = vmatpush1.bf16.msra.mxu0 %v16797_v47  ;;  %11585 = vmatprep.subr.bf16.mxu1 %v16802_v3  ;;  %v16871_v47 = vld [vmem:[%s22919_s14 + $0x108c] ss:$16 sps:$4 sm:$0xff]   ;;  %v16866_v3 = vld [vmem:[%s22919_s14 + $0x1080] ss:$16 sps:$4 sm:$0xff]  }
 0x9cf   : > { %12273 = vmatprep.subr.bf16.mxu0 %v16805_v34  ;;  %v16869_v34 = vld [vmem:[%s22919_s14 + $0x1088] ss:$16 sps:$4 sm:$0xff]  }
 0x9d1   : > { %11586 = vmatpush1.bf16.msra.mxu1 %v16800_v46  ;;  %v16874_v46 = vld [vmem:[%s22919_s14 + $0x10a4] ss:$16 sps:$4 sm:$0xff]  }
 0x9d2   : > { %12274 = vmatpush1.bf16.msra.mxu0 %v16803_v9  ;;  %11587 = vmatprep.subr.bf16.mxu1 %v16808_v13  ;;  %v16877_v9 = vld [vmem:[%s22919_s14 + $0x10ac] ss:$16 sps:$4 sm:$0xff]   ;;  %v16872_v13 = vld [vmem:[%s22919_s14 + $0x10a0] ss:$16 sps:$4 sm:$0xff]  }
 0x9d3   : > { %12275 = vmatprep.subr.bf16.mxu0 %v16811_v44  ;;  %v16875_v44 = vld [vmem:[%s22919_s14 + $0x10a8] ss:$16 sps:$4 sm:$0xff]  }
 0x9d5   : > { %11588 = vmatpush1.bf16.msra.mxu1 %v16806_v45  ;;  %v16880_v45 = vld [vmem:[%s22919_s14 + $0x10c4] ss:$16 sps:$4 sm:$0xff]  }
 0x9d6   : > { %12276 = vmatpush1.bf16.msra.mxu0 %v16809_v50  ;;  %11589 = vmatprep.subr.bf16.mxu1 %v16814_v5  ;;  %v16883_v50 = vld [vmem:[%s22919_s14 + $0x10cc] ss:$16 sps:$4 sm:$0xff]   ;;  %v16878_v5 = vld [vmem:[%s22919_s14 + $0x10c0] ss:$16 sps:$4 sm:$0xff]  }
 0x9d7   : > { %12277 = vmatprep.subr.bf16.mxu0 %v16817_v26  ;;  %v16881_v26 = vld [vmem:[%s22919_s14 + $0x10c8] ss:$16 sps:$4 sm:$0xff]  }
 0x9d9   : > { %11590 = vmatpush1.bf16.msra.mxu1 %v16812_v54  ;;  %v16886_v54 = vld [vmem:[%s22919_s14 + $0x10e4] ss:$16 sps:$4 sm:$0xff]  }
 0x9da   : > { %12278 = vmatpush1.bf16.msra.mxu0 %v16815_v32  ;;  %11591 = vmatprep.subr.bf16.mxu1 %v16820_v28  ;;  %v16889_v32 = vld [vmem:[%s22919_s14 + $0x10ec] ss:$16 sps:$4 sm:$0xff]   ;;  %v16884_v28 = vld [vmem:[%s22919_s14 + $0x10e0] ss:$16 sps:$4 sm:$0xff]  }
 0x9db   : > { %12279 = vmatprep.subr.bf16.mxu0 %v16823_v53  ;;  %v16887_v53 = vld [vmem:[%s22919_s14 + $0x10e8] ss:$16 sps:$4 sm:$0xff]  }
 0x9dd   : > { %11592 = vmatpush1.bf16.msra.mxu1 %v16818_v18  ;;  %v16892_v18 = vld [vmem:[%s22919_s14 + $0x1104] ss:$16 sps:$4 sm:$0xff]  }
 0x9de   : > { %12280 = vmatpush1.bf16.msra.mxu0 %v16821_v37  ;;  %11593 = vmatprep.subr.bf16.mxu1 %v16826_v57  ;;  %v16895_v37 = vld [vmem:[%s22919_s14 + $0x110c] ss:$16 sps:$4 sm:$0xff]   ;;  %v16890_v57 = vld [vmem:[%s22919_s14 + $0x1100] ss:$16 sps:$4 sm:$0xff]  }
 0x9df   : > { %12281 = vmatprep.subr.bf16.mxu0 %v16829_v55  ;;  %v16893_v55 = vld [vmem:[%s22919_s14 + $0x1108] ss:$16 sps:$4 sm:$0xff]  }
 0x9e1   : > { %11594 = vmatpush1.bf16.msra.mxu1 %v16824_v11  ;;  %v16898_v11 = vld [vmem:[%s22919_s14 + $0x1124] ss:$16 sps:$4 sm:$0xff]  }
 0x9e2   : > { %12282 = vmatpush1.bf16.msra.mxu0 %v16827_v21  ;;  %11595 = vmatprep.subr.bf16.mxu1 %v16832_v62  ;;  %v16901_v21 = vld [vmem:[%s22919_s14 + $0x112c] ss:$16 sps:$4 sm:$0xff]   ;;  %v16896_v62 = vld [vmem:[%s22919_s14 + $0x1120] ss:$16 sps:$4 sm:$0xff]  }
 0x9e3   : > { %12283 = vmatprep.subr.bf16.mxu0 %v16835_v42  ;;  %v16899_v42 = vld [vmem:[%s22919_s14 + $0x1128] ss:$16 sps:$4 sm:$0xff]  }
 0x9e5   : > { %11596 = vmatpush1.bf16.msra.mxu1 %v16830_v15  ;;  %v16904_v15 = vld [vmem:[%s22919_s14 + $0x1144] ss:$16 sps:$4 sm:$0xff]  }
 0x9e6   : > { %12284 = vmatpush1.bf16.msra.mxu0 %v16833_v31  ;;  %11597 = vmatprep.subr.bf16.mxu1 %v16838_v40  ;;  %v16907_v31 = vld [vmem:[%s22919_s14 + $0x114c] ss:$16 sps:$4 sm:$0xff]   ;;  %v16902_v40 = vld [vmem:[%s22919_s14 + $0x1140] ss:$16 sps:$4 sm:$0xff]  }
 0x9e7   : > { %12285 = vmatprep.subr.bf16.mxu0 %v16841_v52  ;;  %v16905_v52 = vld [vmem:[%s22919_s14 + $0x1148] ss:$16 sps:$4 sm:$0xff]  }
 0x9e9   : > { %11598 = vmatpush1.bf16.msra.mxu1 %v16836_v6  ;;  %v16910_v6 = vld [vmem:[%s22919_s14 + $0x1164] ss:$16 sps:$4 sm:$0xff]  }
 0x9ea   : > { %12286 = vmatpush1.bf16.msra.mxu0 %v16839_v22  ;;  %11610 = vmatprep.subr.bf16.mxu1 %v16844_v16  ;;  %v16913_v22 = vld [vmem:[%s22919_s14 + $0x116c] ss:$16 sps:$4 sm:$0xff]   ;;  %v16908_v16 = vld [vmem:[%s22919_s14 + $0x1160] ss:$16 sps:$4 sm:$0xff]  }
 0x9eb   : > { %12298 = vmatprep.subr.bf16.mxu0 %v16847_v12  ;;  %v16911_v12 = vld [vmem:[%s22919_s14 + $0x1168] ss:$16 sps:$4 sm:$0xff]  }
 0x9ec   : > { %11600 = vmatmul.mubr.bf16.vlgmr.msra.gmra.mrb[184].mxu1 %v19823_v25 }
 0x9ed   : > { %12288 = vmatmul.mubr.bf16.vlgmr.msra.gmra.mrb[28].mxu0 %v19823_v25  ;;  %11611 = vmatpush1.bf16.msra.mxu1 %v16842_v4  ;;  %v16859_v25 = vld [vmem:[%s22919_s14 + $0x104c] ss:$16 sps:$4 sm:$0xff]   ;;  %v16916_v4 = vld [vmem:[%s22919_s14 + $0x1184] ss:$16 sps:$4 sm:$0xff]  }
 0x9ee   : > { %11642 = vmatprep.mubr.bf16.mxu1 %v19859_v36  ;;  %12299 = vmatpush1.bf16.msra.mxu0 %v16845_v7  ;;  %v16919_v7 = vld [vmem:[%s22919_s14 + $0x118c] ss:$16 sps:$4 sm:$0xff]  }
 0x9ef   : > { %12330 = vmatprep.mubr.bf16.mxu0 %v19859_v36  ;;  %11612 = vmatprep.subr.bf16.mxu1 %v16850_v30  ;;  %v16862_v36 = vld [vmem:[%s22919_s14 + $0x1064] ss:$16 sps:$4 sm:$0xff]   ;;  %v16914_v30 = vld [vmem:[%s22919_s14 + $0x1180] ss:$16 sps:$4 sm:$0xff]  }
 0x9f0   : > { %12300 = vmatprep.subr.bf16.mxu0 %v16853_v56  ;;  %v16917_v56 = vld [vmem:[%s22919_s14 + $0x1188] ss:$16 sps:$4 sm:$0xff]  }
 0x9f1   : > { %11613 = vmatpush1.bf16.msra.mxu1 %v16848_v19  ;;  %v16922_v19 = vld [vmem:[%s22919_s14 + $0x11a4] ss:$16 sps:$4 sm:$0xff]  }
 0x9f2   : > { %12301 = vmatpush1.bf16.msra.mxu0 %v16851_v23  ;;  %11614 = vmatprep.subr.bf16.mxu1 %v16856_v2  ;;  %v16925_v23 = vld [vmem:[%s22919_s14 + $0x11ac] ss:$16 sps:$4 sm:$0xff]   ;;  %v16920_v2 = vld [vmem:[%s22919_s14 + $0x11a0] ss:$16 sps:$4 sm:$0xff]  }
 0x9f3   : > { %12302 = vmatprep.subr.bf16.mxu0 %v16859_v25  ;;  %v16923_v25 = vld [vmem:[%s22919_s14 + $0x11a8] ss:$16 sps:$4 sm:$0xff]  }
 0x9f5   : > { %11615 = vmatpush1.bf16.msra.mxu1 %v16854_v10  ;;  %v16928_v10 = vld [vmem:[%s22919_s14 + $0x11c4] ss:$16 sps:$4 sm:$0xff]  }
 0x9f6   : > { %12303 = vmatpush1.bf16.msra.mxu0 %v16857_v48  ;;  %11616 = vmatprep.subr.bf16.mxu1 %v16862_v36  ;;  %v16931_v48 = vld [vmem:[%s22919_s14 + $0x11cc] ss:$16 sps:$4 sm:$0xff]   ;;  %v16926_v36 = vld [vmem:[%s22919_s14 + $0x11c0] ss:$16 sps:$4 sm:$0xff]  }
 0x9f7   : > { %12304 = vmatprep.subr.bf16.mxu0 %v16865_v63  ;;  %v16929_v63 = vld [vmem:[%s22919_s14 + $0x11c8] ss:$16 sps:$4 sm:$0xff]  }
 0x9f9   : > { %11617 = vmatpush1.bf16.msra.mxu1 %v16860_v43  ;;  %v16934_v43 = vld [vmem:[%s22919_s14 + $0x11e4] ss:$16 sps:$4 sm:$0xff]  }
 0x9fa   : > { %12305 = vmatpush1.bf16.msra.mxu0 %v16863_v51  ;;  %11618 = vmatprep.subr.bf16.mxu1 %v16868_v33  ;;  %v16937_v51 = vld [vmem:[%s22919_s14 + $0x11ec] ss:$16 sps:$4 sm:$0xff]   ;;  %v16932_v33 = vld [vmem:[%s22919_s14 + $0x11e0] ss:$16 sps:$4 sm:$0xff]  }
 0x9fb   : > { %12306 = vmatprep.subr.bf16.mxu0 %v16871_v47  ;;  %v16935_v47 = vld [vmem:[%s22919_s14 + $0x11e8] ss:$16 sps:$4 sm:$0xff]  }
 0x9fd   : > { %11619 = vmatpush1.bf16.msra.mxu1 %v16866_v3  ;;  %v16940_v3 = vld [vmem:[%s22919_s14 + $0x1204] ss:$16 sps:$4 sm:$0xff]  }
 0x9fe   : > { %12307 = vmatpush1.bf16.msra.mxu0 %v16869_v34  ;;  %11620 = vmatprep.subr.bf16.mxu1 %v16874_v46  ;;  %v16943_v34 = vld [vmem:[%s22919_s14 + $0x120c] ss:$16 sps:$4 sm:$0xff]   ;;  %v16938_v46 = vld [vmem:[%s22919_s14 + $0x1200] ss:$16 sps:$4 sm:$0xff]  }
 0x9ff   : > { %12308 = vmatprep.subr.bf16.mxu0 %v16877_v9  ;;  %v16941_v9 = vld [vmem:[%s22919_s14 + $0x1208] ss:$16 sps:$4 sm:$0xff]  }
 0xa01   : > { %11621 = vmatpush1.bf16.msra.mxu1 %v16872_v13  ;;  %v16946_v13 = vld [vmem:[%s22919_s14 + $0x1224] ss:$16 sps:$4 sm:$0xff]  }
 0xa02   : > { %12309 = vmatpush1.bf16.msra.mxu0 %v16875_v44  ;;  %11622 = vmatprep.subr.bf16.mxu1 %v16880_v45  ;;  %v16949_v44 = vld [vmem:[%s22919_s14 + $0x122c] ss:$16 sps:$4 sm:$0xff]   ;;  %v16944_v45 = vld [vmem:[%s22919_s14 + $0x1220] ss:$16 sps:$4 sm:$0xff]  }
 0xa03   : > { %12310 = vmatprep.subr.bf16.mxu0 %v16883_v50  ;;  %v16947_v50 = vld [vmem:[%s22919_s14 + $0x1228] ss:$16 sps:$4 sm:$0xff]  }
 0xa05   : > { %11623 = vmatpush1.bf16.msra.mxu1 %v16878_v5  ;;  %v16952_v5 = vld [vmem:[%s22919_s14 + $0x1244] ss:$16 sps:$4 sm:$0xff]  }
 0xa06   : > { %12311 = vmatpush1.bf16.msra.mxu0 %v16881_v26  ;;  %11624 = vmatprep.subr.bf16.mxu1 %v16886_v54  ;;  %v16950_v26 = vld [vmem:[%s22919_s14 + $0x1240] ss:$16 sps:$4 sm:$0xff]   ;;  %v16953_v54 = vld [vmem:[%s22919_s14 + $0x1248] ss:$16 sps:$4 sm:$0xff]  }
 0xa07   : > { %12312 = vmatprep.subr.bf16.mxu0 %v16889_v32  ;;  %v16961_v32 = vld [vmem:[%s22919_s14 + $0x126c] ss:$16 sps:$4 sm:$0xff]  }
 0xa09   : > { %11625 = vmatpush1.bf16.msra.mxu1 %v16884_v28  ;;  %v16956_v28 = vld [vmem:[%s22919_s14 + $0x1260] ss:$16 sps:$4 sm:$0xff]  }
 0xa0a   : > { %12313 = vmatpush1.bf16.msra.mxu0 %v16887_v53  ;;  %11626 = vmatprep.subr.bf16.mxu1 %v16892_v18  ;;  %v16959_v53 = vld [vmem:[%s22919_s14 + $0x1268] ss:$16 sps:$4 sm:$0xff]   ;;  %v16964_v18 = vld [vmem:[%s22919_s14 + $0x1284] ss:$16 sps:$4 sm:$0xff]  }
 0xa0b   : > { %12314 = vmatprep.subr.bf16.mxu0 %v16895_v37  ;;  %v16967_v37 = vld [vmem:[%s22919_s14 + $0x128c] ss:$16 sps:$4 sm:$0xff]  }
 0xa0d   : > { %11627 = vmatpush1.bf16.msra.mxu1 %v16890_v57  ;;  %v16962_v57 = vld [vmem:[%s22919_s14 + $0x1280] ss:$16 sps:$4 sm:$0xff]  }
 0xa0e   : > { %12315 = vmatpush1.bf16.msra.mxu0 %v16893_v55  ;;  %11628 = vmatprep.subr.bf16.mxu1 %v16898_v11  ;;  %v16965_v55 = vld [vmem:[%s22919_s14 + $0x1288] ss:$16 sps:$4 sm:$0xff]   ;;  %v16970_v11 = vld [vmem:[%s22919_s14 + $0x12a4] ss:$16 sps:$4 sm:$0xff]  }
 0xa0f   : > { %12316 = vmatprep.subr.bf16.mxu0 %v16901_v21  ;;  %v16973_v21 = vld [vmem:[%s22919_s14 + $0x12ac] ss:$16 sps:$4 sm:$0xff]  }
 0xa11   : > { %11629 = vmatpush1.bf16.msra.mxu1 %v16896_v62  ;;  %v16968_v62 = vld [vmem:[%s22919_s14 + $0x12a0] ss:$16 sps:$4 sm:$0xff]  }
 0xa12   : > { %12317 = vmatpush1.bf16.msra.mxu0 %v16899_v42  ;;  %11630 = vmatprep.subr.bf16.mxu1 %v16904_v15  ;;  %v16971_v42 = vld [vmem:[%s22919_s14 + $0x12a8] ss:$16 sps:$4 sm:$0xff]   ;;  %v16976_v15 = vld [vmem:[%s22919_s14 + $0x12c4] ss:$16 sps:$4 sm:$0xff]  }
 0xa13   : > { %12318 = vmatprep.subr.bf16.mxu0 %v16907_v31  ;;  %v16979_v31 = vld [vmem:[%s22919_s14 + $0x12cc] ss:$16 sps:$4 sm:$0xff]  }
 0xa15   : > { %11631 = vmatpush1.bf16.msra.mxu1 %v16902_v40  ;;  %v16974_v40 = vld [vmem:[%s22919_s14 + $0x12c0] ss:$16 sps:$4 sm:$0xff]  }
 0xa16   : > { %12319 = vmatpush1.bf16.msra.mxu0 %v16905_v52  ;;  %11632 = vmatprep.subr.bf16.mxu1 %v16910_v6  ;;  %v16977_v52 = vld [vmem:[%s22919_s14 + $0x12c8] ss:$16 sps:$4 sm:$0xff]   ;;  %v16982_v6 = vld [vmem:[%s22919_s14 + $0x12e4] ss:$16 sps:$4 sm:$0xff]  }
 0xa17   : > { %12320 = vmatprep.subr.bf16.mxu0 %v16913_v22  ;;  %v16985_v22 = vld [vmem:[%s22919_s14 + $0x12ec] ss:$16 sps:$4 sm:$0xff]  }
 0xa19   : > { %11633 = vmatpush1.bf16.msra.mxu1 %v16908_v16  ;;  %v16980_v16 = vld [vmem:[%s22919_s14 + $0x12e0] ss:$16 sps:$4 sm:$0xff]  }
 0xa1a   : > { %12321 = vmatpush1.bf16.msra.mxu0 %v16911_v12  ;;  %11634 = vmatprep.subr.bf16.mxu1 %v16916_v4  ;;  %v16983_v12 = vld [vmem:[%s22919_s14 + $0x12e8] ss:$16 sps:$4 sm:$0xff]   ;;  %v16988_v4 = vld [vmem:[%s22919_s14 + $0x1304] ss:$16 sps:$4 sm:$0xff]  }
 0xa1b   : > { %12322 = vmatprep.subr.bf16.mxu0 %v16919_v7  ;;  %v16991_v7 = vld [vmem:[%s22919_s14 + $0x130c] ss:$16 sps:$4 sm:$0xff]  }
 0xa1d   : > { %11635 = vmatpush1.bf16.msra.mxu1 %v16914_v30  ;;  %v16986_v30 = vld [vmem:[%s22919_s14 + $0x1300] ss:$16 sps:$4 sm:$0xff]  }
 0xa1e   : > { %12323 = vmatpush1.bf16.msra.mxu0 %v16917_v56  ;;  %11636 = vmatprep.subr.bf16.mxu1 %v16922_v19  ;;  %v16989_v56 = vld [vmem:[%s22919_s14 + $0x1308] ss:$16 sps:$4 sm:$0xff]   ;;  %v16994_v19 = vld [vmem:[%s22919_s14 + $0x1324] ss:$16 sps:$4 sm:$0xff]  }
 0xa1f   : > { %12324 = vmatprep.subr.bf16.mxu0 %v16925_v23  ;;  %v16997_v23 = vld [vmem:[%s22919_s14 + $0x132c] ss:$16 sps:$4 sm:$0xff]  }
 0xa21   : > { %11637 = vmatpush1.bf16.msra.mxu1 %v16920_v2  ;;  %v16992_v2 = vld [vmem:[%s22919_s14 + $0x1320] ss:$16 sps:$4 sm:$0xff]  }
 0xa22   : > { %12325 = vmatpush1.bf16.msra.mxu0 %v16923_v25  ;;  %11638 = vmatprep.subr.bf16.mxu1 %v16928_v10  ;;  %v16995_v25 = vld [vmem:[%s22919_s14 + $0x1328] ss:$16 sps:$4 sm:$0xff]   ;;  %v17000_v10 = vld [vmem:[%s22919_s14 + $0x1344] ss:$16 sps:$4 sm:$0xff]  }
 0xa23   : > { %12326 = vmatprep.subr.bf16.mxu0 %v16931_v48  ;;  %v17003_v48 = vld [vmem:[%s22919_s14 + $0x134c] ss:$16 sps:$4 sm:$0xff]  }
 0xa25   : > { %11639 = vmatpush1.bf16.msra.mxu1 %v16926_v36  ;;  %v16998_v36 = vld [vmem:[%s22919_s14 + $0x1340] ss:$16 sps:$4 sm:$0xff]  }
 0xa26   : > { %12327 = vmatpush1.bf16.msra.mxu0 %v16929_v63  ;;  %11640 = vmatprep.subr.bf16.mxu1 %v16934_v43  ;;  %v17001_v63 = vld [vmem:[%s22919_s14 + $0x1348] ss:$16 sps:$4 sm:$0xff]   ;;  %v17006_v43 = vld [vmem:[%s22919_s14 + $0x1364] ss:$16 sps:$4 sm:$0xff]  }
 0xa27   : > { %12328 = vmatprep.subr.bf16.mxu0 %v16937_v51  ;;  %v17009_v51 = vld [vmem:[%s22919_s14 + $0x136c] ss:$16 sps:$4 sm:$0xff]  }
 0xa29   : > { %11641 = vmatpush1.bf16.msra.mxu1 %v16932_v33  ;;  %v17004_v33 = vld [vmem:[%s22919_s14 + $0x1360] ss:$16 sps:$4 sm:$0xff]  }
 0xa2a   : > { %12329 = vmatpush1.bf16.msra.mxu0 %v16935_v47  ;;  %11653 = vmatprep.subr.bf16.mxu1 %v16940_v3  ;;  %v17007_v47 = vld [vmem:[%s22919_s14 + $0x1368] ss:$16 sps:$4 sm:$0xff]   ;;  %v17012_v3 = vld [vmem:[%s22919_s14 + $0x1384] ss:$16 sps:$4 sm:$0xff]  }
 0xa2b   : > { %12341 = vmatprep.subr.bf16.mxu0 %v16943_v34  ;;  %v17015_v34 = vld [vmem:[%s22919_s14 + $0x138c] ss:$16 sps:$4 sm:$0xff]  }
 0xa2c   : > { %11643 = vmatmul.mubr.bf16.vlgmr.msra.gmra.mrb[184].mxu1 %v19851_v29 }
 0xa2d   : > { %12331 = vmatmul.mubr.bf16.vlgmr.msra.gmra.mrb[28].mxu0 %v19851_v29  ;;  %11654 = vmatpush1.bf16.msra.mxu1 %v16938_v46  ;;  %v16955_v29 = vld [vmem:[%s22919_s14 + $0x124c] ss:$16 sps:$4 sm:$0xff]   ;;  %v17010_v46 = vld [vmem:[%s22919_s14 + $0x1380] ss:$16 sps:$4 sm:$0xff]  }
 0xa2e   : > { %11685 = vmatprep.mubr.bf16.mxu1 %v19891_v35  ;;  %12342 = vmatpush1.bf16.msra.mxu0 %v16941_v9  ;;  %v17013_v9 = vld [vmem:[%s22919_s14 + $0x1388] ss:$16 sps:$4 sm:$0xff]  }
 0xa2f   : > { %12373 = vmatprep.mubr.bf16.mxu0 %v19891_v35  ;;  %11655 = vmatprep.subr.bf16.mxu1 %v16946_v13  ;;  %v16958_v35 = vld [vmem:[%s22919_s14 + $0x1264] ss:$16 sps:$4 sm:$0xff]  }
 0xa30   : > { %12343 = vmatprep.subr.bf16.mxu0 %v16949_v44  ;;  %v17018_v13 = vld [vmem:[%s22919_s14 + $0x13a4] ss:$16 sps:$4 sm:$0xff]   ;;  %v17021_v44 = vld [vmem:[%s22919_s14 + $0x13ac] ss:$16 sps:$4 sm:$0xff]  }
 0xa31   : > { %11656 = vmatpush1.bf16.msra.mxu1 %v16944_v45  ;;  %v17016_v45 = vld [vmem:[%s22919_s14 + $0x13a0] ss:$16 sps:$4 sm:$0xff]  }
 0xa32   : > { %12344 = vmatpush1.bf16.msra.mxu0 %v16947_v50  ;;  %11657 = vmatprep.subr.bf16.mxu1 %v16952_v5  ;;  %v17019_v50 = vld [vmem:[%s22919_s14 + $0x13a8] ss:$16 sps:$4 sm:$0xff]   ;;  %v17024_v5 = vld [vmem:[%s22919_s14 + $0x13c4] ss:$16 sps:$4 sm:$0xff]  }
 0xa33   : > { %12345 = vmatprep.subr.bf16.mxu0 %v16955_v29  ;;  %v17027_v29 = vld [vmem:[%s22919_s14 + $0x13cc] ss:$16 sps:$4 sm:$0xff]  }
 0xa35   : > { %11658 = vmatpush1.bf16.msra.mxu1 %v16950_v26  ;;  %v17022_v26 = vld [vmem:[%s22919_s14 + $0x13c0] ss:$16 sps:$4 sm:$0xff]  }
 0xa36   : > { %12346 = vmatpush1.bf16.msra.mxu0 %v16953_v54  ;;  %11659 = vmatprep.subr.bf16.mxu1 %v16958_v35  ;;  %v17025_v54 = vld [vmem:[%s22919_s14 + $0x13c8] ss:$16 sps:$4 sm:$0xff]   ;;  %v17030_v35 = vld [vmem:[%s22919_s14 + $0x13e4] ss:$16 sps:$4 sm:$0xff]  }
 0xa37   : > { %12347 = vmatprep.subr.bf16.mxu0 %v16961_v32  ;;  %v17033_v32 = vld [vmem:[%s22919_s14 + $0x13ec] ss:$16 sps:$4 sm:$0xff]  }
 0xa39   : > { %11660 = vmatpush1.bf16.msra.mxu1 %v16956_v28  ;;  %v17028_v28 = vld [vmem:[%s22919_s14 + $0x13e0] ss:$16 sps:$4 sm:$0xff]  }
 0xa3a   : > { %12348 = vmatpush1.bf16.msra.mxu0 %v16959_v53  ;;  %11661 = vmatprep.subr.bf16.mxu1 %v16964_v18  ;;  %v17031_v53 = vld [vmem:[%s22919_s14 + $0x13e8] ss:$16 sps:$4 sm:$0xff]   ;;  %v17036_v18 = vld [vmem:[%s22919_s14 + $0x1404] ss:$16 sps:$4 sm:$0xff]  }
 0xa3b   : > { %12349 = vmatprep.subr.bf16.mxu0 %v16967_v37  ;;  %v17039_v37 = vld [vmem:[%s22919_s14 + $0x140c] ss:$16 sps:$4 sm:$0xff]  }
 0xa3d   : > { %11662 = vmatpush1.bf16.msra.mxu1 %v16962_v57  ;;  %v17034_v57 = vld [vmem:[%s22919_s14 + $0x1400] ss:$16 sps:$4 sm:$0xff]  }
 0xa3e   : > { %12350 = vmatpush1.bf16.msra.mxu0 %v16965_v55  ;;  %11663 = vmatprep.subr.bf16.mxu1 %v16970_v11  ;;  %v17037_v55 = vld [vmem:[%s22919_s14 + $0x1408] ss:$16 sps:$4 sm:$0xff]   ;;  %v17042_v11 = vld [vmem:[%s22919_s14 + $0x1424] ss:$16 sps:$4 sm:$0xff]  }
 0xa3f   : > { %12351 = vmatprep.subr.bf16.mxu0 %v16973_v21  ;;  %v17045_v21 = vld [vmem:[%s22919_s14 + $0x142c] ss:$16 sps:$4 sm:$0xff]  }
 0xa41   : > { %11664 = vmatpush1.bf16.msra.mxu1 %v16968_v62  ;;  %v17040_v62 = vld [vmem:[%s22919_s14 + $0x1420] ss:$16 sps:$4 sm:$0xff]  }
 0xa42   : > { %12352 = vmatpush1.bf16.msra.mxu0 %v16971_v42  ;;  %11665 = vmatprep.subr.bf16.mxu1 %v16976_v15  ;;  %v17043_v42 = vld [vmem:[%s22919_s14 + $0x1428] ss:$16 sps:$4 sm:$0xff]   ;;  %v17048_v15 = vld [vmem:[%s22919_s14 + $0x1444] ss:$16 sps:$4 sm:$0xff]  }
 0xa43   : > { %12353 = vmatprep.subr.bf16.mxu0 %v16979_v31  ;;  %v17046_v31 = vld [vmem:[%s22919_s14 + $0x1440] ss:$16 sps:$4 sm:$0xff]  }
 0xa45   : > { %11666 = vmatpush1.bf16.msra.mxu1 %v16974_v40  ;;  %v17049_v40 = vld [vmem:[%s22919_s14 + $0x1448] ss:$16 sps:$4 sm:$0xff]  }
 0xa46   : > { %12354 = vmatpush1.bf16.msra.mxu0 %v16977_v52  ;;  %11667 = vmatprep.subr.bf16.mxu1 %v16982_v6  ;;  %v17057_v52 = vld [vmem:[%s22919_s14 + $0x146c] ss:$16 sps:$4 sm:$0xff]   ;;  %v17052_v6 = vld [vmem:[%s22919_s14 + $0x1460] ss:$16 sps:$4 sm:$0xff]  }
 0xa47   : > { %12355 = vmatprep.subr.bf16.mxu0 %v16985_v22  ;;  %v17055_v22 = vld [vmem:[%s22919_s14 + $0x1468] ss:$16 sps:$4 sm:$0xff]  }
 0xa49   : > { %11668 = vmatpush1.bf16.msra.mxu1 %v16980_v16  ;;  %v17060_v16 = vld [vmem:[%s22919_s14 + $0x1484] ss:$16 sps:$4 sm:$0xff]  }
 0xa4a   : > { %12356 = vmatpush1.bf16.msra.mxu0 %v16983_v12  ;;  %11669 = vmatprep.subr.bf16.mxu1 %v16988_v4  ;;  %v17063_v12 = vld [vmem:[%s22919_s14 + $0x148c] ss:$16 sps:$4 sm:$0xff]   ;;  %v17058_v4 = vld [vmem:[%s22919_s14 + $0x1480] ss:$16 sps:$4 sm:$0xff]  }
 0xa4b   : > { %12357 = vmatprep.subr.bf16.mxu0 %v16991_v7  ;;  %v17061_v7 = vld [vmem:[%s22919_s14 + $0x1488] ss:$16 sps:$4 sm:$0xff]  }
 0xa4d   : > { %11670 = vmatpush1.bf16.msra.mxu1 %v16986_v30  ;;  %v17066_v30 = vld [vmem:[%s22919_s14 + $0x14a4] ss:$16 sps:$4 sm:$0xff]  }
 0xa4e   : > { %12358 = vmatpush1.bf16.msra.mxu0 %v16989_v56  ;;  %11671 = vmatprep.subr.bf16.mxu1 %v16994_v19  ;;  %v17069_v56 = vld [vmem:[%s22919_s14 + $0x14ac] ss:$16 sps:$4 sm:$0xff]   ;;  %v17064_v19 = vld [vmem:[%s22919_s14 + $0x14a0] ss:$16 sps:$4 sm:$0xff]  }
 0xa4f   : > { %12359 = vmatprep.subr.bf16.mxu0 %v16997_v23  ;;  %v17067_v23 = vld [vmem:[%s22919_s14 + $0x14a8] ss:$16 sps:$4 sm:$0xff]  }
 0xa51   : > { %11672 = vmatpush1.bf16.msra.mxu1 %v16992_v2  ;;  %v17072_v2 = vld [vmem:[%s22919_s14 + $0x14c4] ss:$16 sps:$4 sm:$0xff]  }
 0xa52   : > { %12360 = vmatpush1.bf16.msra.mxu0 %v16995_v25  ;;  %11673 = vmatprep.subr.bf16.mxu1 %v17000_v10  ;;  %v17075_v25 = vld [vmem:[%s22919_s14 + $0x14cc] ss:$16 sps:$4 sm:$0xff]   ;;  %v17070_v10 = vld [vmem:[%s22919_s14 + $0x14c0] ss:$16 sps:$4 sm:$0xff]  }
 0xa53   : > { %12361 = vmatprep.subr.bf16.mxu0 %v17003_v48  ;;  %v17073_v48 = vld [vmem:[%s22919_s14 + $0x14c8] ss:$16 sps:$4 sm:$0xff]  }
 0xa55   : > { %11674 = vmatpush1.bf16.msra.mxu1 %v16998_v36  ;;  %v17078_v36 = vld [vmem:[%s22919_s14 + $0x14e4] ss:$16 sps:$4 sm:$0xff]  }
 0xa56   : > { %12362 = vmatpush1.bf16.msra.mxu0 %v17001_v63  ;;  %11675 = vmatprep.subr.bf16.mxu1 %v17006_v43  ;;  %v17081_v63 = vld [vmem:[%s22919_s14 + $0x14ec] ss:$16 sps:$4 sm:$0xff]   ;;  %v17076_v43 = vld [vmem:[%s22919_s14 + $0x14e0] ss:$16 sps:$4 sm:$0xff]  }
 0xa57   : > { %12363 = vmatprep.subr.bf16.mxu0 %v17009_v51  ;;  %v17079_v51 = vld [vmem:[%s22919_s14 + $0x14e8] ss:$16 sps:$4 sm:$0xff]  }
 0xa59   : > { %11676 = vmatpush1.bf16.msra.mxu1 %v17004_v33  ;;  %v17084_v33 = vld [vmem:[%s22919_s14 + $0x1504] ss:$16 sps:$4 sm:$0xff]  }
 0xa5a   : > { %12364 = vmatpush1.bf16.msra.mxu0 %v17007_v47  ;;  %11677 = vmatprep.subr.bf16.mxu1 %v17012_v3  ;;  %v17087_v47 = vld [vmem:[%s22919_s14 + $0x150c] ss:$16 sps:$4 sm:$0xff]   ;;  %v17082_v3 = vld [vmem:[%s22919_s14 + $0x1500] ss:$16 sps:$4 sm:$0xff]  }
 0xa5b   : > { %12365 = vmatprep.subr.bf16.mxu0 %v17015_v34  ;;  %v17085_v34 = vld [vmem:[%s22919_s14 + $0x1508] ss:$16 sps:$4 sm:$0xff]  }
 0xa5d   : > { %11678 = vmatpush1.bf16.msra.mxu1 %v17010_v46  ;;  %v17090_v46 = vld [vmem:[%s22919_s14 + $0x1524] ss:$16 sps:$4 sm:$0xff]  }
 0xa5e   : > { %12366 = vmatpush1.bf16.msra.mxu0 %v17013_v9  ;;  %11679 = vmatprep.subr.bf16.mxu1 %v17018_v13  ;;  %v17093_v9 = vld [vmem:[%s22919_s14 + $0x152c] ss:$16 sps:$4 sm:$0xff]   ;;  %v17088_v13 = vld [vmem:[%s22919_s14 + $0x1520] ss:$16 sps:$4 sm:$0xff]  }
 0xa5f   : > { %12367 = vmatprep.subr.bf16.mxu0 %v17021_v44  ;;  %v17091_v44 = vld [vmem:[%s22919_s14 + $0x1528] ss:$16 sps:$4 sm:$0xff]  }
 0xa61   : > { %11680 = vmatpush1.bf16.msra.mxu1 %v17016_v45  ;;  %v17096_v45 = vld [vmem:[%s22919_s14 + $0x1544] ss:$16 sps:$4 sm:$0xff]  }
 0xa62   : > { %12368 = vmatpush1.bf16.msra.mxu0 %v17019_v50  ;;  %11681 = vmatprep.subr.bf16.mxu1 %v17024_v5  ;;  %v17099_v50 = vld [vmem:[%s22919_s14 + $0x154c] ss:$16 sps:$4 sm:$0xff]   ;;  %v17094_v5 = vld [vmem:[%s22919_s14 + $0x1540] ss:$16 sps:$4 sm:$0xff]  }
 0xa63   : > { %12369 = vmatprep.subr.bf16.mxu0 %v17027_v29  ;;  %v17097_v29 = vld [vmem:[%s22919_s14 + $0x1548] ss:$16 sps:$4 sm:$0xff]  }
 0xa65   : > { %11682 = vmatpush1.bf16.msra.mxu1 %v17022_v26  ;;  %v17102_v26 = vld [vmem:[%s22919_s14 + $0x1564] ss:$16 sps:$4 sm:$0xff]  }
 0xa66   : > { %12370 = vmatpush1.bf16.msra.mxu0 %v17025_v54  ;;  %11683 = vmatprep.subr.bf16.mxu1 %v17030_v35  ;;  %v17105_v54 = vld [vmem:[%s22919_s14 + $0x156c] ss:$16 sps:$4 sm:$0xff]   ;;  %v17100_v35 = vld [vmem:[%s22919_s14 + $0x1560] ss:$16 sps:$4 sm:$0xff]  }
 0xa67   : > { %12371 = vmatprep.subr.bf16.mxu0 %v17033_v32  ;;  %v17103_v32 = vld [vmem:[%s22919_s14 + $0x1568] ss:$16 sps:$4 sm:$0xff]  }
 0xa69   : > { %11684 = vmatpush1.bf16.msra.mxu1 %v17028_v28  ;;  %v17108_v28 = vld [vmem:[%s22919_s14 + $0x1584] ss:$16 sps:$4 sm:$0xff]  }
 0xa6a   : > { %12372 = vmatpush1.bf16.msra.mxu0 %v17031_v53  ;;  %11696 = vmatprep.subr.bf16.mxu1 %v17036_v18  ;;  %v17111_v53 = vld [vmem:[%s22919_s14 + $0x158c] ss:$16 sps:$4 sm:$0xff]   ;;  %v17106_v18 = vld [vmem:[%s22919_s14 + $0x1580] ss:$16 sps:$4 sm:$0xff]  }
 0xa6b   : > { %12384 = vmatprep.subr.bf16.mxu0 %v17039_v37  ;;  %v17109_v37 = vld [vmem:[%s22919_s14 + $0x1588] ss:$16 sps:$4 sm:$0xff]  }
 0xa6c   : > { %11686 = vmatmul.mubr.bf16.vlgmr.msra.gmra.mrb[184].mxu1 %v19883_v59 }
 0xa6d   : > { %12374 = vmatmul.mubr.bf16.vlgmr.msra.gmra.mrb[28].mxu0 %v19883_v59  ;;  %11697 = vmatpush1.bf16.msra.mxu1 %v17034_v57  ;;  %v17051_v59 = vld [vmem:[%s22919_s14 + $0x144c] ss:$16 sps:$4 sm:$0xff]   ;;  %v17114_v57 = vld [vmem:[%s22919_s14 + $0x15a4] ss:$16 sps:$4 sm:$0xff]  }
 0xa6e   : > { %11728 = vmatprep.mubr.bf16.mxu1 %v19919_v38  ;;  %12385 = vmatpush1.bf16.msra.mxu0 %v17037_v55  ;;  %v17117_v55 = vld [vmem:[%s22919_s14 + $0x15ac] ss:$16 sps:$4 sm:$0xff]  }
 0xa6f   : > { %12416 = vmatprep.mubr.bf16.mxu0 %v19919_v38  ;;  %11698 = vmatprep.subr.bf16.mxu1 %v17042_v11  ;;  %v17054_v38 = vld [vmem:[%s22919_s14 + $0x1464] ss:$16 sps:$4 sm:$0xff]   ;;  %v17112_v11 = vld [vmem:[%s22919_s14 + $0x15a0] ss:$16 sps:$4 sm:$0xff]  }
 0xa70   : > { %12386 = vmatprep.subr.bf16.mxu0 %v17045_v21  ;;  %v17115_v21 = vld [vmem:[%s22919_s14 + $0x15a8] ss:$16 sps:$4 sm:$0xff]  }
 0xa71   : > { %11699 = vmatpush1.bf16.msra.mxu1 %v17040_v62  ;;  %v17120_v62 = vld [vmem:[%s22919_s14 + $0x15c4] ss:$16 sps:$4 sm:$0xff]  }
 0xa72   : > { %12387 = vmatpush1.bf16.msra.mxu0 %v17043_v42  ;;  %11700 = vmatprep.subr.bf16.mxu1 %v17048_v15  ;;  %v17123_v42 = vld [vmem:[%s22919_s14 + $0x15cc] ss:$16 sps:$4 sm:$0xff]   ;;  %v17118_v15 = vld [vmem:[%s22919_s14 + $0x15c0] ss:$16 sps:$4 sm:$0xff]  }
 0xa73   : > { %12388 = vmatprep.subr.bf16.mxu0 %v17051_v59  ;;  %v17121_v59 = vld [vmem:[%s22919_s14 + $0x15c8] ss:$16 sps:$4 sm:$0xff]  }
 0xa75   : > { %11701 = vmatpush1.bf16.msra.mxu1 %v17046_v31  ;;  %v17126_v31 = vld [vmem:[%s22919_s14 + $0x15e4] ss:$16 sps:$4 sm:$0xff]  }
 0xa76   : > { %12389 = vmatpush1.bf16.msra.mxu0 %v17049_v40  ;;  %11702 = vmatprep.subr.bf16.mxu1 %v17054_v38  ;;  %v17129_v40 = vld [vmem:[%s22919_s14 + $0x15ec] ss:$16 sps:$4 sm:$0xff]   ;;  %v17124_v38 = vld [vmem:[%s22919_s14 + $0x15e0] ss:$16 sps:$4 sm:$0xff]  }
 0xa77   : > { %12390 = vmatprep.subr.bf16.mxu0 %v17057_v52  ;;  %v17127_v52 = vld [vmem:[%s22919_s14 + $0x15e8] ss:$16 sps:$4 sm:$0xff]  }
 0xa79   : > { %11703 = vmatpush1.bf16.msra.mxu1 %v17052_v6  ;;  %v17132_v6 = vld [vmem:[%s22919_s14 + $0x1604] ss:$16 sps:$4 sm:$0xff]  }
 0xa7a   : > { %12391 = vmatpush1.bf16.msra.mxu0 %v17055_v22  ;;  %11704 = vmatprep.subr.bf16.mxu1 %v17060_v16  ;;  %v17135_v22 = vld [vmem:[%s22919_s14 + $0x160c] ss:$16 sps:$4 sm:$0xff]   ;;  %v17130_v16 = vld [vmem:[%s22919_s14 + $0x1600] ss:$16 sps:$4 sm:$0xff]  }
 0xa7b   : > { %12392 = vmatprep.subr.bf16.mxu0 %v17063_v12  ;;  %v17133_v12 = vld [vmem:[%s22919_s14 + $0x1608] ss:$16 sps:$4 sm:$0xff]  }
 0xa7d   : > { %11705 = vmatpush1.bf16.msra.mxu1 %v17058_v4  ;;  %v17138_v4 = vld [vmem:[%s22919_s14 + $0x1624] ss:$16 sps:$4 sm:$0xff]  }
 0xa7e   : > { %12393 = vmatpush1.bf16.msra.mxu0 %v17061_v7  ;;  %11706 = vmatprep.subr.bf16.mxu1 %v17066_v30  ;;  %v17141_v7 = vld [vmem:[%s22919_s14 + $0x162c] ss:$16 sps:$4 sm:$0xff]   ;;  %v17136_v30 = vld [vmem:[%s22919_s14 + $0x1620] ss:$16 sps:$4 sm:$0xff]  }
 0xa7f   : > { %12394 = vmatprep.subr.bf16.mxu0 %v17069_v56  ;;  %v17139_v56 = vld [vmem:[%s22919_s14 + $0x1628] ss:$16 sps:$4 sm:$0xff]  }
 0xa81   : > { %11707 = vmatpush1.bf16.msra.mxu1 %v17064_v19  ;;  %v17144_v19 = vld [vmem:[%s22919_s14 + $0x1644] ss:$16 sps:$4 sm:$0xff]  }
 0xa82   : > { %12395 = vmatpush1.bf16.msra.mxu0 %v17067_v23  ;;  %11708 = vmatprep.subr.bf16.mxu1 %v17072_v2  ;;  %v17142_v23 = vld [vmem:[%s22919_s14 + $0x1640] ss:$16 sps:$4 sm:$0xff]   ;;  %v17145_v2 = vld [vmem:[%s22919_s14 + $0x1648] ss:$16 sps:$4 sm:$0xff]  }
 0xa83   : > { %12396 = vmatprep.subr.bf16.mxu0 %v17075_v25  ;;  %v17153_v25 = vld [vmem:[%s22919_s14 + $0x166c] ss:$16 sps:$4 sm:$0xff]  }
 0xa85   : > { %11709 = vmatpush1.bf16.msra.mxu1 %v17070_v10  ;;  %v17148_v10 = vld [vmem:[%s22919_s14 + $0x1660] ss:$16 sps:$4 sm:$0xff]  }
 0xa86   : > { %12397 = vmatpush1.bf16.msra.mxu0 %v17073_v48  ;;  %11710 = vmatprep.subr.bf16.mxu1 %v17078_v36  ;;  %v17151_v48 = vld [vmem:[%s22919_s14 + $0x1668] ss:$16 sps:$4 sm:$0xff]   ;;  %v17156_v36 = vld [vmem:[%s22919_s14 + $0x1684] ss:$16 sps:$4 sm:$0xff]  }
 0xa87   : > { %12398 = vmatprep.subr.bf16.mxu0 %v17081_v63  ;;  %v17159_v63 = vld [vmem:[%s22919_s14 + $0x168c] ss:$16 sps:$4 sm:$0xff]  }
 0xa89   : > { %11711 = vmatpush1.bf16.msra.mxu1 %v17076_v43  ;;  %v17154_v43 = vld [vmem:[%s22919_s14 + $0x1680] ss:$16 sps:$4 sm:$0xff]  }
 0xa8a   : > { %12399 = vmatpush1.bf16.msra.mxu0 %v17079_v51  ;;  %11712 = vmatprep.subr.bf16.mxu1 %v17084_v33  ;;  %v17157_v51 = vld [vmem:[%s22919_s14 + $0x1688] ss:$16 sps:$4 sm:$0xff]   ;;  %v17162_v33 = vld [vmem:[%s22919_s14 + $0x16a4] ss:$16 sps:$4 sm:$0xff]  }
 0xa8b   : > { %12400 = vmatprep.subr.bf16.mxu0 %v17087_v47  ;;  %v17165_v47 = vld [vmem:[%s22919_s14 + $0x16ac] ss:$16 sps:$4 sm:$0xff]  }
 0xa8d   : > { %11713 = vmatpush1.bf16.msra.mxu1 %v17082_v3  ;;  %v17160_v3 = vld [vmem:[%s22919_s14 + $0x16a0] ss:$16 sps:$4 sm:$0xff]  }
 0xa8e   : > { %12401 = vmatpush1.bf16.msra.mxu0 %v17085_v34  ;;  %11714 = vmatprep.subr.bf16.mxu1 %v17090_v46  ;;  %v17163_v34 = vld [vmem:[%s22919_s14 + $0x16a8] ss:$16 sps:$4 sm:$0xff]   ;;  %v17168_v46 = vld [vmem:[%s22919_s14 + $0x16c4] ss:$16 sps:$4 sm:$0xff]  }
 0xa8f   : > { %12402 = vmatprep.subr.bf16.mxu0 %v17093_v9  ;;  %v17171_v9 = vld [vmem:[%s22919_s14 + $0x16cc] ss:$16 sps:$4 sm:$0xff]  }
 0xa91   : > { %11715 = vmatpush1.bf16.msra.mxu1 %v17088_v13  ;;  %v17166_v13 = vld [vmem:[%s22919_s14 + $0x16c0] ss:$16 sps:$4 sm:$0xff]  }
 0xa92   : > { %12403 = vmatpush1.bf16.msra.mxu0 %v17091_v44  ;;  %11716 = vmatprep.subr.bf16.mxu1 %v17096_v45  ;;  %v17169_v44 = vld [vmem:[%s22919_s14 + $0x16c8] ss:$16 sps:$4 sm:$0xff]   ;;  %v17174_v45 = vld [vmem:[%s22919_s14 + $0x16e4] ss:$16 sps:$4 sm:$0xff]  }
 0xa93   : > { %12404 = vmatprep.subr.bf16.mxu0 %v17099_v50  ;;  %v17177_v50 = vld [vmem:[%s22919_s14 + $0x16ec] ss:$16 sps:$4 sm:$0xff]  }
 0xa95   : > { %11717 = vmatpush1.bf16.msra.mxu1 %v17094_v5  ;;  %v17172_v5 = vld [vmem:[%s22919_s14 + $0x16e0] ss:$16 sps:$4 sm:$0xff]  }
 0xa96   : > { %12405 = vmatpush1.bf16.msra.mxu0 %v17097_v29  ;;  %11718 = vmatprep.subr.bf16.mxu1 %v17102_v26  ;;  %v17175_v29 = vld [vmem:[%s22919_s14 + $0x16e8] ss:$16 sps:$4 sm:$0xff]   ;;  %v17180_v26 = vld [vmem:[%s22919_s14 + $0x1704] ss:$16 sps:$4 sm:$0xff]  }
 0xa97   : > { %12406 = vmatprep.subr.bf16.mxu0 %v17105_v54  ;;  %v17183_v54 = vld [vmem:[%s22919_s14 + $0x170c] ss:$16 sps:$4 sm:$0xff]  }
 0xa99   : > { %11719 = vmatpush1.bf16.msra.mxu1 %v17100_v35  ;;  %v17178_v35 = vld [vmem:[%s22919_s14 + $0x1700] ss:$16 sps:$4 sm:$0xff]  }
 0xa9a   : > { %12407 = vmatpush1.bf16.msra.mxu0 %v17103_v32  ;;  %11720 = vmatprep.subr.bf16.mxu1 %v17108_v28  ;;  %v17181_v32 = vld [vmem:[%s22919_s14 + $0x1708] ss:$16 sps:$4 sm:$0xff]   ;;  %v17186_v28 = vld [vmem:[%s22919_s14 + $0x1724] ss:$16 sps:$4 sm:$0xff]  }
 0xa9b   : > { %12408 = vmatprep.subr.bf16.mxu0 %v17111_v53  ;;  %v17189_v53 = vld [vmem:[%s22919_s14 + $0x172c] ss:$16 sps:$4 sm:$0xff]  }
 0xa9d   : > { %11721 = vmatpush1.bf16.msra.mxu1 %v17106_v18  ;;  %v17184_v18 = vld [vmem:[%s22919_s14 + $0x1720] ss:$16 sps:$4 sm:$0xff]  }
 0xa9e   : > { %12409 = vmatpush1.bf16.msra.mxu0 %v17109_v37  ;;  %11722 = vmatprep.subr.bf16.mxu1 %v17114_v57  ;;  %v17187_v37 = vld [vmem:[%s22919_s14 + $0x1728] ss:$16 sps:$4 sm:$0xff]   ;;  %v17192_v57 = vld [vmem:[%s22919_s14 + $0x1744] ss:$16 sps:$4 sm:$0xff]  }
 0xa9f   : > { %12410 = vmatprep.subr.bf16.mxu0 %v17117_v55  ;;  %v17195_v55 = vld [vmem:[%s22919_s14 + $0x174c] ss:$16 sps:$4 sm:$0xff]  }
 0xaa1   : > { %11723 = vmatpush1.bf16.msra.mxu1 %v17112_v11  ;;  %v17190_v11 = vld [vmem:[%s22919_s14 + $0x1740] ss:$16 sps:$4 sm:$0xff]  }
 0xaa2   : > { %12411 = vmatpush1.bf16.msra.mxu0 %v17115_v21  ;;  %11724 = vmatprep.subr.bf16.mxu1 %v17120_v62  ;;  %v17193_v21 = vld [vmem:[%s22919_s14 + $0x1748] ss:$16 sps:$4 sm:$0xff]   ;;  %v17198_v62 = vld [vmem:[%s22919_s14 + $0x1764] ss:$16 sps:$4 sm:$0xff]  }
 0xaa3   : > { %12412 = vmatprep.subr.bf16.mxu0 %v17123_v42  ;;  %v17201_v42 = vld [vmem:[%s22919_s14 + $0x176c] ss:$16 sps:$4 sm:$0xff]  }
 0xaa5   : > { %11725 = vmatpush1.bf16.msra.mxu1 %v17118_v15  ;;  %v17196_v15 = vld [vmem:[%s22919_s14 + $0x1760] ss:$16 sps:$4 sm:$0xff]  }
 0xaa6   : > { %12413 = vmatpush1.bf16.msra.mxu0 %v17121_v59  ;;  %11726 = vmatprep.subr.bf16.mxu1 %v17126_v31  ;;  %v17199_v59 = vld [vmem:[%s22919_s14 + $0x1768] ss:$16 sps:$4 sm:$0xff]   ;;  %v17204_v31 = vld [vmem:[%s22919_s14 + $0x1784] ss:$16 sps:$4 sm:$0xff]  }
 0xaa7   : > { %12414 = vmatprep.subr.bf16.mxu0 %v17129_v40  ;;  %v17207_v40 = vld [vmem:[%s22919_s14 + $0x178c] ss:$16 sps:$4 sm:$0xff]  }
 0xaa9   : > { %11727 = vmatpush1.bf16.msra.mxu1 %v17124_v38  ;;  %v17202_v38 = vld [vmem:[%s22919_s14 + $0x1780] ss:$16 sps:$4 sm:$0xff]  }
 0xaaa   : > { %12415 = vmatpush1.bf16.msra.mxu0 %v17127_v52  ;;  %11739 = vmatprep.subr.bf16.mxu1 %v17132_v6  ;;  %v17205_v52 = vld [vmem:[%s22919_s14 + $0x1788] ss:$16 sps:$4 sm:$0xff]   ;;  %v17210_v6 = vld [vmem:[%s22919_s14 + $0x17a4] ss:$16 sps:$4 sm:$0xff]  }
 0xaab   : > { %12427 = vmatprep.subr.bf16.mxu0 %v17135_v22  ;;  %v17213_v22 = vld [vmem:[%s22919_s14 + $0x17ac] ss:$16 sps:$4 sm:$0xff]  }
 0xaac   : > { %11729 = vmatmul.mubr.bf16.vlgmr.msra.gmra.mrb[184].mxu1 %v19911_v24 }
 0xaad   : > { %12417 = vmatmul.mubr.bf16.vlgmr.msra.gmra.mrb[28].mxu0 %v19911_v24  ;;  %11740 = vmatpush1.bf16.msra.mxu1 %v17130_v16  ;;  %v17147_v24 = vld [vmem:[%s22919_s14 + $0x164c] ss:$16 sps:$4 sm:$0xff]   ;;  %v17208_v16 = vld [vmem:[%s22919_s14 + $0x17a0] ss:$16 sps:$4 sm:$0xff]  }
 0xaae   : > { %11771 = vmatprep.mubr.bf16.mxu1 %v19947_v27  ;;  %12428 = vmatpush1.bf16.msra.mxu0 %v17133_v12  ;;  %v17211_v12 = vld [vmem:[%s22919_s14 + $0x17a8] ss:$16 sps:$4 sm:$0xff]  }
 0xaaf   : > { %12459 = vmatprep.mubr.bf16.mxu0 %v19947_v27  ;;  %11741 = vmatprep.subr.bf16.mxu1 %v17138_v4  ;;  %v17150_v27 = vld [vmem:[%s22919_s14 + $0x1664] ss:$16 sps:$4 sm:$0xff]  }
 0xab0   : > { %12429 = vmatprep.subr.bf16.mxu0 %v17141_v7  ;;  %v17216_v4 = vld [vmem:[%s22919_s14 + $0x17c4] ss:$16 sps:$4 sm:$0xff]   ;;  %v17219_v7 = vld [vmem:[%s22919_s14 + $0x17cc] ss:$16 sps:$4 sm:$0xff]  }
 0xab1   : > { %11742 = vmatpush1.bf16.msra.mxu1 %v17136_v30  ;;  %v17214_v30 = vld [vmem:[%s22919_s14 + $0x17c0] ss:$16 sps:$4 sm:$0xff]  }
 0xab2   : > { %12430 = vmatpush1.bf16.msra.mxu0 %v17139_v56  ;;  %11743 = vmatprep.subr.bf16.mxu1 %v17144_v19  ;;  %v17217_v56 = vld [vmem:[%s22919_s14 + $0x17c8] ss:$16 sps:$4 sm:$0xff]   ;;  %v17222_v19 = vld [vmem:[%s22919_s14 + $0x17e4] ss:$16 sps:$4 sm:$0xff]  }
 0xab3   : > { %12431 = vmatprep.subr.bf16.mxu0 %v17147_v24  ;;  %v17225_v24 = vld [vmem:[%s22919_s14 + $0x17ec] ss:$16 sps:$4 sm:$0xff]  }
 0xab5   : > { %11744 = vmatpush1.bf16.msra.mxu1 %v17142_v23  ;;  %v17220_v23 = vld [vmem:[%s22919_s14 + $0x17e0] ss:$16 sps:$4 sm:$0xff]  }
 0xab6   : > { %12432 = vmatpush1.bf16.msra.mxu0 %v17145_v2  ;;  %11745 = vmatprep.subr.bf16.mxu1 %v17150_v27  ;;  %v17223_v2 = vld [vmem:[%s22919_s14 + $0x17e8] ss:$16 sps:$4 sm:$0xff]   ;;  %v17228_v27 = vld [vmem:[%s22919_s14 + $0x1804] ss:$16 sps:$4 sm:$0xff]  }
 0xab7   : > { %12433 = vmatprep.subr.bf16.mxu0 %v17153_v25  ;;  %v17231_v25 = vld [vmem:[%s22919_s14 + $0x180c] ss:$16 sps:$4 sm:$0xff]  }
 0xab9   : > { %11746 = vmatpush1.bf16.msra.mxu1 %v17148_v10  ;;  %v17226_v10 = vld [vmem:[%s22919_s14 + $0x1800] ss:$16 sps:$4 sm:$0xff]  }
 0xaba   : > { %12434 = vmatpush1.bf16.msra.mxu0 %v17151_v48  ;;  %11747 = vmatprep.subr.bf16.mxu1 %v17156_v36  ;;  %v17229_v48 = vld [vmem:[%s22919_s14 + $0x1808] ss:$16 sps:$4 sm:$0xff]   ;;  %v17234_v36 = vld [vmem:[%s22919_s14 + $0x1824] ss:$16 sps:$4 sm:$0xff]  }
 0xabb   : > { %12435 = vmatprep.subr.bf16.mxu0 %v17159_v63  ;;  %v17237_v63 = vld [vmem:[%s22919_s14 + $0x182c] ss:$16 sps:$4 sm:$0xff]  }
 0xabd   : > { %11748 = vmatpush1.bf16.msra.mxu1 %v17154_v43  ;;  %v17232_v43 = vld [vmem:[%s22919_s14 + $0x1820] ss:$16 sps:$4 sm:$0xff]  }
 0xabe   : > { %12436 = vmatpush1.bf16.msra.mxu0 %v17157_v51  ;;  %11749 = vmatprep.subr.bf16.mxu1 %v17162_v33  ;;  %v17235_v51 = vld [vmem:[%s22919_s14 + $0x1828] ss:$16 sps:$4 sm:$0xff]   ;;  %v17240_v33 = vld [vmem:[%s22919_s14 + $0x1844] ss:$16 sps:$4 sm:$0xff]  }
 0xabf   : > { %12437 = vmatprep.subr.bf16.mxu0 %v17165_v47  ;;  %v17238_v47 = vld [vmem:[%s22919_s14 + $0x1840] ss:$16 sps:$4 sm:$0xff]  }
 0xac1   : > { %11750 = vmatpush1.bf16.msra.mxu1 %v17160_v3  ;;  %v17241_v3 = vld [vmem:[%s22919_s14 + $0x1848] ss:$16 sps:$4 sm:$0xff]  }
 0xac2   : > { %12438 = vmatpush1.bf16.msra.mxu0 %v17163_v34  ;;  %11751 = vmatprep.subr.bf16.mxu1 %v17168_v46  ;;  %v17249_v34 = vld [vmem:[%s22919_s14 + $0x186c] ss:$16 sps:$4 sm:$0xff]   ;;  %v17244_v46 = vld [vmem:[%s22919_s14 + $0x1860] ss:$16 sps:$4 sm:$0xff]  }
 0xac3   : > { %12439 = vmatprep.subr.bf16.mxu0 %v17171_v9  ;;  %v17247_v9 = vld [vmem:[%s22919_s14 + $0x1868] ss:$16 sps:$4 sm:$0xff]  }
 0xac5   : > { %11752 = vmatpush1.bf16.msra.mxu1 %v17166_v13  ;;  %v17252_v13 = vld [vmem:[%s22919_s14 + $0x1884] ss:$16 sps:$4 sm:$0xff]  }
 0xac6   : > { %12440 = vmatpush1.bf16.msra.mxu0 %v17169_v44  ;;  %11753 = vmatprep.subr.bf16.mxu1 %v17174_v45  ;;  %v17255_v44 = vld [vmem:[%s22919_s14 + $0x188c] ss:$16 sps:$4 sm:$0xff]   ;;  %v17250_v45 = vld [vmem:[%s22919_s14 + $0x1880] ss:$16 sps:$4 sm:$0xff]  }
 0xac7   : > { %12441 = vmatprep.subr.bf16.mxu0 %v17177_v50  ;;  %v17253_v50 = vld [vmem:[%s22919_s14 + $0x1888] ss:$16 sps:$4 sm:$0xff]  }
 0xac9   : > { %11754 = vmatpush1.bf16.msra.mxu1 %v17172_v5  ;;  %v17258_v5 = vld [vmem:[%s22919_s14 + $0x18a4] ss:$16 sps:$4 sm:$0xff]  }
 0xaca   : > { %12442 = vmatpush1.bf16.msra.mxu0 %v17175_v29  ;;  %11755 = vmatprep.subr.bf16.mxu1 %v17180_v26  ;;  %v17261_v29 = vld [vmem:[%s22919_s14 + $0x18ac] ss:$16 sps:$4 sm:$0xff]   ;;  %v17256_v26 = vld [vmem:[%s22919_s14 + $0x18a0] ss:$16 sps:$4 sm:$0xff]  }
 0xacb   : > { %12443 = vmatprep.subr.bf16.mxu0 %v17183_v54  ;;  %v17259_v54 = vld [vmem:[%s22919_s14 + $0x18a8] ss:$16 sps:$4 sm:$0xff]  }
 0xacd   : > { %11756 = vmatpush1.bf16.msra.mxu1 %v17178_v35  ;;  %v17264_v35 = vld [vmem:[%s22919_s14 + $0x18c4] ss:$16 sps:$4 sm:$0xff]  }
 0xace   : > { %12444 = vmatpush1.bf16.msra.mxu0 %v17181_v32  ;;  %11757 = vmatprep.subr.bf16.mxu1 %v17186_v28  ;;  %v17267_v32 = vld [vmem:[%s22919_s14 + $0x18cc] ss:$16 sps:$4 sm:$0xff]   ;;  %v17262_v28 = vld [vmem:[%s22919_s14 + $0x18c0] ss:$16 sps:$4 sm:$0xff]  }
 0xacf   : > { %12445 = vmatprep.subr.bf16.mxu0 %v17189_v53  ;;  %v17265_v53 = vld [vmem:[%s22919_s14 + $0x18c8] ss:$16 sps:$4 sm:$0xff]  }
 0xad1   : > { %11758 = vmatpush1.bf16.msra.mxu1 %v17184_v18  ;;  %v17270_v18 = vld [vmem:[%s22919_s14 + $0x18e4] ss:$16 sps:$4 sm:$0xff]  }
 0xad2   : > { %12446 = vmatpush1.bf16.msra.mxu0 %v17187_v37  ;;  %11759 = vmatprep.subr.bf16.mxu1 %v17192_v57  ;;  %v17273_v37 = vld [vmem:[%s22919_s14 + $0x18ec] ss:$16 sps:$4 sm:$0xff]   ;;  %v17268_v57 = vld [vmem:[%s22919_s14 + $0x18e0] ss:$16 sps:$4 sm:$0xff]  }
 0xad3   : > { %12447 = vmatprep.subr.bf16.mxu0 %v17195_v55  ;;  %v17271_v55 = vld [vmem:[%s22919_s14 + $0x18e8] ss:$16 sps:$4 sm:$0xff]  }
 0xad5   : > { %11760 = vmatpush1.bf16.msra.mxu1 %v17190_v11  ;;  %v17276_v11 = vld [vmem:[%s22919_s14 + $0x1904] ss:$16 sps:$4 sm:$0xff]  }
 0xad6   : > { %12448 = vmatpush1.bf16.msra.mxu0 %v17193_v21  ;;  %11761 = vmatprep.subr.bf16.mxu1 %v17198_v62  ;;  %v17279_v21 = vld [vmem:[%s22919_s14 + $0x190c] ss:$16 sps:$4 sm:$0xff]   ;;  %v17274_v62 = vld [vmem:[%s22919_s14 + $0x1900] ss:$16 sps:$4 sm:$0xff]  }
 0xad7   : > { %12449 = vmatprep.subr.bf16.mxu0 %v17201_v42  ;;  %v17277_v42 = vld [vmem:[%s22919_s14 + $0x1908] ss:$16 sps:$4 sm:$0xff]  }
 0xad9   : > { %11762 = vmatpush1.bf16.msra.mxu1 %v17196_v15  ;;  %v17282_v15 = vld [vmem:[%s22919_s14 + $0x1924] ss:$16 sps:$4 sm:$0xff]  }
 0xada   : > { %12450 = vmatpush1.bf16.msra.mxu0 %v17199_v59  ;;  %11763 = vmatprep.subr.bf16.mxu1 %v17204_v31  ;;  %v17285_v59 = vld [vmem:[%s22919_s14 + $0x192c] ss:$16 sps:$4 sm:$0xff]   ;;  %v17280_v31 = vld [vmem:[%s22919_s14 + $0x1920] ss:$16 sps:$4 sm:$0xff]  }
 0xadb   : > { %12451 = vmatprep.subr.bf16.mxu0 %v17207_v40  ;;  %v17283_v40 = vld [vmem:[%s22919_s14 + $0x1928] ss:$16 sps:$4 sm:$0xff]  }
 0xadd   : > { %11764 = vmatpush1.bf16.msra.mxu1 %v17202_v38  ;;  %v17288_v38 = vld [vmem:[%s22919_s14 + $0x1944] ss:$16 sps:$4 sm:$0xff]  }
 0xade   : > { %12452 = vmatpush1.bf16.msra.mxu0 %v17205_v52  ;;  %11765 = vmatprep.subr.bf16.mxu1 %v17210_v6  ;;  %v17291_v52 = vld [vmem:[%s22919_s14 + $0x194c] ss:$16 sps:$4 sm:$0xff]   ;;  %v17286_v6 = vld [vmem:[%s22919_s14 + $0x1940] ss:$16 sps:$4 sm:$0xff]  }
 0xadf   : > { %12453 = vmatprep.subr.bf16.mxu0 %v17213_v22  ;;  %v17289_v22 = vld [vmem:[%s22919_s14 + $0x1948] ss:$16 sps:$4 sm:$0xff]  }
 0xae1   : > { %11766 = vmatpush1.bf16.msra.mxu1 %v17208_v16  ;;  %v17294_v16 = vld [vmem:[%s22919_s14 + $0x1964] ss:$16 sps:$4 sm:$0xff]  }
 0xae2   : > { %12454 = vmatpush1.bf16.msra.mxu0 %v17211_v12  ;;  %11767 = vmatprep.subr.bf16.mxu1 %v17216_v4  ;;  %v17297_v12 = vld [vmem:[%s22919_s14 + $0x196c] ss:$16 sps:$4 sm:$0xff]   ;;  %v17292_v4 = vld [vmem:[%s22919_s14 + $0x1960] ss:$16 sps:$4 sm:$0xff]  }
 0xae3   : > { %12455 = vmatprep.subr.bf16.mxu0 %v17219_v7  ;;  %v17295_v7 = vld [vmem:[%s22919_s14 + $0x1968] ss:$16 sps:$4 sm:$0xff]  }
 0xae5   : > { %11768 = vmatpush1.bf16.msra.mxu1 %v17214_v30  ;;  %v17300_v30 = vld [vmem:[%s22919_s14 + $0x1984] ss:$16 sps:$4 sm:$0xff]  }
 0xae6   : > { %12456 = vmatpush1.bf16.msra.mxu0 %v17217_v56  ;;  %11769 = vmatprep.subr.bf16.mxu1 %v17222_v19  ;;  %v17303_v56 = vld [vmem:[%s22919_s14 + $0x198c] ss:$16 sps:$4 sm:$0xff]   ;;  %v17298_v19 = vld [vmem:[%s22919_s14 + $0x1980] ss:$16 sps:$4 sm:$0xff]  }
 0xae7   : > { %12457 = vmatprep.subr.bf16.mxu0 %v17225_v24  ;;  %v17301_v24 = vld [vmem:[%s22919_s14 + $0x1988] ss:$16 sps:$4 sm:$0xff]  }
 0xae9   : > { %11770 = vmatpush1.bf16.msra.mxu1 %v17220_v23  ;;  %v17306_v23 = vld [vmem:[%s22919_s14 + $0x19a4] ss:$16 sps:$4 sm:$0xff]  }
 0xaea   : > { %12458 = vmatpush1.bf16.msra.mxu0 %v17223_v2  ;;  %11782 = vmatprep.subr.bf16.mxu1 %v17228_v27  ;;  %v17309_v2 = vld [vmem:[%s22919_s14 + $0x19ac] ss:$16 sps:$4 sm:$0xff]   ;;  %v17304_v27 = vld [vmem:[%s22919_s14 + $0x19a0] ss:$16 sps:$4 sm:$0xff]  }
 0xaeb   : > { %12470 = vmatprep.subr.bf16.mxu0 %v17231_v25  ;;  %v17307_v25 = vld [vmem:[%s22919_s14 + $0x19a8] ss:$16 sps:$4 sm:$0xff]  }
 0xaec   : > { %11772 = vmatmul.mubr.bf16.vlgmr.msra.gmra.mrb[184].mxu1 %v19939_v49 }
 0xaed   : > { %12460 = vmatmul.mubr.bf16.vlgmr.msra.gmra.mrb[28].mxu0 %v19939_v49  ;;  %11783 = vmatpush1.bf16.msra.mxu1 %v17226_v10  ;;  %v17243_v49 = vld [vmem:[%s22919_s14 + $0x184c] ss:$16 sps:$4 sm:$0xff]   ;;  %v17312_v10 = vld [vmem:[%s22919_s14 + $0x19c4] ss:$16 sps:$4 sm:$0xff]  }
 0xaee   : > { %11814 = vmatprep.mubr.bf16.mxu1 %v19975_v58  ;;  %12471 = vmatpush1.bf16.msra.mxu0 %v17229_v48  ;;  %v17315_v48 = vld [vmem:[%s22919_s14 + $0x19cc] ss:$16 sps:$4 sm:$0xff]  }
 0xaef   : > { %12502 = vmatprep.mubr.bf16.mxu0 %v19975_v58  ;;  %11784 = vmatprep.subr.bf16.mxu1 %v17234_v36  ;;  %v17246_v58 = vld [vmem:[%s22919_s14 + $0x1864] ss:$16 sps:$4 sm:$0xff]   ;;  %v17310_v36 = vld [vmem:[%s22919_s14 + $0x19c0] ss:$16 sps:$4 sm:$0xff]  }
 0xaf0   : > { %12472 = vmatprep.subr.bf16.mxu0 %v17237_v63  ;;  %v17313_v63 = vld [vmem:[%s22919_s14 + $0x19c8] ss:$16 sps:$4 sm:$0xff]  }
 0xaf1   : > { %11785 = vmatpush1.bf16.msra.mxu1 %v17232_v43  ;;  %v17318_v43 = vld [vmem:[%s22919_s14 + $0x19e4] ss:$16 sps:$4 sm:$0xff]  }
 0xaf2   : > { %12473 = vmatpush1.bf16.msra.mxu0 %v17235_v51  ;;  %11786 = vmatprep.subr.bf16.mxu1 %v17240_v33  ;;  %v17321_v51 = vld [vmem:[%s22919_s14 + $0x19ec] ss:$16 sps:$4 sm:$0xff]   ;;  %v17316_v33 = vld [vmem:[%s22919_s14 + $0x19e0] ss:$16 sps:$4 sm:$0xff]  }
 0xaf3   : > { %12474 = vmatprep.subr.bf16.mxu0 %v17243_v49  ;;  %v17319_v49 = vld [vmem:[%s22919_s14 + $0x19e8] ss:$16 sps:$4 sm:$0xff]  }
 0xaf5   : > { %11787 = vmatpush1.bf16.msra.mxu1 %v17238_v47  ;;  %v17324_v47 = vld [vmem:[%s22919_s14 + $0x1a04] ss:$16 sps:$4 sm:$0xff]  }
 0xaf6   : > { %12475 = vmatpush1.bf16.msra.mxu0 %v17241_v3  ;;  %11788 = vmatprep.subr.bf16.mxu1 %v17246_v58  ;;  %v17327_v3 = vld [vmem:[%s22919_s14 + $0x1a0c] ss:$16 sps:$4 sm:$0xff]   ;;  %v17322_v58 = vld [vmem:[%s22919_s14 + $0x1a00] ss:$16 sps:$4 sm:$0xff]  }
 0xaf7   : > { %12476 = vmatprep.subr.bf16.mxu0 %v17249_v34  ;;  %v17325_v34 = vld [vmem:[%s22919_s14 + $0x1a08] ss:$16 sps:$4 sm:$0xff]  }
 0xaf9   : > { %11789 = vmatpush1.bf16.msra.mxu1 %v17244_v46  ;;  %v17330_v46 = vld [vmem:[%s22919_s14 + $0x1a24] ss:$16 sps:$4 sm:$0xff]  }
 0xafa   : > { %12477 = vmatpush1.bf16.msra.mxu0 %v17247_v9  ;;  %11790 = vmatprep.subr.bf16.mxu1 %v17252_v13  ;;  %v17333_v9 = vld [vmem:[%s22919_s14 + $0x1a2c] ss:$16 sps:$4 sm:$0xff]   ;;  %v17328_v13 = vld [vmem:[%s22919_s14 + $0x1a20] ss:$16 sps:$4 sm:$0xff]  }
 0xafb   : > { %12478 = vmatprep.subr.bf16.mxu0 %v17255_v44  ;;  %v17331_v44 = vld [vmem:[%s22919_s14 + $0x1a28] ss:$16 sps:$4 sm:$0xff]  }
 0xafd   : > { %11791 = vmatpush1.bf16.msra.mxu1 %v17250_v45  ;;  %v17336_v45 = vld [vmem:[%s22919_s14 + $0x1a44] ss:$16 sps:$4 sm:$0xff]  }
 0xafe   : > { %12479 = vmatpush1.bf16.msra.mxu0 %v17253_v50  ;;  %11792 = vmatprep.subr.bf16.mxu1 %v17258_v5  ;;  %v17334_v50 = vld [vmem:[%s22919_s14 + $0x1a40] ss:$16 sps:$4 sm:$0xff]   ;;  %v17337_v5 = vld [vmem:[%s22919_s14 + $0x1a48] ss:$16 sps:$4 sm:$0xff]  }
 0xaff   : > { %12480 = vmatprep.subr.bf16.mxu0 %v17261_v29  ;;  %v17345_v29 = vld [vmem:[%s22919_s14 + $0x1a6c] ss:$16 sps:$4 sm:$0xff]  }
 0xb01   : > { %11793 = vmatpush1.bf16.msra.mxu1 %v17256_v26  ;;  %v17340_v26 = vld [vmem:[%s22919_s14 + $0x1a60] ss:$16 sps:$4 sm:$0xff]  }
 0xb02   : > { %12481 = vmatpush1.bf16.msra.mxu0 %v17259_v54  ;;  %11794 = vmatprep.subr.bf16.mxu1 %v17264_v35  ;;  %v17343_v54 = vld [vmem:[%s22919_s14 + $0x1a68] ss:$16 sps:$4 sm:$0xff]   ;;  %v17348_v35 = vld [vmem:[%s22919_s14 + $0x1a84] ss:$16 sps:$4 sm:$0xff]  }
 0xb03   : > { %12482 = vmatprep.subr.bf16.mxu0 %v17267_v32  ;;  %v17351_v32 = vld [vmem:[%s22919_s14 + $0x1a8c] ss:$16 sps:$4 sm:$0xff]  }
 0xb05   : > { %11795 = vmatpush1.bf16.msra.mxu1 %v17262_v28  ;;  %v17346_v28 = vld [vmem:[%s22919_s14 + $0x1a80] ss:$16 sps:$4 sm:$0xff]  }
 0xb06   : > { %12483 = vmatpush1.bf16.msra.mxu0 %v17265_v53  ;;  %11796 = vmatprep.subr.bf16.mxu1 %v17270_v18  ;;  %v17349_v53 = vld [vmem:[%s22919_s14 + $0x1a88] ss:$16 sps:$4 sm:$0xff]   ;;  %v17354_v18 = vld [vmem:[%s22919_s14 + $0x1aa4] ss:$16 sps:$4 sm:$0xff]  }
 0xb07   : > { %12484 = vmatprep.subr.bf16.mxu0 %v17273_v37  ;;  %v17357_v37 = vld [vmem:[%s22919_s14 + $0x1aac] ss:$16 sps:$4 sm:$0xff]  }
 0xb09   : > { %11797 = vmatpush1.bf16.msra.mxu1 %v17268_v57  ;;  %v17352_v57 = vld [vmem:[%s22919_s14 + $0x1aa0] ss:$16 sps:$4 sm:$0xff]  }
 0xb0a   : > { %12485 = vmatpush1.bf16.msra.mxu0 %v17271_v55  ;;  %11798 = vmatprep.subr.bf16.mxu1 %v17276_v11  ;;  %v17355_v55 = vld [vmem:[%s22919_s14 + $0x1aa8] ss:$16 sps:$4 sm:$0xff]   ;;  %v17360_v11 = vld [vmem:[%s22919_s14 + $0x1ac4] ss:$16 sps:$4 sm:$0xff]  }
 0xb0b   : > { %12486 = vmatprep.subr.bf16.mxu0 %v17279_v21  ;;  %v17363_v21 = vld [vmem:[%s22919_s14 + $0x1acc] ss:$16 sps:$4 sm:$0xff]  }
 0xb0d   : > { %11799 = vmatpush1.bf16.msra.mxu1 %v17274_v62  ;;  %v17358_v62 = vld [vmem:[%s22919_s14 + $0x1ac0] ss:$16 sps:$4 sm:$0xff]  }
 0xb0e   : > { %12487 = vmatpush1.bf16.msra.mxu0 %v17277_v42  ;;  %11800 = vmatprep.subr.bf16.mxu1 %v17282_v15  ;;  %v17361_v42 = vld [vmem:[%s22919_s14 + $0x1ac8] ss:$16 sps:$4 sm:$0xff]   ;;  %v17366_v15 = vld [vmem:[%s22919_s14 + $0x1ae4] ss:$16 sps:$4 sm:$0xff]  }
 0xb0f   : > { %12488 = vmatprep.subr.bf16.mxu0 %v17285_v59  ;;  %v17369_v59 = vld [vmem:[%s22919_s14 + $0x1aec] ss:$16 sps:$4 sm:$0xff]  }
 0xb11   : > { %11801 = vmatpush1.bf16.msra.mxu1 %v17280_v31  ;;  %v17364_v31 = vld [vmem:[%s22919_s14 + $0x1ae0] ss:$16 sps:$4 sm:$0xff]  }
 0xb12   : > { %12489 = vmatpush1.bf16.msra.mxu0 %v17283_v40  ;;  %11802 = vmatprep.subr.bf16.mxu1 %v17288_v38  ;;  %v17367_v40 = vld [vmem:[%s22919_s14 + $0x1ae8] ss:$16 sps:$4 sm:$0xff]   ;;  %v17372_v38 = vld [vmem:[%s22919_s14 + $0x1b04] ss:$16 sps:$4 sm:$0xff]  }
 0xb13   : > { %12490 = vmatprep.subr.bf16.mxu0 %v17291_v52  ;;  %v17375_v52 = vld [vmem:[%s22919_s14 + $0x1b0c] ss:$16 sps:$4 sm:$0xff]  }
 0xb15   : > { %11803 = vmatpush1.bf16.msra.mxu1 %v17286_v6  ;;  %v17370_v6 = vld [vmem:[%s22919_s14 + $0x1b00] ss:$16 sps:$4 sm:$0xff]  }
 0xb16   : > { %12491 = vmatpush1.bf16.msra.mxu0 %v17289_v22  ;;  %11804 = vmatprep.subr.bf16.mxu1 %v17294_v16  ;;  %v17373_v22 = vld [vmem:[%s22919_s14 + $0x1b08] ss:$16 sps:$4 sm:$0xff]   ;;  %v17378_v16 = vld [vmem:[%s22919_s14 + $0x1b24] ss:$16 sps:$4 sm:$0xff]  }
 0xb17   : > { %12492 = vmatprep.subr.bf16.mxu0 %v17297_v12  ;;  %v17381_v12 = vld [vmem:[%s22919_s14 + $0x1b2c] ss:$16 sps:$4 sm:$0xff]  }
 0xb19   : > { %11805 = vmatpush1.bf16.msra.mxu1 %v17292_v4  ;;  %v17376_v4 = vld [vmem:[%s22919_s14 + $0x1b20] ss:$16 sps:$4 sm:$0xff]  }
 0xb1a   : > { %12493 = vmatpush1.bf16.msra.mxu0 %v17295_v7  ;;  %11806 = vmatprep.subr.bf16.mxu1 %v17300_v30  ;;  %v17379_v7 = vld [vmem:[%s22919_s14 + $0x1b28] ss:$16 sps:$4 sm:$0xff]   ;;  %v17384_v30 = vld [vmem:[%s22919_s14 + $0x1b44] ss:$16 sps:$4 sm:$0xff]  }
 0xb1b   : > { %12494 = vmatprep.subr.bf16.mxu0 %v17303_v56  ;;  %v17387_v56 = vld [vmem:[%s22919_s14 + $0x1b4c] ss:$16 sps:$4 sm:$0xff]  }
 0xb1d   : > { %11807 = vmatpush1.bf16.msra.mxu1 %v17298_v19  ;;  %v17382_v19 = vld [vmem:[%s22919_s14 + $0x1b40] ss:$16 sps:$4 sm:$0xff]  }
 0xb1e   : > { %12495 = vmatpush1.bf16.msra.mxu0 %v17301_v24  ;;  %11808 = vmatprep.subr.bf16.mxu1 %v17306_v23  ;;  %v17385_v24 = vld [vmem:[%s22919_s14 + $0x1b48] ss:$16 sps:$4 sm:$0xff]   ;;  %v17390_v23 = vld [vmem:[%s22919_s14 + $0x1b64] ss:$16 sps:$4 sm:$0xff]  }
 0xb1f   : > { %12496 = vmatprep.subr.bf16.mxu0 %v17309_v2  ;;  %v17393_v2 = vld [vmem:[%s22919_s14 + $0x1b6c] ss:$16 sps:$4 sm:$0xff]  }
 0xb21   : > { %11809 = vmatpush1.bf16.msra.mxu1 %v17304_v27  ;;  %v17388_v27 = vld [vmem:[%s22919_s14 + $0x1b60] ss:$16 sps:$4 sm:$0xff]  }
 0xb22   : > { %12497 = vmatpush1.bf16.msra.mxu0 %v17307_v25  ;;  %11810 = vmatprep.subr.bf16.mxu1 %v17312_v10  ;;  %v17391_v25 = vld [vmem:[%s22919_s14 + $0x1b68] ss:$16 sps:$4 sm:$0xff]   ;;  %v17396_v10 = vld [vmem:[%s22919_s14 + $0x1b84] ss:$16 sps:$4 sm:$0xff]  }
 0xb23   : > { %12498 = vmatprep.subr.bf16.mxu0 %v17315_v48  ;;  %v17399_v48 = vld [vmem:[%s22919_s14 + $0x1b8c] ss:$16 sps:$4 sm:$0xff]  }
 0xb25   : > { %11811 = vmatpush1.bf16.msra.mxu1 %v17310_v36  ;;  %v17394_v36 = vld [vmem:[%s22919_s14 + $0x1b80] ss:$16 sps:$4 sm:$0xff]  }
 0xb26   : > { %12499 = vmatpush1.bf16.msra.mxu0 %v17313_v63  ;;  %11812 = vmatprep.subr.bf16.mxu1 %v17318_v43  ;;  %v17397_v63 = vld [vmem:[%s22919_s14 + $0x1b88] ss:$16 sps:$4 sm:$0xff]   ;;  %v17402_v43 = vld [vmem:[%s22919_s14 + $0x1ba4] ss:$16 sps:$4 sm:$0xff]  }
 0xb27   : > { %12500 = vmatprep.subr.bf16.mxu0 %v17321_v51  ;;  %v17405_v51 = vld [vmem:[%s22919_s14 + $0x1bac] ss:$16 sps:$4 sm:$0xff]  }
 0xb29   : > { %11813 = vmatpush1.bf16.msra.mxu1 %v17316_v33  ;;  %v17400_v33 = vld [vmem:[%s22919_s14 + $0x1ba0] ss:$16 sps:$4 sm:$0xff]  }
 0xb2a   : > { %12501 = vmatpush1.bf16.msra.mxu0 %v17319_v49  ;;  %11825 = vmatprep.subr.bf16.mxu1 %v17324_v47  ;;  %v17403_v49 = vld [vmem:[%s22919_s14 + $0x1ba8] ss:$16 sps:$4 sm:$0xff]   ;;  %v17408_v47 = vld [vmem:[%s22919_s14 + $0x1bc4] ss:$16 sps:$4 sm:$0xff]  }
 0xb2b   : > { %12513 = vmatprep.subr.bf16.mxu0 %v17327_v3  ;;  %v17411_v3 = vld [vmem:[%s22919_s14 + $0x1bcc] ss:$16 sps:$4 sm:$0xff]  }
 0xb2c   : > { %11815 = vmatmul.mubr.bf16.vlgmr.msra.gmra.mrb[184].mxu1 %v19967_v14 }
 0xb2d   : > { %12503 = vmatmul.mubr.bf16.vlgmr.msra.gmra.mrb[28].mxu0 %v19967_v14  ;;  %11826 = vmatpush1.bf16.msra.mxu1 %v17322_v58  ;;  %v17339_v14 = vld [vmem:[%s22919_s14 + $0x1a4c] ss:$16 sps:$4 sm:$0xff]   ;;  %v17406_v58 = vld [vmem:[%s22919_s14 + $0x1bc0] ss:$16 sps:$4 sm:$0xff]  }
 0xb2e   : > { %11857 = vmatprep.mubr.bf16.mxu1 %v20003_v0  ;;  %12514 = vmatpush1.bf16.msra.mxu0 %v17325_v34  ;;  %v17409_v34 = vld [vmem:[%s22919_s14 + $0x1bc8] ss:$16 sps:$4 sm:$0xff]  }
 0xb2f   : > { %12545 = vmatprep.mubr.bf16.mxu0 %v20003_v0  ;;  %11827 = vmatprep.subr.bf16.mxu1 %v17330_v46  ;;  %v17342_v0 = vld [vmem:[%s22919_s14 + $0x1a64] ss:$16 sps:$4 sm:$0xff]  }
 0xb30   : > { %12515 = vmatprep.subr.bf16.mxu0 %v17333_v9  ;;  %v17414_v46 = vld [vmem:[%s22919_s14 + $0x1be4] ss:$16 sps:$4 sm:$0xff]   ;;  %v17417_v9 = vld [vmem:[%s22919_s14 + $0x1bec] ss:$16 sps:$4 sm:$0xff]  }
 0xb31   : > { %11828 = vmatpush1.bf16.msra.mxu1 %v17328_v13  ;;  %v17412_v13 = vld [vmem:[%s22919_s14 + $0x1be0] ss:$16 sps:$4 sm:$0xff]  }
 0xb32   : > { %12516 = vmatpush1.bf16.msra.mxu0 %v17331_v44  ;;  %11829 = vmatprep.subr.bf16.mxu1 %v17336_v45  ;;  %v17415_v44 = vld [vmem:[%s22919_s14 + $0x1be8] ss:$16 sps:$4 sm:$0xff]   ;;  %v17420_v45 = vld [vmem:[%s22919_s14 + $0x1c04] ss:$16 sps:$4 sm:$0xff]  }
 0xb33   : > { %12517 = vmatprep.subr.bf16.mxu0 %v17339_v14  ;;  %v17423_v14 = vld [vmem:[%s22919_s14 + $0x1c0c] ss:$16 sps:$4 sm:$0xff]  }
 0xb35   : > { %11830 = vmatpush1.bf16.msra.mxu1 %v17334_v50  ;;  %v17418_v50 = vld [vmem:[%s22919_s14 + $0x1c00] ss:$16 sps:$4 sm:$0xff]  }
 0xb36   : > { %12518 = vmatpush1.bf16.msra.mxu0 %v17337_v5  ;;  %11831 = vmatprep.subr.bf16.mxu1 %v17342_v0  ;;  %v17421_v5 = vld [vmem:[%s22919_s14 + $0x1c08] ss:$16 sps:$4 sm:$0xff]   ;;  %v17426_v0 = vld [vmem:[%s22919_s14 + $0x1c24] ss:$16 sps:$4 sm:$0xff]  }
 0xb37   : > { %12519 = vmatprep.subr.bf16.mxu0 %v17345_v29  ;;  %v17429_v29 = vld [vmem:[%s22919_s14 + $0x1c2c] ss:$16 sps:$4 sm:$0xff]  }
 0xb39   : > { %11832 = vmatpush1.bf16.msra.mxu1 %v17340_v26  ;;  %v17424_v26 = vld [vmem:[%s22919_s14 + $0x1c20] ss:$16 sps:$4 sm:$0xff]  }
 0xb3a   : > { %12520 = vmatpush1.bf16.msra.mxu0 %v17343_v54  ;;  %11833 = vmatprep.subr.bf16.mxu1 %v17348_v35  ;;  %v17427_v54 = vld [vmem:[%s22919_s14 + $0x1c28] ss:$16 sps:$4 sm:$0xff]   ;;  %v17432_v35 = vld [vmem:[%s22919_s14 + $0x1c44] ss:$16 sps:$4 sm:$0xff]  }
 0xb3b   : > { %12521 = vmatprep.subr.bf16.mxu0 %v17351_v32  ;;  %v17430_v32 = vld [vmem:[%s22919_s14 + $0x1c40] ss:$16 sps:$4 sm:$0xff]  }
 0xb3d   : > { %11834 = vmatpush1.bf16.msra.mxu1 %v17346_v28  ;;  %v17433_v28 = vld [vmem:[%s22919_s14 + $0x1c48] ss:$16 sps:$4 sm:$0xff]  }
 0xb3e   : > { %12522 = vmatpush1.bf16.msra.mxu0 %v17349_v53  ;;  %11835 = vmatprep.subr.bf16.mxu1 %v17354_v18  ;;  %v17441_v53 = vld [vmem:[%s22919_s14 + $0x1c6c] ss:$16 sps:$4 sm:$0xff]   ;;  %v17436_v18 = vld [vmem:[%s22919_s14 + $0x1c60] ss:$16 sps:$4 sm:$0xff]  }
 0xb3f   : > { %12523 = vmatprep.subr.bf16.mxu0 %v17357_v37  ;;  %v17439_v37 = vld [vmem:[%s22919_s14 + $0x1c68] ss:$16 sps:$4 sm:$0xff]  }
 0xb41   : > { %11836 = vmatpush1.bf16.msra.mxu1 %v17352_v57  ;;  %v17444_v57 = vld [vmem:[%s22919_s14 + $0x1c84] ss:$16 sps:$4 sm:$0xff]  }
 0xb42   : > { %12524 = vmatpush1.bf16.msra.mxu0 %v17355_v55  ;;  %11837 = vmatprep.subr.bf16.mxu1 %v17360_v11  ;;  %v17447_v55 = vld [vmem:[%s22919_s14 + $0x1c8c] ss:$16 sps:$4 sm:$0xff]   ;;  %v17442_v11 = vld [vmem:[%s22919_s14 + $0x1c80] ss:$16 sps:$4 sm:$0xff]  }
 0xb43   : > { %12525 = vmatprep.subr.bf16.mxu0 %v17363_v21  ;;  %v17445_v21 = vld [vmem:[%s22919_s14 + $0x1c88] ss:$16 sps:$4 sm:$0xff]  }
 0xb45   : > { %11838 = vmatpush1.bf16.msra.mxu1 %v17358_v62  ;;  %v17450_v62 = vld [vmem:[%s22919_s14 + $0x1ca4] ss:$16 sps:$4 sm:$0xff]  }
 0xb46   : > { %12526 = vmatpush1.bf16.msra.mxu0 %v17361_v42  ;;  %11839 = vmatprep.subr.bf16.mxu1 %v17366_v15  ;;  %v17453_v42 = vld [vmem:[%s22919_s14 + $0x1cac] ss:$16 sps:$4 sm:$0xff]   ;;  %v17448_v15 = vld [vmem:[%s22919_s14 + $0x1ca0] ss:$16 sps:$4 sm:$0xff]  }
 0xb47   : > { %12527 = vmatprep.subr.bf16.mxu0 %v17369_v59  ;;  %v17451_v59 = vld [vmem:[%s22919_s14 + $0x1ca8] ss:$16 sps:$4 sm:$0xff]  }
 0xb49   : > { %11840 = vmatpush1.bf16.msra.mxu1 %v17364_v31  ;;  %v17456_v31 = vld [vmem:[%s22919_s14 + $0x1cc4] ss:$16 sps:$4 sm:$0xff]  }
 0xb4a   : > { %12528 = vmatpush1.bf16.msra.mxu0 %v17367_v40  ;;  %11841 = vmatprep.subr.bf16.mxu1 %v17372_v38  ;;  %v17459_v40 = vld [vmem:[%s22919_s14 + $0x1ccc] ss:$16 sps:$4 sm:$0xff]   ;;  %v17454_v38 = vld [vmem:[%s22919_s14 + $0x1cc0] ss:$16 sps:$4 sm:$0xff]  }
 0xb4b   : > { %12529 = vmatprep.subr.bf16.mxu0 %v17375_v52  ;;  %v17457_v52 = vld [vmem:[%s22919_s14 + $0x1cc8] ss:$16 sps:$4 sm:$0xff]  }
 0xb4d   : > { %11842 = vmatpush1.bf16.msra.mxu1 %v17370_v6  ;;  %v17462_v6 = vld [vmem:[%s22919_s14 + $0x1ce4] ss:$16 sps:$4 sm:$0xff]  }
 0xb4e   : > { %12530 = vmatpush1.bf16.msra.mxu0 %v17373_v22  ;;  %11843 = vmatprep.subr.bf16.mxu1 %v17378_v16  ;;  %v17465_v22 = vld [vmem:[%s22919_s14 + $0x1cec] ss:$16 sps:$4 sm:$0xff]   ;;  %v17460_v16 = vld [vmem:[%s22919_s14 + $0x1ce0] ss:$16 sps:$4 sm:$0xff]  }
 0xb4f   : > { %12531 = vmatprep.subr.bf16.mxu0 %v17381_v12  ;;  %v17463_v12 = vld [vmem:[%s22919_s14 + $0x1ce8] ss:$16 sps:$4 sm:$0xff]  }
 0xb51   : > { %11844 = vmatpush1.bf16.msra.mxu1 %v17376_v4  ;;  %v17468_v4 = vld [vmem:[%s22919_s14 + $0x1d04] ss:$16 sps:$4 sm:$0xff]  }
 0xb52   : > { %12532 = vmatpush1.bf16.msra.mxu0 %v17379_v7  ;;  %11845 = vmatprep.subr.bf16.mxu1 %v17384_v30  ;;  %v17471_v7 = vld [vmem:[%s22919_s14 + $0x1d0c] ss:$16 sps:$4 sm:$0xff]   ;;  %v17466_v30 = vld [vmem:[%s22919_s14 + $0x1d00] ss:$16 sps:$4 sm:$0xff]  }
 0xb53   : > { %12533 = vmatprep.subr.bf16.mxu0 %v17387_v56  ;;  %v17469_v56 = vld [vmem:[%s22919_s14 + $0x1d08] ss:$16 sps:$4 sm:$0xff]  }
 0xb55   : > { %11846 = vmatpush1.bf16.msra.mxu1 %v17382_v19  ;;  %v17474_v19 = vld [vmem:[%s22919_s14 + $0x1d24] ss:$16 sps:$4 sm:$0xff]  }
 0xb56   : > { %12534 = vmatpush1.bf16.msra.mxu0 %v17385_v24  ;;  %11847 = vmatprep.subr.bf16.mxu1 %v17390_v23  ;;  %v17477_v24 = vld [vmem:[%s22919_s14 + $0x1d2c] ss:$16 sps:$4 sm:$0xff]   ;;  %v17472_v23 = vld [vmem:[%s22919_s14 + $0x1d20] ss:$16 sps:$4 sm:$0xff]  }
 0xb57   : > { %12535 = vmatprep.subr.bf16.mxu0 %v17393_v2  ;;  %v17475_v2 = vld [vmem:[%s22919_s14 + $0x1d28] ss:$16 sps:$4 sm:$0xff]  }
 0xb59   : > { %11848 = vmatpush1.bf16.msra.mxu1 %v17388_v27  ;;  %v17480_v27 = vld [vmem:[%s22919_s14 + $0x1d44] ss:$16 sps:$4 sm:$0xff]  }
 0xb5a   : > { %12536 = vmatpush1.bf16.msra.mxu0 %v17391_v25  ;;  %11849 = vmatprep.subr.bf16.mxu1 %v17396_v10  ;;  %v17483_v25 = vld [vmem:[%s22919_s14 + $0x1d4c] ss:$16 sps:$4 sm:$0xff]   ;;  %v17478_v10 = vld [vmem:[%s22919_s14 + $0x1d40] ss:$16 sps:$4 sm:$0xff]  }
 0xb5b   : > { %12537 = vmatprep.subr.bf16.mxu0 %v17399_v48  ;;  %v17481_v48 = vld [vmem:[%s22919_s14 + $0x1d48] ss:$16 sps:$4 sm:$0xff]  }
 0xb5d   : > { %11850 = vmatpush1.bf16.msra.mxu1 %v17394_v36  ;;  %v17486_v36 = vld [vmem:[%s22919_s14 + $0x1d64] ss:$16 sps:$4 sm:$0xff]  }
 0xb5e   : > { %12538 = vmatpush1.bf16.msra.mxu0 %v17397_v63  ;;  %11851 = vmatprep.subr.bf16.mxu1 %v17402_v43  ;;  %v17489_v63 = vld [vmem:[%s22919_s14 + $0x1d6c] ss:$16 sps:$4 sm:$0xff]   ;;  %v17484_v43 = vld [vmem:[%s22919_s14 + $0x1d60] ss:$16 sps:$4 sm:$0xff]  }
 0xb5f   : > { %12539 = vmatprep.subr.bf16.mxu0 %v17405_v51  ;;  %v17487_v51 = vld [vmem:[%s22919_s14 + $0x1d68] ss:$16 sps:$4 sm:$0xff]  }
 0xb61   : > { %11852 = vmatpush1.bf16.msra.mxu1 %v17400_v33  ;;  %v17492_v33 = vld [vmem:[%s22919_s14 + $0x1d84] ss:$16 sps:$4 sm:$0xff]  }
 0xb62   : > { %12540 = vmatpush1.bf16.msra.mxu0 %v17403_v49  ;;  %11853 = vmatprep.subr.bf16.mxu1 %v17408_v47  ;;  %v17495_v49 = vld [vmem:[%s22919_s14 + $0x1d8c] ss:$16 sps:$4 sm:$0xff]   ;;  %v17490_v47 = vld [vmem:[%s22919_s14 + $0x1d80] ss:$16 sps:$4 sm:$0xff]  }
 0xb63   : > { %12541 = vmatprep.subr.bf16.mxu0 %v17411_v3  ;;  %v17493_v3 = vld [vmem:[%s22919_s14 + $0x1d88] ss:$16 sps:$4 sm:$0xff]  }
 0xb65   : > { %11854 = vmatpush1.bf16.msra.mxu1 %v17406_v58  ;;  %v17498_v58 = vld [vmem:[%s22919_s14 + $0x1da4] ss:$16 sps:$4 sm:$0xff]  }
 0xb66   : > { %12542 = vmatpush1.bf16.msra.mxu0 %v17409_v34  ;;  %11855 = vmatprep.subr.bf16.mxu1 %v17414_v46  ;;  %v17501_v34 = vld [vmem:[%s22919_s14 + $0x1dac] ss:$16 sps:$4 sm:$0xff]   ;;  %v17496_v46 = vld [vmem:[%s22919_s14 + $0x1da0] ss:$16 sps:$4 sm:$0xff]  }
 0xb67   : > { %12543 = vmatprep.subr.bf16.mxu0 %v17417_v9  ;;  %v17499_v9 = vld [vmem:[%s22919_s14 + $0x1da8] ss:$16 sps:$4 sm:$0xff]  }
 0xb69   : > { %11856 = vmatpush1.bf16.msra.mxu1 %v17412_v13  ;;  %v17504_v13 = vld [vmem:[%s22919_s14 + $0x1dc4] ss:$16 sps:$4 sm:$0xff]  }
 0xb6a   : > { %12544 = vmatpush1.bf16.msra.mxu0 %v17415_v44  ;;  %11868 = vmatprep.subr.bf16.mxu1 %v17420_v45  ;;  %v17507_v44 = vld [vmem:[%s22919_s14 + $0x1dcc] ss:$16 sps:$4 sm:$0xff]   ;;  %v17502_v45 = vld [vmem:[%s22919_s14 + $0x1dc0] ss:$16 sps:$4 sm:$0xff]  }
 0xb6b   : > { %12556 = vmatprep.subr.bf16.mxu0 %v17423_v14  ;;  %v17505_v14 = vld [vmem:[%s22919_s14 + $0x1dc8] ss:$16 sps:$4 sm:$0xff]  }
 0xb6c   : > { %11858 = vmatmul.mubr.bf16.vlgmr.msra.gmra.mrb[184].mxu1 %v19995_v8 }
 0xb6d   : > { %12546 = vmatmul.mubr.bf16.vlgmr.msra.gmra.mrb[28].mxu0 %v19995_v8  ;;  %11869 = vmatpush1.bf16.msra.mxu1 %v17418_v50  ;;  %v17435_v8 = vld [vmem:[%s22919_s14 + $0x1c4c] ss:$16 sps:$4 sm:$0xff]   ;;  %v17510_v50 = vld [vmem:[%s22919_s14 + $0x1de4] ss:$16 sps:$4 sm:$0xff]  }
 0xb6e   : > { %11900 = vmatprep.mubr.bf16.mxu1 %v20031_v60  ;;  %12557 = vmatpush1.bf16.msra.mxu0 %v17421_v5  ;;  %v17513_v5 = vld [vmem:[%s22919_s14 + $0x1dec] ss:$16 sps:$4 sm:$0xff]  }
 0xb6f   : > { %12588 = vmatprep.mubr.bf16.mxu0 %v20031_v60  ;;  %11870 = vmatprep.subr.bf16.mxu1 %v17426_v0  ;;  %v17438_v60 = vld [vmem:[%s22919_s14 + $0x1c64] ss:$16 sps:$4 sm:$0xff]   ;;  %v17508_v0 = vld [vmem:[%s22919_s14 + $0x1de0] ss:$16 sps:$4 sm:$0xff]  }
 0xb70   : > { %12558 = vmatprep.subr.bf16.mxu0 %v17429_v29  ;;  %v17511_v29 = vld [vmem:[%s22919_s14 + $0x1de8] ss:$16 sps:$4 sm:$0xff]  }
 0xb71   : > { %11871 = vmatpush1.bf16.msra.mxu1 %v17424_v26  ;;  %v17516_v26 = vld [vmem:[%s22919_s14 + $0x1e04] ss:$16 sps:$4 sm:$0xff]  }
 0xb72   : > { %12559 = vmatpush1.bf16.msra.mxu0 %v17427_v54  ;;  %11872 = vmatprep.subr.bf16.mxu1 %v17432_v35  ;;  %v17519_v54 = vld [vmem:[%s22919_s14 + $0x1e0c] ss:$16 sps:$4 sm:$0xff]   ;;  %v17514_v35 = vld [vmem:[%s22919_s14 + $0x1e00] ss:$16 sps:$4 sm:$0xff]  }
 0xb73   : > { %12560 = vmatprep.subr.bf16.mxu0 %v17435_v8  ;;  %v17517_v8 = vld [vmem:[%s22919_s14 + $0x1e08] ss:$16 sps:$4 sm:$0xff]  }
 0xb75   : > { %11873 = vmatpush1.bf16.msra.mxu1 %v17430_v32  ;;  %v17522_v32 = vld [vmem:[%s22919_s14 + $0x1e24] ss:$16 sps:$4 sm:$0xff]  }
 0xb76   : > { %12561 = vmatpush1.bf16.msra.mxu0 %v17433_v28  ;;  %11874 = vmatprep.subr.bf16.mxu1 %v17438_v60  ;;  %v17525_v28 = vld [vmem:[%s22919_s14 + $0x1e2c] ss:$16 sps:$4 sm:$0xff]   ;;  %v17520_v60 = vld [vmem:[%s22919_s14 + $0x1e20] ss:$16 sps:$4 sm:$0xff]  }
 0xb77   : > { %12562 = vmatprep.subr.bf16.mxu0 %v17441_v53  ;;  %v17523_v53 = vld [vmem:[%s22919_s14 + $0x1e28] ss:$16 sps:$4 sm:$0xff]  }
 0xb79   : > { %11875 = vmatpush1.bf16.msra.mxu1 %v17436_v18  ;;  %v17528_v18 = vld [vmem:[%s22919_s14 + $0x1e44] ss:$16 sps:$4 sm:$0xff]  }
 0xb7a   : > { %12563 = vmatpush1.bf16.msra.mxu0 %v17439_v37  ;;  %11876 = vmatprep.subr.bf16.mxu1 %v17444_v57  ;;  %v17526_v37 = vld [vmem:[%s22919_s14 + $0x1e40] ss:$16 sps:$4 sm:$0xff]   ;;  %v17529_v57 = vld [vmem:[%s22919_s14 + $0x1e48] ss:$16 sps:$4 sm:$0xff]  }
 0xb7b   : > { %12564 = vmatprep.subr.bf16.mxu0 %v17447_v55  ;;  %v17537_v55 = vld [vmem:[%s22919_s14 + $0x1e6c] ss:$16 sps:$4 sm:$0xff]  }
 0xb7d   : > { %11877 = vmatpush1.bf16.msra.mxu1 %v17442_v11  ;;  %v17532_v11 = vld [vmem:[%s22919_s14 + $0x1e60] ss:$16 sps:$4 sm:$0xff]  }
 0xb7e   : > { %12565 = vmatpush1.bf16.msra.mxu0 %v17445_v21  ;;  %11878 = vmatprep.subr.bf16.mxu1 %v17450_v62  ;;  %v17535_v21 = vld [vmem:[%s22919_s14 + $0x1e68] ss:$16 sps:$4 sm:$0xff]   ;;  %v17540_v62 = vld [vmem:[%s22919_s14 + $0x1e84] ss:$16 sps:$4 sm:$0xff]  }
 0xb7f   : > { %12566 = vmatprep.subr.bf16.mxu0 %v17453_v42  ;;  %v17543_v42 = vld [vmem:[%s22919_s14 + $0x1e8c] ss:$16 sps:$4 sm:$0xff]  }
 0xb81   : > { %11879 = vmatpush1.bf16.msra.mxu1 %v17448_v15  ;;  %v17538_v15 = vld [vmem:[%s22919_s14 + $0x1e80] ss:$16 sps:$4 sm:$0xff]  }
 0xb82   : > { %12567 = vmatpush1.bf16.msra.mxu0 %v17451_v59  ;;  %11880 = vmatprep.subr.bf16.mxu1 %v17456_v31  ;;  %v17541_v59 = vld [vmem:[%s22919_s14 + $0x1e88] ss:$16 sps:$4 sm:$0xff]   ;;  %v17546_v31 = vld [vmem:[%s22919_s14 + $0x1ea4] ss:$16 sps:$4 sm:$0xff]  }
 0xb83   : > { %12568 = vmatprep.subr.bf16.mxu0 %v17459_v40  ;;  %v17549_v40 = vld [vmem:[%s22919_s14 + $0x1eac] ss:$16 sps:$4 sm:$0xff]  }
 0xb85   : > { %11881 = vmatpush1.bf16.msra.mxu1 %v17454_v38  ;;  %v17544_v38 = vld [vmem:[%s22919_s14 + $0x1ea0] ss:$16 sps:$4 sm:$0xff]  }
 0xb86   : > { %12569 = vmatpush1.bf16.msra.mxu0 %v17457_v52  ;;  %11882 = vmatprep.subr.bf16.mxu1 %v17462_v6  ;;  %v17547_v52 = vld [vmem:[%s22919_s14 + $0x1ea8] ss:$16 sps:$4 sm:$0xff]   ;;  %v17552_v6 = vld [vmem:[%s22919_s14 + $0x1ec4] ss:$16 sps:$4 sm:$0xff]  }
 0xb87   : > { %12570 = vmatprep.subr.bf16.mxu0 %v17465_v22  ;;  %v17555_v22 = vld [vmem:[%s22919_s14 + $0x1ecc] ss:$16 sps:$4 sm:$0xff]  }
 0xb89   : > { %11883 = vmatpush1.bf16.msra.mxu1 %v17460_v16  ;;  %v17550_v16 = vld [vmem:[%s22919_s14 + $0x1ec0] ss:$16 sps:$4 sm:$0xff]  }
 0xb8a   : > { %12571 = vmatpush1.bf16.msra.mxu0 %v17463_v12  ;;  %11884 = vmatprep.subr.bf16.mxu1 %v17468_v4  ;;  %v17553_v12 = vld [vmem:[%s22919_s14 + $0x1ec8] ss:$16 sps:$4 sm:$0xff]   ;;  %v17558_v4 = vld [vmem:[%s22919_s14 + $0x1ee4] ss:$16 sps:$4 sm:$0xff]  }
 0xb8b   : > { %12572 = vmatprep.subr.bf16.mxu0 %v17471_v7  ;;  %v17561_v7 = vld [vmem:[%s22919_s14 + $0x1eec] ss:$16 sps:$4 sm:$0xff]  }
 0xb8d   : > { %11885 = vmatpush1.bf16.msra.mxu1 %v17466_v30  ;;  %v17556_v30 = vld [vmem:[%s22919_s14 + $0x1ee0] ss:$16 sps:$4 sm:$0xff]  }
 0xb8e   : > { %12573 = vmatpush1.bf16.msra.mxu0 %v17469_v56  ;;  %11886 = vmatprep.subr.bf16.mxu1 %v17474_v19  ;;  %v17559_v56 = vld [vmem:[%s22919_s14 + $0x1ee8] ss:$16 sps:$4 sm:$0xff]   ;;  %v17564_v19 = vld [vmem:[%s22919_s14 + $0x1f04] ss:$16 sps:$4 sm:$0xff]  }
 0xb8f   : > { %12574 = vmatprep.subr.bf16.mxu0 %v17477_v24  ;;  %v17567_v24 = vld [vmem:[%s22919_s14 + $0x1f0c] ss:$16 sps:$4 sm:$0xff]  }
 0xb91   : > { %11887 = vmatpush1.bf16.msra.mxu1 %v17472_v23  ;;  %v17562_v23 = vld [vmem:[%s22919_s14 + $0x1f00] ss:$16 sps:$4 sm:$0xff]  }
 0xb92   : > { %12575 = vmatpush1.bf16.msra.mxu0 %v17475_v2  ;;  %11888 = vmatprep.subr.bf16.mxu1 %v17480_v27  ;;  %v17565_v2 = vld [vmem:[%s22919_s14 + $0x1f08] ss:$16 sps:$4 sm:$0xff]   ;;  %v17570_v27 = vld [vmem:[%s22919_s14 + $0x1f24] ss:$16 sps:$4 sm:$0xff]  }
 0xb93   : > { %12576 = vmatprep.subr.bf16.mxu0 %v17483_v25  ;;  %v17573_v25 = vld [vmem:[%s22919_s14 + $0x1f2c] ss:$16 sps:$4 sm:$0xff]  }
 0xb95   : > { %11889 = vmatpush1.bf16.msra.mxu1 %v17478_v10  ;;  %v17568_v10 = vld [vmem:[%s22919_s14 + $0x1f20] ss:$16 sps:$4 sm:$0xff]  }
 0xb96   : > { %12577 = vmatpush1.bf16.msra.mxu0 %v17481_v48  ;;  %11890 = vmatprep.subr.bf16.mxu1 %v17486_v36  ;;  %v17571_v48 = vld [vmem:[%s22919_s14 + $0x1f28] ss:$16 sps:$4 sm:$0xff]   ;;  %v17576_v36 = vld [vmem:[%s22919_s14 + $0x1f44] ss:$16 sps:$4 sm:$0xff]  }
 0xb97   : > { %12578 = vmatprep.subr.bf16.mxu0 %v17489_v63  ;;  %v17579_v63 = vld [vmem:[%s22919_s14 + $0x1f4c] ss:$16 sps:$4 sm:$0xff]  }
 0xb99   : > { %11891 = vmatpush1.bf16.msra.mxu1 %v17484_v43  ;;  %v17574_v43 = vld [vmem:[%s22919_s14 + $0x1f40] ss:$16 sps:$4 sm:$0xff]  }
 0xb9a   : > { %12579 = vmatpush1.bf16.msra.mxu0 %v17487_v51  ;;  %11892 = vmatprep.subr.bf16.mxu1 %v17492_v33  ;;  %v17577_v51 = vld [vmem:[%s22919_s14 + $0x1f48] ss:$16 sps:$4 sm:$0xff]   ;;  %v17582_v33 = vld [vmem:[%s22919_s14 + $0x1f64] ss:$16 sps:$4 sm:$0xff]  }
 0xb9b   : > { %12580 = vmatprep.subr.bf16.mxu0 %v17495_v49  ;;  %v17585_v49 = vld [vmem:[%s22919_s14 + $0x1f6c] ss:$16 sps:$4 sm:$0xff]  }
 0xb9d   : > { %11893 = vmatpush1.bf16.msra.mxu1 %v17490_v47  ;;  %v17580_v47 = vld [vmem:[%s22919_s14 + $0x1f60] ss:$16 sps:$4 sm:$0xff]  }
 0xb9e   : > { %12581 = vmatpush1.bf16.msra.mxu0 %v17493_v3  ;;  %11894 = vmatprep.subr.bf16.mxu1 %v17498_v58  ;;  %v17583_v3 = vld [vmem:[%s22919_s14 + $0x1f68] ss:$16 sps:$4 sm:$0xff]   ;;  %v17588_v58 = vld [vmem:[%s22919_s14 + $0x1f84] ss:$16 sps:$4 sm:$0xff]  }
 0xb9f   : > { %12582 = vmatprep.subr.bf16.mxu0 %v17501_v34  ;;  %v17591_v34 = vld [vmem:[%s22919_s14 + $0x1f8c] ss:$16 sps:$4 sm:$0xff]  }
 0xba1   : > { %11895 = vmatpush1.bf16.msra.mxu1 %v17496_v46  ;;  %v17586_v46 = vld [vmem:[%s22919_s14 + $0x1f80] ss:$16 sps:$4 sm:$0xff]  }
 0xba2   : > { %12583 = vmatpush1.bf16.msra.mxu0 %v17499_v9  ;;  %11896 = vmatprep.subr.bf16.mxu1 %v17504_v13  ;;  %v17589_v9 = vld [vmem:[%s22919_s14 + $0x1f88] ss:$16 sps:$4 sm:$0xff]   ;;  %v17594_v13 = vld [vmem:[%s22919_s14 + $0x1fa4] ss:$16 sps:$4 sm:$0xff]  }
 0xba3   : > { %12584 = vmatprep.subr.bf16.mxu0 %v17507_v44  ;;  %v17597_v44 = vld [vmem:[%s22919_s14 + $0x1fac] ss:$16 sps:$4 sm:$0xff]  }
 0xba5   : > { %11897 = vmatpush1.bf16.msra.mxu1 %v17502_v45  ;;  %v17592_v45 = vld [vmem:[%s22919_s14 + $0x1fa0] ss:$16 sps:$4 sm:$0xff]  }
 0xba6   : > { %12585 = vmatpush1.bf16.msra.mxu0 %v17505_v14  ;;  %11898 = vmatprep.subr.bf16.mxu1 %v17510_v50  ;;  %v17595_v14 = vld [vmem:[%s22919_s14 + $0x1fa8] ss:$16 sps:$4 sm:$0xff]   ;;  %v17600_v50 = vld [vmem:[%s22919_s14 + $0x1fc4] ss:$16 sps:$4 sm:$0xff]  }
 0xba7   : > { %12586 = vmatprep.subr.bf16.mxu0 %v17513_v5  ;;  %v17603_v5 = vld [vmem:[%s22919_s14 + $0x1fcc] ss:$16 sps:$4 sm:$0xff]  }
 0xba9   : > { %11899 = vmatpush1.bf16.msra.mxu1 %v17508_v0  ;;  %v17598_v0 = vld [vmem:[%s22919_s14 + $0x1fc0] ss:$16 sps:$4 sm:$0xff]  }
 0xbaa   : > { %12587 = vmatpush1.bf16.msra.mxu0 %v17511_v29  ;;  %11911 = vmatprep.subr.bf16.mxu1 %v17516_v26  ;;  %v17601_v29 = vld [vmem:[%s22919_s14 + $0x1fc8] ss:$16 sps:$4 sm:$0xff]   ;;  %v17606_v26 = vld [vmem:[%s22919_s14 + $0x1fe4] ss:$16 sps:$4 sm:$0xff]  }
 0xbab   : > { %12599 = vmatprep.subr.bf16.mxu0 %v17519_v54  ;;  %v17609_v54 = vld [vmem:[%s22919_s14 + $0x1fec] ss:$16 sps:$4 sm:$0xff]  }
 0xbac   : > { %11901 = vmatmul.mubr.bf16.vlgmr.msra.gmra.mrb[184].mxu1 %v20023_v41 }
 0xbad   : > { %12589 = vmatmul.mubr.bf16.vlgmr.msra.gmra.mrb[28].mxu0 %v20023_v41  ;;  %11912 = vmatpush1.bf16.msra.mxu1 %v17514_v35  ;;  %v17531_v41 = vld [vmem:[%s22919_s14 + $0x1e4c] ss:$16 sps:$4 sm:$0xff]   ;;  %v17604_v35 = vld [vmem:[%s22919_s14 + $0x1fe0] ss:$16 sps:$4 sm:$0xff]  }
 0xbae   : > { %11943 = vmatprep.mubr.bf16.mxu1 %v20059_v39  ;;  %12600 = vmatpush1.bf16.msra.mxu0 %v17517_v8  ;;  %v17607_v8 = vld [vmem:[%s22919_s14 + $0x1fe8] ss:$16 sps:$4 sm:$0xff]  }
 0xbaf   : > { %12631 = vmatprep.mubr.bf16.mxu0 %v20059_v39  ;;  %11913 = vmatprep.subr.bf16.mxu1 %v17522_v32  ;;  %v17534_v39 = vld [vmem:[%s22919_s14 + $0x1e64] ss:$16 sps:$4 sm:$0xff]  }
 0xbb0   : > { %12601 = vmatprep.subr.bf16.mxu0 %v17525_v28  ;;  %v17610_v32 = vld [vmem:[%s22923_s18 + $0x40] sm:$0xff]  }
 0xbb1   : > { %11914 = vmatpush1.bf16.msra.mxu1 %v17520_v60  ;;  %v17611_v28 = vld [vmem:[%s22923_s18] sm:$0xff]   ;;  %v17612_v60 = vld [vmem:[%s22923_s18 + $0x48] sm:$0xff]  }
 0xbb2   : > { %12602 = vmatpush1.bf16.msra.mxu0 %v17523_v53  ;;  %11915 = vmatprep.subr.bf16.mxu1 %v17528_v18  ;;  %v17613_v53 = vld [vmem:[%s22923_s18 + $0x8] sm:$0xff]   ;;  %v17615_v18 = vld [vmem:[%s22923_s18 + $0x10] sm:$0xff]  }
 0xbb3   : > { %12603 = vmatprep.subr.bf16.mxu0 %v17531_v41  ;;  %v17616_v41 = vld [vmem:[%s22923_s18 + $0x58] sm:$0xff]  }
 0xbb5   : > { %11916 = vmatpush1.bf16.msra.mxu1 %v17526_v37  ;;  %v17617_v37 = vld [vmem:[%s22923_s18 + $0x18] sm:$0xff]  }
 0xbb6   : > { %12604 = vmatpush1.bf16.msra.mxu0 %v17529_v57  ;;  %11917 = vmatprep.subr.bf16.mxu1 %v17534_v39  ;;  %v17618_v57 = vld [vmem:[%s22923_s18 + $0x60] sm:$0xff]  }
 0xbb7   : > { %12605 = vmatprep.subr.bf16.mxu0 %v17537_v55  ;;  %v17619_v39 = vld [vmem:[%s22923_s18 + $0x20] sm:$0xff]   ;;  %v17620_v55 = vld [vmem:[%s22923_s18 + $0x68] sm:$0xff]  }
 0xbb9   : > { %11918 = vmatpush1.bf16.msra.mxu1 %v17532_v11  ;;  %v17621_v11 = vld [vmem:[%s22923_s18 + $0x28] sm:$0xff]  }
 0xbba   : > { %12606 = vmatpush1.bf16.msra.mxu0 %v17535_v21  ;;  %11919 = vmatprep.subr.bf16.mxu1 %v17540_v62  ;;  %v17622_v21 = vld [vmem:[%s22923_s18 + $0x70] sm:$0xff]  }
 0xbbb   : > { %12607 = vmatprep.subr.bf16.mxu0 %v17543_v42  ;;  %v17623_v62 = vld [vmem:[%s22923_s18 + $0x30] sm:$0xff]   ;;  %v17624_v42 = vld [vmem:[%s22923_s18 + $0x78] sm:$0xff]  }
 0xbbd   : > { %11920 = vmatpush1.bf16.msra.mxu1 %v17538_v15  ;;  %v17625_v15 = vld [vmem:[%s22923_s18 + $0x38] sm:$0xff]  }
 0xbbe   : > { %12608 = vmatpush1.bf16.msra.mxu0 %v17541_v59  ;;  %11921 = vmatprep.subr.bf16.mxu1 %v17546_v31  ;;  %v17626_v59 = vld [vmem:[%s22923_s18 + $0xc0] sm:$0xff]  }
 0xbbf   : > { %12609 = vmatprep.subr.bf16.mxu0 %v17549_v40  ;;  %v6124_v31 = vld [vmem:[%s22920_s15] sm:$0xf]  ;;  %v22678_v40 = vsub.s32 2, %v19303_v61 }
 0xbc1   : > { %11922 = vmatpush1.bf16.msra.mxu1 %v17544_v38  ;;  %v22681_v38 = vsub.s32 3, %v19303_v61 }
 0xbc2   : > { %12610 = vmatpush1.bf16.msra.mxu0 %v17547_v52  ;;  %11923 = vmatprep.subr.bf16.mxu1 %v17552_v6  ;;  %v6129_v52 = vrot.slane %v6124_v31, %v19306_v17 }
 0xbc3   : > { %12611 = vmatprep.subr.bf16.mxu0 %v17555_v22  ;;  %v6137_v22 = vrot.slane %v6124_v31, %v22678_v40 }
 0xbc5   : > { %11924 = vmatpush1.bf16.msra.mxu1 %v17550_v16  ;;  %v6133_v16 = vrot.slane %v6124_v31, %v19312_v20 }
 0xbc6   : > { %12612 = vmatpush1.bf16.msra.mxu0 %v17553_v12  ;;  %11925 = vmatprep.subr.bf16.mxu1 %v17558_v4 }
 0xbc7   : > { %12613 = vmatprep.subr.bf16.mxu0 %v17561_v7  ;;  %v6141_v7 = vrot.slane %v6124_v31, %v22681_v38 }
 0xbc9   : > { %11926 = vmatpush1.bf16.msra.mxu1 %v17556_v30 }
 0xbca   : > { %12614 = vmatpush1.bf16.msra.mxu0 %v17559_v56  ;;  %11927 = vmatprep.subr.bf16.mxu1 %v17564_v19 }
 0xbcb   : > { %12615 = vmatprep.subr.bf16.mxu0 %v17567_v24 }
 0xbcd   : > { %11928 = vmatpush1.bf16.msra.mxu1 %v17562_v23 }
 0xbce   : > { %12616 = vmatpush1.bf16.msra.mxu0 %v17565_v2  ;;  %11929 = vmatprep.subr.bf16.mxu1 %v17570_v27 }
 0xbcf   : > { %12617 = vmatprep.subr.bf16.mxu0 %v17573_v25 }
 0xbd1   : > { %11930 = vmatpush1.bf16.msra.mxu1 %v17568_v10 }
 0xbd2   : > { %12618 = vmatpush1.bf16.msra.mxu0 %v17571_v48  ;;  %11931 = vmatprep.subr.bf16.mxu1 %v17576_v36 }
 0xbd3   : > { %12619 = vmatprep.subr.bf16.mxu0 %v17579_v63 }
 0xbd5   : > { %11932 = vmatpush1.bf16.msra.mxu1 %v17574_v43 }
 0xbd6   : > { %12620 = vmatpush1.bf16.msra.mxu0 %v17577_v51  ;;  %11933 = vmatprep.subr.bf16.mxu1 %v17582_v33 }
 0xbd7   : > { %12621 = vmatprep.subr.bf16.mxu0 %v17585_v49 }
 0xbd9   : > { %11934 = vmatpush1.bf16.msra.mxu1 %v17580_v47 }
 0xbda   : > { %12622 = vmatpush1.bf16.msra.mxu0 %v17583_v3  ;;  %11935 = vmatprep.subr.bf16.mxu1 %v17588_v58 }
 0xbdb   : > { %12623 = vmatprep.subr.bf16.mxu0 %v17591_v34 }
 0xbdd   : > { %11936 = vmatpush1.bf16.msra.mxu1 %v17586_v46 }
 0xbde   : > { %12624 = vmatpush1.bf16.msra.mxu0 %v17589_v9  ;;  %11937 = vmatprep.subr.bf16.mxu1 %v17594_v13 }
 0xbdf   : > { %12625 = vmatprep.subr.bf16.mxu0 %v17597_v44 }
 0xbe1   : > { %11938 = vmatpush1.bf16.msra.mxu1 %v17592_v45 }
 0xbe2   : > { %12626 = vmatpush1.bf16.msra.mxu0 %v17595_v14  ;;  %11939 = vmatprep.subr.bf16.mxu1 %v17600_v50 }
 0xbe3   : > { %12627 = vmatprep.subr.bf16.mxu0 %v17603_v5 }
 0xbe5   : > { %11940 = vmatpush1.bf16.msra.mxu1 %v17598_v0 }
 0xbe6   : > { %12628 = vmatpush1.bf16.msra.mxu0 %v17601_v29  ;;  %11941 = vmatprep.subr.bf16.mxu1 %v17606_v26 }
 0xbe7   : > { %12629 = vmatprep.subr.bf16.mxu0 %v17609_v54 }
 0xbe9   : > { %11942 = vmatpush1.bf16.msra.mxu1 %v17604_v35 }
 0xbea   : > { %12630 = vmatpush1.bf16.msra.mxu0 %v17607_v8  ;;  %15103 = vmatprep.subr.bf16.mxu1 %v17610_v32 }
 0xbec   : > { %11944 = vmatmul.mubr.bf16.vlgmr.msra.gmra.mrb[184].mxu1 %v20051_v1 }
 0xbed   : > { %12632 = vmatmul.mubr.bf16.vlgmr.msra.gmra.mrb[28].mxu0 %v20051_v1  ;;  %15104 = vmatpush3.bf16.msra.mxu1 %v17611_v28  ;;  %v17614_v1 = vld [vmem:[%s22923_s18 + $0x50] sm:$0xff]  }
 0xbee   : > { %15105 = vmatprep.subr.bf16.mxu1 %v17612_v60 }
 0xbf1   : > { %15106 = vmatpush3.bf16.msra.mxu1 %v17613_v53 }
 0xbf2   : > { %15107 = vmatprep.subr.bf16.mxu1 %v17614_v1 }
 0xbf5   : > { %15108 = vmatpush3.bf16.msra.mxu1 %v17615_v18 }
 0xbf6   : > { %15109 = vmatprep.subr.bf16.mxu1 %v17616_v41 }
 0xbf9   : > { %15110 = vmatpush3.bf16.msra.mxu1 %v17617_v37 }
 0xbfa   : > { %15111 = vmatprep.subr.bf16.mxu1 %v17618_v57 }
 0xbfd   : > { %15112 = vmatpush3.bf16.msra.mxu1 %v17619_v39 }
 0xbfe   : > { %15113 = vmatprep.subr.bf16.mxu1 %v17620_v55 }
 0xc01   : > { %15114 = vmatpush3.bf16.msra.mxu1 %v17621_v11 }
 0xc02   : > { %15115 = vmatprep.subr.bf16.mxu1 %v17622_v21 }
 0xc05   : > { %15116 = vmatpush3.bf16.msra.mxu1 %v17623_v62 }
 0xc06   : > { %15117 = vmatprep.subr.bf16.mxu1 %v17624_v42 }
 0xc09   : > { %15118 = vmatpush3.bf16.msra.mxu1 %v17625_v15 }
 0xc0a   : > { %15125 = vmatprep.subr.bf16.mxu1 %v17626_v59 }
 0xcbf   : > { %v11945_v6 = vpop.f32.mrb[184].mxu1 }
 0xcc0   : > { %v12633_v12 = vpop.f32.mrb[28].mxu0  ;;  %v11947_v4 = vpop.f32.mrb[185].mxu1  ;;  %v15352_v19 = vadd.f32 %v11945_v6, %v6129_v52 }
 0xcc1   : > { %v12635_v30 = vpop.f32.mrb[29].mxu0  ;;  %v11949_v56 = vpop.f32.mrb[186].mxu1  ;;  %v15356_v27 = vadd.f32 %v12633_v12, %v6137_v22  ;;  %v15353_v61 = vadd.f32 %v11947_v4, %v6133_v16 }
 0xcc2   : > { %v15354_v24 = vadd.f32 %v11949_v56, %v6129_v52  ;;  %v12637_v23 = vpop.f32.mrb[30].mxu0  ;;  %v11951_v2 = vpop.f32.mrb[187].mxu1  ;;  %v15357_v36 = vadd.f32 %v12635_v30, %v6141_v7 }
 0xcc3   : > { %v15358_v25 = vadd.f32 %v12637_v23, %v6137_v22  ;;  %v15355_v10 = vadd.f32 %v11951_v2, %v6133_v16  ;;  %v12639_v48 = vpop.f32.mrb[31].mxu0 }
 0xcc4   : > { %v12642_v63 = vadd.f32 %v15354_v24, %v15352_v19  ;;  %v15359_v43 = vadd.f32 %v12639_v48, %v6141_v7 }
 0xcc5   : > { %v12656_v51 = vadd.f32 %v15358_v25, %v15356_v27  ;;  %v12649_v33 = vadd.f32 %v15355_v10, %v15353_v61 }
 0xcc6   : > { %v12643_v49 = vrot.slane %v12642_v63, 4  ;;  %v12663_v47 = vadd.f32 %v15359_v43, %v15357_v36 }
 0xcc7   : > { %v12657_v3 = vrot.slane %v12656_v51, 4  ;;  %v12650_v58 = vrot.slane %v12649_v33, 4 }
 0xcc8   : > { %v12644_v34 = vadd.f32 %v12643_v49, %v12642_v63  ;;  %v12664_v46 = vrot.slane %v12663_v47, 4 }
 0xcc9   : > { %v12658_v9 = vadd.f32 %v12657_v3, %v12656_v51  ;;  %v12651_v13 = vadd.f32 %v12650_v58, %v12649_v33 }
 0xcca   : > { %v12645_v44 = vrot.slane %v12644_v34, 2  ;;  %v12665_v45 = vadd.f32 %v12664_v46, %v12663_v47 }
 0xccb   : > { %v12659_v14 = vrot.slane %v12658_v9, 2  ;;  %v12652_v50 = vrot.slane %v12651_v13, 2 }
 0xccc   : > { %v12646_v5 = vadd.f32 %v12645_v44, %v12644_v34  ;;  %v12666_v0 = vrot.slane %v12665_v45, 2 }
 0xccd   : > { %v12660_v29 = vadd.f32 %v12659_v14, %v12658_v9  ;;  %v12653_v26 = vadd.f32 %v12652_v50, %v12651_v13 }
 0xcce   : > { %v12647_v54 = vrot.slane %v12646_v5, 1  ;;  %v12667_v35 = vadd.f32 %v12666_v0, %v12665_v45 }
 0xccf   : > { %v12661_v8 = vrot.slane %v12660_v29, 1  ;;  %v12654_v32 = vrot.slane %v12653_v26, 1 }
 0xcd0   : > { %v12648_v28 = vadd.f32 %v12647_v54, %v12646_v5  ;;  %v12668_v60 = vrot.slane %v12667_v35, 1 }
 0xcd1   : > { %v12662_v53 = vadd.f32 %v12661_v8, %v12660_v29  ;;  %v12655_v1 = vadd.f32 %v12654_v32, %v12653_v26 }
 0xcd2   : > { %v12671_v18 = vmul.f32 0.0625, %v12648_v28  ;;  %v12669_v41 = vadd.f32 %v12668_v60, %v12667_v35  ;;  %v12739_v60 = vld [vmem:[%s22921_s16] sm:$0xf] }
 0xcd3   : > { %v12673_v37 = vmul.f32 0.0625, %v12662_v53  ;;  %v12672_v57 = vmul.f32 0.0625, %v12655_v1  ;;  %v12769_v53 = vld [vmem:[%s22922_s17] sm:$0xf]  ;;  %v12744_v1 = vrot.slane %v12739_v60, %v19306_v17 }
 0xcd4   : > { %v22687_v39 = vsub.f32 %v15352_v19, %v12671_v18  ;;  %v22689_v55 = vsub.f32 %v15354_v24, %v12671_v18  ;;  %v12674_v11 = vmul.f32 0.0625, %v12669_v41  ;;  %v12774_v41 = vrot.slane %v12769_v53, %v19306_v17 }
 0xcd5   : > { %v22691_v21 = vsub.f32 %v15356_v27, %v12673_v37  ;;  %v22693_v62 = vsub.f32 %v15358_v25, %v12673_v37  ;;  %v22695_v42 = vsub.f32 %v15353_v61, %v12672_v57  ;;  %v22697_v15 = vsub.f32 %v15355_v10, %v12672_v57 }
 0xcd6   : > { %v12683_v59 = vmul.f32 %v22687_v39, %v22687_v39  ;;  %v12687_v31 = vmul.f32 %v22689_v55, %v22689_v55  ;;  %v22703_v52 = vsub.f32 %v15357_v36, %v12674_v11  ;;  %v22705_v6 = vsub.f32 %v15359_v43, %v12674_v11 }
 0xcd7   : > { %v12685_v22 = vmul.f32 %v22691_v21, %v22691_v21  ;;  %v12689_v16 = vmul.f32 %v22693_v62, %v22693_v62  ;;  %v12684_v12 = vmul.f32 %v22695_v42, %v22695_v42  ;;  %v12688_v4 = vmul.f32 %v22697_v15, %v22697_v15 }
 0xcd8   : > { %v12691_v7 = vadd.f32 %v12687_v31, %v12683_v59  ;;  %v12686_v30 = vmul.f32 %v22703_v52, %v22703_v52  ;;  %v12690_v56 = vmul.f32 %v22705_v6, %v22705_v6  ;;  %v12752_v37 = vrot.slane %v12739_v60, %v22678_v40 }
 0xcd9   : > { %v12705_v19 = vadd.f32 %v12689_v16, %v12685_v22  ;;  %v12698_v24 = vadd.f32 %v12688_v4, %v12684_v12  ;;  %v12748_v57 = vrot.slane %v12739_v60, %v19312_v20  ;;  %v12782_v22 = vrot.slane %v12769_v53, %v22678_v40 }
 0xcda   : > { %v12692_v23 = vrot.slane %v12691_v7, 4  ;;  %v12712_v2 = vadd.f32 %v12690_v56, %v12686_v30  ;;  %v12756_v16 = vrot.slane %v12739_v60, %v22681_v38  ;;  %v12778_v30 = vrot.slane %v12769_v53, %v19312_v20  ;;  %v17632_v60 = vld [vmem:[%s22923_s18 + $0xd8] sm:$0xff]  }
 0xcdb   : > { %v12706_v27 = vrot.slane %v12705_v19, 4  ;;  %v12699_v61 = vrot.slane %v12698_v24, 4  ;;  %v12786_v56 = vrot.slane %v12769_v53, %v22681_v38  ;;  %v17633_v53 = vld [vmem:[%s22923_s18 + $0x98] sm:$0xff]  }
 0xcdc   : > { %v12693_v25 = vadd.f32 %v12692_v23, %v12691_v7  ;;  %v12713_v10 = vrot.slane %v12712_v2, 4 }
 0xcdd   : > { %v12707_v48 = vadd.f32 %v12706_v27, %v12705_v19  ;;  %v12700_v36 = vadd.f32 %v12699_v61, %v12698_v24 }
 0xcde   : > { %v12694_v63 = vrot.slane %v12693_v25, 2  ;;  %v12714_v43 = vadd.f32 %v12713_v10, %v12712_v2 }
 0xcdf   : > { %v12708_v51 = vrot.slane %v12707_v48, 2  ;;  %v12701_v33 = vrot.slane %v12700_v36, 2 }
 0xce0   : > { %v12695_v49 = vadd.f32 %v12694_v63, %v12693_v25  ;;  %v12715_v47 = vrot.slane %v12714_v43, 2 }
 0xce1   : > { %v12709_v3 = vadd.f32 %v12708_v51, %v12707_v48  ;;  %v12702_v58 = vadd.f32 %v12701_v33, %v12700_v36 }
 0xce2   : > { %v12696_v34 = vrot.slane %v12695_v49, 1  ;;  %v12716_v46 = vadd.f32 %v12715_v47, %v12714_v43 }
 0xce3   : > { %v12710_v9 = vrot.slane %v12709_v3, 1  ;;  %v12703_v13 = vrot.slane %v12702_v58, 1 }
 0xce4   : > { %v12697_v44 = vadd.f32 %v12696_v34, %v12695_v49  ;;  %v12717_v45 = vrot.slane %v12716_v46, 1 }
 0xce5   : > { %v12711_v14 = vadd.f32 %v12710_v9, %v12709_v3  ;;  %v12704_v50 = vadd.f32 %v12703_v13, %v12702_v58 }
 0xce6   : > { %v12719_v5 = vmul.f32 0.0625, %v12697_v44  ;;  %v12718_v0 = vadd.f32 %v12717_v45, %v12716_v46 }
 0xce7   : > { %v12721_v29 = vmul.f32 0.0625, %v12711_v14  ;;  %v12720_v26 = vmul.f32 0.0625, %v12704_v50 }
 0xce8   : > { %v12723_v54 = vadd.f32 1e-05, %v12719_v5  ;;  %v12722_v35 = vmul.f32 0.0625, %v12718_v0 }
 0xce9   : > { %v12725_v8 = vadd.f32 1e-05, %v12721_v29  ;;  %v12724_v32 = vadd.f32 1e-05, %v12720_v26  ;;  %v17627_v26 = vld [vmem:[%s22923_s18 + $0x80] sm:$0xff]  }
 0xcea   : > { %17648 = vrsqrt.f32 %v12723_v54  ;;  %v12726_v28 = vadd.f32 1e-05, %v12722_v35  ;;  %v17628_v35 = vld [vmem:[%s22923_s18 + $0xc8] sm:$0xff]  }
 0xceb   : > { %17650 = vrsqrt.f32 %v12725_v8  ;;  %v17629_v8 = vld [vmem:[%s22923_s18 + $0x88] sm:$0xff]  }
 0xcec   : > { %17652 = vrsqrt.f32 %v12724_v32  ;;  %v17630_v32 = vld [vmem:[%s22923_s18 + $0xd0] sm:$0xff]  }
 0xced   : > { %17654 = vrsqrt.f32 %v12726_v28  ;;  %v17631_v28 = vld [vmem:[%s22923_s18 + $0x90] sm:$0xff]  }
 0xcf4   : > { %v17649_v18 = vpop.eup %17648 }
 0xcf5   : > { %v17651_v11 = vpop.eup %17650  ;;  %v12731_v59 = vmul.f32 %v17649_v18, %v22687_v39  ;;  %v12735_v31 = vmul.f32 %v17649_v18, %v22689_v55  ;;  %v17635_v18 = vld [vmem:[%s22923_s18 + $0xa0] sm:$0xff]  }
 0xcf6   : > { %v17653_v12 = vpop.eup %17652  ;;  %v12733_v4 = vmul.f32 %v17651_v11, %v22691_v21  ;;  %v12737_v7 = vmul.f32 %v17651_v11, %v22693_v62  ;;  %v17639_v11 = vld [vmem:[%s22923_s18 + $0xb0] sm:$0xff]  }
 0xcf7   : > { %v17655_v19 = vpop.eup %17654  ;;  %v12761_v24 = vmul.f32 %v12744_v1, %v12731_v59  ;;  %v12765_v23 = vmul.f32 %v12744_v1, %v12735_v31  ;;  %v12732_v39 = vmul.f32 %v17653_v12, %v22695_v42  ;;  %v12736_v55 = vmul.f32 %v17653_v12, %v22697_v15  ;;  %v17634_v1 = vld [vmem:[%s22923_s18 + $0xe0] sm:$0xff]   ;;  %v17640_v59 = vld [vmem:[%s22923_s18 + $0xf8] sm:$0xff]  }
 0xcf8   : > { %v12763_v2 = vmul.f32 %v12752_v37, %v12733_v4  ;;  %v12767_v40 = vmul.f32 %v12752_v37, %v12737_v7  ;;  %v12734_v27 = vmul.f32 %v17655_v19, %v22703_v52  ;;  %v12738_v61 = vmul.f32 %v17655_v19, %v22705_v6  ;;  %v17637_v37 = vld [vmem:[%s22923_s18 + $0xa8] sm:$0xff]   ;;  %v17641_v31 = vld [vmem:[%s22923_s18 + $0xb8] sm:$0xff]   ;;  %v13234_v12 = vld [vmem:[%s22924_s19] sm:$0xff] }
 0xcf9   : > { %v12795_v21 = vadd.f32 %v12774_v41, %v12765_v23  ;;  %v12766_v25 = vmul.f32 %v12748_v57, %v12736_v55  ;;  %v12762_v62 = vmul.f32 %v12748_v57, %v12732_v39  ;;  %v12791_v10 = vadd.f32 %v12774_v41, %v12761_v24  ;;  %v17636_v41 = vld [vmem:[%s22923_s18 + $0xe8] sm:$0xff]   ;;  %v17638_v57 = vld [vmem:[%s22923_s18 + $0xf0] sm:$0xff]   ;;  %v13237_v39 = vld [vmem:[%s22924_s19 + $0x18] sm:$0xff] }
 0xcfa   : > { %v12797_v20 = vadd.f32 %v12782_v22, %v12767_v40  ;;  %v12768_v48 = vmul.f32 %v12756_v16, %v12738_v61  ;;  %v12764_v38 = vmul.f32 %v12756_v16, %v12734_v27  ;;  %v12793_v36 = vadd.f32 %v12782_v22, %v12763_v2  ;;  %v13250_v22 = vld [vmem:[%s22924_s19 + $0x80] sm:$0xff]  ;;  %v13251_v16 = vld [vmem:[%s22924_s19 + $0x88] sm:$0xff]  ;;  %v13236_v23 = vld [vmem:[%s22924_s19 + $0x10] sm:$0xff] }
 0xcfb   : > { %v12803_v63 = vmul.f32 0.2, %v12795_v21  ;;  %v12792_v43 = vadd.f32 %v12778_v30, %v12762_v62  ;;  %v12796_v51 = vadd.f32 %v12778_v30, %v12766_v25  ;;  %v12799_v42 = vmul.f32 0.2, %v12791_v10  ;;  %v13235_v7 = vld [vmem:[%s22924_s19 + $0x8] sm:$0xff]  ;;  %v13252_v30 = vld [vmem:[%s22924_s19 + $0x90] sm:$0xff] }
 0xcfc   : > { %v12805_v33 = vmul.f32 0.2, %v12797_v20  ;;  %v12794_v15 = vadd.f32 %v12786_v56, %v12764_v38  ;;  %v12798_v49 = vadd.f32 %v12786_v56, %v12768_v48  ;;  %v12801_v47 = vmul.f32 0.2, %v12793_v36  ;;  %v13253_v56 = vld [vmem:[%s22924_s19 + $0x98] sm:$0xff]  ;;  %v13254_v55 = vld [vmem:[%s22924_s19 + $0xa0] sm:$0xff] }
 0xcfd   : > { %v12800_v3 = vmul.f32 0.2, %v12792_v43  ;;  %v12804_v52 = vmul.f32 0.2, %v12796_v51  ;;  %v12807_v58 = vmax.f32 %v12791_v10, %v12799_v42  ;;  %v12811_v6 = vmax.f32 %v12795_v21, %v12803_v63  ;;  %v13255_v2 = vld [vmem:[%s22924_s19 + $0xa8] sm:$0xff]  ;;  %v13238_v61 = vld [vmem:[%s22924_s19 + $0x20] sm:$0xff] }
 0xcfe   : > { %v12802_v34 = vmul.f32 0.2, %v12794_v15  ;;  %v12806_v46 = vmul.f32 0.2, %v12798_v49  ;;  %v12809_v9 = vmax.f32 %v12793_v36, %v12801_v47  ;;  %v12813_v13 = vmax.f32 %v12797_v20, %v12805_v33  ;;  %v13239_v21 = vld [vmem:[%s22924_s19 + $0x28] sm:$0xff]  ;;  %v13256_v25 = vld [vmem:[%s22924_s19 + $0xb0] sm:$0xff] }
 0xcff   : > { %v12808_v44 = vmax.f32 %v12792_v43, %v12800_v3  ;;  %v12812_v45 = vmax.f32 %v12796_v51, %v12804_v52  ;;  %v12815_v14 = vpack.c.bf16 %v12811_v6, %v12807_v58  ;;  %v15312_v4 = vpack.c.bf16 %v13251_v16, %v13250_v22  ;;  %v13257_v62 = vld [vmem:[%s22924_s19 + $0xb8] sm:$0xff]  ;;  %v13240_v48 = vld [vmem:[%s22924_s19 + $0x30] sm:$0xff]  ;;  %v13259_v47 = vld [vmem:[%s22924_s19 + $0xc8] sm:$0xff] }
 0xd00   : > { %v12810_v50 = vmax.f32 %v12794_v15, %v12802_v34  ;;  %v12814_v5 = vmax.f32 %v12798_v49, %v12806_v46  ;;  %v12817_v0 = vpack.c.bf16 %v12813_v13, %v12809_v9  ;;  %v15314_v19 = vpack.c.bf16 %v13235_v7, %v13234_v12  ;;  %v13241_v38 = vld [vmem:[%s22924_s19 + $0x38] sm:$0xff]  ;;  %v13258_v49 = vld [vmem:[%s22924_s19 + $0xc0] sm:$0xff]  ;;  %v13243_v58 = vld [vmem:[%s22924_s19 + $0x48] sm:$0xff] }
 0xd01   : > { %v12816_v29 = vpack.c.bf16 %v12812_v45, %v12808_v44  ;;  %v15316_v24 = vpack.c.bf16 %v13253_v56, %v13252_v30  ;;  %v15318_v40 = vpack.c.bf16 %v13237_v39, %v13236_v23  ;;  %v15320_v27 = vpack.c.bf16 %v13255_v2, %v13254_v55  ;;  %v13242_v52 = vld [vmem:[%s22924_s19 + $0x40] sm:$0xff]  ;;  %v13260_v9 = vld [vmem:[%s22924_s19 + $0xd0] sm:$0xff]  ;;  %v13261_v13 = vld [vmem:[%s22924_s19 + $0xd8] sm:$0xff] }
 0xd02   : > { %v12818_v54 = vpack.c.bf16 %v12814_v5, %v12810_v50  ;;  %v15322_v10 = vpack.c.bf16 %v13239_v21, %v13238_v61  ;;  %v15324_v20 = vpack.c.bf16 %v13257_v62, %v13256_v25  ;;  %v15326_v36 = vpack.c.bf16 %v13241_v38, %v13240_v48  ;;  %v13244_v50 = vld [vmem:[%s22924_s19 + $0x50] sm:$0xff]  ;;  %v13245_v5 = vld [vmem:[%s22924_s19 + $0x58] sm:$0xff] }
 0xd03   : > { %13107 = vmatprep.mubr.bf16.mxu1 %v12816_v29  ;;  %v15328_v3 = vpack.c.bf16 %v13259_v47, %v13258_v49  ;;  %v15330_v6 = vpack.c.bf16 %v13243_v58, %v13242_v52  ;;  %v15334_v29 = vpack.c.bf16 %v13245_v5, %v13244_v50  ;;  %v13248_v12 = vld [vmem:[%s22924_s19 + $0x70] sm:$0xff] }
 0xd04   : > { %13108 = vmatmul.mubr.bf16.vlgmr.msra.gmra.mrb[188].mxu1 %v12815_v14  ;;  %v15332_v14 = vpack.c.bf16 %v13261_v13, %v13260_v9 }
 0xd05   : > { %15126 = vmatpush3.bf16.msra.mxu1 %v17627_v26  ;;  %13148 = vmatprep.mubr.bf16.mxu1 %v12818_v54 }
 0xd06   : > { %15127 = vmatprep.subr.bf16.mxu1 %v17628_v35 }
 0xd09   : > { %15128 = vmatpush3.bf16.msra.mxu1 %v17629_v8  ;;  %v13262_v8 = vld [vmem:[%s22924_s19 + $0xe0] sm:$0xff] }
 0xd0a   : > { %15129 = vmatprep.subr.bf16.mxu1 %v17630_v32 }
 0xd0d   : > { %15130 = vmatpush3.bf16.msra.mxu1 %v17631_v28 }
 0xd0e   : > { %15131 = vmatprep.subr.bf16.mxu1 %v17632_v60 }
 0xd11   : > { %15132 = vmatpush3.bf16.msra.mxu1 %v17633_v53 }
 0xd12   : > { %15133 = vmatprep.subr.bf16.mxu1 %v17634_v1  ;;  %v13263_v1 = vld [vmem:[%s22924_s19 + $0xe8] sm:$0xff] }
 0xd13   : > { %v15336_v16 = vpack.c.bf16 %v13263_v1, %v13262_v8 }
 0xd15   : > { %15134 = vmatpush3.bf16.msra.mxu1 %v17635_v18  ;;  %v13246_v18 = vld [vmem:[%s22924_s19 + $0x60] sm:$0xff] }
 0xd16   : > { %15135 = vmatprep.subr.bf16.mxu1 %v17636_v41  ;;  %v13247_v41 = vld [vmem:[%s22924_s19 + $0x68] sm:$0xff] }
 0xd17   : > { %v15338_v56 = vpack.c.bf16 %v13247_v41, %v13246_v18 }
 0xd19   : > { %15136 = vmatpush3.bf16.msra.mxu1 %v17637_v37  ;;  %v13264_v37 = vld [vmem:[%s22924_s19 + $0xf0] sm:$0xff] }
 0xd1a   : > { %15137 = vmatprep.subr.bf16.mxu1 %v17638_v57  ;;  %v13265_v57 = vld [vmem:[%s22924_s19 + $0xf8] sm:$0xff] }
 0xd1d   : > { %15138 = vmatpush3.bf16.msra.mxu1 %v17639_v11 }
 0xd1e   : > { %15139 = vmatprep.subr.bf16.mxu1 %v17640_v59 }
 0xd21   : > { %15140 = vmatpush3.bf16.msra.mxu1 %v17641_v31 }
 0xd22   : > { %15313 = vmatprep.subr.bf16.mxu1 %v15312_v4  ;;  %v13249_v4 = vld [vmem:[%s22924_s19 + $0x78] sm:$0xff] }
 0xd23   : > { %v15342_v2 = vpack.c.bf16 %v13249_v4, %v13248_v12 }
 0xd24   : > { %13149 = vmatmul.mubr.bf16.vlgmr.msra.gmra.mrb[192].mxu1 %v12817_v0 }
 0xd25   : > { %15315 = vmatpush3.bf16.msra.mxu1 %v15314_v19  ;;  %v15340_v19 = vpack.c.bf16 %v13265_v57, %v13264_v37 }
 0xd26   : > { %15317 = vmatprep.subr.bf16.mxu1 %v15316_v24 }
 0xd29   : > { %15319 = vmatpush3.bf16.msra.mxu1 %v15318_v40 }
 0xd2a   : > { %15321 = vmatprep.subr.bf16.mxu1 %v15320_v27 }
 0xd2d   : > { %15323 = vmatpush3.bf16.msra.mxu1 %v15322_v10  ;;  %v13266_v10 = vld [vmem:[#allocation2] sm:$0x1] }
 0xd2e   : > { %15325 = vmatprep.subr.bf16.mxu1 %v15324_v20 }
 0xd31   : > { %15327 = vmatpush3.bf16.msra.mxu1 %v15326_v36 }
 0xd32   : > { %15329 = vmatprep.subr.bf16.mxu1 %v15328_v3 }
 0xd35   : > { %15331 = vmatpush3.bf16.msra.mxu1 %v15330_v6 }
 0xd36   : > { %15333 = vmatprep.subr.bf16.mxu1 %v15332_v14 }
 0xd39   : > { %15335 = vmatpush3.bf16.msra.mxu1 %v15334_v29 }
 0xd3a   : > { %15337 = vmatprep.subr.bf16.mxu1 %v15336_v16 }
 0xd3d   : > { %15339 = vmatpush3.bf16.msra.mxu1 %v15338_v56 }
 0xd3e   : > { %15341 = vmatprep.subr.bf16.mxu1 %v15340_v19 }
 0xd41   : > { %15343 = vmatpush3.bf16.msra.mxu1 %v15342_v2 }
 0xdd7   : > { %v15119_v63 = vpop.f32.mrb[188].mxu1 }
 0xdd8   : > { %v15120_v43 = vpop.f32.mrb[189].mxu1 }
 0xdd9   : > { %v15121_v51 = vadd.f32 %v15120_v43, %v15119_v63  ;;  %v15122_v42 = vpop.f32.mrb[190].mxu1 }
 0xdda   : > { %v15123_v33 = vpop.f32.mrb[191].mxu1 }
 0xddb   : > { %v15124_v15 = vadd.f32 %v15123_v33, %v15122_v42 }
 0xdf7   : > { %v15141_v34 = vpop.f32.mrb[192].mxu1 }
 0xdf8   : > { %v15142_v46 = vpop.f32.mrb[193].mxu1 }
 0xdf9   : > { %v15143_v44 = vadd.f32 %v15142_v46, %v15141_v34  ;;  %v15144_v45 = vpop.f32.mrb[194].mxu1 }
 0xdfa   : > { %v15145_v0 = vpop.f32.mrb[195].mxu1 }
 0xdfb   : > { %v22858_v26 = vadd.f32 %v15143_v44, %v15121_v51  ;;  %v15146_v54 = vadd.f32 %v15145_v0, %v15144_v45 }
 0xdfd   : > { %v13154_v35 = vadd.f32 %v15146_v54, %v15124_v15  ;;  %v13162_v32 = vrot.slane %v22858_v26, 2  ;;  %v13158_v60 = vrot.slane %v22858_v26, 1  ;;  %v13170_v7 = vrot.slane %v22858_v26, 4 }
 0xdfe   : > { %v13166_v30 = vrot.slane %v22858_v26, 3  ;;  %v13178_v40 = vrot.slane %v22858_v26, 6  ;;  %v13174_v27 = vrot.slane %v22858_v26, 5  ;;  %v13182_v62 = vrot.slane %v22858_v26, 7 }
 0xdff   : > { %v13191_v28 = vrot.slane %v13154_v35, 2  ;;  %v13187_v53 = vrot.slane %v13154_v35, 1  ;;  %v13199_v31 = vrot.slane %v13154_v35, 4  ;;  %v13195_v22 = vrot.slane %v13154_v35, 3 }
 0xe00   : > { %v13207_v24 = vrot.slane %v13154_v35, 6  ;;  %v13203_v55 = vrot.slane %v13154_v35, 5  ;;  %v13211_v25 = vrot.slane %v13154_v35, 7 }
 0xe01   : > { %v15527_v11 = vpack.i.bf16 %v13162_v32, %v13191_v28  ;;  %v15522_v59 = vpack.i.bf16 %v13158_v60, %v13187_v53  ;;  %v15537_v23 = vpack.i.bf16 %v13170_v7, %v13199_v31  ;;  %v15532_v39 = vpack.i.bf16 %v13166_v30, %v13195_v22 }
 0xe02   : > { %v15547_v61 = vpack.i.bf16 %v13178_v40, %v13207_v24  ;;  %v15542_v21 = vpack.i.bf16 %v13174_v27, %v13203_v55  ;;  %v15552_v20 = vpack.i.bf16 %v13182_v62, %v13211_v25 }
 0xe03   : > { %15528 = vrot.lane.b32.xlu1 %v15527_v11, %s17671_s30  ;;  %15523 = vrot.lane.b32.xlu0 %v15522_v59, %s17672_s5 }
 0xe07   : > { %15538 = vrot.lane.b32.xlu1 %v15537_v23, %s22943_s22  ;;  %15533 = vrot.lane.b32.xlu0 %v15532_v39, %s17673_s1 }
 0xe0b   : > { %15548 = vrot.lane.b32.xlu1 %v15547_v61, %s17674_s24  ;;  %15543 = vrot.lane.b32.xlu0 %v15542_v21, %s17675_s2 }
 0xe0f   : > { %15553 = vrot.lane.b32.xlu0 %v15552_v20, %s17676_s25  ;;  %13269 = vperm.xlu1 %15557, %v13266_v10  }
 0xe75   : > { %v15529_v48 = vpop.permute.xlu1 %15528  ;;  %v15524_v38 = vpop.permute.xlu0 %15523 }
 0xe76   : > { %v15526_v36 = vunpack.i.h.bf16 %v15524_v38  ;;  %v15525_v63 = vunpack.i.l.bf16 %v15524_v38  ;;  %v15531_v43 = vunpack.i.h.bf16 %v15529_v48  ;;  %v15530_v51 = vunpack.i.l.bf16 %v15529_v48 }
 0xe78   : > { %v13216_v42 = vsel %vm13215_vm8, %v22858_v26, %v15526_v36  ;;  %v13227_v33 = vsel %vm13215_vm8, %v13154_v35, %v15525_v63 }
 0xe79   : > { %v15539_v15 = vpop.permute.xlu1 %15538  ;;  %v15534_v49 = vpop.permute.xlu0 %15533  ;;  %v13218_v6 = vsel %vm13217_vm9, %v13216_v42, %v15531_v43  ;;  %v13228_v34 = vsel %vm13217_vm9, %v13227_v33, %v15530_v51 }
 0xe7a   : > { %v15536_v47 = vunpack.i.h.bf16 %v15534_v49  ;;  %v15535_v3 = vunpack.i.l.bf16 %v15534_v49  ;;  %v15541_v52 = vunpack.i.h.bf16 %v15539_v15  ;;  %v15540_v58 = vunpack.i.l.bf16 %v15539_v15 }
 0xe7c   : > { %v13219_v46 = vsel %vm704_vm0, %v13218_v6, %v15536_v47  ;;  %v13229_v9 = vsel %vm704_vm0, %v13228_v34, %v15535_v3 }
 0xe7d   : > { %v15549_v13 = vpop.permute.xlu1 %15548  ;;  %v15544_v44 = vpop.permute.xlu0 %15543  ;;  %v13220_v0 = vsel %vm1527_vm3, %v13219_v46, %v15541_v52  ;;  %v13230_v29 = vsel %vm1527_vm3, %v13229_v9, %v15540_v58 }
 0xe7e   : > { %v15546_v45 = vunpack.i.h.bf16 %v15544_v44  ;;  %v15545_v14 = vunpack.i.l.bf16 %v15544_v44  ;;  %v15551_v50 = vunpack.i.h.bf16 %v15549_v13  ;;  %v15550_v5 = vunpack.i.l.bf16 %v15549_v13 }
 0xe80   : > { %v13222_v26 = vsel %vm13221_vm10, %v13220_v0, %v15546_v45  ;;  %v13231_v54 = vsel %vm13221_vm10, %v13230_v29, %v15545_v14 }
 0xe81   : > { %v15554_v35 = vpop.permute.xlu0 %15553  ;;  %v13232_v28 = vsel %vm13223_vm11, %v13231_v54, %v15550_v5  ;;  %v13224_v60 = vsel %vm13223_vm11, %v13222_v26, %v15551_v50 }
 0xe82   : > { %v15556_v8 = vunpack.i.h.bf16 %v15554_v35  ;;  %v15555_v32 = vunpack.i.l.bf16 %v15554_v35 }
 0xe84   : > { %v13233_v53 = vsel %vm13225_vm12, %v13232_v28, %v15555_v32  ;;  %v13226_v1 = vsel %vm13225_vm12, %v13224_v60, %v15556_v8 }
 0xe85   : > { %13340 = vmatprep.mubr.f32.mxu1 %v13233_v53 }
 0xe86   : > { %13341 = vmatmul.mubr.f32.vlgmr.msra.gmra.mrb[196].mxu1 %v13226_v1 }
 0xe8e   : > { %v13270_v18 = vpop.permute.xlu1 %13269 }
 0xe8f   : > { %v13275_v37 = vrot.slane %v13270_v18, %v19306_v17 }
 0xf59   : > { %v15179_v41 = vpop.f32.mrb[196].mxu1 }
 0xf5a   : > { %v15180_v57 = vpop.f32.mrb[197].mxu1 }
 0xf5b   : > { %v15181_v11 = vadd.f32 %v15180_v57, %v15179_v41 }
 0xf5d   : > { %v13343_v59 = vadd.f32 %v15181_v11, %v13275_v37 }
 0xf5f   : > { %v13346_v31 = vsub.f32 0.0, %v13343_v59 }
 0xf61   : > { %v13347_v22 = vmul.f32 1.442695, %v13346_v31 }
 0xf63   : > { %17656 = vpow2.f32 %v13347_v22 }
 0xf6d   : > { %v17657_v16 = vpop.eup %17656 }
 0xf6e   : > { %v13349_v12 = vadd.f32 1.0, %v17657_v16 }
 0xf70   : > { %17658 = vrcp.f32 %v13349_v12 }
 0xf7a   : > { %v17659_v4 = vpop.eup %17658 }
 0xf7b   : > { %13353 = vst.msk [vmem:[%s654_s0] sm:$0x1] %vm13352_vm13, %v17659_v4 }
 0xf7c PF: > { %s33_s26 = sadd.s32 1, %s17666_s26  }
 0xf7d   : > { %p30_p4 = scmp.ge.s32.totalorder %s33_s26, 4  }
 0xf7f   :  { %32 = sbr.rel (!%p30_p4) target bundleno = 7 (0x7), region = 134 }

</bundles_post_ra>
